<compile_context>
chip_gen: v7x
topology: tpu7x:2x2x1
jax: 0.10.0
libtpu: 0.0.40
codegen_flags: <defaults>
</compile_context>

<pallas_src>
import functools

import jax
import jax.numpy as jnp
from jax.experimental import pallas as pl
from jax.experimental.pallas import tpu as pltpu

LATENT_DIM = 100
NUM_CLASSES = 10
OUT_CHANNELS = 3
BN_EPS = 1e-5

# v7x has 64 MiB VMEM per TensorCore -> keep the scoped limit safely below it
# (also fine on v5e / v6e which have 128 MiB).
VMEM_LIMIT = 48 * 1024 * 1024


# --------------------------------------------------------------------------
# Pallas kernels
# --------------------------------------------------------------------------
def _fc1_t1_kernel(z_ref, wf_ref, bf_ref, w1_ref, o_ref):
    """Fused fc1 (Linear) + t1 (ConvTranspose2d on a 1x1 input == matmul)."""
    h = jnp.dot(z_ref[...], wf_ref[...], preferred_element_type=jnp.float32)
    h = h + bf_ref[...]                      # fc1 bias (no activation in ref)
    o_ref[...] = jnp.dot(h.astype(jnp.bfloat16), w1_ref[...],
                         preferred_element_type=jnp.float32)


def _gemm_kernel(x_ref, w_ref, o_ref):
    """One M-tile of the scatter-deconv GEMM: bf16 x bf16 -> f32."""
    o_ref[...] = jnp.dot(x_ref[...], w_ref[...],
                         preferred_element_type=jnp.float32)


def _bn_relu_kernel(x_ref, cb_ref, g_ref, b_ref, o_ref, *, eps):
    """(x + conv_bias) -> BatchNorm(batch stats, biased var) -> ReLU."""
    x = x_ref[...] + cb_ref[...]
    mean = jnp.mean(x, axis=0, keepdims=True)
    var = jnp.mean(jnp.square(x - mean), axis=0, keepdims=True)
    y = (x - mean) * jax.lax.rsqrt(var + eps)
    y = y * g_ref[...] + b_ref[...]
    o_ref[...] = jnp.maximum(y, 0.0).astype(o_ref.dtype)


def _bias_tanh_kernel(x_ref, b_ref, o_ref):
    o_ref[...] = jnp.tanh(x_ref[...] + b_ref[...])


# --------------------------------------------------------------------------
# Pallas wrappers
# --------------------------------------------------------------------------
def pallas_fc1_t1(z, wf, bf, w1):
    """z (B, Kz) -> fc1 -> t1 tap contributions (B, 4*4*192)."""
    B = z.shape[0]
    K0 = wf.shape[0]                     # fc1 input dim, pre-padded to 128
    if z.shape[1] < K0:
        z = jnp.pad(z, ((0, 0), (0, K0 - z.shape[1])))
    K1 = wf.shape[1]
    N = w1.shape[1]
    return pl.pallas_call(
        _fc1_t1_kernel,
        out_shape=jax.ShapeDtypeStruct((B, N), jnp.float32),
        grid=(1,),
        in_specs=[
            pl.BlockSpec((B, K0), lambda i: (0, 0)),
            pl.BlockSpec((K0, K1), lambda i: (0, 0)),
            pl.BlockSpec((1, K1), lambda i: (0, 0)),
            pl.BlockSpec((K1, N), lambda i: (0, 0)),
        ],
        out_specs=pl.BlockSpec((B, N), lambda i: (0, 0)),
        compiler_params=pltpu.CompilerParams(vmem_limit_bytes=VMEM_LIMIT),
    )(z.astype(jnp.bfloat16), wf, bf, w1)


def pallas_gemm(x, w, tm=256):
    """(M, K) @ (K, N) in bf16 with f32 accumulation, tiled over M.

    The weight block stays resident; the M axis is a parallel grid so the
    kernel pipelines DMA with compute and shards across TensorCores."""
    M, K = x.shape
    N = w.shape[1]
    x = x.astype(jnp.bfloat16)
    if M <= tm:
        bm, Mp = M, M
    else:
        bm = tm
        Mp = ((M + tm - 1) // tm) * tm
        if Mp != M:
            x = jnp.pad(x, ((0, Mp - M), (0, 0)))
    grid_m = Mp // bm
    out = pl.pallas_call(
        _gemm_kernel,
        out_shape=jax.ShapeDtypeStruct((Mp, N), jnp.float32),
        grid=(grid_m,),
        in_specs=[
            pl.BlockSpec((bm, K), lambda i: (i, 0)),
            pl.BlockSpec((K, N), lambda i: (0, 0)),
        ],
        out_specs=pl.BlockSpec((bm, N), lambda i: (i, 0)),
        compiler_params=pltpu.CompilerParams(
            dimension_semantics=("parallel",),
            vmem_limit_bytes=VMEM_LIMIT),
    )(x, w)
    return out if Mp == M else out[:M]


def pallas_bn_relu(x, conv_b, gamma, beta, eps=BN_EPS):
    """conv-bias + BatchNorm (training-mode batch stats) + ReLU on (M, C)."""
    M, C = x.shape
    return pl.pallas_call(
        functools.partial(_bn_relu_kernel, eps=eps),
        out_shape=jax.ShapeDtypeStruct((M, C), jnp.bfloat16),
        grid=(1,),
        in_specs=[pl.BlockSpec((M, C), lambda i: (0, 0)),
                  pl.BlockSpec((1, C), lambda i: (0, 0)),
                  pl.BlockSpec((1, C), lambda i: (0, 0)),
                  pl.BlockSpec((1, C), lambda i: (0, 0))],
        out_specs=pl.BlockSpec((M, C), lambda i: (0, 0)),
        compiler_params=pltpu.CompilerParams(vmem_limit_bytes=VMEM_LIMIT),
    )(x, conv_b, gamma, beta)


def pallas_bias_tanh(x, b_row):
    """tanh(x + bias) on a lane-dense (M, N) layout."""
    M, N = x.shape
    return pl.pallas_call(
        _bias_tanh_kernel,
        out_shape=jax.ShapeDtypeStruct((M, N), jnp.float32),
        grid=(1,),
        in_specs=[pl.BlockSpec((M, N), lambda i: (0, 0)),
                  pl.BlockSpec((1, N), lambda i: (0, 0))],
        out_specs=pl.BlockSpec((M, N), lambda i: (0, 0)),
        compiler_params=pltpu.CompilerParams(vmem_limit_bytes=VMEM_LIMIT),
    )(x, b_row)


# --------------------------------------------------------------------------
# Phase-decomposed overlap-add for ConvTranspose2d(k=4, stride=2, pad=1)
# --------------------------------------------------------------------------
def _deconv_overlap_add(c):
    """c: (B, H, W, 4, 4, Cp) per-input-pixel tap contributions
    (c[b,ih,iw,kh,kw,:] scatters to output (2*ih-1+kh, 2*iw-1+kw)).
    Returns the assembled output (B, 2H, 2W, Cp).  Pure layout plumbing."""
    B, H, W, _, _, Cp = c.shape
    cp = jnp.pad(c, ((0, 0), (1, 1), (1, 1), (0, 0), (0, 0), (0, 0)))
    rows = []
    for ph in range(2):
        cols = []
        for pw in range(2):
            acc = jnp.zeros((B, H, W, Cp), c.dtype)
            for dh in range(2):
                for dw in range(2):
                    kh = 3 - 2 * dh - ph
                    kw = 3 - 2 * dw - pw
                    acc = acc + cp[:, ph + dh:ph + dh + H,
                                   pw + dw:pw + dw + W, kh, kw, :]
            cols.append(acc)
        rows.append(jnp.stack(cols, axis=0))          # (2, B, H, W, Cp)
    y = jnp.stack(rows, axis=0)                       # (ph, pw, B, H, W, Cp)
    y = jnp.transpose(y, (2, 3, 0, 4, 1, 5))          # (B, H, ph, W, pw, Cp)
    return y.reshape(B, 2 * H, 2 * W, Cp)


# --------------------------------------------------------------------------
# One-time parameter preprocessing (GEMM-ready, bf16, lane-padded layouts)
# --------------------------------------------------------------------------
def _deconv_weight_mat(w_t, pad_cout_to=None):
    """PyTorch ConvTranspose2d weight (Cin, Cout, 4, 4) -> bf16 GEMM matrix
    (Cin, 4*4*Cout[_padded]) with column order (kh, kw, cout)."""
    Cin, Cout, K, _ = w_t.shape
    if pad_cout_to is not None and pad_cout_to > Cout:
        w_t = jnp.pad(w_t, ((0, 0), (0, pad_cout_to - Cout), (0, 0), (0, 0)))
        Cout = pad_cout_to
    m = jnp.transpose(w_t, (0, 2, 3, 1)).reshape(Cin, K * K * Cout)
    return m.astype(jnp.bfloat16)


def prepare_params(raw):
    f32, bf16 = jnp.float32, jnp.bfloat16
    row = lambda v: v.reshape(1, -1).astype(f32)

    k_in = raw["fc1_w"].shape[1]                        # 110
    k_pad = ((k_in + 127) // 128) * 128                 # 128
    wf = jnp.pad(raw["fc1_w"].T, ((0, k_pad - k_in), (0, 0))).astype(bf16)

    b4 = jnp.pad(raw["t4_b"], (0, 8 - OUT_CHANNELS))    # pad Cout 3 -> 8

    return {
        "wf": wf,                                       # (128, 384)
        "bf": row(raw["fc1_b"]),
        "w1": _deconv_weight_mat(raw["t1_w"]),          # (384, 3072)
        "cb1": row(raw["t1_b"]),
        "g1": row(raw["bn1_g"]), "b1": row(raw["bn1_b"]),
        "w2": _deconv_weight_mat(raw["t2_w"]),          # (192, 1536)
        "cb2": row(raw["t2_b"]),
        "g2": row(raw["bn2_g"]), "b2": row(raw["bn2_b"]),
        "w3": _deconv_weight_mat(raw["t3_w"]),          # (96, 768)
        "cb3": row(raw["t3_b"]),
        "g3": row(raw["bn3_g"]), "b3": row(raw["bn3_b"]),
        "w4": _deconv_weight_mat(raw["t4_w"], pad_cout_to=8),   # (48, 128)
        "b4_row": jnp.tile(b4, 32).reshape(1, 32 * 8).astype(f32),
    }


# --------------------------------------------------------------------------
# Generator forward
# --------------------------------------------------------------------------
def generator_forward(p, z):
    B = z.shape[0]

    # fc1 + t1 (deconv on 1x1 input) fused -> tap contributions (B, 4*4*192)
    c1 = pallas_fc1_t1(z, p["wf"], p["bf"], p["w1"])
    # BN1 + ReLU per channel over all B*4*4 output pixels; rows = (b, oh, ow)
    x1 = pallas_bn_relu(c1.reshape(B * 16, 192), p["cb1"], p["g1"], p["b1"])

    # t2: (B,4,4,192) -> (B,8,8,96)  scatter GEMM + overlap-add
    c2 = pallas_gemm(x1, p["w2"])                               # (B*16, 1536)
    y2 = _deconv_overlap_add(c2.reshape(B, 4, 4, 4, 4, 96))     # (B, 8, 8, 96)
    x2 = pallas_bn_relu(y2.reshape(B * 64, 96), p["cb2"], p["g2"], p["b2"])

    # t3: (B,8,8,96) -> (B,16,16,48)
    c3 = pallas_gemm(x2, p["w3"])                               # (B*64, 768)
    y3 = _deconv_overlap_add(c3.reshape(B, 8, 8, 4, 4, 48))     # (B, 16, 16, 48)
    x3 = pallas_bn_relu(y3.reshape(B * 256, 48), p["cb3"], p["g3"], p["b3"])

    # t4: (B,16,16,48) -> (B,32,32,3), channels padded 3->8 for lane density
    c4 = pallas_gemm(x3, p["w4"])                               # (B*256, 128)
    y4 = _deconv_overlap_add(c4.reshape(B, 16, 16, 4, 4, 8))    # (B, 32, 32, 8)
    out = pallas_bias_tanh(y4.reshape(B * 32, 32 * 8), p["b4_row"])
    out = out.reshape(B, 32, 32, 8)[..., :OUT_CHANNELS]

    return jnp.transpose(out, (0, 3, 1, 2))                     # NCHW (B,3,32,32)


# --------------------------------------------------------------------------
# Deterministic parameter init (synthetic weights; no checkpoint loading)
# --------------------------------------------------------------------------
def init_params(key):
    ks = jax.random.split(key, 16)
    n = lambda k, shp, s=0.05: (jax.random.normal(k, shp, jnp.float32) * s)
    return {
        "fc1_w": n(ks[0], (384, LATENT_DIM + NUM_CLASSES)),
        "fc1_b": n(ks[1], (384,)),
        "t1_w": n(ks[2], (384, 192, 4, 4)),
        "t1_b": n(ks[3], (192,)),
        "bn1_g": 1.0 + n(ks[4], (192,)),
        "bn1_b": n(ks[5], (192,)),
        "t2_w": n(ks[6], (192, 96, 4, 4)),
        "t2_b": n(ks[7], (96,)),
        "bn2_g": 1.0 + n(ks[8], (96,)),
        "bn2_b": n(ks[9], (96,)),
        "t3_w": n(ks[10], (96, 48, 4, 4)),
        "t3_b": n(ks[11], (48,)),
        "bn3_g": 1.0 + n(ks[12], (48,)),
        "bn3_b": n(ks[13], (48,)),
        "t4_w": n(ks[14], (48, OUT_CHANNELS, 4, 4)),
        "t4_b": n(ks[15], (OUT_CHANNELS,)),
    }


if __name__ == "__main__":
    key = jax.random.PRNGKey(0)
    pkey, zkey = jax.random.split(key)
    raw = init_params(pkey)
    params = prepare_params(raw)      # one-time weight re-layout (hoisted)

    B = 2
    z = jax.random.normal(zkey, (B, LATENT_DIM + NUM_CLASSES), jnp.float32)

    fwd = jax.jit(generator_forward)
    out = fwd(params, z)
    jax.block_until_ready(out)

    assert out.shape == (B, OUT_CHANNELS, 32, 32), out.shape
    assert bool(jnp.all(jnp.isfinite(out)))
    print("KERNEL_OK")
</pallas_src>

<mosaic_0001>
module attributes {stable_mosaic.version = 11 : i64} {
  func.func @_fc1_t1_kernel(%arg0: i32, %arg1: memref<2x128xbf16, #tpu.memory_space<vmem>>, %arg2: memref<128x384xbf16, #tpu.memory_space<vmem>>, %arg3: memref<1x384xf32, #tpu.memory_space<vmem>>, %arg4: memref<384x3072xbf16, #tpu.memory_space<vmem>>, %arg5: memref<2x3072xf32, #tpu.memory_space<vmem>>) attributes {dimension_semantics = [#tpu.dimension_semantics<arbitrary>], iteration_bounds = array<i64: 1>, scalar_prefetch = 0 : i64, scratch_operands = 0 : i64, tpu.core_type = #tpu.core_type<tc>, window_params = [{pipeline_mode = #tpu.pipeline_mode<synchronous>, transform_indices = @transform_0, window_bounds = array<i64: 2, 128>}, {pipeline_mode = #tpu.pipeline_mode<synchronous>, transform_indices = @transform_1, window_bounds = array<i64: 128, 384>}, {pipeline_mode = #tpu.pipeline_mode<synchronous>, transform_indices = @transform_2, window_bounds = array<i64: 1, 384>}, {pipeline_mode = #tpu.pipeline_mode<synchronous>, transform_indices = @transform_3, window_bounds = array<i64: 384, 3072>}, {pipeline_mode = #tpu.pipeline_mode<synchronous>, transform_indices = @transform_4, window_bounds = array<i64: 2, 3072>}]} {
    %c0 = arith.constant 0 : index
    %c0_0 = arith.constant 0 : index
    %0 = vector.load %arg1[%c0, %c0_0] : memref<2x128xbf16, #tpu.memory_space<vmem>>, vector<2x128xbf16>
    %c0_1 = arith.constant 0 : index
    %c0_2 = arith.constant 0 : index
    %1 = vector.load %arg2[%c0_1, %c0_2] : memref<128x384xbf16, #tpu.memory_space<vmem>>, vector<128x384xbf16>
    %cst = arith.constant dense<0.000000e+00> : vector<2x384xf32>
    %2 = tpu.matmul %0, %1, %cst {dimension_numbers = #tpu.dot_dimension_numbers<[1], [0], [0], [1], [0, 0, 1, 1], [], []>} : vector<2x128xbf16>, vector<128x384xbf16>, vector<2x384xf32> -> vector<2x384xf32>
    %c0_3 = arith.constant 0 : index
    %c0_4 = arith.constant 0 : index
    %3 = vector.load %arg3[%c0_3, %c0_4] : memref<1x384xf32, #tpu.memory_space<vmem>>, vector<1x384xf32>
    %4 = vector.broadcast %3 : vector<1x384xf32> to vector<2x384xf32>
    %5 = arith.addf %2, %4 : vector<2x384xf32>
    %6 = arith.truncf %5 : vector<2x384xf32> to vector<2x384xbf16>
    %c0_5 = arith.constant 0 : index
    %c0_6 = arith.constant 0 : index
    %7 = vector.load %arg4[%c0_5, %c0_6] : memref<384x3072xbf16, #tpu.memory_space<vmem>>, vector<384x3072xbf16>
    %cst_7 = arith.constant dense<0.000000e+00> : vector<2x3072xf32>
    %8 = tpu.matmul %6, %7, %cst_7 {dimension_numbers = #tpu.dot_dimension_numbers<[1], [0], [0], [1], [0, 0, 1, 1], [], []>} : vector<2x384xbf16>, vector<384x3072xbf16>, vector<2x3072xf32> -> vector<2x3072xf32>
    %c0_8 = arith.constant 0 : index
    %c0_9 = arith.constant 0 : index
    %9 = vector.load %arg5[%c0_8, %c0_9] : memref<2x3072xf32, #tpu.memory_space<vmem>>, vector<2x3072xf32>
    tpu.vector_store %arg5[%c0_8, %c0_9], %8 {strides = array<i32>} : memref<2x3072xf32, #tpu.memory_space<vmem>>, vector<2x3072xf32>,
    return
  }
  func.func @transform_0(%arg0: i32) -> (i32, i32) {
    %c0_i32 = arith.constant 0 : i32
    %c0_i32_0 = arith.constant 0 : i32
    %c0_i32_1 = arith.constant 0 : i32
    return %c0_i32, %c0_i32_0 : i32, i32
  }
  func.func @transform_1(%arg0: i32) -> (i32, i32) {
    %c0_i32 = arith.constant 0 : i32
    %c0_i32_0 = arith.constant 0 : i32
    %c0_i32_1 = arith.constant 0 : i32
    return %c0_i32, %c0_i32_0 : i32, i32
  }
  func.func @transform_2(%arg0: i32) -> (i32, i32) {
    %c0_i32 = arith.constant 0 : i32
    %c0_i32_0 = arith.constant 0 : i32
    %c0_i32_1 = arith.constant 0 : i32
    return %c0_i32, %c0_i32_0 : i32, i32
  }
  func.func @transform_3(%arg0: i32) -> (i32, i32) {
    %c0_i32 = arith.constant 0 : i32
    %c0_i32_0 = arith.constant 0 : i32
    %c0_i32_1 = arith.constant 0 : i32
    return %c0_i32, %c0_i32_0 : i32, i32
  }
  func.func @transform_4(%arg0: i32) -> (i32, i32) {
    %c0_i32 = arith.constant 0 : i32
    %c0_i32_0 = arith.constant 0 : i32
    %c0_i32_1 = arith.constant 0 : i32
    return %c0_i32, %c0_i32_0 : i32, i32
  }
}

module attributes {stable_mosaic.version = 11 : i64} {
  func.func @_bn_relu_kernel(%arg0: i32, %arg1: memref<32x192xf32, #tpu.memory_space<vmem>>, %arg2: memref<1x192xf32, #tpu.memory_space<vmem>>, %arg3: memref<1x192xf32, #tpu.memory_space<vmem>>, %arg4: memref<1x192xf32, #tpu.memory_space<vmem>>, %arg5: memref<32x192xbf16, #tpu.memory_space<vmem>>) attributes {dimension_semantics = [#tpu.dimension_semantics<arbitrary>], iteration_bounds = array<i64: 1>, scalar_prefetch = 0 : i64, scratch_operands = 0 : i64, tpu.core_type = #tpu.core_type<tc>, window_params = [{pipeline_mode = #tpu.pipeline_mode<synchronous>, transform_indices = @transform_0, window_bounds = array<i64: 32, 192>}, {pipeline_mode = #tpu.pipeline_mode<synchronous>, transform_indices = @transform_1, window_bounds = array<i64: 1, 192>}, {pipeline_mode = #tpu.pipeline_mode<synchronous>, transform_indices = @transform_2, window_bounds = array<i64: 1, 192>}, {pipeline_mode = #tpu.pipeline_mode<synchronous>, transform_indices = @transform_3, window_bounds = array<i64: 1, 192>}, {pipeline_mode = #tpu.pipeline_mode<synchronous>, transform_indices = @transform_4, window_bounds = array<i64: 32, 192>}]} {
    %c0 = arith.constant 0 : index
    %c0_0 = arith.constant 0 : index
    %0 = vector.load %arg1[%c0, %c0_0] : memref<32x192xf32, #tpu.memory_space<vmem>>, vector<32x192xf32>
    %c0_1 = arith.constant 0 : index
    %c0_2 = arith.constant 0 : index
    %1 = vector.load %arg2[%c0_1, %c0_2] : memref<1x192xf32, #tpu.memory_space<vmem>>, vector<1x192xf32>
    %2 = vector.broadcast %1 : vector<1x192xf32> to vector<32x192xf32>
    %3 = arith.addf %0, %2 : vector<32x192xf32>
    %cst = arith.constant dense<0.000000e+00> : vector<192xf32>
    %4 = vector.multi_reduction <add>, %3, %cst [0] : vector<32x192xf32> to vector<192xf32>
    %5 = vector.shape_cast %4 : vector<192xf32> to vector<1x192xf32>
    %cst_3 = arith.constant 3.200000e+01 : f32
    %6 = vector.broadcast %cst_3 : f32 to vector<1x192xf32>
    %7 = arith.divf %5, %6 : vector<1x192xf32>
    %8 = vector.broadcast %7 : vector<1x192xf32> to vector<32x192xf32>
    %9 = arith.subf %3, %8 : vector<32x192xf32>
    %10 = arith.mulf %9, %9 : vector<32x192xf32>
    %cst_4 = arith.constant dense<0.000000e+00> : vector<192xf32>
    %11 = vector.multi_reduction <add>, %10, %cst_4 [0] : vector<32x192xf32> to vector<192xf32>
    %12 = vector.shape_cast %11 : vector<192xf32> to vector<1x192xf32>
    %cst_5 = arith.constant 3.200000e+01 : f32
    %13 = vector.broadcast %cst_5 : f32 to vector<1x192xf32>
    %14 = arith.divf %12, %13 : vector<1x192xf32>
    %15 = vector.broadcast %7 : vector<1x192xf32> to vector<32x192xf32>
    %16 = arith.subf %3, %15 : vector<32x192xf32>
    %cst_6 = arith.constant 9.99999974E-6 : f32
    %17 = vector.broadcast %cst_6 : f32 to vector<1x192xf32>
    %18 = arith.addf %14, %17 : vector<1x192xf32>
    %19 = math.rsqrt %18 : vector<1x192xf32>
    %20 = vector.broadcast %19 : vector<1x192xf32> to vector<32x192xf32>
    %21 = arith.mulf %16, %20 : vector<32x192xf32>
    %c0_7 = arith.constant 0 : index
    %c0_8 = arith.constant 0 : index
    %22 = vector.load %arg3[%c0_7, %c0_8] : memref<1x192xf32, #tpu.memory_space<vmem>>, vector<1x192xf32>
    %23 = vector.broadcast %22 : vector<1x192xf32> to vector<32x192xf32>
    %24 = arith.mulf %21, %23 : vector<32x192xf32>
    %c0_9 = arith.constant 0 : index
    %c0_10 = arith.constant 0 : index
    %25 = vector.load %arg4[%c0_9, %c0_10] : memref<1x192xf32, #tpu.memory_space<vmem>>, vector<1x192xf32>
    %26 = vector.broadcast %25 : vector<1x192xf32> to vector<32x192xf32>
    %27 = arith.addf %24, %26 : vector<32x192xf32>
    %cst_11 = arith.constant 0.000000e+00 : f32
    %28 = vector.broadcast %cst_11 : f32 to vector<32x192xf32>
    %29 = arith.maximumf %27, %28 : vector<32x192xf32>
    %30 = arith.truncf %29 : vector<32x192xf32> to vector<32x192xbf16>
    %c0_12 = arith.constant 0 : index
    %c0_13 = arith.constant 0 : index
    %31 = vector.load %arg5[%c0_12, %c0_13] : memref<32x192xbf16, #tpu.memory_space<vmem>>, vector<32x192xbf16>
    tpu.vector_store %arg5[%c0_12, %c0_13], %30 {strides = array<i32>} : memref<32x192xbf16, #tpu.memory_space<vmem>>, vector<32x192xbf16>,
    return
  }
  func.func @transform_0(%arg0: i32) -> (i32, i32) {
    %c0_i32 = arith.constant 0 : i32
    %c0_i32_0 = arith.constant 0 : i32
    %c0_i32_1 = arith.constant 0 : i32
    return %c0_i32, %c0_i32_0 : i32, i32
  }
  func.func @transform_1(%arg0: i32) -> (i32, i32) {
    %c0_i32 = arith.constant 0 : i32
    %c0_i32_0 = arith.constant 0 : i32
    %c0_i32_1 = arith.constant 0 : i32
    return %c0_i32, %c0_i32_0 : i32, i32
  }
  func.func @transform_2(%arg0: i32) -> (i32, i32) {
    %c0_i32 = arith.constant 0 : i32
    %c0_i32_0 = arith.constant 0 : i32
    %c0_i32_1 = arith.constant 0 : i32
    return %c0_i32, %c0_i32_0 : i32, i32
  }
  func.func @transform_3(%arg0: i32) -> (i32, i32) {
    %c0_i32 = arith.constant 0 : i32
    %c0_i32_0 = arith.constant 0 : i32
    %c0_i32_1 = arith.constant 0 : i32
    return %c0_i32, %c0_i32_0 : i32, i32
  }
  func.func @transform_4(%arg0: i32) -> (i32, i32) {
    %c0_i32 = arith.constant 0 : i32
    %c0_i32_0 = arith.constant 0 : i32
    %c0_i32_1 = arith.constant 0 : i32
    return %c0_i32, %c0_i32_0 : i32, i32
  }
}

module attributes {stable_mosaic.version = 11 : i64} {
  func.func @_gemm_kernel(%arg0: i32, %arg1: memref<32x192xbf16, #tpu.memory_space<vmem>>, %arg2: memref<192x1536xbf16, #tpu.memory_space<vmem>>, %arg3: memref<32x1536xf32, #tpu.memory_space<vmem>>) attributes {dimension_semantics = [#tpu.dimension_semantics<parallel>], iteration_bounds = array<i64: 1>, scalar_prefetch = 0 : i64, scratch_operands = 0 : i64, tpu.core_type = #tpu.core_type<tc>, window_params = [{transform_indices = @transform_0, window_bounds = array<i64: 32, 192>}, {pipeline_mode = #tpu.pipeline_mode<synchronous>, transform_indices = @transform_1, window_bounds = array<i64: 192, 1536>}, {transform_indices = @transform_2, window_bounds = array<i64: 32, 1536>}]} {
    %c0 = arith.constant 0 : index
    %c0_0 = arith.constant 0 : index
    %0 = vector.load %arg1[%c0, %c0_0] : memref<32x192xbf16, #tpu.memory_space<vmem>>, vector<32x192xbf16>
    %c0_1 = arith.constant 0 : index
    %c0_2 = arith.constant 0 : index
    %1 = vector.load %arg2[%c0_1, %c0_2] : memref<192x1536xbf16, #tpu.memory_space<vmem>>, vector<192x1536xbf16>
    %cst = arith.constant dense<0.000000e+00> : vector<32x1536xf32>
    %2 = tpu.matmul %0, %1, %cst {dimension_numbers = #tpu.dot_dimension_numbers<[1], [0], [0], [1], [0, 0, 1, 1], [], []>} : vector<32x192xbf16>, vector<192x1536xbf16>, vector<32x1536xf32> -> vector<32x1536xf32>
    %c0_3 = arith.constant 0 : index
    %c0_4 = arith.constant 0 : index
    %3 = vector.load %arg3[%c0_3, %c0_4] : memref<32x1536xf32, #tpu.memory_space<vmem>>, vector<32x1536xf32>
    tpu.vector_store %arg3[%c0_3, %c0_4], %2 {strides = array<i32>} : memref<32x1536xf32, #tpu.memory_space<vmem>>, vector<32x1536xf32>,
    return
  }
  func.func @transform_0(%arg0: i32) -> (i32, i32) {
    %c0_i32 = arith.constant 0 : i32
    %c0_i32_0 = arith.constant 0 : i32
    return %arg0, %c0_i32 : i32, i32
  }
  func.func @transform_1(%arg0: i32) -> (i32, i32) {
    %c0_i32 = arith.constant 0 : i32
    %c0_i32_0 = arith.constant 0 : i32
    %c0_i32_1 = arith.constant 0 : i32
    return %c0_i32, %c0_i32_0 : i32, i32
  }
  func.func @transform_2(%arg0: i32) -> (i32, i32) {
    %c0_i32 = arith.constant 0 : i32
    %c0_i32_0 = arith.constant 0 : i32
    return %arg0, %c0_i32 : i32, i32
  }
}

module attributes {stable_mosaic.version = 11 : i64} {
  func.func @_gemm_kernel(%arg0: i32, %arg1: memref<128x96xbf16, #tpu.memory_space<vmem>>, %arg2: memref<96x768xbf16, #tpu.memory_space<vmem>>, %arg3: memref<128x768xf32, #tpu.memory_space<vmem>>) attributes {dimension_semantics = [#tpu.dimension_semantics<parallel>], iteration_bounds = array<i64: 1>, scalar_prefetch = 0 : i64, scratch_operands = 0 : i64, tpu.core_type = #tpu.core_type<tc>, window_params = [{transform_indices = @transform_0, window_bounds = array<i64: 128, 96>}, {pipeline_mode = #tpu.pipeline_mode<synchronous>, transform_indices = @transform_1, window_bounds = array<i64: 96, 768>}, {transform_indices = @transform_2, window_bounds = array<i64: 128, 768>}]} {
    %c0 = arith.constant 0 : index
    %c0_0 = arith.constant 0 : index
    %0 = vector.load %arg1[%c0, %c0_0] : memref<128x96xbf16, #tpu.memory_space<vmem>>, vector<128x96xbf16>
    %c0_1 = arith.constant 0 : index
    %c0_2 = arith.constant 0 : index
    %1 = vector.load %arg2[%c0_1, %c0_2] : memref<96x768xbf16, #tpu.memory_space<vmem>>, vector<96x768xbf16>
    %cst = arith.constant dense<0.000000e+00> : vector<128x768xf32>
    %2 = tpu.matmul %0, %1, %cst {dimension_numbers = #tpu.dot_dimension_numbers<[1], [0], [0], [1], [0, 0, 1, 1], [], []>} : vector<128x96xbf16>, vector<96x768xbf16>, vector<128x768xf32> -> vector<128x768xf32>
    %c0_3 = arith.constant 0 : index
    %c0_4 = arith.constant 0 : index
    %3 = vector.load %arg3[%c0_3, %c0_4] : memref<128x768xf32, #tpu.memory_space<vmem>>, vector<128x768xf32>
    tpu.vector_store %arg3[%c0_3, %c0_4], %2 {strides = array<i32>} : memref<128x768xf32, #tpu.memory_space<vmem>>, vector<128x768xf32>,
    return
  }
  func.func @transform_0(%arg0: i32) -> (i32, i32) {
    %c0_i32 = arith.constant 0 : i32
    %c0_i32_0 = arith.constant 0 : i32
    return %arg0, %c0_i32 : i32, i32
  }
  func.func @transform_1(%arg0: i32) -> (i32, i32) {
    %c0_i32 = arith.constant 0 : i32
    %c0_i32_0 = arith.constant 0 : i32
    %c0_i32_1 = arith.constant 0 : i32
    return %c0_i32, %c0_i32_0 : i32, i32
  }
  func.func @transform_2(%arg0: i32) -> (i32, i32) {
    %c0_i32 = arith.constant 0 : i32
    %c0_i32_0 = arith.constant 0 : i32
    return %arg0, %c0_i32 : i32, i32
  }
}

module attributes {stable_mosaic.version = 11 : i64} {
  func.func @_bn_relu_kernel(%arg0: i32, %arg1: memref<128x96xf32, #tpu.memory_space<vmem>>, %arg2: memref<1x96xf32, #tpu.memory_space<vmem>>, %arg3: memref<1x96xf32, #tpu.memory_space<vmem>>, %arg4: memref<1x96xf32, #tpu.memory_space<vmem>>, %arg5: memref<128x96xbf16, #tpu.memory_space<vmem>>) attributes {dimension_semantics = [#tpu.dimension_semantics<arbitrary>], iteration_bounds = array<i64: 1>, scalar_prefetch = 0 : i64, scratch_operands = 0 : i64, tpu.core_type = #tpu.core_type<tc>, window_params = [{pipeline_mode = #tpu.pipeline_mode<synchronous>, transform_indices = @transform_0, window_bounds = array<i64: 128, 96>}, {pipeline_mode = #tpu.pipeline_mode<synchronous>, transform_indices = @transform_1, window_bounds = array<i64: 1, 96>}, {pipeline_mode = #tpu.pipeline_mode<synchronous>, transform_indices = @transform_2, window_bounds = array<i64: 1, 96>}, {pipeline_mode = #tpu.pipeline_mode<synchronous>, transform_indices = @transform_3, window_bounds = array<i64: 1, 96>}, {pipeline_mode = #tpu.pipeline_mode<synchronous>, transform_indices = @transform_4, window_bounds = array<i64: 128, 96>}]} {
    %c0 = arith.constant 0 : index
    %c0_0 = arith.constant 0 : index
    %0 = vector.load %arg1[%c0, %c0_0] : memref<128x96xf32, #tpu.memory_space<vmem>>, vector<128x96xf32>
    %c0_1 = arith.constant 0 : index
    %c0_2 = arith.constant 0 : index
    %1 = vector.load %arg2[%c0_1, %c0_2] : memref<1x96xf32, #tpu.memory_space<vmem>>, vector<1x96xf32>
    %2 = vector.broadcast %1 : vector<1x96xf32> to vector<128x96xf32>
    %3 = arith.addf %0, %2 : vector<128x96xf32>
    %cst = arith.constant dense<0.000000e+00> : vector<96xf32>
    %4 = vector.multi_reduction <add>, %3, %cst [0] : vector<128x96xf32> to vector<96xf32>
    %5 = vector.shape_cast %4 : vector<96xf32> to vector<1x96xf32>
    %cst_3 = arith.constant 1.280000e+02 : f32
    %6 = vector.broadcast %cst_3 : f32 to vector<1x96xf32>
    %7 = arith.divf %5, %6 : vector<1x96xf32>
    %8 = vector.broadcast %7 : vector<1x96xf32> to vector<128x96xf32>
    %9 = arith.subf %3, %8 : vector<128x96xf32>
    %10 = arith.mulf %9, %9 : vector<128x96xf32>
    %cst_4 = arith.constant dense<0.000000e+00> : vector<96xf32>
    %11 = vector.multi_reduction <add>, %10, %cst_4 [0] : vector<128x96xf32> to vector<96xf32>
    %12 = vector.shape_cast %11 : vector<96xf32> to vector<1x96xf32>
    %cst_5 = arith.constant 1.280000e+02 : f32
    %13 = vector.broadcast %cst_5 : f32 to vector<1x96xf32>
    %14 = arith.divf %12, %13 : vector<1x96xf32>
    %15 = vector.broadcast %7 : vector<1x96xf32> to vector<128x96xf32>
    %16 = arith.subf %3, %15 : vector<128x96xf32>
    %cst_6 = arith.constant 9.99999974E-6 : f32
    %17 = vector.broadcast %cst_6 : f32 to vector<1x96xf32>
    %18 = arith.addf %14, %17 : vector<1x96xf32>
    %19 = math.rsqrt %18 : vector<1x96xf32>
    %20 = vector.broadcast %19 : vector<1x96xf32> to vector<128x96xf32>
    %21 = arith.mulf %16, %20 : vector<128x96xf32>
    %c0_7 = arith.constant 0 : index
    %c0_8 = arith.constant 0 : index
    %22 = vector.load %arg3[%c0_7, %c0_8] : memref<1x96xf32, #tpu.memory_space<vmem>>, vector<1x96xf32>
    %23 = vector.broadcast %22 : vector<1x96xf32> to vector<128x96xf32>
    %24 = arith.mulf %21, %23 : vector<128x96xf32>
    %c0_9 = arith.constant 0 : index
    %c0_10 = arith.constant 0 : index
    %25 = vector.load %arg4[%c0_9, %c0_10] : memref<1x96xf32, #tpu.memory_space<vmem>>, vector<1x96xf32>
    %26 = vector.broadcast %25 : vector<1x96xf32> to vector<128x96xf32>
    %27 = arith.addf %24, %26 : vector<128x96xf32>
    %cst_11 = arith.constant 0.000000e+00 : f32
    %28 = vector.broadcast %cst_11 : f32 to vector<128x96xf32>
    %29 = arith.maximumf %27, %28 : vector<128x96xf32>
    %30 = arith.truncf %29 : vector<128x96xf32> to vector<128x96xbf16>
    %c0_12 = arith.constant 0 : index
    %c0_13 = arith.constant 0 : index
    %31 = vector.load %arg5[%c0_12, %c0_13] : memref<128x96xbf16, #tpu.memory_space<vmem>>, vector<128x96xbf16>
    tpu.vector_store %arg5[%c0_12, %c0_13], %30 {strides = array<i32>} : memref<128x96xbf16, #tpu.memory_space<vmem>>, vector<128x96xbf16>,
    return
  }
  func.func @transform_0(%arg0: i32) -> (i32, i32) {
    %c0_i32 = arith.constant 0 : i32
    %c0_i32_0 = arith.constant 0 : i32
    %c0_i32_1 = arith.constant 0 : i32
    return %c0_i32, %c0_i32_0 : i32, i32
  }
  func.func @transform_1(%arg0: i32) -> (i32, i32) {
    %c0_i32 = arith.constant 0 : i32
    %c0_i32_0 = arith.constant 0 : i32
    %c0_i32_1 = arith.constant 0 : i32
    return %c0_i32, %c0_i32_0 : i32, i32
  }
  func.func @transform_2(%arg0: i32) -> (i32, i32) {
    %c0_i32 = arith.constant 0 : i32
    %c0_i32_0 = arith.constant 0 : i32
    %c0_i32_1 = arith.constant 0 : i32
    return %c0_i32, %c0_i32_0 : i32, i32
  }
  func.func @transform_3(%arg0: i32) -> (i32, i32) {
    %c0_i32 = arith.constant 0 : i32
    %c0_i32_0 = arith.constant 0 : i32
    %c0_i32_1 = arith.constant 0 : i32
    return %c0_i32, %c0_i32_0 : i32, i32
  }
  func.func @transform_4(%arg0: i32) -> (i32, i32) {
    %c0_i32 = arith.constant 0 : i32
    %c0_i32_0 = arith.constant 0 : i32
    %c0_i32_1 = arith.constant 0 : i32
    return %c0_i32, %c0_i32_0 : i32, i32
  }
}

module attributes {stable_mosaic.version = 11 : i64} {
  func.func @_bn_relu_kernel(%arg0: i32, %arg1: memref<512x48xf32, #tpu.memory_space<vmem>>, %arg2: memref<1x48xf32, #tpu.memory_space<vmem>>, %arg3: memref<1x48xf32, #tpu.memory_space<vmem>>, %arg4: memref<1x48xf32, #tpu.memory_space<vmem>>, %arg5: memref<512x48xbf16, #tpu.memory_space<vmem>>) attributes {dimension_semantics = [#tpu.dimension_semantics<arbitrary>], iteration_bounds = array<i64: 1>, scalar_prefetch = 0 : i64, scratch_operands = 0 : i64, tpu.core_type = #tpu.core_type<tc>, window_params = [{pipeline_mode = #tpu.pipeline_mode<synchronous>, transform_indices = @transform_0, window_bounds = array<i64: 512, 48>}, {pipeline_mode = #tpu.pipeline_mode<synchronous>, transform_indices = @transform_1, window_bounds = array<i64: 1, 48>}, {pipeline_mode = #tpu.pipeline_mode<synchronous>, transform_indices = @transform_2, window_bounds = array<i64: 1, 48>}, {pipeline_mode = #tpu.pipeline_mode<synchronous>, transform_indices = @transform_3, window_bounds = array<i64: 1, 48>}, {pipeline_mode = #tpu.pipeline_mode<synchronous>, transform_indices = @transform_4, window_bounds = array<i64: 512, 48>}]} {
    %c0 = arith.constant 0 : index
    %c0_0 = arith.constant 0 : index
    %0 = vector.load %arg1[%c0, %c0_0] : memref<512x48xf32, #tpu.memory_space<vmem>>, vector<512x48xf32>
    %c0_1 = arith.constant 0 : index
    %c0_2 = arith.constant 0 : index
    %1 = vector.load %arg2[%c0_1, %c0_2] : memref<1x48xf32, #tpu.memory_space<vmem>>, vector<1x48xf32>
    %2 = vector.broadcast %1 : vector<1x48xf32> to vector<512x48xf32>
    %3 = arith.addf %0, %2 : vector<512x48xf32>
    %cst = arith.constant dense<0.000000e+00> : vector<48xf32>
    %4 = vector.multi_reduction <add>, %3, %cst [0] : vector<512x48xf32> to vector<48xf32>
    %5 = vector.shape_cast %4 : vector<48xf32> to vector<1x48xf32>
    %cst_3 = arith.constant 5.120000e+02 : f32
    %6 = vector.broadcast %cst_3 : f32 to vector<1x48xf32>
    %7 = arith.divf %5, %6 : vector<1x48xf32>
    %8 = vector.broadcast %7 : vector<1x48xf32> to vector<512x48xf32>
    %9 = arith.subf %3, %8 : vector<512x48xf32>
    %10 = arith.mulf %9, %9 : vector<512x48xf32>
    %cst_4 = arith.constant dense<0.000000e+00> : vector<48xf32>
    %11 = vector.multi_reduction <add>, %10, %cst_4 [0] : vector<512x48xf32> to vector<48xf32>
    %12 = vector.shape_cast %11 : vector<48xf32> to vector<1x48xf32>
    %cst_5 = arith.constant 5.120000e+02 : f32
    %13 = vector.broadcast %cst_5 : f32 to vector<1x48xf32>
    %14 = arith.divf %12, %13 : vector<1x48xf32>
    %15 = vector.broadcast %7 : vector<1x48xf32> to vector<512x48xf32>
    %16 = arith.subf %3, %15 : vector<512x48xf32>
    %cst_6 = arith.constant 9.99999974E-6 : f32
    %17 = vector.broadcast %cst_6 : f32 to vector<1x48xf32>
    %18 = arith.addf %14, %17 : vector<1x48xf32>
    %19 = math.rsqrt %18 : vector<1x48xf32>
    %20 = vector.broadcast %19 : vector<1x48xf32> to vector<512x48xf32>
    %21 = arith.mulf %16, %20 : vector<512x48xf32>
    %c0_7 = arith.constant 0 : index
    %c0_8 = arith.constant 0 : index
    %22 = vector.load %arg3[%c0_7, %c0_8] : memref<1x48xf32, #tpu.memory_space<vmem>>, vector<1x48xf32>
    %23 = vector.broadcast %22 : vector<1x48xf32> to vector<512x48xf32>
    %24 = arith.mulf %21, %23 : vector<512x48xf32>
    %c0_9 = arith.constant 0 : index
    %c0_10 = arith.constant 0 : index
    %25 = vector.load %arg4[%c0_9, %c0_10] : memref<1x48xf32, #tpu.memory_space<vmem>>, vector<1x48xf32>
    %26 = vector.broadcast %25 : vector<1x48xf32> to vector<512x48xf32>
    %27 = arith.addf %24, %26 : vector<512x48xf32>
    %cst_11 = arith.constant 0.000000e+00 : f32
    %28 = vector.broadcast %cst_11 : f32 to vector<512x48xf32>
    %29 = arith.maximumf %27, %28 : vector<512x48xf32>
    %30 = arith.truncf %29 : vector<512x48xf32> to vector<512x48xbf16>
    %c0_12 = arith.constant 0 : index
    %c0_13 = arith.constant 0 : index
    %31 = vector.load %arg5[%c0_12, %c0_13] : memref<512x48xbf16, #tpu.memory_space<vmem>>, vector<512x48xbf16>
    tpu.vector_store %arg5[%c0_12, %c0_13], %30 {strides = array<i32>} : memref<512x48xbf16, #tpu.memory_space<vmem>>, vector<512x48xbf16>,
    return
  }
  func.func @transform_0(%arg0: i32) -> (i32, i32) {
    %c0_i32 = arith.constant 0 : i32
    %c0_i32_0 = arith.constant 0 : i32
    %c0_i32_1 = arith.constant 0 : i32
    return %c0_i32, %c0_i32_0 : i32, i32
  }
  func.func @transform_1(%arg0: i32) -> (i32, i32) {
    %c0_i32 = arith.constant 0 : i32
    %c0_i32_0 = arith.constant 0 : i32
    %c0_i32_1 = arith.constant 0 : i32
    return %c0_i32, %c0_i32_0 : i32, i32
  }
  func.func @transform_2(%arg0: i32) -> (i32, i32) {
    %c0_i32 = arith.constant 0 : i32
    %c0_i32_0 = arith.constant 0 : i32
    %c0_i32_1 = arith.constant 0 : i32
    return %c0_i32, %c0_i32_0 : i32, i32
  }
  func.func @transform_3(%arg0: i32) -> (i32, i32) {
    %c0_i32 = arith.constant 0 : i32
    %c0_i32_0 = arith.constant 0 : i32
    %c0_i32_1 = arith.constant 0 : i32
    return %c0_i32, %c0_i32_0 : i32, i32
  }
  func.func @transform_4(%arg0: i32) -> (i32, i32) {
    %c0_i32 = arith.constant 0 : i32
    %c0_i32_0 = arith.constant 0 : i32
    %c0_i32_1 = arith.constant 0 : i32
    return %c0_i32, %c0_i32_0 : i32, i32
  }
}

module attributes {stable_mosaic.version = 11 : i64} {
  func.func @_gemm_kernel(%arg0: i32, %arg1: memref<256x48xbf16, #tpu.memory_space<vmem>>, %arg2: memref<48x128xbf16, #tpu.memory_space<vmem>>, %arg3: memref<256x128xf32, #tpu.memory_space<vmem>>) attributes {dimension_semantics = [#tpu.dimension_semantics<parallel>], iteration_bounds = array<i64: 2>, scalar_prefetch = 0 : i64, scratch_operands = 0 : i64, tpu.core_type = #tpu.core_type<tc>, window_params = [{transform_indices = @transform_0, window_bounds = array<i64: 256, 48>}, {pipeline_mode = #tpu.pipeline_mode<synchronous>, transform_indices = @transform_1, window_bounds = array<i64: 48, 128>}, {transform_indices = @transform_2, window_bounds = array<i64: 256, 128>}]} {
    %c0 = arith.constant 0 : index
    %c0_0 = arith.constant 0 : index
    %0 = vector.load %arg1[%c0, %c0_0] : memref<256x48xbf16, #tpu.memory_space<vmem>>, vector<256x48xbf16>
    %c0_1 = arith.constant 0 : index
    %c0_2 = arith.constant 0 : index
    %1 = vector.load %arg2[%c0_1, %c0_2] : memref<48x128xbf16, #tpu.memory_space<vmem>>, vector<48x128xbf16>
    %cst = arith.constant dense<0.000000e+00> : vector<256x128xf32>
    %2 = tpu.matmul %0, %1, %cst {dimension_numbers = #tpu.dot_dimension_numbers<[1], [0], [0], [1], [0, 0, 1, 1], [], []>} : vector<256x48xbf16>, vector<48x128xbf16>, vector<256x128xf32> -> vector<256x128xf32>
    %c0_3 = arith.constant 0 : index
    %c0_4 = arith.constant 0 : index
    %3 = vector.load %arg3[%c0_3, %c0_4] : memref<256x128xf32, #tpu.memory_space<vmem>>, vector<256x128xf32>
    tpu.vector_store %arg3[%c0_3, %c0_4], %2 {strides = array<i32>} : memref<256x128xf32, #tpu.memory_space<vmem>>, vector<256x128xf32>,
    return
  }
  func.func @transform_0(%arg0: i32) -> (i32, i32) {
    %c0_i32 = arith.constant 0 : i32
    %c0_i32_0 = arith.constant 0 : i32
    return %arg0, %c0_i32 : i32, i32
  }
  func.func @transform_1(%arg0: i32) -> (i32, i32) {
    %c0_i32 = arith.constant 0 : i32
    %c0_i32_0 = arith.constant 0 : i32
    %c0_i32_1 = arith.constant 0 : i32
    return %c0_i32, %c0_i32_0 : i32, i32
  }
  func.func @transform_2(%arg0: i32) -> (i32, i32) {
    %c0_i32 = arith.constant 0 : i32
    %c0_i32_0 = arith.constant 0 : i32
    return %arg0, %c0_i32 : i32, i32
  }
}

module attributes {stable_mosaic.version = 11 : i64} {
  func.func @_bias_tanh_kernel(%arg0: i32, %arg1: memref<64x256xf32, #tpu.memory_space<vmem>>, %arg2: memref<1x256xf32, #tpu.memory_space<vmem>>, %arg3: memref<64x256xf32, #tpu.memory_space<vmem>>) attributes {dimension_semantics = [#tpu.dimension_semantics<arbitrary>], iteration_bounds = array<i64: 1>, scalar_prefetch = 0 : i64, scratch_operands = 0 : i64, tpu.core_type = #tpu.core_type<tc>, window_params = [{pipeline_mode = #tpu.pipeline_mode<synchronous>, transform_indices = @transform_0, window_bounds = array<i64: 64, 256>}, {pipeline_mode = #tpu.pipeline_mode<synchronous>, transform_indices = @transform_1, window_bounds = array<i64: 1, 256>}, {pipeline_mode = #tpu.pipeline_mode<synchronous>, transform_indices = @transform_2, window_bounds = array<i64: 64, 256>}]} {
    %c0 = arith.constant 0 : index
    %c0_0 = arith.constant 0 : index
    %0 = vector.load %arg1[%c0, %c0_0] : memref<64x256xf32, #tpu.memory_space<vmem>>, vector<64x256xf32>
    %c0_1 = arith.constant 0 : index
    %c0_2 = arith.constant 0 : index
    %1 = vector.load %arg2[%c0_1, %c0_2] : memref<1x256xf32, #tpu.memory_space<vmem>>, vector<1x256xf32>
    %2 = vector.broadcast %1 : vector<1x256xf32> to vector<64x256xf32>
    %3 = arith.addf %0, %2 : vector<64x256xf32>
    %4 = math.tanh %3 : vector<64x256xf32>
    %c0_3 = arith.constant 0 : index
    %c0_4 = arith.constant 0 : index
    %5 = vector.load %arg3[%c0_3, %c0_4] : memref<64x256xf32, #tpu.memory_space<vmem>>, vector<64x256xf32>
    tpu.vector_store %arg3[%c0_3, %c0_4], %4 {strides = array<i32>} : memref<64x256xf32, #tpu.memory_space<vmem>>, vector<64x256xf32>,
    return
  }
  func.func @transform_0(%arg0: i32) -> (i32, i32) {
    %c0_i32 = arith.constant 0 : i32
    %c0_i32_0 = arith.constant 0 : i32
    %c0_i32_1 = arith.constant 0 : i32
    return %c0_i32, %c0_i32_0 : i32, i32
  }
  func.func @transform_1(%arg0: i32) -> (i32, i32) {
    %c0_i32 = arith.constant 0 : i32
    %c0_i32_0 = arith.constant 0 : i32
    %c0_i32_1 = arith.constant 0 : i32
    return %c0_i32, %c0_i32_0 : i32, i32
  }
  func.func @transform_2(%arg0: i32) -> (i32, i32) {
    %c0_i32 = arith.constant 0 : i32
    %c0_i32_0 = arith.constant 0 : i32
    %c0_i32_1 = arith.constant 0 : i32
    return %c0_i32, %c0_i32_0 : i32, i32
  }
}

</mosaic_0001>

<bundles_post_ra>
// kernel: generator_forward.9
= control target key start
LH: loop header
LB: loop body
LE: loop exit
PB: predicated region body
PF: predicated region fallthrough
CT: control target
= control target key end

     0   :  { %v27_v0 = vlaneseq  ;;  %vm54_vm0 = vcmask 523264   ;;  %vm195_vm1 = vcmask 1043456   ;;  %vm196_vm2 = vcmask 523268   ;;  %s308_s1 = inlined_call_operand.vmem [shape: f32[1,192], index: 1, kind: input, shape index: {}]   ;;  %s309_s0 = inlined_call_operand.vmem [shape: f32[32,192], index: 0, kind: input, shape index: {}]   ;;  %s310_s2 = inlined_call_operand.vmem [shape: f32[1,192], index: 2, kind: input, shape index: {}]   ;;  %s311_s3 = inlined_call_operand.vmem [shape: f32[1,192], index: 3, kind: input, shape index: {}]   ;;  %s312_s4 = inlined_call_operand.vmem [shape: bf16[32,192], index: 4, kind: output, shape index: {}]  }
   0x1   :  { %v25_v2 = vld [vmem:[%s308_s1] sm:$0x3]  ;;  %v18_v6 = vld [vmem:[%s309_s0 + $0x8] sm:$0xff]  ;;  %v19_v7 = vld [vmem:[%s309_s0 + $0x10] sm:$0xff] }
   0x2   :  { %v28_v1 = vshrl.u32 %v27_v0, 7  ;;  %v17_v3 = vld [vmem:[%s309_s0] sm:$0xff]  ;;  %v20_v8 = vld [vmem:[%s309_s0 + $0x18] sm:$0xff]  ;;  %v22_v10 = vld [vmem:[%s309_s0 + $0x28] sm:$0xff] }
   0x3   :  { %v21_v9 = vld [vmem:[%s309_s0 + $0x20] sm:$0xff]  ;;  %v24_v11 = vld [vmem:[%s309_s0 + $0x38] sm:$0xff]  ;;  %v23_v14 = vld [vmem:[%s309_s0 + $0x30] sm:$0xff] }
   0x4   :  { %v249_v4 = vsub.s32 0, %v28_v1  ;;  %v251_v5 = vsub.s32 1, %v28_v1  ;;  %vm197_vm3 = vmor %vm196_vm2, %vm195_vm1 }
   0x6   :  { %v30_v12 = vrot.slane %v25_v2, %v249_v4  ;;  %v34_v13 = vrot.slane %v25_v2, %v251_v5 }
   0x8   :  { %v37_v15 = vadd.f32 %v30_v12, %v17_v3  ;;  %v38_v16 = vadd.f32 %v34_v13, %v18_v6  ;;  %v39_v17 = vadd.f32 %v30_v12, %v19_v7  ;;  %v40_v18 = vadd.f32 %v34_v13, %v20_v8 }
   0x9   :  { %v41_v19 = vadd.f32 %v30_v12, %v21_v9  ;;  %v42_v20 = vadd.f32 %v34_v13, %v22_v10  ;;  %v44_v21 = vadd.f32 %v34_v13, %v24_v11  ;;  %v43_v22 = vadd.f32 %v30_v12, %v23_v14 }
   0xa   :  { %v45_v23 = vadd.f32 %v39_v17, %v37_v15  ;;  %v55_v24 = vsel %vm54_vm0, %v38_v16, 0.0  ;;  %v56_v25 = vsel %vm54_vm0, %v40_v18, 0.0 }
   0xb   :  { %v57_v26 = vadd.f32 %v56_v25, %v55_v24  ;;  %v58_v27 = vsel %vm54_vm0, %v42_v20, 0.0  ;;  %v60_v29 = vsel %vm54_vm0, %v44_v21, 0.0 }
   0xc   :  { %v46_v28 = vadd.f32 %v45_v23, %v41_v19 }
   0xd   :  { %v59_v30 = vadd.f32 %v58_v27, %v57_v26  ;;  %v123_v27 = vld [vmem:[%s310_s2] sm:$0x3] }
   0xe   :  { %v47_v31 = vadd.f32 %v46_v28, %v43_v22  ;;  %v143_v28 = vld [vmem:[%s311_s3] sm:$0x3] }
   0xf   :  { %v61_v32 = vadd.f32 %v60_v29, %v59_v30  ;;  %v128_v29 = vrot.slane %v123_v27, %v249_v4 }
  0x10   :  { %v48_v33 = vrot.slane %v47_v31, 4 }
  0x11   :  { %v62_v34 = vrot.slane %v61_v32, 4 }
  0x12   :  { %v49_v35 = vadd.f32 %v48_v33, %v47_v31  ;;  %v132_v31 = vrot.slane %v123_v27, %v251_v5 }
  0x13   :  { %v63_v36 = vadd.f32 %v62_v34, %v61_v32  ;;  %v148_v32 = vrot.slane %v143_v28, %v249_v4 }
  0x14   :  { %v50_v37 = vrot.slane %v49_v35, 2 }
  0x15   :  { %v64_v38 = vrot.slane %v63_v36, 2 }
  0x16   :  { %v51_v39 = vadd.f32 %v50_v37, %v49_v35 }
  0x17   :  { %v65_v40 = vadd.f32 %v64_v38, %v63_v36  ;;  %v152_v38 = vrot.slane %v143_v28, %v251_v5 }
  0x18   :  { %v52_v41 = vrot.slane %v51_v39, 1 }
  0x19   :  { %v66_v42 = vrot.slane %v65_v40, 1 }
  0x1a   :  { %v53_v43 = vadd.f32 %v52_v41, %v51_v39 }
  0x1b   :  { %v67_v44 = vadd.f32 %v66_v42, %v65_v40 }
  0x1c   :  { %v69_v45 = vmul.f32 0.03125, %v53_v43 }
  0x1d   :  { %v70_v46 = vmul.f32 0.03125, %v67_v44 }
  0x1e   :  { %v71_v47 = vsub.f32 %v37_v15, %v69_v45  ;;  %v73_v48 = vsub.f32 %v39_v17, %v69_v45  ;;  %v75_v49 = vsub.f32 %v41_v19, %v69_v45  ;;  %v77_v50 = vsub.f32 %v43_v22, %v69_v45 }
  0x1f   :  { %v72_v51 = vsub.f32 %v38_v16, %v70_v46  ;;  %v74_v52 = vsub.f32 %v40_v18, %v70_v46  ;;  %v76_v53 = vsub.f32 %v42_v20, %v70_v46  ;;  %v78_v54 = vsub.f32 %v44_v21, %v70_v46 }
  0x20   :  { %v79_v55 = vmul.f32 %v71_v47, %v71_v47  ;;  %v81_v56 = vmul.f32 %v73_v48, %v73_v48  ;;  %v83_v57 = vmul.f32 %v75_v49, %v75_v49  ;;  %v85_v62 = vmul.f32 %v77_v50, %v77_v50 }
  0x21   :  { %v80_v58 = vmul.f32 %v72_v51, %v72_v51  ;;  %v82_v59 = vmul.f32 %v74_v52, %v74_v52  ;;  %v84_v60 = vmul.f32 %v76_v53, %v76_v53  ;;  %v86_v61 = vmul.f32 %v78_v54, %v78_v54 }
  0x22   :  { %v87_v63 = vadd.f32 %v81_v56, %v79_v55 }
  0x23   :  { %v96_v0 = vsel %vm54_vm0, %v80_v58, 0.0  ;;  %v97_v1 = vsel %vm54_vm0, %v82_v59, 0.0  ;;  %v99_v2 = vsel %vm54_vm0, %v84_v60, 0.0  ;;  %v101_v7 = vsel %vm54_vm0, %v86_v61, 0.0 }
  0x24   :  { %v88_v3 = vadd.f32 %v87_v63, %v83_v57  ;;  %v98_v6 = vadd.f32 %v97_v1, %v96_v0 }
  0x26   :  { %v89_v8 = vadd.f32 %v88_v3, %v85_v62  ;;  %v100_v9 = vadd.f32 %v99_v2, %v98_v6 }
  0x28   :  { %v90_v10 = vrot.slane %v89_v8, 4  ;;  %v102_v11 = vadd.f32 %v101_v7, %v100_v9 }
  0x2a   :  { %v91_v12 = vadd.f32 %v90_v10, %v89_v8  ;;  %v103_v13 = vrot.slane %v102_v11, 4 }
  0x2c   :  { %v92_v14 = vrot.slane %v91_v12, 2  ;;  %v104_v15 = vadd.f32 %v103_v13, %v102_v11 }
  0x2e   :  { %v93_v16 = vadd.f32 %v92_v14, %v91_v12  ;;  %v105_v17 = vrot.slane %v104_v15, 2 }
  0x30   :  { %v94_v18 = vrot.slane %v93_v16, 1  ;;  %v106_v19 = vadd.f32 %v105_v17, %v104_v15 }
  0x32   :  { %v95_v20 = vadd.f32 %v94_v18, %v93_v16  ;;  %v107_v21 = vrot.slane %v106_v19, 1 }
  0x34   :  { %v108_v22 = vadd.f32 %v107_v21, %v106_v19  ;;  %v109_v23 = vmul.f32 0.03125, %v95_v20 }
  0x36   :  { %v110_v24 = vmul.f32 0.03125, %v108_v22  ;;  %v111_v25 = vadd.f32 1e-05, %v109_v23 }
  0x38   :  { %v112_v26 = vadd.f32 1e-05, %v110_v24  ;;  %214 = vrsqrt.f32 %v111_v25 }
  0x3a   :  { %216 = vrsqrt.f32 %v112_v26 }
  0x42   :  { %v215_v30 = vpop.eup %214 }
  0x43   :  { %v115_v33 = vmul.f32 %v215_v30, %v71_v47  ;;  %v117_v34 = vmul.f32 %v215_v30, %v73_v48  ;;  %v119_v35 = vmul.f32 %v215_v30, %v75_v49  ;;  %v121_v36 = vmul.f32 %v215_v30, %v77_v50 }
  0x44   :  { %v217_v37 = vpop.eup %216 }
  0x45   :  { %v116_v39 = vmul.f32 %v217_v37, %v72_v51  ;;  %v135_v40 = vmul.f32 %v128_v29, %v115_v33  ;;  %v118_v41 = vmul.f32 %v217_v37, %v74_v52  ;;  %v137_v42 = vmul.f32 %v128_v29, %v117_v34 }
  0x46   :  { %v120_v43 = vmul.f32 %v217_v37, %v76_v53  ;;  %v139_v44 = vmul.f32 %v128_v29, %v119_v35  ;;  %v122_v45 = vmul.f32 %v217_v37, %v78_v54  ;;  %v141_v46 = vmul.f32 %v128_v29, %v121_v36 }
  0x47   :  { %v136_v55 = vmul.f32 %v132_v31, %v116_v39  ;;  %v155_v56 = vadd.f32 %v148_v32, %v135_v40  ;;  %v138_v4 = vmul.f32 %v132_v31, %v118_v41  ;;  %v157_v47 = vadd.f32 %v148_v32, %v137_v42 }
  0x48   :  { %v140_v48 = vmul.f32 %v132_v31, %v120_v43  ;;  %v159_v49 = vadd.f32 %v148_v32, %v139_v44  ;;  %v142_v50 = vmul.f32 %v132_v31, %v122_v45  ;;  %v161_v57 = vadd.f32 %v148_v32, %v141_v46 }
  0x49   :  { %v156_v58 = vadd.f32 %v152_v38, %v136_v55  ;;  %v163_v5 = vmax.f32 %v155_v56, 0.0  ;;  %v158_v59 = vadd.f32 %v152_v38, %v138_v4  ;;  %v165_v60 = vmax.f32 %v157_v47, 0.0 }
  0x4a   :  { %v160_v51 = vadd.f32 %v152_v38, %v140_v48  ;;  %v167_v61 = vmax.f32 %v159_v49, 0.0  ;;  %v162_v52 = vadd.f32 %v152_v38, %v142_v50  ;;  %v169_v62 = vmax.f32 %v161_v57, 0.0 }
  0x4b   :  { %v164_v53 = vmax.f32 %v156_v58, 0.0  ;;  %v166_v63 = vmax.f32 %v158_v59, 0.0 }
  0x4c   :  { %v168_v54 = vmax.f32 %v160_v51, 0.0  ;;  %v170_v0 = vmax.f32 %v162_v52, 0.0 }
  0x4d   :  { %v210_v1 = vpack.c.bf16 %v164_v53, %v163_v5  ;;  %v211_v2 = vpack.c.bf16 %v166_v63, %v165_v60 }
  0x4e   :  { %v212_v3 = vpack.c.bf16 %v168_v54, %v167_v61  ;;  %v213_v6 = vpack.c.bf16 %v170_v0, %v169_v62 }
  0x4f   :  { %198 = vst.msk [vmem:[%s312_s4] sm:$0xff] %vm197_vm3, %v210_v1  ;;  %199 = vst.msk [vmem:[%s312_s4 + $0x8] sm:$0xff] %vm197_vm3, %v211_v2 }
  0x50   :  { %200 = vst.msk [vmem:[%s312_s4 + $0x10] sm:$0xff] %vm197_vm3, %v212_v3  ;;  %201 = vst.msk [vmem:[%s312_s4 + $0x18] sm:$0xff] %vm197_vm3, %v213_v6 }

// kernel: generator_forward.10
= control target key start
LH: loop header
LB: loop body
LE: loop exit
PB: predicated region body
PF: predicated region fallthrough
CT: control target
= control target key end

     0   :  { %vm898_vm0 = vcmask 523264   ;;  %s2304_s1 = inlined_call_operand.vmem [shape: bf16[192,1536], index: 1, kind: input, shape index: {}]   ;;  %s2305_s0 = inlined_call_operand.vmem [shape: bf16[32,192], index: 0, kind: input, shape index: {}]   ;;  %s2306_s2 = inlined_call_operand.vmem [shape: f32[32,1536], index: 2, kind: output, shape index: {}]  }
   0x1   :  { %v1435_v0 = vld [vmem:[%s2304_s1 + $0x4] ss:$48 sps:$4 sm:$0xff]   ;;  %v1437_v1 = vld [vmem:[%s2304_s1 + $0xc] ss:$48 sps:$4 sm:$0xff]   ;;  %v1439_v2 = vld [vmem:[%s2304_s1] ss:$48 sps:$4 sm:$0xff]  }
   0x2   :  { %905 = vmatprep.subr.bf16.mxu0 %v1435_v0  ;;  %v1440_v3 = vld [vmem:[%s2304_s1 + $0x8] ss:$48 sps:$4 sm:$0xff]   ;;  %958 = vmatprep.subr.bf16.mxu1 %v1437_v1  ;;  %v1441_v4 = vld [vmem:[%s2304_s1 + $0x64] ss:$48 sps:$4 sm:$0xff]   ;;  %v1443_v5 = vld [vmem:[%s2304_s1 + $0x6c] ss:$48 sps:$4 sm:$0xff]  }
   0x3   :  { %906 = vmatpush1.bf16.msra.mxu0 %v1439_v2  ;;  %959 = vmatpush1.bf16.msra.mxu1 %v1440_v3  ;;  %v1445_v6 = vld [vmem:[%s2304_s1 + $0x60] ss:$48 sps:$4 sm:$0xff]   ;;  %v1446_v7 = vld [vmem:[%s2304_s1 + $0x68] ss:$48 sps:$4 sm:$0xff]   ;;  %v1447_v8 = vld [vmem:[%s2304_s1 + $0xc4] ss:$48 sps:$4 sm:$0xff]  }
   0x4   :  { %907 = vmatprep.subr.bf16.mxu0 %v1441_v4  ;;  %960 = vmatprep.subr.bf16.mxu1 %v1443_v5  ;;  %v1449_v9 = vld [vmem:[%s2304_s1 + $0xcc] ss:$48 sps:$4 sm:$0xff]   ;;  %v1451_v10 = vld [vmem:[%s2304_s1 + $0xc0] ss:$48 sps:$4 sm:$0xff]   ;;  %v1452_v11 = vld [vmem:[%s2304_s1 + $0xc8] ss:$48 sps:$4 sm:$0xff]  }
   0x5   :  { %v1453_v12 = vld [vmem:[%s2304_s1 + $0x124] ss:$48 sps:$4 sm:$0xff]   ;;  %v1455_v13 = vld [vmem:[%s2304_s1 + $0x12c] ss:$48 sps:$4 sm:$0xff]   ;;  %v1457_v14 = vld [vmem:[%s2304_s1 + $0x120] ss:$48 sps:$4 sm:$0xff]  }
   0x6   :  { %v1458_v15 = vld [vmem:[%s2304_s1 + $0x128] ss:$48 sps:$4 sm:$0xff]   ;;  %v1459_v16 = vld [vmem:[%s2304_s1 + $0x184] ss:$48 sps:$4 sm:$0xff]   ;;  %v1461_v17 = vld [vmem:[%s2304_s1 + $0x18c] ss:$48 sps:$4 sm:$0xff]  }
   0x7   :  { %908 = vmatpush1.bf16.msra.mxu0 %v1445_v6  ;;  %961 = vmatpush1.bf16.msra.mxu1 %v1446_v7  ;;  %v1463_v18 = vld [vmem:[%s2304_s1 + $0x180] ss:$48 sps:$4 sm:$0xff]   ;;  %v1464_v19 = vld [vmem:[%s2304_s1 + $0x188] ss:$48 sps:$4 sm:$0xff]   ;;  %v1465_v20 = vld [vmem:[%s2304_s1 + $0x1e4] ss:$48 sps:$4 sm:$0xff]  }
   0x8   :  { %909 = vmatprep.subr.bf16.mxu0 %v1447_v8  ;;  %962 = vmatprep.subr.bf16.mxu1 %v1449_v9  ;;  %v1467_v21 = vld [vmem:[%s2304_s1 + $0x1ec] ss:$48 sps:$4 sm:$0xff]   ;;  %v1469_v22 = vld [vmem:[%s2304_s1 + $0x1e0] ss:$48 sps:$4 sm:$0xff]   ;;  %v1470_v23 = vld [vmem:[%s2304_s1 + $0x1e8] ss:$48 sps:$4 sm:$0xff]  }
   0x9   :  { %v1471_v24 = vld [vmem:[%s2304_s1 + $0x244] ss:$48 sps:$4 sm:$0xff]   ;;  %v1473_v25 = vld [vmem:[%s2304_s1 + $0x24c] ss:$48 sps:$4 sm:$0xff]   ;;  %v1475_v26 = vld [vmem:[%s2304_s1 + $0x240] ss:$48 sps:$4 sm:$0xff]  }
   0xa   :  { %v1476_v27 = vld [vmem:[%s2304_s1 + $0x248] ss:$48 sps:$4 sm:$0xff]   ;;  %v1477_v28 = vld [vmem:[%s2304_s1 + $0x2a4] ss:$48 sps:$4 sm:$0xff]   ;;  %v1479_v29 = vld [vmem:[%s2304_s1 + $0x2ac] ss:$48 sps:$4 sm:$0xff]  }
   0xb   :  { %910 = vmatpush1.bf16.msra.mxu0 %v1451_v10  ;;  %963 = vmatpush1.bf16.msra.mxu1 %v1452_v11  ;;  %v1481_v30 = vld [vmem:[%s2304_s1 + $0x2a0] ss:$48 sps:$4 sm:$0xff]   ;;  %v1482_v31 = vld [vmem:[%s2304_s1 + $0x2a8] ss:$48 sps:$4 sm:$0xff]   ;;  %v1483_v32 = vld [vmem:[%s2304_s1 + $0x304] ss:$48 sps:$4 sm:$0xff]  }
   0xc   :  { %911 = vmatprep.subr.bf16.mxu0 %v1453_v12  ;;  %964 = vmatprep.subr.bf16.mxu1 %v1455_v13  ;;  %v1485_v33 = vld [vmem:[%s2304_s1 + $0x30c] ss:$48 sps:$4 sm:$0xff]   ;;  %v1487_v34 = vld [vmem:[%s2304_s1 + $0x300] ss:$48 sps:$4 sm:$0xff]   ;;  %v1488_v35 = vld [vmem:[%s2304_s1 + $0x308] ss:$48 sps:$4 sm:$0xff]  }
   0xd   :  { %v1489_v36 = vld [vmem:[%s2304_s1 + $0x364] ss:$48 sps:$4 sm:$0xff]   ;;  %v1491_v38 = vld [vmem:[%s2304_s1 + $0x36c] ss:$48 sps:$4 sm:$0xff]   ;;  %v1493_v39 = vld [vmem:[%s2304_s1 + $0x360] ss:$48 sps:$4 sm:$0xff]  }
   0xe   :  { %v1786_v37 = vld [vmem:[%s2305_s0 + $0x4] ss:$8 sps:$4 sm:$0xff]   ;;  %v1494_v40 = vld [vmem:[%s2304_s1 + $0x368] ss:$48 sps:$4 sm:$0xff]   ;;  %v1499_v43 = vld [vmem:[%s2304_s1 + $0x3c0] ss:$48 sps:$4 sm:$0xff]  }
   0xf   :  { %912 = vmatpush1.bf16.msra.mxu0 %v1457_v14  ;;  %965 = vmatpush1.bf16.msra.mxu1 %v1458_v15  ;;  %v1495_v41 = vld [vmem:[%s2304_s1 + $0x3c4] ss:$48 sps:$4 sm:$0xff]   ;;  %v1497_v42 = vld [vmem:[%s2304_s1 + $0x3cc] ss:$48 sps:$4 sm:$0xff]   ;;  %v1500_v44 = vld [vmem:[%s2304_s1 + $0x3c8] ss:$48 sps:$4 sm:$0xff]  }
  0x10   :  { %913 = vmatprep.subr.bf16.mxu0 %v1459_v16  ;;  %966 = vmatprep.subr.bf16.mxu1 %v1461_v17  ;;  %v1501_v45 = vld [vmem:[%s2304_s1 + $0x424] ss:$48 sps:$4 sm:$0xff]   ;;  %v1503_v46 = vld [vmem:[%s2304_s1 + $0x42c] ss:$48 sps:$4 sm:$0xff]   ;;  %v1505_v47 = vld [vmem:[%s2304_s1 + $0x420] ss:$48 sps:$4 sm:$0xff]  }
  0x11   :  { %1423 = vmatprep.mubr.msk.bf16.mxu0 %vm898_vm0, %v1786_v37  ;;  %1425 = vmatprep.mubr.msk.bf16.mxu1 %vm898_vm0, %v1786_v37  ;;  %v1506_v48 = vld [vmem:[%s2304_s1 + $0x428] ss:$48 sps:$4 sm:$0xff]   ;;  %v1512_v49 = vld [vmem:[%s2304_s1 + $0x14] ss:$48 sps:$4 sm:$0xff]   ;;  %v1515_v50 = vld [vmem:[%s2304_s1 + $0x1c] ss:$48 sps:$4 sm:$0xff]  }
  0x12   :  { %v1834_v51 = vld [vmem:[%s2305_s0] ss:$8 sps:$4 sm:$0xff]   ;;  %v1518_v54 = vld [vmem:[%s2304_s1 + $0x74] ss:$48 sps:$4 sm:$0xff]   ;;  %v1521_v55 = vld [vmem:[%s2304_s1 + $0x7c] ss:$48 sps:$4 sm:$0xff]  }
  0x13   :  { %914 = vmatpush1.bf16.msra.mxu0 %v1463_v18  ;;  %967 = vmatpush1.bf16.msra.mxu1 %v1464_v19  ;;  %v1510_v52 = vld [vmem:[%s2304_s1 + $0x10] ss:$48 sps:$4 sm:$0xff]   ;;  %v1513_v53 = vld [vmem:[%s2304_s1 + $0x18] ss:$48 sps:$4 sm:$0xff]   ;;  %v1524_v58 = vld [vmem:[%s2304_s1 + $0xd4] ss:$48 sps:$4 sm:$0xff]  }
  0x14   :  { %915 = vmatprep.subr.bf16.mxu0 %v1465_v20  ;;  %968 = vmatprep.subr.bf16.mxu1 %v1467_v21  ;;  %v1516_v56 = vld [vmem:[%s2304_s1 + $0x70] ss:$48 sps:$4 sm:$0xff]   ;;  %v1519_v57 = vld [vmem:[%s2304_s1 + $0x78] ss:$48 sps:$4 sm:$0xff]   ;;  %v1527_v59 = vld [vmem:[%s2304_s1 + $0xdc] ss:$48 sps:$4 sm:$0xff]  }
  0x15   :  { %v1522_v60 = vld [vmem:[%s2304_s1 + $0xd0] ss:$48 sps:$4 sm:$0xff]   ;;  %v1525_v61 = vld [vmem:[%s2304_s1 + $0xd8] ss:$48 sps:$4 sm:$0xff]   ;;  %v1530_v62 = vld [vmem:[%s2304_s1 + $0x134] ss:$48 sps:$4 sm:$0xff]  }
  0x16   :  { %v1533_v63 = vld [vmem:[%s2304_s1 + $0x13c] ss:$48 sps:$4 sm:$0xff]   ;;  %v1528_v0 = vld [vmem:[%s2304_s1 + $0x130] ss:$48 sps:$4 sm:$0xff]   ;;  %v1531_v1 = vld [vmem:[%s2304_s1 + $0x138] ss:$48 sps:$4 sm:$0xff]  }
  0x17   :  { %916 = vmatpush1.bf16.msra.mxu0 %v1469_v22  ;;  %969 = vmatpush1.bf16.msra.mxu1 %v1470_v23  ;;  %v1536_v2 = vld [vmem:[%s2304_s1 + $0x194] ss:$48 sps:$4 sm:$0xff]   ;;  %v1539_v3 = vld [vmem:[%s2304_s1 + $0x19c] ss:$48 sps:$4 sm:$0xff]   ;;  %v1894_v5 = vld [vmem:[%s2305_s0 + $0x10] ss:$8 sps:$4 sm:$0xff]  }
  0x18   :  { %917 = vmatprep.subr.bf16.mxu0 %v1471_v24  ;;  %970 = vmatprep.subr.bf16.mxu1 %v1473_v25  ;;  %v1889_v4 = vld [vmem:[%s2305_s0 + $0x14] ss:$8 sps:$4 sm:$0xff]   ;;  %v1534_v6 = vld [vmem:[%s2304_s1 + $0x190] ss:$48 sps:$4 sm:$0xff]   ;;  %v1537_v7 = vld [vmem:[%s2304_s1 + $0x198] ss:$48 sps:$4 sm:$0xff]  }
  0x19   :  { %v1542_v8 = vld [vmem:[%s2304_s1 + $0x1f4] ss:$48 sps:$4 sm:$0xff]   ;;  %v1545_v9 = vld [vmem:[%s2304_s1 + $0x1fc] ss:$48 sps:$4 sm:$0xff]   ;;  %v1540_v10 = vld [vmem:[%s2304_s1 + $0x1f0] ss:$48 sps:$4 sm:$0xff]  }
  0x1a   :  { %v1543_v11 = vld [vmem:[%s2304_s1 + $0x1f8] ss:$48 sps:$4 sm:$0xff]   ;;  %v1548_v12 = vld [vmem:[%s2304_s1 + $0x254] ss:$48 sps:$4 sm:$0xff]   ;;  %v1551_v13 = vld [vmem:[%s2304_s1 + $0x25c] ss:$48 sps:$4 sm:$0xff]  }
  0x1b   :  { %918 = vmatpush1.bf16.msra.mxu0 %v1475_v26  ;;  %971 = vmatpush1.bf16.msra.mxu1 %v1476_v27  ;;  %v1546_v14 = vld [vmem:[%s2304_s1 + $0x250] ss:$48 sps:$4 sm:$0xff]   ;;  %v1549_v15 = vld [vmem:[%s2304_s1 + $0x258] ss:$48 sps:$4 sm:$0xff]   ;;  %v1554_v16 = vld [vmem:[%s2304_s1 + $0x2b4] ss:$48 sps:$4 sm:$0xff]  }
  0x1c   :  { %919 = vmatprep.subr.bf16.mxu0 %v1477_v28  ;;  %972 = vmatprep.subr.bf16.mxu1 %v1479_v29  ;;  %v1557_v17 = vld [vmem:[%s2304_s1 + $0x2bc] ss:$48 sps:$4 sm:$0xff]   ;;  %v1552_v18 = vld [vmem:[%s2304_s1 + $0x2b0] ss:$48 sps:$4 sm:$0xff]   ;;  %v1555_v19 = vld [vmem:[%s2304_s1 + $0x2b8] ss:$48 sps:$4 sm:$0xff]  }
  0x1d   :  { %v1560_v20 = vld [vmem:[%s2304_s1 + $0x314] ss:$48 sps:$4 sm:$0xff]   ;;  %v1563_v21 = vld [vmem:[%s2304_s1 + $0x31c] ss:$48 sps:$4 sm:$0xff]   ;;  %v1558_v22 = vld [vmem:[%s2304_s1 + $0x310] ss:$48 sps:$4 sm:$0xff]  }
  0x1e   :  { %v1561_v23 = vld [vmem:[%s2304_s1 + $0x318] ss:$48 sps:$4 sm:$0xff]   ;;  %v1566_v24 = vld [vmem:[%s2304_s1 + $0x374] ss:$48 sps:$4 sm:$0xff]   ;;  %v1569_v25 = vld [vmem:[%s2304_s1 + $0x37c] ss:$48 sps:$4 sm:$0xff]  }
  0x1f   :  { %920 = vmatpush1.bf16.msra.mxu0 %v1481_v30  ;;  %973 = vmatpush1.bf16.msra.mxu1 %v1482_v31  ;;  %v1564_v26 = vld [vmem:[%s2304_s1 + $0x370] ss:$48 sps:$4 sm:$0xff]   ;;  %v1567_v27 = vld [vmem:[%s2304_s1 + $0x378] ss:$48 sps:$4 sm:$0xff]   ;;  %v1575_v28 = vld [vmem:[%s2304_s1 + $0x3d4] ss:$48 sps:$4 sm:$0xff]  }
  0x20   :  { %921 = vmatprep.subr.bf16.mxu0 %v1483_v32  ;;  %974 = vmatprep.subr.bf16.mxu1 %v1485_v33  ;;  %v1578_v29 = vld [vmem:[%s2304_s1 + $0x3dc] ss:$48 sps:$4 sm:$0xff]   ;;  %v1573_v30 = vld [vmem:[%s2304_s1 + $0x3d0] ss:$48 sps:$4 sm:$0xff]   ;;  %v1576_v31 = vld [vmem:[%s2304_s1 + $0x3d8] ss:$48 sps:$4 sm:$0xff]  }
  0x21   :  { %v1581_v32 = vld [vmem:[%s2304_s1 + $0x434] ss:$48 sps:$4 sm:$0xff]   ;;  %v1584_v33 = vld [vmem:[%s2304_s1 + $0x43c] ss:$48 sps:$4 sm:$0xff]  }
  0x23   :  { %922 = vmatpush1.bf16.msra.mxu0 %v1487_v34  ;;  %975 = vmatpush1.bf16.msra.mxu1 %v1488_v35  ;;  %v1579_v34 = vld [vmem:[%s2304_s1 + $0x430] ss:$48 sps:$4 sm:$0xff]   ;;  %v1582_v35 = vld [vmem:[%s2304_s1 + $0x438] ss:$48 sps:$4 sm:$0xff]  }
  0x24   :  { %923 = vmatprep.subr.bf16.mxu0 %v1489_v36  ;;  %976 = vmatprep.subr.bf16.mxu1 %v1491_v38  ;;  %v1587_v36 = vld [vmem:[%s2304_s1 + $0x24] ss:$48 sps:$4 sm:$0xff]   ;;  %v1590_v38 = vld [vmem:[%s2304_s1 + $0x2c] ss:$48 sps:$4 sm:$0xff]  }
  0x27   :  { %924 = vmatpush1.bf16.msra.mxu0 %v1493_v39  ;;  %977 = vmatpush1.bf16.msra.mxu1 %v1494_v40  ;;  %v1585_v39 = vld [vmem:[%s2304_s1 + $0x20] ss:$48 sps:$4 sm:$0xff]   ;;  %v1588_v40 = vld [vmem:[%s2304_s1 + $0x28] ss:$48 sps:$4 sm:$0xff]  }
  0x28   :  { %925 = vmatprep.subr.bf16.mxu0 %v1495_v41  ;;  %978 = vmatprep.subr.bf16.mxu1 %v1497_v42  ;;  %v1593_v41 = vld [vmem:[%s2304_s1 + $0x84] ss:$48 sps:$4 sm:$0xff]   ;;  %v1596_v42 = vld [vmem:[%s2304_s1 + $0x8c] ss:$48 sps:$4 sm:$0xff]  }
  0x2b   :  { %926 = vmatpush1.bf16.msra.mxu0 %v1499_v43  ;;  %979 = vmatpush1.bf16.msra.mxu1 %v1500_v44  ;;  %v1591_v43 = vld [vmem:[%s2304_s1 + $0x80] ss:$48 sps:$4 sm:$0xff]   ;;  %v1594_v44 = vld [vmem:[%s2304_s1 + $0x88] ss:$48 sps:$4 sm:$0xff]  }
  0x2c   :  { %927 = vmatprep.subr.bf16.mxu0 %v1501_v45  ;;  %980 = vmatprep.subr.bf16.mxu1 %v1503_v46  ;;  %v1599_v45 = vld [vmem:[%s2304_s1 + $0xe4] ss:$48 sps:$4 sm:$0xff]   ;;  %v1602_v46 = vld [vmem:[%s2304_s1 + $0xec] ss:$48 sps:$4 sm:$0xff]  }
  0x2f   :  { %928 = vmatpush1.bf16.msra.mxu0 %v1505_v47  ;;  %981 = vmatpush1.bf16.msra.mxu1 %v1506_v48  ;;  %v1597_v47 = vld [vmem:[%s2304_s1 + $0xe0] ss:$48 sps:$4 sm:$0xff]   ;;  %v1600_v48 = vld [vmem:[%s2304_s1 + $0xe8] ss:$48 sps:$4 sm:$0xff]  }
  0x30   :  { %1011 = vmatprep.subr.bf16.mxu0 %v1512_v49  ;;  %1064 = vmatprep.subr.bf16.mxu1 %v1515_v50  ;;  %v1605_v49 = vld [vmem:[%s2304_s1 + $0x144] ss:$48 sps:$4 sm:$0xff]   ;;  %v1608_v50 = vld [vmem:[%s2304_s1 + $0x14c] ss:$48 sps:$4 sm:$0xff]  }
  0x32   :  { %938 = vmatmul.mubr.bf16.vlgmr.msra.gmra.mrb[0].mxu0 %v1834_v51  ;;  %991 = vmatmul.mubr.bf16.vlgmr.msra.gmra.mrb[0].mxu1 %v1834_v51 }
  0x33   :  { %1012 = vmatpush1.bf16.msra.mxu0 %v1510_v52  ;;  %1065 = vmatpush1.bf16.msra.mxu1 %v1513_v53  ;;  %v1603_v52 = vld [vmem:[%s2304_s1 + $0x140] ss:$48 sps:$4 sm:$0xff]   ;;  %v1606_v53 = vld [vmem:[%s2304_s1 + $0x148] ss:$48 sps:$4 sm:$0xff]  }
  0x34   :  { %1013 = vmatprep.subr.bf16.mxu0 %v1518_v54  ;;  %1066 = vmatprep.subr.bf16.mxu1 %v1521_v55  ;;  %v1611_v54 = vld [vmem:[%s2304_s1 + $0x1a4] ss:$48 sps:$4 sm:$0xff]   ;;  %v1614_v55 = vld [vmem:[%s2304_s1 + $0x1ac] ss:$48 sps:$4 sm:$0xff]  }
  0x35   :  { %1424 = vmatprep.mubr.msk.bf16.mxu0 %vm898_vm0, %v1889_v4  ;;  %1426 = vmatprep.mubr.msk.bf16.mxu1 %vm898_vm0, %v1889_v4 }
  0x37   :  { %1014 = vmatpush1.bf16.msra.mxu0 %v1516_v56  ;;  %1067 = vmatpush1.bf16.msra.mxu1 %v1519_v57  ;;  %v1609_v56 = vld [vmem:[%s2304_s1 + $0x1a0] ss:$48 sps:$4 sm:$0xff]   ;;  %v1612_v57 = vld [vmem:[%s2304_s1 + $0x1a8] ss:$48 sps:$4 sm:$0xff]  }
  0x38   :  { %1015 = vmatprep.subr.bf16.mxu0 %v1524_v58  ;;  %1068 = vmatprep.subr.bf16.mxu1 %v1527_v59  ;;  %v1617_v58 = vld [vmem:[%s2304_s1 + $0x204] ss:$48 sps:$4 sm:$0xff]   ;;  %v1615_v59 = vld [vmem:[%s2304_s1 + $0x200] ss:$48 sps:$4 sm:$0xff]  }
  0x3a   :  { %948 = vmatmul.mubr.bf16.gmra.mrb[4].mxu0 %v1894_v5  ;;  %1001 = vmatmul.mubr.bf16.gmra.mrb[4].mxu1 %v1894_v5 }
  0x3b   :  { %1016 = vmatpush1.bf16.msra.mxu0 %v1522_v60  ;;  %1069 = vmatpush1.bf16.msra.mxu1 %v1525_v61  ;;  %v1618_v60 = vld [vmem:[%s2304_s1 + $0x208] ss:$48 sps:$4 sm:$0xff]   ;;  %v1623_v61 = vld [vmem:[%s2304_s1 + $0x264] ss:$48 sps:$4 sm:$0xff]  }
  0x3c   :  { %1017 = vmatprep.subr.bf16.mxu0 %v1530_v62  ;;  %1070 = vmatprep.subr.bf16.mxu1 %v1533_v63  ;;  %v1626_v62 = vld [vmem:[%s2304_s1 + $0x26c] ss:$48 sps:$4 sm:$0xff]   ;;  %v1621_v63 = vld [vmem:[%s2304_s1 + $0x260] ss:$48 sps:$4 sm:$0xff]  }
  0x3d   :  { %1427 = vmatprep.mubr.msk.bf16.mxu0 %vm898_vm0, %v1786_v37  ;;  %1429 = vmatprep.mubr.msk.bf16.mxu1 %vm898_vm0, %v1786_v37 }
  0x3f   :  { %1018 = vmatpush1.bf16.msra.mxu0 %v1528_v0  ;;  %1071 = vmatpush1.bf16.msra.mxu1 %v1531_v1  ;;  %v1624_v0 = vld [vmem:[%s2304_s1 + $0x268] ss:$48 sps:$4 sm:$0xff]   ;;  %v1629_v1 = vld [vmem:[%s2304_s1 + $0x2c4] ss:$48 sps:$4 sm:$0xff]  }
  0x40   :  { %1019 = vmatprep.subr.bf16.mxu0 %v1536_v2  ;;  %1072 = vmatprep.subr.bf16.mxu1 %v1539_v3  ;;  %v1632_v2 = vld [vmem:[%s2304_s1 + $0x2cc] ss:$48 sps:$4 sm:$0xff]   ;;  %v1627_v3 = vld [vmem:[%s2304_s1 + $0x2c0] ss:$48 sps:$4 sm:$0xff]  }
  0x43   :  { %1020 = vmatpush1.bf16.msra.mxu0 %v1534_v6  ;;  %1073 = vmatpush1.bf16.msra.mxu1 %v1537_v7  ;;  %v1630_v6 = vld [vmem:[%s2304_s1 + $0x2c8] ss:$48 sps:$4 sm:$0xff]   ;;  %v1635_v7 = vld [vmem:[%s2304_s1 + $0x324] ss:$48 sps:$4 sm:$0xff]  }
  0x44   :  { %1021 = vmatprep.subr.bf16.mxu0 %v1542_v8  ;;  %1074 = vmatprep.subr.bf16.mxu1 %v1545_v9  ;;  %v1638_v8 = vld [vmem:[%s2304_s1 + $0x32c] ss:$48 sps:$4 sm:$0xff]   ;;  %v1633_v9 = vld [vmem:[%s2304_s1 + $0x320] ss:$48 sps:$4 sm:$0xff]  }
  0x47   :  { %1022 = vmatpush1.bf16.msra.mxu0 %v1540_v10  ;;  %1075 = vmatpush1.bf16.msra.mxu1 %v1543_v11  ;;  %v1636_v10 = vld [vmem:[%s2304_s1 + $0x328] ss:$48 sps:$4 sm:$0xff]   ;;  %v1641_v11 = vld [vmem:[%s2304_s1 + $0x384] ss:$48 sps:$4 sm:$0xff]  }
  0x48   :  { %1023 = vmatprep.subr.bf16.mxu0 %v1548_v12  ;;  %1076 = vmatprep.subr.bf16.mxu1 %v1551_v13  ;;  %v1644_v12 = vld [vmem:[%s2304_s1 + $0x38c] ss:$48 sps:$4 sm:$0xff]   ;;  %v1639_v13 = vld [vmem:[%s2304_s1 + $0x380] ss:$48 sps:$4 sm:$0xff]  }
  0x4b   :  { %1024 = vmatpush1.bf16.msra.mxu0 %v1546_v14  ;;  %1077 = vmatpush1.bf16.msra.mxu1 %v1549_v15  ;;  %v1642_v14 = vld [vmem:[%s2304_s1 + $0x388] ss:$48 sps:$4 sm:$0xff]   ;;  %v1647_v15 = vld [vmem:[%s2304_s1 + $0x3e4] ss:$48 sps:$4 sm:$0xff]  }
  0x4c   :  { %1025 = vmatprep.subr.bf16.mxu0 %v1554_v16  ;;  %1078 = vmatprep.subr.bf16.mxu1 %v1557_v17  ;;  %v1650_v16 = vld [vmem:[%s2304_s1 + $0x3ec] ss:$48 sps:$4 sm:$0xff]   ;;  %v1645_v17 = vld [vmem:[%s2304_s1 + $0x3e0] ss:$48 sps:$4 sm:$0xff]  }
  0x4f   :  { %1026 = vmatpush1.bf16.msra.mxu0 %v1552_v18  ;;  %1079 = vmatpush1.bf16.msra.mxu1 %v1555_v19  ;;  %v1648_v18 = vld [vmem:[%s2304_s1 + $0x3e8] ss:$48 sps:$4 sm:$0xff]   ;;  %v1653_v19 = vld [vmem:[%s2304_s1 + $0x444] ss:$48 sps:$4 sm:$0xff]  }
  0x50   :  { %1027 = vmatprep.subr.bf16.mxu0 %v1560_v20  ;;  %1080 = vmatprep.subr.bf16.mxu1 %v1563_v21  ;;  %v1656_v20 = vld [vmem:[%s2304_s1 + $0x44c] ss:$48 sps:$4 sm:$0xff]   ;;  %v1651_v21 = vld [vmem:[%s2304_s1 + $0x440] ss:$48 sps:$4 sm:$0xff]  }
  0x53   :  { %1028 = vmatpush1.bf16.msra.mxu0 %v1558_v22  ;;  %1081 = vmatpush1.bf16.msra.mxu1 %v1561_v23  ;;  %v1654_v22 = vld [vmem:[%s2304_s1 + $0x448] ss:$48 sps:$4 sm:$0xff]  }
  0x54   :  { %1029 = vmatprep.subr.bf16.mxu0 %v1566_v24  ;;  %1082 = vmatprep.subr.bf16.mxu1 %v1569_v25 }
  0x57   :  { %1030 = vmatpush1.bf16.msra.mxu0 %v1564_v26  ;;  %1083 = vmatpush1.bf16.msra.mxu1 %v1567_v27 }
  0x58   :  { %1031 = vmatprep.subr.bf16.mxu0 %v1575_v28  ;;  %1084 = vmatprep.subr.bf16.mxu1 %v1578_v29 }
  0x5b   :  { %1032 = vmatpush1.bf16.msra.mxu0 %v1573_v30  ;;  %1085 = vmatpush1.bf16.msra.mxu1 %v1576_v31 }
  0x5c   :  { %1033 = vmatprep.subr.bf16.mxu0 %v1581_v32  ;;  %1086 = vmatprep.subr.bf16.mxu1 %v1584_v33 }
  0x5f   :  { %1034 = vmatpush1.bf16.msra.mxu0 %v1579_v34  ;;  %1087 = vmatpush1.bf16.msra.mxu1 %v1582_v35 }
  0x60   :  { %1117 = vmatprep.subr.bf16.mxu0 %v1587_v36  ;;  %1170 = vmatprep.subr.bf16.mxu1 %v1590_v38 }
  0x62   :  { %1044 = vmatmul.mubr.bf16.vlgmr.msra.gmra.mrb[8].mxu0 %v1834_v51  ;;  %1097 = vmatmul.mubr.bf16.vlgmr.msra.gmra.mrb[8].mxu1 %v1834_v51 }
  0x63   :  { %1118 = vmatpush1.bf16.msra.mxu0 %v1585_v39  ;;  %1171 = vmatpush1.bf16.msra.mxu1 %v1588_v40 }
  0x64   :  { %1119 = vmatprep.subr.bf16.mxu0 %v1593_v41  ;;  %1172 = vmatprep.subr.bf16.mxu1 %v1596_v42 }
  0x65   :  { %1428 = vmatprep.mubr.msk.bf16.mxu0 %vm898_vm0, %v1889_v4  ;;  %1430 = vmatprep.mubr.msk.bf16.mxu1 %vm898_vm0, %v1889_v4 }
  0x67   :  { %1120 = vmatpush1.bf16.msra.mxu0 %v1591_v43  ;;  %1173 = vmatpush1.bf16.msra.mxu1 %v1594_v44 }
  0x68   :  { %1121 = vmatprep.subr.bf16.mxu0 %v1599_v45  ;;  %1174 = vmatprep.subr.bf16.mxu1 %v1602_v46 }
  0x6a   :  { %1054 = vmatmul.mubr.bf16.gmra.mrb[12].mxu0 %v1894_v5  ;;  %1107 = vmatmul.mubr.bf16.gmra.mrb[12].mxu1 %v1894_v5 }
  0x6b   :  { %1122 = vmatpush1.bf16.msra.mxu0 %v1597_v47  ;;  %1175 = vmatpush1.bf16.msra.mxu1 %v1600_v48 }
  0x6c   :  { %1123 = vmatprep.subr.bf16.mxu0 %v1605_v49  ;;  %1176 = vmatprep.subr.bf16.mxu1 %v1608_v50 }
  0x6d   :  { %1431 = vmatprep.mubr.msk.bf16.mxu0 %vm898_vm0, %v1786_v37  ;;  %1433 = vmatprep.mubr.msk.bf16.mxu1 %vm898_vm0, %v1786_v37  ;;  %v1620_v37 = vld [vmem:[%s2304_s1 + $0x20c] ss:$48 sps:$4 sm:$0xff]  }
  0x6f   :  { %1124 = vmatpush1.bf16.msra.mxu0 %v1603_v52  ;;  %1177 = vmatpush1.bf16.msra.mxu1 %v1606_v53 }
  0x70   :  { %1125 = vmatprep.subr.bf16.mxu0 %v1611_v54  ;;  %1178 = vmatprep.subr.bf16.mxu1 %v1614_v55 }
  0x73   :  { %1126 = vmatpush1.bf16.msra.mxu0 %v1609_v56  ;;  %1179 = vmatpush1.bf16.msra.mxu1 %v1612_v57 }
  0x74   :  { %1127 = vmatprep.subr.bf16.mxu0 %v1617_v58  ;;  %1180 = vmatprep.subr.bf16.mxu1 %v1620_v37 }
  0x77   :  { %1128 = vmatpush1.bf16.msra.mxu0 %v1615_v59  ;;  %1181 = vmatpush1.bf16.msra.mxu1 %v1618_v60 }
  0x78   :  { %1129 = vmatprep.subr.bf16.mxu0 %v1623_v61  ;;  %1182 = vmatprep.subr.bf16.mxu1 %v1626_v62 }
  0x7b   :  { %1130 = vmatpush1.bf16.msra.mxu0 %v1621_v63  ;;  %1183 = vmatpush1.bf16.msra.mxu1 %v1624_v0 }
  0x7c   :  { %1131 = vmatprep.subr.bf16.mxu0 %v1629_v1  ;;  %1184 = vmatprep.subr.bf16.mxu1 %v1632_v2 }
  0x7f   :  { %1132 = vmatpush1.bf16.msra.mxu0 %v1627_v3  ;;  %1185 = vmatpush1.bf16.msra.mxu1 %v1630_v6 }
  0x80   :  { %1133 = vmatprep.subr.bf16.mxu0 %v1635_v7  ;;  %1186 = vmatprep.subr.bf16.mxu1 %v1638_v8 }
  0x83   :  { %1134 = vmatpush1.bf16.msra.mxu0 %v1633_v9  ;;  %1187 = vmatpush1.bf16.msra.mxu1 %v1636_v10 }
  0x84   :  { %1135 = vmatprep.subr.bf16.mxu0 %v1641_v11  ;;  %1188 = vmatprep.subr.bf16.mxu1 %v1644_v12 }
  0x87   :  { %1136 = vmatpush1.bf16.msra.mxu0 %v1639_v13  ;;  %1189 = vmatpush1.bf16.msra.mxu1 %v1642_v14 }
  0x88   :  { %1137 = vmatprep.subr.bf16.mxu0 %v1647_v15  ;;  %1190 = vmatprep.subr.bf16.mxu1 %v1650_v16 }
  0x8b   :  { %1138 = vmatpush1.bf16.msra.mxu0 %v1645_v17  ;;  %1191 = vmatpush1.bf16.msra.mxu1 %v1648_v18 }
  0x8c   :  { %1139 = vmatprep.subr.bf16.mxu0 %v1653_v19  ;;  %1192 = vmatprep.subr.bf16.mxu1 %v1656_v20 }
  0x8f   :  { %1140 = vmatpush1.bf16.msra.mxu0 %v1651_v21  ;;  %1193 = vmatpush1.bf16.msra.mxu1 %v1654_v22 }
  0x92   :  { %1150 = vmatmul.mubr.bf16.vlgmr.msra.gmra.mrb[16].mxu0 %v1834_v51  ;;  %1203 = vmatmul.mubr.bf16.vlgmr.msra.gmra.mrb[16].mxu1 %v1834_v51 }
  0x93   :  { %1432 = vmatprep.mubr.msk.bf16.mxu0 %vm898_vm0, %v1889_v4  ;;  %1434 = vmatprep.mubr.msk.bf16.mxu1 %vm898_vm0, %v1889_v4 }
  0x9a   :  { %1160 = vmatmul.mubr.bf16.gmra.mrb[20].mxu0 %v1894_v5  ;;  %1213 = vmatmul.mubr.bf16.gmra.mrb[20].mxu1 %v1894_v5 }
 0x105   :  { %v939_v23 = vpop.f32.mrb[0].mxu0  ;;  %v992_v24 = vpop.f32.mrb[0].mxu1 }
 0x106   :  { %1223 = vst [vmem:[%s2306_s2] sm:$0xff] %v939_v23  ;;  %1225 = vst [vmem:[%s2306_s2 + $0x10] sm:$0xff] %v992_v24  ;;  %v941_v51 = vpop.f32.mrb[1].mxu0  ;;  %v994_v25 = vpop.f32.mrb[1].mxu1 }
 0x107   :  { %1224 = vst [vmem:[%s2306_s2 + $0x8] sm:$0xff] %v941_v51  ;;  %1226 = vst [vmem:[%s2306_s2 + $0x18] sm:$0xff] %v994_v25  ;;  %v943_v4 = vpop.f32.mrb[2].mxu0  ;;  %v996_v5 = vpop.f32.mrb[2].mxu1 }
 0x108   :  { %1235 = vst [vmem:[%s2306_s2 + $0x60] sm:$0xff] %v943_v4  ;;  %1237 = vst [vmem:[%s2306_s2 + $0x70] sm:$0xff] %v996_v5  ;;  %v945_v26 = vpop.f32.mrb[3].mxu0  ;;  %v998_v27 = vpop.f32.mrb[3].mxu1 }
 0x109   :  { %1236 = vst [vmem:[%s2306_s2 + $0x68] sm:$0xff] %v945_v26  ;;  %1238 = vst [vmem:[%s2306_s2 + $0x78] sm:$0xff] %v998_v27 }
 0x10d   :  { %v949_v28 = vpop.f32.mrb[4].mxu0  ;;  %v1002_v29 = vpop.f32.mrb[4].mxu1 }
 0x10e   :  { %1247 = vst [vmem:[%s2306_s2 + $0xc0] sm:$0xff] %v949_v28  ;;  %1249 = vst [vmem:[%s2306_s2 + $0xd0] sm:$0xff] %v1002_v29  ;;  %v951_v30 = vpop.f32.mrb[5].mxu0  ;;  %v1004_v31 = vpop.f32.mrb[5].mxu1 }
 0x10f   :  { %1248 = vst [vmem:[%s2306_s2 + $0xc8] sm:$0xff] %v951_v30  ;;  %1250 = vst [vmem:[%s2306_s2 + $0xd8] sm:$0xff] %v1004_v31  ;;  %v953_v32 = vpop.f32.mrb[6].mxu0  ;;  %v1006_v33 = vpop.f32.mrb[6].mxu1 }
 0x110   :  { %1259 = vst [vmem:[%s2306_s2 + $0x120] sm:$0xff] %v953_v32  ;;  %1261 = vst [vmem:[%s2306_s2 + $0x130] sm:$0xff] %v1006_v33  ;;  %v955_v34 = vpop.f32.mrb[7].mxu0  ;;  %v1008_v35 = vpop.f32.mrb[7].mxu1 }
 0x111   :  { %1260 = vst [vmem:[%s2306_s2 + $0x128] sm:$0xff] %v955_v34  ;;  %1262 = vst [vmem:[%s2306_s2 + $0x138] sm:$0xff] %v1008_v35 }
 0x135   :  { %v1045_v36 = vpop.f32.mrb[8].mxu0  ;;  %v1098_v38 = vpop.f32.mrb[8].mxu1 }
 0x136   :  { %1227 = vst [vmem:[%s2306_s2 + $0x20] sm:$0xff] %v1045_v36  ;;  %1229 = vst [vmem:[%s2306_s2 + $0x30] sm:$0xff] %v1098_v38  ;;  %v1047_v39 = vpop.f32.mrb[9].mxu0  ;;  %v1100_v40 = vpop.f32.mrb[9].mxu1 }
 0x137   :  { %1228 = vst [vmem:[%s2306_s2 + $0x28] sm:$0xff] %v1047_v39  ;;  %1230 = vst [vmem:[%s2306_s2 + $0x38] sm:$0xff] %v1100_v40  ;;  %v1049_v41 = vpop.f32.mrb[10].mxu0  ;;  %v1102_v42 = vpop.f32.mrb[10].mxu1 }
 0x138   :  { %1239 = vst [vmem:[%s2306_s2 + $0x80] sm:$0xff] %v1049_v41  ;;  %1241 = vst [vmem:[%s2306_s2 + $0x90] sm:$0xff] %v1102_v42  ;;  %v1051_v43 = vpop.f32.mrb[11].mxu0  ;;  %v1104_v44 = vpop.f32.mrb[11].mxu1 }
 0x139   :  { %1240 = vst [vmem:[%s2306_s2 + $0x88] sm:$0xff] %v1051_v43  ;;  %1242 = vst [vmem:[%s2306_s2 + $0x98] sm:$0xff] %v1104_v44 }
 0x13d   :  { %v1055_v45 = vpop.f32.mrb[12].mxu0  ;;  %v1108_v46 = vpop.f32.mrb[12].mxu1 }
 0x13e   :  { %1251 = vst [vmem:[%s2306_s2 + $0xe0] sm:$0xff] %v1055_v45  ;;  %1253 = vst [vmem:[%s2306_s2 + $0xf0] sm:$0xff] %v1108_v46  ;;  %v1057_v47 = vpop.f32.mrb[13].mxu0  ;;  %v1110_v48 = vpop.f32.mrb[13].mxu1 }
 0x13f   :  { %1252 = vst [vmem:[%s2306_s2 + $0xe8] sm:$0xff] %v1057_v47  ;;  %1254 = vst [vmem:[%s2306_s2 + $0xf8] sm:$0xff] %v1110_v48  ;;  %v1059_v49 = vpop.f32.mrb[14].mxu0  ;;  %v1112_v50 = vpop.f32.mrb[14].mxu1 }
 0x140   :  { %1263 = vst [vmem:[%s2306_s2 + $0x140] sm:$0xff] %v1059_v49  ;;  %1265 = vst [vmem:[%s2306_s2 + $0x150] sm:$0xff] %v1112_v50  ;;  %v1061_v52 = vpop.f32.mrb[15].mxu0  ;;  %v1114_v53 = vpop.f32.mrb[15].mxu1 }
 0x141   :  { %1264 = vst [vmem:[%s2306_s2 + $0x148] sm:$0xff] %v1061_v52  ;;  %1266 = vst [vmem:[%s2306_s2 + $0x158] sm:$0xff] %v1114_v53 }
 0x165   :  { %v1151_v54 = vpop.f32.mrb[16].mxu0  ;;  %v1204_v55 = vpop.f32.mrb[16].mxu1 }
 0x166   :  { %1231 = vst [vmem:[%s2306_s2 + $0x40] sm:$0xff] %v1151_v54  ;;  %1233 = vst [vmem:[%s2306_s2 + $0x50] sm:$0xff] %v1204_v55  ;;  %v1153_v56 = vpop.f32.mrb[17].mxu0  ;;  %v1206_v57 = vpop.f32.mrb[17].mxu1 }
 0x167   :  { %1232 = vst [vmem:[%s2306_s2 + $0x48] sm:$0xff] %v1153_v56  ;;  %1234 = vst [vmem:[%s2306_s2 + $0x58] sm:$0xff] %v1206_v57  ;;  %v1155_v58 = vpop.f32.mrb[18].mxu0  ;;  %v1208_v37 = vpop.f32.mrb[18].mxu1 }
 0x168   :  { %1243 = vst [vmem:[%s2306_s2 + $0xa0] sm:$0xff] %v1155_v58  ;;  %1245 = vst [vmem:[%s2306_s2 + $0xb0] sm:$0xff] %v1208_v37  ;;  %v1157_v59 = vpop.f32.mrb[19].mxu0  ;;  %v1210_v60 = vpop.f32.mrb[19].mxu1 }
 0x169   :  { %1244 = vst [vmem:[%s2306_s2 + $0xa8] sm:$0xff] %v1157_v59  ;;  %1246 = vst [vmem:[%s2306_s2 + $0xb8] sm:$0xff] %v1210_v60 }
 0x16d   :  { %v1161_v61 = vpop.f32.mrb[20].mxu0  ;;  %v1214_v62 = vpop.f32.mrb[20].mxu1 }
 0x16e   :  { %1255 = vst [vmem:[%s2306_s2 + $0x100] sm:$0xff] %v1161_v61  ;;  %1257 = vst [vmem:[%s2306_s2 + $0x110] sm:$0xff] %v1214_v62  ;;  %v1163_v63 = vpop.f32.mrb[21].mxu0  ;;  %v1216_v0 = vpop.f32.mrb[21].mxu1 }
 0x16f   :  { %1256 = vst [vmem:[%s2306_s2 + $0x108] sm:$0xff] %v1163_v63  ;;  %1258 = vst [vmem:[%s2306_s2 + $0x118] sm:$0xff] %v1216_v0  ;;  %v1165_v1 = vpop.f32.mrb[22].mxu0  ;;  %v1218_v2 = vpop.f32.mrb[22].mxu1 }
 0x170   :  { %1267 = vst [vmem:[%s2306_s2 + $0x160] sm:$0xff] %v1165_v1  ;;  %1269 = vst [vmem:[%s2306_s2 + $0x170] sm:$0xff] %v1218_v2  ;;  %v1167_v3 = vpop.f32.mrb[23].mxu0  ;;  %v1220_v6 = vpop.f32.mrb[23].mxu1 }
 0x171   :  { %1268 = vst [vmem:[%s2306_s2 + $0x168] sm:$0xff] %v1167_v3  ;;  %1270 = vst [vmem:[%s2306_s2 + $0x178] sm:$0xff] %v1220_v6 }

// kernel: generator_forward.12
= control target key start
LH: loop header
LB: loop body
LE: loop exit
PB: predicated region body
PF: predicated region fallthrough
CT: control target
= control target key end

     0   :  { %v891_v1 = vmov 0   ;;  %vm284_vm0 = vcmask 785408   ;;  %s1390_s1 = inlined_call_operand.vmem [shape: bf16[96,768], index: 1, kind: input, shape index: {}]   ;;  %s1391_s0 = inlined_call_operand.vmem [shape: bf16[128,96], index: 0, kind: input, shape index: {}]   ;;  %s1392_s2 = inlined_call_operand.vmem [shape: f32[128,768], index: 2, kind: output, shape index: {}]  }
   0x1   :  { %v829_v0 = vld [vmem:[%s1390_s1 + $0x4] ss:$24 sps:$4 sm:$0xff]   ;;  %341 = vmatprep.mubr.bf16.mxu0 %v891_v1  ;;  %381 = vmatprep.mubr.bf16.mxu1 %v891_v1  ;;  %v831_v2 = vld [vmem:[%s1390_s1] ss:$24 sps:$4 sm:$0xff]   ;;  %v832_v3 = vld [vmem:[%s1390_s1 + $0x34] ss:$24 sps:$4 sm:$0xff]  }
   0x2   :  { %309 = vmatprep.subr.bf16.mxu0 %v829_v0  ;;  %816 = vmatprep.subr.bf16.mxu1 %v829_v0  ;;  %v834_v4 = vld [vmem:[%s1390_s1 + $0x30] ss:$24 sps:$4 sm:$0xff]   ;;  %v835_v5 = vld [vmem:[%s1390_s1 + $0x64] ss:$24 sps:$4 sm:$0xff]   ;;  %v837_v6 = vld [vmem:[%s1390_s1 + $0x60] ss:$24 sps:$4 sm:$0xff]  }
   0x3   :  { %310 = vmatpush1.bf16.msra.mxu0 %v831_v2  ;;  %822 = vmatpush1.bf16.msra.mxu1 %v831_v2  ;;  %v838_v7 = vld [vmem:[%s1390_s1 + $0x94] ss:$24 sps:$4 sm:$0xff]   ;;  %v840_v8 = vld [vmem:[%s1390_s1 + $0x90] ss:$24 sps:$4 sm:$0xff]   ;;  %v841_v9 = vld [vmem:[%s1390_s1 + $0xc4] ss:$24 sps:$4 sm:$0xff]  }
   0x4   :  { %311 = vmatprep.subr.bf16.mxu0 %v832_v3  ;;  %817 = vmatprep.subr.bf16.mxu1 %v832_v3  ;;  %v843_v10 = vld [vmem:[%s1390_s1 + $0xc0] ss:$24 sps:$4 sm:$0xff]   ;;  %v844_v11 = vld [vmem:[%s1390_s1 + $0xf4] ss:$24 sps:$4 sm:$0xff]   ;;  %v846_v12 = vld [vmem:[%s1390_s1 + $0xf0] ss:$24 sps:$4 sm:$0xff]  }
   0x5   :  { %v851_v13 = vld [vmem:[%s1390_s1 + $0xc] ss:$24 sps:$4 sm:$0xff]   ;;  %v849_v17 = vld [vmem:[%s1390_s1 + $0x8] ss:$24 sps:$4 sm:$0xff]   ;;  %v857_v19 = vld [vmem:[%s1390_s1 + $0x3c] ss:$24 sps:$4 sm:$0xff]  }
   0x6   :  { %v951_v14 = vld [vmem:[%s1391_s0] sm:$0xff]   ;;  %v854_v15 = vld [vmem:[%s1390_s1 + $0x14] ss:$24 sps:$4 sm:$0xff]   ;;  %v852_v18 = vld [vmem:[%s1390_s1 + $0x10] ss:$24 sps:$4 sm:$0xff]  }
   0x7   :  { %312 = vmatpush1.bf16.msra.mxu0 %v834_v4  ;;  %823 = vmatpush1.bf16.msra.mxu1 %v834_v4  ;;  %v959_v16 = vld [vmem:[%s1391_s0 + $0x20] sm:$0xff]   ;;  %v855_v21 = vld [vmem:[%s1390_s1 + $0x38] ss:$24 sps:$4 sm:$0xff]   ;;  %v868_v24 = vld [vmem:[%s1390_s1 + $0x74] ss:$24 sps:$4 sm:$0xff]  }
   0x8   :  { %313 = vmatprep.subr.bf16.mxu0 %v835_v5  ;;  %818 = vmatprep.subr.bf16.mxu1 %v835_v5  ;;  %v860_v20 = vld [vmem:[%s1390_s1 + $0x44] ss:$24 sps:$4 sm:$0xff]   ;;  %v858_v22 = vld [vmem:[%s1390_s1 + $0x40] ss:$24 sps:$4 sm:$0xff]   ;;  %v861_v25 = vld [vmem:[%s1391_s0 + $0x8] sm:$0xff]  }
   0x9   :  { %v865_v23 = vld [vmem:[%s1390_s1 + $0x6c] ss:$24 sps:$4 sm:$0xff]   ;;  %v863_v27 = vld [vmem:[%s1390_s1 + $0x68] ss:$24 sps:$4 sm:$0xff]   ;;  %v873_v29 = vld [vmem:[%s1390_s1 + $0x9c] ss:$24 sps:$4 sm:$0xff]  }
   0xa   :  { %v997_v26 = vld [vmem:[%s1391_s0 + $0x28] sm:$0xff]   ;;  %v876_v30 = vld [vmem:[%s1390_s1 + $0xa4] ss:$24 sps:$4 sm:$0xff]   ;;  %v871_v31 = vld [vmem:[%s1390_s1 + $0x98] ss:$24 sps:$4 sm:$0xff]  }
   0xb   :  { %314 = vmatpush1.bf16.msra.mxu0 %v837_v6  ;;  %824 = vmatpush1.bf16.msra.mxu1 %v837_v6  ;;  %v866_v28 = vld [vmem:[%s1390_s1 + $0x70] ss:$24 sps:$4 sm:$0xff]   ;;  %v874_v32 = vld [vmem:[%s1390_s1 + $0xa0] ss:$24 sps:$4 sm:$0xff]   ;;  %v879_v33 = vld [vmem:[%s1390_s1 + $0xcc] ss:$24 sps:$4 sm:$0xff]  }
   0xc   :  { %315 = vmatprep.subr.bf16.mxu0 %v838_v7  ;;  %819 = vmatprep.subr.bf16.mxu1 %v838_v7  ;;  %v882_v34 = vld [vmem:[%s1390_s1 + $0xd4] ss:$24 sps:$4 sm:$0xff]   ;;  %v877_v37 = vld [vmem:[%s1390_s1 + $0xc8] ss:$24 sps:$4 sm:$0xff]   ;;  %v890_v40 = vld [vmem:[%s1390_s1 + $0x104] ss:$24 sps:$4 sm:$0xff]  }
   0xd   :  { %v869_v35 = vld [vmem:[%s1391_s0 + $0x10] sm:$0xff]   ;;  %v888_v42 = vld [vmem:[%s1390_s1 + $0x100] ss:$24 sps:$4 sm:$0xff]  }
   0xe   :  { %v870_v36 = vld [vmem:[%s1391_s0 + $0x30] sm:$0xff]   ;;  %v883_v43 = vld [vmem:[%s1391_s0 + $0x18] sm:$0xff]  }
   0xf   :  { %316 = vmatpush1.bf16.msra.mxu0 %v840_v8  ;;  %825 = vmatpush1.bf16.msra.mxu1 %v840_v8  ;;  %v880_v38 = vld [vmem:[%s1390_s1 + $0xd0] ss:$24 sps:$4 sm:$0xff]   ;;  %v887_v39 = vld [vmem:[%s1390_s1 + $0xfc] ss:$24 sps:$4 sm:$0xff]  }
  0x10   :  { %317 = vmatprep.subr.bf16.mxu0 %v841_v9  ;;  %820 = vmatprep.subr.bf16.mxu1 %v841_v9  ;;  %v885_v41 = vld [vmem:[%s1390_s1 + $0xf8] ss:$24 sps:$4 sm:$0xff]  }
  0x11   :  { %v884_v44 = vld [vmem:[%s1391_s0 + $0x38] sm:$0xff]  }
  0x13   :  { %318 = vmatpush1.bf16.msra.mxu0 %v843_v10  ;;  %826 = vmatpush1.bf16.msra.mxu1 %v843_v10 }
  0x14   :  { %319 = vmatprep.subr.bf16.mxu0 %v844_v11  ;;  %821 = vmatprep.subr.bf16.mxu1 %v844_v11 }
  0x17   :  { %320 = vmatpush1.bf16.msra.mxu0 %v846_v12  ;;  %827 = vmatpush1.bf16.msra.mxu1 %v846_v12 }
  0x18   :  { %422 = vmatprep.subr.bf16.mxu1 %v851_v13  ;;  %535 = vmatprep.subr.bf16.mxu0 %v854_v15 }
  0x1a   :  { %792 = vmatmul.mubr.msk.bf16.vlgmr.msra.gmra.mrb[0].mxu0 %vm284_vm0, %v951_v14  ;;  %796 = vmatmul.mubr.msk.bf16.vlgmr.msra.gmra.mrb[0].mxu1 %vm284_vm0, %v959_v16 }
  0x1b   :  { %423 = vmatpush1.bf16.msra.mxu1 %v849_v17  ;;  %536 = vmatpush1.bf16.msra.mxu0 %v852_v18 }
  0x1c   :  { %424 = vmatprep.subr.bf16.mxu1 %v857_v19  ;;  %537 = vmatprep.subr.bf16.mxu0 %v860_v20 }
  0x1d   :  { %351 = vmatprep.mubr.bf16.mxu0 %v891_v1  ;;  %391 = vmatprep.mubr.bf16.mxu1 %v891_v1 }
  0x1f   :  { %425 = vmatpush1.bf16.msra.mxu1 %v855_v21  ;;  %538 = vmatpush1.bf16.msra.mxu0 %v858_v22 }
  0x20   :  { %426 = vmatprep.subr.bf16.mxu1 %v865_v23  ;;  %539 = vmatprep.subr.bf16.mxu0 %v868_v24 }
  0x22   :  { %793 = vmatmul.mubr.msk.bf16.gmra.mrb[4].mxu0 %vm284_vm0, %v861_v25  ;;  %797 = vmatmul.mubr.msk.bf16.gmra.mrb[4].mxu1 %vm284_vm0, %v997_v26 }
  0x23   :  { %427 = vmatpush1.bf16.msra.mxu1 %v863_v27  ;;  %540 = vmatpush1.bf16.msra.mxu0 %v866_v28 }
  0x24   :  { %361 = vmatprep.mubr.bf16.mxu0 %v891_v1  ;;  %401 = vmatprep.mubr.bf16.mxu1 %v891_v1 }
  0x25   :  { %428 = vmatprep.subr.bf16.mxu1 %v873_v29  ;;  %541 = vmatprep.subr.bf16.mxu0 %v876_v30 }
  0x27   :  { %429 = vmatpush1.bf16.msra.mxu1 %v871_v31  ;;  %542 = vmatpush1.bf16.msra.mxu0 %v874_v32 }
  0x28   :  { %430 = vmatprep.subr.bf16.mxu1 %v879_v33  ;;  %543 = vmatprep.subr.bf16.mxu0 %v882_v34 }
  0x2a   :  { %794 = vmatmul.mubr.msk.bf16.gmra.mrb[8].mxu0 %vm284_vm0, %v869_v35  ;;  %798 = vmatmul.mubr.msk.bf16.gmra.mrb[8].mxu1 %vm284_vm0, %v870_v36 }
  0x2b   :  { %371 = vmatprep.mubr.bf16.mxu0 %v891_v1  ;;  %411 = vmatprep.mubr.bf16.mxu1 %v891_v1 }
  0x2c   :  { %431 = vmatpush1.bf16.msra.mxu1 %v877_v37  ;;  %544 = vmatpush1.bf16.msra.mxu0 %v880_v38 }
  0x2d   :  { %432 = vmatprep.subr.bf16.mxu1 %v887_v39  ;;  %545 = vmatprep.subr.bf16.mxu0 %v890_v40 }
  0x30   :  { %433 = vmatpush1.bf16.msra.mxu1 %v885_v41  ;;  %546 = vmatpush1.bf16.msra.mxu0 %v888_v42 }
  0x32   :  { %795 = vmatmul.mubr.msk.bf16.gmra.mrb[12].mxu0 %vm284_vm0, %v883_v43  ;;  %799 = vmatmul.mubr.msk.bf16.gmra.mrb[12].mxu1 %vm284_vm0, %v884_v44 }
  0x33   :  { %454 = vmatprep.mubr.bf16.mxu1 %v891_v1  ;;  %567 = vmatprep.mubr.bf16.mxu0 %v891_v1 }
  0x3a   :  { %800 = vmatmul.mubr.msk.bf16.vlgmr.msra.gmra.mrb[16].mxu1 %vm284_vm0, %v951_v14  ;;  %808 = vmatmul.mubr.msk.bf16.vlgmr.msra.gmra.mrb[16].mxu0 %vm284_vm0, %v951_v14 }
  0x3b   :  { %464 = vmatprep.mubr.bf16.mxu1 %v891_v1  ;;  %577 = vmatprep.mubr.bf16.mxu0 %v891_v1 }
  0x42   :  { %801 = vmatmul.mubr.msk.bf16.gmra.mrb[20].mxu1 %vm284_vm0, %v861_v25  ;;  %809 = vmatmul.mubr.msk.bf16.gmra.mrb[20].mxu0 %vm284_vm0, %v861_v25 }
  0x43   :  { %474 = vmatprep.mubr.bf16.mxu1 %v891_v1  ;;  %587 = vmatprep.mubr.bf16.mxu0 %v891_v1 }
  0x4a   :  { %802 = vmatmul.mubr.msk.bf16.gmra.mrb[24].mxu1 %vm284_vm0, %v869_v35  ;;  %810 = vmatmul.mubr.msk.bf16.gmra.mrb[24].mxu0 %vm284_vm0, %v869_v35 }
  0x4b   :  { %484 = vmatprep.mubr.bf16.mxu1 %v891_v1  ;;  %597 = vmatprep.mubr.bf16.mxu0 %v891_v1 }
  0x52   :  { %803 = vmatmul.mubr.msk.bf16.gmra.mrb[28].mxu1 %vm284_vm0, %v883_v43  ;;  %811 = vmatmul.mubr.msk.bf16.gmra.mrb[28].mxu0 %vm284_vm0, %v883_v43 }
  0x53   :  { %494 = vmatprep.mubr.bf16.mxu1 %v891_v1  ;;  %607 = vmatprep.mubr.bf16.mxu0 %v891_v1 }
  0x5a   :  { %804 = vmatmul.mubr.msk.bf16.gmra.mrb[32].mxu1 %vm284_vm0, %v959_v16  ;;  %812 = vmatmul.mubr.msk.bf16.gmra.mrb[32].mxu0 %vm284_vm0, %v959_v16 }
  0x5b   :  { %504 = vmatprep.mubr.bf16.mxu1 %v891_v1  ;;  %617 = vmatprep.mubr.bf16.mxu0 %v891_v1 }
  0x62   :  { %805 = vmatmul.mubr.msk.bf16.gmra.mrb[36].mxu1 %vm284_vm0, %v997_v26  ;;  %813 = vmatmul.mubr.msk.bf16.gmra.mrb[36].mxu0 %vm284_vm0, %v997_v26 }
  0x63   :  { %514 = vmatprep.mubr.bf16.mxu1 %v891_v1  ;;  %627 = vmatprep.mubr.bf16.mxu0 %v891_v1 }
  0x6a   :  { %806 = vmatmul.mubr.msk.bf16.gmra.mrb[40].mxu1 %vm284_vm0, %v870_v36  ;;  %814 = vmatmul.mubr.msk.bf16.gmra.mrb[40].mxu0 %vm284_vm0, %v870_v36 }
  0x6b   :  { %524 = vmatprep.mubr.bf16.mxu1 %v891_v1  ;;  %637 = vmatprep.mubr.bf16.mxu0 %v891_v1 }
  0x72   :  { %807 = vmatmul.mubr.msk.bf16.gmra.mrb[44].mxu1 %vm284_vm0, %v884_v44  ;;  %815 = vmatmul.mubr.msk.bf16.gmra.mrb[44].mxu0 %vm284_vm0, %v884_v44 }
  0xed   :  { %v343_v45 = vpop.f32.mrb[0].mxu0  ;;  %v383_v46 = vpop.f32.mrb[0].mxu1 }
  0xee   :  { %648 = vst [vmem:[%s1392_s2] sm:$0xff] %v343_v45  ;;  %696 = vst [vmem:[%s1392_s2 + $0x180] sm:$0xff] %v383_v46  ;;  %v345_v47 = vpop.f32.mrb[1].mxu0  ;;  %v385_v48 = vpop.f32.mrb[1].mxu1 }
  0xef   :  { %649 = vst [vmem:[%s1392_s2 + $0x8] sm:$0xff] %v345_v47  ;;  %697 = vst [vmem:[%s1392_s2 + $0x188] sm:$0xff] %v385_v48  ;;  %v347_v49 = vpop.f32.mrb[2].mxu0  ;;  %v387_v50 = vpop.f32.mrb[2].mxu1 }
  0xf0   :  { %654 = vst [vmem:[%s1392_s2 + $0x30] sm:$0xff] %v347_v49  ;;  %702 = vst [vmem:[%s1392_s2 + $0x1b0] sm:$0xff] %v387_v50  ;;  %v349_v51 = vpop.f32.mrb[3].mxu0  ;;  %v389_v52 = vpop.f32.mrb[3].mxu1 }
  0xf1   :  { %655 = vst [vmem:[%s1392_s2 + $0x38] sm:$0xff] %v349_v51  ;;  %703 = vst [vmem:[%s1392_s2 + $0x1b8] sm:$0xff] %v389_v52 }
  0xf5   :  { %v353_v53 = vpop.f32.mrb[4].mxu0  ;;  %v393_v54 = vpop.f32.mrb[4].mxu1 }
  0xf6   :  { %660 = vst [vmem:[%s1392_s2 + $0x60] sm:$0xff] %v353_v53  ;;  %708 = vst [vmem:[%s1392_s2 + $0x1e0] sm:$0xff] %v393_v54  ;;  %v355_v55 = vpop.f32.mrb[5].mxu0  ;;  %v395_v56 = vpop.f32.mrb[5].mxu1 }
  0xf7   :  { %661 = vst [vmem:[%s1392_s2 + $0x68] sm:$0xff] %v355_v55  ;;  %709 = vst [vmem:[%s1392_s2 + $0x1e8] sm:$0xff] %v395_v56  ;;  %v357_v57 = vpop.f32.mrb[6].mxu0  ;;  %v397_v58 = vpop.f32.mrb[6].mxu1 }
  0xf8   :  { %666 = vst [vmem:[%s1392_s2 + $0x90] sm:$0xff] %v357_v57  ;;  %714 = vst [vmem:[%s1392_s2 + $0x210] sm:$0xff] %v397_v58  ;;  %v359_v59 = vpop.f32.mrb[7].mxu0  ;;  %v399_v60 = vpop.f32.mrb[7].mxu1 }
  0xf9   :  { %667 = vst [vmem:[%s1392_s2 + $0x98] sm:$0xff] %v359_v59  ;;  %715 = vst [vmem:[%s1392_s2 + $0x218] sm:$0xff] %v399_v60 }
  0xfd   :  { %v363_v61 = vpop.f32.mrb[8].mxu0  ;;  %v403_v62 = vpop.f32.mrb[8].mxu1 }
  0xfe   :  { %672 = vst [vmem:[%s1392_s2 + $0xc0] sm:$0xff] %v363_v61  ;;  %720 = vst [vmem:[%s1392_s2 + $0x240] sm:$0xff] %v403_v62  ;;  %v365_v63 = vpop.f32.mrb[9].mxu0  ;;  %v405_v0 = vpop.f32.mrb[9].mxu1 }
  0xff   :  { %673 = vst [vmem:[%s1392_s2 + $0xc8] sm:$0xff] %v365_v63  ;;  %721 = vst [vmem:[%s1392_s2 + $0x248] sm:$0xff] %v405_v0  ;;  %v367_v1 = vpop.f32.mrb[10].mxu0  ;;  %v407_v2 = vpop.f32.mrb[10].mxu1 }
 0x100   :  { %678 = vst [vmem:[%s1392_s2 + $0xf0] sm:$0xff] %v367_v1  ;;  %726 = vst [vmem:[%s1392_s2 + $0x270] sm:$0xff] %v407_v2  ;;  %v369_v3 = vpop.f32.mrb[11].mxu0  ;;  %v409_v4 = vpop.f32.mrb[11].mxu1 }
 0x101   :  { %679 = vst [vmem:[%s1392_s2 + $0xf8] sm:$0xff] %v369_v3  ;;  %727 = vst [vmem:[%s1392_s2 + $0x278] sm:$0xff] %v409_v4 }
 0x105   :  { %v373_v5 = vpop.f32.mrb[12].mxu0  ;;  %v413_v6 = vpop.f32.mrb[12].mxu1 }
 0x106   :  { %684 = vst [vmem:[%s1392_s2 + $0x120] sm:$0xff] %v373_v5  ;;  %732 = vst [vmem:[%s1392_s2 + $0x2a0] sm:$0xff] %v413_v6  ;;  %v375_v7 = vpop.f32.mrb[13].mxu0  ;;  %v415_v8 = vpop.f32.mrb[13].mxu1 }
 0x107   :  { %685 = vst [vmem:[%s1392_s2 + $0x128] sm:$0xff] %v375_v7  ;;  %733 = vst [vmem:[%s1392_s2 + $0x2a8] sm:$0xff] %v415_v8  ;;  %v377_v9 = vpop.f32.mrb[14].mxu0  ;;  %v417_v10 = vpop.f32.mrb[14].mxu1 }
 0x108   :  { %690 = vst [vmem:[%s1392_s2 + $0x150] sm:$0xff] %v377_v9  ;;  %738 = vst [vmem:[%s1392_s2 + $0x2d0] sm:$0xff] %v417_v10  ;;  %v379_v11 = vpop.f32.mrb[15].mxu0  ;;  %v419_v12 = vpop.f32.mrb[15].mxu1 }
 0x109   :  { %691 = vst [vmem:[%s1392_s2 + $0x158] sm:$0xff] %v379_v11  ;;  %739 = vst [vmem:[%s1392_s2 + $0x2d8] sm:$0xff] %v419_v12 }
 0x10d   :  { %v456_v13 = vpop.f32.mrb[16].mxu1  ;;  %v569_v14 = vpop.f32.mrb[16].mxu0 }
 0x10e   :  { %650 = vst [vmem:[%s1392_s2 + $0x10] sm:$0xff] %v456_v13  ;;  %652 = vst [vmem:[%s1392_s2 + $0x20] sm:$0xff] %v569_v14  ;;  %v458_v15 = vpop.f32.mrb[17].mxu1  ;;  %v571_v16 = vpop.f32.mrb[17].mxu0 }
 0x10f   :  { %651 = vst [vmem:[%s1392_s2 + $0x18] sm:$0xff] %v458_v15  ;;  %653 = vst [vmem:[%s1392_s2 + $0x28] sm:$0xff] %v571_v16  ;;  %v460_v17 = vpop.f32.mrb[18].mxu1  ;;  %v573_v18 = vpop.f32.mrb[18].mxu0 }
 0x110   :  { %656 = vst [vmem:[%s1392_s2 + $0x40] sm:$0xff] %v460_v17  ;;  %658 = vst [vmem:[%s1392_s2 + $0x50] sm:$0xff] %v573_v18  ;;  %v462_v19 = vpop.f32.mrb[19].mxu1  ;;  %v575_v20 = vpop.f32.mrb[19].mxu0 }
 0x111   :  { %657 = vst [vmem:[%s1392_s2 + $0x48] sm:$0xff] %v462_v19  ;;  %659 = vst [vmem:[%s1392_s2 + $0x58] sm:$0xff] %v575_v20 }
 0x115   :  { %v466_v21 = vpop.f32.mrb[20].mxu1  ;;  %v579_v22 = vpop.f32.mrb[20].mxu0 }
 0x116   :  { %662 = vst [vmem:[%s1392_s2 + $0x70] sm:$0xff] %v466_v21  ;;  %664 = vst [vmem:[%s1392_s2 + $0x80] sm:$0xff] %v579_v22  ;;  %v468_v23 = vpop.f32.mrb[21].mxu1  ;;  %v581_v24 = vpop.f32.mrb[21].mxu0 }
 0x117   :  { %663 = vst [vmem:[%s1392_s2 + $0x78] sm:$0xff] %v468_v23  ;;  %665 = vst [vmem:[%s1392_s2 + $0x88] sm:$0xff] %v581_v24  ;;  %v470_v25 = vpop.f32.mrb[22].mxu1  ;;  %v583_v26 = vpop.f32.mrb[22].mxu0 }
 0x118   :  { %668 = vst [vmem:[%s1392_s2 + $0xa0] sm:$0xff] %v470_v25  ;;  %670 = vst [vmem:[%s1392_s2 + $0xb0] sm:$0xff] %v583_v26  ;;  %v472_v27 = vpop.f32.mrb[23].mxu1  ;;  %v585_v28 = vpop.f32.mrb[23].mxu0 }
 0x119   :  { %669 = vst [vmem:[%s1392_s2 + $0xa8] sm:$0xff] %v472_v27  ;;  %671 = vst [vmem:[%s1392_s2 + $0xb8] sm:$0xff] %v585_v28 }
 0x11d   :  { %v476_v29 = vpop.f32.mrb[24].mxu1  ;;  %v589_v30 = vpop.f32.mrb[24].mxu0 }
 0x11e   :  { %674 = vst [vmem:[%s1392_s2 + $0xd0] sm:$0xff] %v476_v29  ;;  %676 = vst [vmem:[%s1392_s2 + $0xe0] sm:$0xff] %v589_v30  ;;  %v478_v31 = vpop.f32.mrb[25].mxu1  ;;  %v591_v32 = vpop.f32.mrb[25].mxu0 }
 0x11f   :  { %675 = vst [vmem:[%s1392_s2 + $0xd8] sm:$0xff] %v478_v31  ;;  %677 = vst [vmem:[%s1392_s2 + $0xe8] sm:$0xff] %v591_v32  ;;  %v480_v33 = vpop.f32.mrb[26].mxu1  ;;  %v593_v34 = vpop.f32.mrb[26].mxu0 }
 0x120   :  { %680 = vst [vmem:[%s1392_s2 + $0x100] sm:$0xff] %v480_v33  ;;  %682 = vst [vmem:[%s1392_s2 + $0x110] sm:$0xff] %v593_v34  ;;  %v482_v35 = vpop.f32.mrb[27].mxu1  ;;  %v595_v36 = vpop.f32.mrb[27].mxu0 }
 0x121   :  { %681 = vst [vmem:[%s1392_s2 + $0x108] sm:$0xff] %v482_v35  ;;  %683 = vst [vmem:[%s1392_s2 + $0x118] sm:$0xff] %v595_v36 }
 0x125   :  { %v486_v37 = vpop.f32.mrb[28].mxu1  ;;  %v599_v38 = vpop.f32.mrb[28].mxu0 }
 0x126   :  { %686 = vst [vmem:[%s1392_s2 + $0x130] sm:$0xff] %v486_v37  ;;  %688 = vst [vmem:[%s1392_s2 + $0x140] sm:$0xff] %v599_v38  ;;  %v488_v39 = vpop.f32.mrb[29].mxu1  ;;  %v601_v40 = vpop.f32.mrb[29].mxu0 }
 0x127   :  { %687 = vst [vmem:[%s1392_s2 + $0x138] sm:$0xff] %v488_v39  ;;  %689 = vst [vmem:[%s1392_s2 + $0x148] sm:$0xff] %v601_v40  ;;  %v490_v41 = vpop.f32.mrb[30].mxu1  ;;  %v603_v42 = vpop.f32.mrb[30].mxu0 }
 0x128   :  { %692 = vst [vmem:[%s1392_s2 + $0x160] sm:$0xff] %v490_v41  ;;  %694 = vst [vmem:[%s1392_s2 + $0x170] sm:$0xff] %v603_v42  ;;  %v492_v43 = vpop.f32.mrb[31].mxu1  ;;  %v605_v44 = vpop.f32.mrb[31].mxu0 }
 0x129   :  { %693 = vst [vmem:[%s1392_s2 + $0x168] sm:$0xff] %v492_v43  ;;  %695 = vst [vmem:[%s1392_s2 + $0x178] sm:$0xff] %v605_v44 }
 0x12d   :  { %v496_v45 = vpop.f32.mrb[32].mxu1  ;;  %v609_v46 = vpop.f32.mrb[32].mxu0 }
 0x12e   :  { %698 = vst [vmem:[%s1392_s2 + $0x190] sm:$0xff] %v496_v45  ;;  %700 = vst [vmem:[%s1392_s2 + $0x1a0] sm:$0xff] %v609_v46  ;;  %v498_v47 = vpop.f32.mrb[33].mxu1  ;;  %v611_v48 = vpop.f32.mrb[33].mxu0 }
 0x12f   :  { %699 = vst [vmem:[%s1392_s2 + $0x198] sm:$0xff] %v498_v47  ;;  %701 = vst [vmem:[%s1392_s2 + $0x1a8] sm:$0xff] %v611_v48  ;;  %v500_v49 = vpop.f32.mrb[34].mxu1  ;;  %v613_v50 = vpop.f32.mrb[34].mxu0 }
 0x130   :  { %704 = vst [vmem:[%s1392_s2 + $0x1c0] sm:$0xff] %v500_v49  ;;  %706 = vst [vmem:[%s1392_s2 + $0x1d0] sm:$0xff] %v613_v50  ;;  %v502_v51 = vpop.f32.mrb[35].mxu1  ;;  %v615_v52 = vpop.f32.mrb[35].mxu0 }
 0x131   :  { %705 = vst [vmem:[%s1392_s2 + $0x1c8] sm:$0xff] %v502_v51  ;;  %707 = vst [vmem:[%s1392_s2 + $0x1d8] sm:$0xff] %v615_v52 }
 0x135   :  { %v506_v53 = vpop.f32.mrb[36].mxu1  ;;  %v619_v54 = vpop.f32.mrb[36].mxu0 }
 0x136   :  { %710 = vst [vmem:[%s1392_s2 + $0x1f0] sm:$0xff] %v506_v53  ;;  %712 = vst [vmem:[%s1392_s2 + $0x200] sm:$0xff] %v619_v54  ;;  %v508_v55 = vpop.f32.mrb[37].mxu1  ;;  %v621_v56 = vpop.f32.mrb[37].mxu0 }
 0x137   :  { %711 = vst [vmem:[%s1392_s2 + $0x1f8] sm:$0xff] %v508_v55  ;;  %713 = vst [vmem:[%s1392_s2 + $0x208] sm:$0xff] %v621_v56  ;;  %v510_v57 = vpop.f32.mrb[38].mxu1  ;;  %v623_v58 = vpop.f32.mrb[38].mxu0 }
 0x138   :  { %716 = vst [vmem:[%s1392_s2 + $0x220] sm:$0xff] %v510_v57  ;;  %718 = vst [vmem:[%s1392_s2 + $0x230] sm:$0xff] %v623_v58  ;;  %v512_v59 = vpop.f32.mrb[39].mxu1  ;;  %v625_v60 = vpop.f32.mrb[39].mxu0 }
 0x139   :  { %717 = vst [vmem:[%s1392_s2 + $0x228] sm:$0xff] %v512_v59  ;;  %719 = vst [vmem:[%s1392_s2 + $0x238] sm:$0xff] %v625_v60 }
 0x13d   :  { %v516_v61 = vpop.f32.mrb[40].mxu1  ;;  %v629_v62 = vpop.f32.mrb[40].mxu0 }
 0x13e   :  { %722 = vst [vmem:[%s1392_s2 + $0x250] sm:$0xff] %v516_v61  ;;  %724 = vst [vmem:[%s1392_s2 + $0x260] sm:$0xff] %v629_v62  ;;  %v518_v63 = vpop.f32.mrb[41].mxu1  ;;  %v631_v0 = vpop.f32.mrb[41].mxu0 }
 0x13f   :  { %723 = vst [vmem:[%s1392_s2 + $0x258] sm:$0xff] %v518_v63  ;;  %725 = vst [vmem:[%s1392_s2 + $0x268] sm:$0xff] %v631_v0  ;;  %v520_v1 = vpop.f32.mrb[42].mxu1  ;;  %v633_v2 = vpop.f32.mrb[42].mxu0 }
 0x140   :  { %728 = vst [vmem:[%s1392_s2 + $0x280] sm:$0xff] %v520_v1  ;;  %730 = vst [vmem:[%s1392_s2 + $0x290] sm:$0xff] %v633_v2  ;;  %v522_v3 = vpop.f32.mrb[43].mxu1  ;;  %v635_v4 = vpop.f32.mrb[43].mxu0 }
 0x141   :  { %729 = vst [vmem:[%s1392_s2 + $0x288] sm:$0xff] %v522_v3  ;;  %731 = vst [vmem:[%s1392_s2 + $0x298] sm:$0xff] %v635_v4 }
 0x145   :  { %v526_v5 = vpop.f32.mrb[44].mxu1  ;;  %v639_v6 = vpop.f32.mrb[44].mxu0 }
 0x146   :  { %734 = vst [vmem:[%s1392_s2 + $0x2b0] sm:$0xff] %v526_v5  ;;  %736 = vst [vmem:[%s1392_s2 + $0x2c0] sm:$0xff] %v639_v6  ;;  %v528_v7 = vpop.f32.mrb[45].mxu1  ;;  %v641_v8 = vpop.f32.mrb[45].mxu0 }
 0x147   :  { %735 = vst [vmem:[%s1392_s2 + $0x2b8] sm:$0xff] %v528_v7  ;;  %737 = vst [vmem:[%s1392_s2 + $0x2c8] sm:$0xff] %v641_v8  ;;  %v530_v9 = vpop.f32.mrb[46].mxu1  ;;  %v643_v10 = vpop.f32.mrb[46].mxu0 }
 0x148   :  { %740 = vst [vmem:[%s1392_s2 + $0x2e0] sm:$0xff] %v530_v9  ;;  %742 = vst [vmem:[%s1392_s2 + $0x2f0] sm:$0xff] %v643_v10  ;;  %v532_v11 = vpop.f32.mrb[47].mxu1  ;;  %v645_v12 = vpop.f32.mrb[47].mxu0 }
 0x149   :  { %741 = vst [vmem:[%s1392_s2 + $0x2e8] sm:$0xff] %v532_v11  ;;  %743 = vst [vmem:[%s1392_s2 + $0x2f8] sm:$0xff] %v645_v12 }

// kernel: generator_forward.11
= control target key start
LH: loop header
LB: loop body
LE: loop exit
PB: predicated region body
PF: predicated region fallthrough
CT: control target
= control target key end

     0   :  { %vm56_vm0 = vcmask 785408   ;;  %vm310_vm1 = vcmask 781312   ;;  %s686_s0 = inlined_call_operand.vmem [shape: f32[128,96], index: 0, kind: input, shape index: {}]   ;;  %s687_s1 = inlined_call_operand.vmem [shape: f32[1,96], index: 1, kind: input, shape index: {}]   ;;  %s688_s2 = inlined_call_operand.vmem [shape: f32[1,96], index: 2, kind: input, shape index: {}]   ;;  %s689_s3 = inlined_call_operand.vmem [shape: f32[1,96], index: 3, kind: input, shape index: {}]   ;;  %s690_s4 = inlined_call_operand.vmem [shape: bf16[128,96], index: 4, kind: output, shape index: {}]  }
   0x1   :  { %v17_v0 = vld [vmem:[%s686_s0] sm:$0xff]  ;;  %v18_v1 = vld [vmem:[%s686_s0 + $0x8] sm:$0xff]  ;;  %v19_v2 = vld [vmem:[%s686_s0 + $0x10] sm:$0xff] }
   0x2   :  { %v20_v3 = vld [vmem:[%s686_s0 + $0x18] sm:$0xff]  ;;  %v331_v4 = vld [vmem:[%s687_s1] ss:$0 sm:$0xff]  ;;  %v22_v10 = vld [vmem:[%s686_s0 + $0x28] sm:$0xff] }
   0x3   :  { %v408_v5 = vadd.f32 %v331_v4, %v17_v0  ;;  %v410_v6 = vadd.f32 %v331_v4, %v18_v1  ;;  %v412_v7 = vadd.f32 %v331_v4, %v19_v2  ;;  %v21_v8 = vld [vmem:[%s686_s0 + $0x20] sm:$0xff]  ;;  %v417_v9 = vadd.f32 %v331_v4, %v20_v3  ;;  %v23_v15 = vld [vmem:[%s686_s0 + $0x30] sm:$0xff]  ;;  %v24_v19 = vld [vmem:[%s686_s0 + $0x38] sm:$0xff] }
   0x4   :  { %v422_v11 = vadd.f32 %v331_v4, %v21_v8  ;;  %v45_v17 = vadd.f32 %v331_v4, %v22_v10  ;;  %v46_v21 = vadd.f32 %v331_v4, %v23_v15  ;;  %v25_v23 = vld [vmem:[%s686_s0 + $0x40] sm:$0xff]  ;;  %v47_v25 = vadd.f32 %v331_v4, %v24_v19  ;;  %v26_v27 = vld [vmem:[%s686_s0 + $0x48] sm:$0xff]  ;;  %v27_v31 = vld [vmem:[%s686_s0 + $0x50] sm:$0xff] }
   0x5   :  { %v57_v12 = vsel %vm56_vm0, %v408_v5, 0.0  ;;  %v58_v13 = vsel %vm56_vm0, %v410_v6, 0.0  ;;  %v60_v14 = vsel %vm56_vm0, %v412_v7, 0.0  ;;  %v62_v18 = vsel %vm56_vm0, %v417_v9, 0.0  ;;  %v28_v35 = vld [vmem:[%s686_s0 + $0x58] sm:$0xff]  ;;  %v29_v39 = vld [vmem:[%s686_s0 + $0x60] sm:$0xff] }
   0x6   :  { %v59_v16 = vadd.f32 %v58_v13, %v57_v12  ;;  %v64_v22 = vsel %vm56_vm0, %v422_v11, 0.0  ;;  %v66_v26 = vsel %vm56_vm0, %v45_v17, 0.0  ;;  %v48_v29 = vadd.f32 %v331_v4, %v25_v23  ;;  %v30_v43 = vld [vmem:[%s686_s0 + $0x68] sm:$0xff]  ;;  %v31_v47 = vld [vmem:[%s686_s0 + $0x70] sm:$0xff]  ;;  %v32_v51 = vld [vmem:[%s686_s0 + $0x78] sm:$0xff] }
   0x7   :  { %v68_v30 = vsel %vm56_vm0, %v46_v21, 0.0  ;;  %v49_v33 = vadd.f32 %v331_v4, %v26_v27  ;;  %v70_v34 = vsel %vm56_vm0, %v47_v25, 0.0  ;;  %v50_v37 = vadd.f32 %v331_v4, %v27_v31 }
   0x8   :  { %v61_v20 = vadd.f32 %v60_v14, %v59_v16  ;;  %v72_v38 = vsel %vm56_vm0, %v48_v29, 0.0  ;;  %v51_v41 = vadd.f32 %v331_v4, %v28_v35  ;;  %v52_v45 = vadd.f32 %v331_v4, %v29_v39 }
   0x9   :  { %v74_v42 = vsel %vm56_vm0, %v49_v33, 0.0  ;;  %v76_v46 = vsel %vm56_vm0, %v50_v37, 0.0  ;;  %v53_v49 = vadd.f32 %v331_v4, %v30_v43  ;;  %v54_v53 = vadd.f32 %v331_v4, %v31_v47 }
   0xa   :  { %v63_v24 = vadd.f32 %v62_v18, %v61_v20  ;;  %v78_v50 = vsel %vm56_vm0, %v51_v41, 0.0  ;;  %v80_v54 = vsel %vm56_vm0, %v52_v45, 0.0  ;;  %v472_v56 = vadd.f32 %v331_v4, %v32_v51 }
   0xb   :  { %v82_v57 = vsel %vm56_vm0, %v53_v49, 0.0  ;;  %v84_v59 = vsel %vm56_vm0, %v54_v53, 0.0 }
   0xc   :  { %v65_v28 = vadd.f32 %v64_v22, %v63_v24  ;;  %v86_v61 = vsel %vm56_vm0, %v472_v56, 0.0 }
   0xe   :  { %v67_v32 = vadd.f32 %v66_v26, %v65_v28 }
  0x10   :  { %v69_v36 = vadd.f32 %v68_v30, %v67_v32 }
  0x12   :  { %v71_v40 = vadd.f32 %v70_v34, %v69_v36 }
  0x14   :  { %v73_v44 = vadd.f32 %v72_v38, %v71_v40 }
  0x16   :  { %v75_v48 = vadd.f32 %v74_v42, %v73_v44 }
  0x18   :  { %v77_v52 = vadd.f32 %v76_v46, %v75_v48 }
  0x1a   :  { %v79_v55 = vadd.f32 %v78_v50, %v77_v52 }
  0x1c   :  { %v81_v58 = vadd.f32 %v80_v54, %v79_v55 }
  0x1e   :  { %v83_v60 = vadd.f32 %v82_v57, %v81_v58 }
  0x20   :  { %v85_v62 = vadd.f32 %v84_v59, %v83_v60 }
  0x22   :  { %v87_v63 = vadd.f32 %v86_v61, %v85_v62 }
  0x24   :  { %v88_v0 = vrot.slane %v87_v63, 4 }
  0x26   :  { %v89_v1 = vadd.f32 %v88_v0, %v87_v63 }
  0x28   :  { %v90_v2 = vrot.slane %v89_v1, 2 }
  0x2a   :  { %v91_v3 = vadd.f32 %v90_v2, %v89_v1 }
  0x2c   :  { %v92_v8 = vrot.slane %v91_v3, 1 }
  0x2e   :  { %v93_v10 = vadd.f32 %v92_v8, %v91_v3 }
  0x30   :  { %v95_v12 = vmul.f32 0.0078125, %v93_v10 }
  0x32   :  { %v479_v4 = vsub.f32 %v408_v5, %v95_v12  ;;  %v482_v13 = vsub.f32 %v410_v6, %v95_v12  ;;  %v485_v14 = vsub.f32 %v412_v7, %v95_v12  ;;  %v488_v15 = vsub.f32 %v417_v9, %v95_v12 }
  0x33   :  { %v491_v16 = vsub.f32 %v422_v11, %v95_v12  ;;  %v499_v6 = vsub.f32 %v45_v17, %v95_v12  ;;  %v503_v20 = vsub.f32 %v46_v21, %v95_v12  ;;  %v510_v26 = vsub.f32 %v47_v25, %v95_v12 }
  0x34   :  { %v112_v18 = vmul.f32 %v479_v4, %v479_v4  ;;  %v113_v19 = vmul.f32 %v482_v13, %v482_v13  ;;  %v114_v5 = vmul.f32 %v485_v14, %v485_v14  ;;  %v115_v7 = vmul.f32 %v488_v15, %v488_v15 }
  0x35   :  { %v116_v9 = vmul.f32 %v491_v16, %v491_v16  ;;  %v117_v17 = vmul.f32 %v499_v6, %v499_v6  ;;  %v515_v21 = vsub.f32 %v48_v29, %v95_v12  ;;  %v118_v30 = vmul.f32 %v503_v20, %v503_v20 }
  0x36   :  { %v128_v11 = vsel %vm56_vm0, %v112_v18, 0.0  ;;  %v129_v22 = vsel %vm56_vm0, %v113_v19, 0.0  ;;  %v131_v23 = vsel %vm56_vm0, %v114_v5, 0.0  ;;  %v133_v27 = vsel %vm56_vm0, %v115_v7, 0.0 }
  0x37   :  { %v130_v24 = vadd.f32 %v129_v22, %v128_v11  ;;  %v135_v31 = vsel %vm56_vm0, %v116_v9, 0.0  ;;  %v520_v34 = vsub.f32 %v49_v33, %v95_v12  ;;  %v119_v25 = vmul.f32 %v510_v26, %v510_v26 }
  0x38   :  { %v137_v35 = vsel %vm56_vm0, %v117_v17, 0.0  ;;  %v525_v38 = vsub.f32 %v50_v37, %v95_v12  ;;  %v120_v29 = vmul.f32 %v515_v21, %v515_v21  ;;  %v139_v39 = vsel %vm56_vm0, %v118_v30, 0.0 }
  0x39   :  { %v132_v28 = vadd.f32 %v131_v23, %v130_v24  ;;  %v530_v42 = vsub.f32 %v51_v41, %v95_v12  ;;  %v121_v33 = vmul.f32 %v520_v34, %v520_v34  ;;  %v141_v43 = vsel %vm56_vm0, %v119_v25, 0.0  ;;  %v567_v24 = vld [vmem:[%s688_s2] ss:$0 sm:$0xff] }
  0x3a   :  { %v535_v46 = vsub.f32 %v52_v45, %v95_v12  ;;  %v122_v37 = vmul.f32 %v525_v38, %v525_v38  ;;  %v143_v47 = vsel %vm56_vm0, %v120_v29, 0.0  ;;  %v540_v50 = vsub.f32 %v53_v49, %v95_v12 }
  0x3b   :  { %v134_v32 = vadd.f32 %v133_v27, %v132_v28  ;;  %v123_v41 = vmul.f32 %v530_v42, %v530_v42  ;;  %v145_v51 = vsel %vm56_vm0, %v121_v33, 0.0  ;;  %v545_v54 = vsub.f32 %v54_v53, %v95_v12 }
  0x3c   :  { %v124_v45 = vmul.f32 %v535_v46, %v535_v46  ;;  %v147_v55 = vsel %vm56_vm0, %v122_v37, 0.0  ;;  %v551_v58 = vsub.f32 %v472_v56, %v95_v12  ;;  %v125_v49 = vmul.f32 %v540_v50, %v540_v50 }
  0x3d   :  { %v136_v36 = vadd.f32 %v135_v31, %v134_v32  ;;  %v149_v59 = vsel %vm56_vm0, %v123_v41, 0.0  ;;  %v126_v61 = vmul.f32 %v545_v54, %v545_v54  ;;  %v576_v31 = vld [vmem:[%s689_s3] ss:$0 sm:$0xff] }
  0x3e   :  { %v151_v53 = vsel %vm56_vm0, %v124_v45, 0.0  ;;  %v127_v63 = vmul.f32 %v551_v58, %v551_v58  ;;  %v153_v0 = vsel %vm56_vm0, %v125_v49, 0.0 }
  0x3f   :  { %v138_v40 = vadd.f32 %v137_v35, %v136_v36  ;;  %v155_v56 = vsel %vm56_vm0, %v126_v61, 0.0 }
  0x40   :  { %v157_v3 = vsel %vm56_vm0, %v127_v63, 0.0 }
  0x41   :  { %v140_v44 = vadd.f32 %v139_v39, %v138_v40 }
  0x43   :  { %v142_v48 = vadd.f32 %v141_v43, %v140_v44 }
  0x45   :  { %v144_v52 = vadd.f32 %v143_v47, %v142_v48 }
  0x47   :  { %v146_v57 = vadd.f32 %v145_v51, %v144_v52 }
  0x49   :  { %v148_v60 = vadd.f32 %v147_v55, %v146_v57 }
  0x4b   :  { %v150_v62 = vadd.f32 %v149_v59, %v148_v60 }
  0x4d   :  { %v152_v1 = vadd.f32 %v151_v53, %v150_v62 }
  0x4f   :  { %v154_v2 = vadd.f32 %v153_v0, %v152_v1 }
  0x51   :  { %v156_v8 = vadd.f32 %v155_v56, %v154_v2 }
  0x53   :  { %v158_v10 = vadd.f32 %v157_v3, %v156_v8 }
  0x55   :  { %v159_v12 = vrot.slane %v158_v10, 4 }
  0x57   :  { %v160_v18 = vadd.f32 %v159_v12, %v158_v10 }
  0x59   :  { %v161_v19 = vrot.slane %v160_v18, 2 }
  0x5b   :  { %v162_v5 = vadd.f32 %v161_v19, %v160_v18 }
  0x5d   :  { %v163_v7 = vrot.slane %v162_v5, 1 }
  0x5f   :  { %v164_v9 = vadd.f32 %v163_v7, %v162_v5 }
  0x61   :  { %v165_v11 = vmul.f32 0.0078125, %v164_v9 }
  0x63   :  { %v166_v22 = vadd.f32 1e-05, %v165_v11 }
  0x65   :  { %366 = vrsqrt.f32 %v166_v22 }
  0x6f   :  { %v367_v23 = vpop.eup %366 }
  0x70   :  { %v168_v17 = vmul.f32 %v367_v23, %v479_v4  ;;  %v169_v27 = vmul.f32 %v367_v23, %v482_v13  ;;  %v170_v28 = vmul.f32 %v367_v23, %v485_v14  ;;  %v171_v30 = vmul.f32 %v367_v23, %v488_v15 }
  0x71   :  { %v172_v32 = vmul.f32 %v367_v23, %v491_v16  ;;  %v173_v25 = vmul.f32 %v367_v23, %v499_v6  ;;  %v174_v35 = vmul.f32 %v367_v23, %v503_v20  ;;  %v175_v36 = vmul.f32 %v367_v23, %v510_v26 }
  0x72   :  { %v191_v4 = vmul.f32 %v567_v24, %v168_v17  ;;  %v192_v13 = vmul.f32 %v567_v24, %v169_v27  ;;  %v193_v14 = vmul.f32 %v567_v24, %v170_v28  ;;  %v194_v15 = vmul.f32 %v567_v24, %v171_v30 }
  0x73   :  { %v195_v29 = vmul.f32 %v567_v24, %v172_v32  ;;  %v196_v39 = vmul.f32 %v567_v24, %v173_v25  ;;  %v197_v16 = vmul.f32 %v567_v24, %v174_v35  ;;  %v198_v6 = vmul.f32 %v567_v24, %v175_v36 }
  0x74   :  { %v214_v20 = vadd.f32 %v576_v31, %v191_v4  ;;  %v215_v26 = vadd.f32 %v576_v31, %v192_v13  ;;  %v216_v40 = vadd.f32 %v576_v31, %v193_v14  ;;  %v217_v33 = vadd.f32 %v576_v31, %v194_v15 }
  0x75   :  { %v218_v43 = vadd.f32 %v576_v31, %v195_v29  ;;  %v219_v44 = vadd.f32 %v576_v31, %v196_v39  ;;  %v220_v37 = vadd.f32 %v576_v31, %v197_v16  ;;  %v221_v47 = vadd.f32 %v576_v31, %v198_v6 }
  0x76   :  { %v230_v48 = vmax.f32 %v214_v20, 0.0  ;;  %v231_v41 = vmax.f32 %v215_v26, 0.0  ;;  %v232_v51 = vmax.f32 %v216_v40, 0.0  ;;  %v233_v52 = vmax.f32 %v217_v33, 0.0 }
  0x77   :  { %v234_v45 = vmax.f32 %v218_v43, 0.0  ;;  %v235_v55 = vmax.f32 %v219_v44, 0.0  ;;  %v236_v57 = vmax.f32 %v220_v37, 0.0  ;;  %v237_v49 = vmax.f32 %v221_v47, 0.0 }
  0x78   :  { %v350_v59 = vpack.c.bf16 %v230_v48, %v230_v48  ;;  %v351_v60 = vpack.c.bf16 %v231_v41, %v231_v41  ;;  %v352_v61 = vpack.c.bf16 %v232_v51, %v232_v51  ;;  %v353_v53 = vpack.c.bf16 %v233_v52, %v233_v52 }
  0x79   :  { %v354_v62 = vpack.c.bf16 %v234_v45, %v234_v45  ;;  %v355_v63 = vpack.c.bf16 %v235_v55, %v235_v55  ;;  %v356_v0 = vpack.c.bf16 %v236_v57, %v236_v57  ;;  %v357_v1 = vpack.c.bf16 %v237_v49, %v237_v49 }
  0x7a   :  { %311 = vst.msk [vmem:[%s690_s4] sm:$0xf] %vm310_vm1, %v350_v59  ;;  %312 = vst.msk [vmem:[%s690_s4 + $0x4] sm:$0xf] %vm310_vm1, %v351_v60  ;;  %v176_v56 = vmul.f32 %v367_v23, %v515_v21  ;;  %v177_v2 = vmul.f32 %v367_v23, %v520_v34  ;;  %v178_v3 = vmul.f32 %v367_v23, %v525_v38 }
  0x7b   :  { %313 = vst.msk [vmem:[%s690_s4 + $0x8] sm:$0xf] %vm310_vm1, %v352_v61  ;;  %314 = vst.msk [vmem:[%s690_s4 + $0xc] sm:$0xf] %vm310_vm1, %v353_v53  ;;  %v179_v8 = vmul.f32 %v367_v23, %v530_v42  ;;  %v180_v21 = vmul.f32 %v367_v23, %v535_v46  ;;  %v181_v34 = vmul.f32 %v367_v23, %v540_v50 }
  0x7c   :  { %315 = vst.msk [vmem:[%s690_s4 + $0x10] sm:$0xf] %vm310_vm1, %v354_v62  ;;  %316 = vst.msk [vmem:[%s690_s4 + $0x14] sm:$0xf] %vm310_vm1, %v355_v63  ;;  %v182_v38 = vmul.f32 %v367_v23, %v545_v54  ;;  %v183_v42 = vmul.f32 %v367_v23, %v551_v58  ;;  %v199_v10 = vmul.f32 %v567_v24, %v176_v56 }
  0x7d   :  { %317 = vst.msk [vmem:[%s690_s4 + $0x18] sm:$0xf] %vm310_vm1, %v356_v0  ;;  %318 = vst.msk [vmem:[%s690_s4 + $0x1c] sm:$0xf] %vm310_vm1, %v357_v1  ;;  %v200_v12 = vmul.f32 %v567_v24, %v177_v2  ;;  %v201_v18 = vmul.f32 %v567_v24, %v178_v3  ;;  %v202_v19 = vmul.f32 %v567_v24, %v179_v8 }
  0x7e   :  { %v203_v5 = vmul.f32 %v567_v24, %v180_v21  ;;  %v204_v7 = vmul.f32 %v567_v24, %v181_v34  ;;  %v205_v46 = vmul.f32 %v567_v24, %v182_v38  ;;  %v206_v50 = vmul.f32 %v567_v24, %v183_v42 }
  0x7f   :  { %v222_v54 = vadd.f32 %v576_v31, %v199_v10  ;;  %v223_v58 = vadd.f32 %v576_v31, %v200_v12  ;;  %v224_v9 = vadd.f32 %v576_v31, %v201_v18  ;;  %v225_v11 = vadd.f32 %v576_v31, %v202_v19 }
  0x80   :  { %v226_v22 = vadd.f32 %v576_v31, %v203_v5  ;;  %v227_v23 = vadd.f32 %v576_v31, %v204_v7  ;;  %v228_v17 = vadd.f32 %v576_v31, %v205_v46  ;;  %v229_v27 = vadd.f32 %v576_v31, %v206_v50 }
  0x81   :  { %v238_v28 = vmax.f32 %v222_v54, 0.0  ;;  %v239_v30 = vmax.f32 %v223_v58, 0.0  ;;  %v240_v32 = vmax.f32 %v224_v9, 0.0  ;;  %v241_v24 = vmax.f32 %v225_v11, 0.0 }
  0x82   :  { %v242_v25 = vmax.f32 %v226_v22, 0.0  ;;  %v243_v35 = vmax.f32 %v227_v23, 0.0  ;;  %v244_v36 = vmax.f32 %v228_v17, 0.0  ;;  %v245_v4 = vmax.f32 %v229_v27, 0.0 }
  0x83   :  { %v358_v13 = vpack.c.bf16 %v238_v28, %v238_v28  ;;  %v359_v14 = vpack.c.bf16 %v239_v30, %v239_v30  ;;  %v360_v15 = vpack.c.bf16 %v240_v32, %v240_v32  ;;  %v361_v29 = vpack.c.bf16 %v241_v24, %v241_v24 }
  0x84   :  { %v362_v39 = vpack.c.bf16 %v242_v25, %v242_v25  ;;  %v363_v16 = vpack.c.bf16 %v243_v35, %v243_v35  ;;  %v364_v6 = vpack.c.bf16 %v244_v36, %v244_v36  ;;  %v365_v20 = vpack.c.bf16 %v245_v4, %v245_v4 }
  0x85   :  { %319 = vst.msk [vmem:[%s690_s4 + $0x20] sm:$0xf] %vm310_vm1, %v358_v13  ;;  %320 = vst.msk [vmem:[%s690_s4 + $0x24] sm:$0xf] %vm310_vm1, %v359_v14 }
  0x86   :  { %321 = vst.msk [vmem:[%s690_s4 + $0x28] sm:$0xf] %vm310_vm1, %v360_v15  ;;  %322 = vst.msk [vmem:[%s690_s4 + $0x2c] sm:$0xf] %vm310_vm1, %v361_v29 }
  0x87   :  { %323 = vst.msk [vmem:[%s690_s4 + $0x30] sm:$0xf] %vm310_vm1, %v362_v39  ;;  %324 = vst.msk [vmem:[%s690_s4 + $0x34] sm:$0xf] %vm310_vm1, %v363_v16 }
  0x88   :  { %325 = vst.msk [vmem:[%s690_s4 + $0x38] sm:$0xf] %vm310_vm1, %v364_v6  ;;  %326 = vst.msk [vmem:[%s690_s4 + $0x3c] sm:$0xf] %vm310_vm1, %v365_v20 }

// kernel: generator_forward.8
= control target key start
LH: loop header
LB: loop body
LE: loop exit
PB: predicated region body
PF: predicated region fallthrough
CT: control target
= control target key end

     0   :  { %9 = vsyncpa [#allocation3], 0  ;;  %s5885_s0 = inlined_call_operand.vmem [shape: bf16[2,128], index: 0, kind: input, shape index: {}]   ;;  %s5886_s1 = inlined_call_operand.hbm [shape: bf16[128,384], index: 1, kind: input, shape index: {}]   ;;  %s5887_s2 = inlined_call_operand.hbm [shape: f32[1,384], index: 2, kind: input, shape index: {}]   ;;  %s5888_s3 = inlined_call_operand.hbm [shape: bf16[384,3072], index: 3, kind: input, shape index: {}]   ;;  %s5889_s4 = inlined_call_operand.vmem [shape: f32[2,3072], index: 4, kind: output, shape index: {}]  }
   0x1   :  { %10 = vsyncpa [#allocation5], 0  ;;  %s5693_s15 = smov [#allocation4]   ;;  %s5694_s17 = smov [#allocation2]  }
   0x2   :  { %s31_s16 = sshll.u32 %s5693_s15, 4  ;;  %s18_s18 = sshll.u32 %s5694_s17, 4  ;;  %s32_s16 = int_to_ptr.vmem [resolvable:$true] %s31_s16  ;;  %s5729_s18 = int_to_ptr.vmem [resolvable:$true] %s18_s18 }
   0x3   :  { %s5623_s21 = scalar_lea.hbm %s5887_s2, 48 }
   0x4   :  { %p5624_p0 = scmp.ne.s32.totalorder %s5887_s2, %s5623_s21  ;;  %p5627_p1 = scmp.lt.u32.totalorder %s5623_s21, %s5887_s2 }
   0x6   :  { %p5629_p2 = pnand %p5627_p1, %p5624_p0 }
   0x8   :  { %5632 = shalt.err (!%p5629_p2)
}
   0x9   :  { %s5633_s26 = scalar_lea.vmem %s32_s16, 48  ;;  %s5637_s27 = scalar_lea.vmem %s32_s16, 64 }
   0xa   :  { %p5634_p3 = scmp.ne.s32.totalorder %s32_s16, %s5633_s26  ;;  %p5638_p4 = scmp.lt.s32.totalorder %s32_s16, %s32_s16 }
   0xb   :  { %p5639_p5 = scmp.lt.s32.totalorder %s5637_s27, %s5633_s26 }
   0xd   :  { %p5640_p6 = por %p5639_p5, %p5638_p4 }
   0xf   :  { %p5641_p7 = pnand %p5640_p6, %p5634_p3 }
  0x11   :  { %5644 = shalt.err (!%p5641_p7)
}
  0x12   :  { %34 = dma.hbm_to_vmem [thread:$0]  %s5887_s2, 48, %s32_s16, [#allocation5]  }
  0x13   :  { %s5645_s6 = scalar_lea.hbm %s5886_s1, 3072 }
  0x14   :  { %p5646_p8 = scmp.ne.s32.totalorder %s5886_s1, %s5645_s6  ;;  %p5649_p9 = scmp.lt.u32.totalorder %s5645_s6, %s5886_s1 }
  0x16   :  { %p5651_p10 = pnand %p5649_p9, %p5646_p8 }
  0x18   :  { %5654 = shalt.err (!%p5651_p10)
}
  0x19   :  { %s5655_s11 = scalar_lea.vmem %s5729_s18, 3072  ;;  %p5660_p12 = scmp.lt.s32.totalorder %s5729_s18, %s5729_s18 }
  0x1a   :  { %p5656_p11 = scmp.ne.s32.totalorder %s5729_s18, %s5655_s11  ;;  %p5661_p13 = scmp.lt.s32.totalorder %s5655_s11, %s5655_s11 }
  0x1c   :  { %p5662_p0 = por %p5661_p13, %p5660_p12 }
  0x1e   :  { %p5663_p1 = pnand %p5662_p0, %p5656_p11 }
  0x20   :  { %5666 = shalt.err (!%p5663_p1)
}
  0x21   :  { %s5695_s2 = smov 192   ;;  %s5696_s12 = smov 12  }
  0x22   :  { %24 = dma.hbm_to_vmem [thread:$0]  %s5886_s1, 3072, %s5729_s18, [#allocation3], %s5695_s2, %s5695_s2, %s5696_s12  }
  0x23   :  { %s5697_s15 = smov [#allocation6]   ;;  %s5667_s20 = scalar_lea.hbm %s5888_s3, 73728 }
  0x24   :  { %s40_s16 = sshll.u32 %s5697_s15, 4  ;;  %p5668_p2 = scmp.ne.s32.totalorder %s5888_s3, %s5667_s20  ;;  %s41_s16 = int_to_ptr.vmem [resolvable:$true] %s40_s16 }
  0x25   :  { %p5671_p3 = scmp.lt.u32.totalorder %s5667_s20, %s5888_s3 }
  0x27   :  { %p5673_p4 = pnand %p5671_p3, %p5668_p2 }
  0x29   :  { %5676 = shalt.err (!%p5673_p4)
}
  0x2a   :  { %s5677_s25 = scalar_lea.vmem %s41_s16, 73728  ;;  %p5682_p6 = scmp.lt.s32.totalorder %s41_s16, %s41_s16 }
  0x2b   :  { %p5678_p5 = scmp.ne.s32.totalorder %s41_s16, %s5677_s25  ;;  %p5683_p7 = scmp.lt.s32.totalorder %s5677_s25, %s5677_s25 }
  0x2d   :  { %p5684_p8 = por %p5683_p7, %p5682_p6 }
  0x2f   :  { %p5685_p9 = pnand %p5684_p8, %p5678_p5 }
  0x31   :  { %5688 = shalt.err (!%p5685_p9)
}
  0x32   :  { %s5698_s1 = smov 1536   ;;  %s5699_s18 = smov 96  }
  0x33   :  { %46 = dma.hbm_to_vmem [thread:$0]  %s5888_s3, 73728, %s41_s16, [#allocation5], %s5698_s1, %s5698_s1, %s5699_s18  }
  0x34   :  { %5689 = dma.done.wait [#allocation3], 3072  }
  0x35   :  { %5690 = vsyncadd [#allocation3], 4294964224 }
  0x36   :  { %5691 = dma.done.wait [#allocation5], 73776  }
  0x37   :  { %5692 = vsyncadd [#allocation5], 4294893520  ;;  %v5700_v0 = vmov 0   ;;  %v5701_v1 = vmov 0.0   ;;  %vm5702_vm0 = vmmov 0   ;;  %v319_v22 = vld [vmem:[#allocation6] sm:$0xff] }
  0x38   :  { %267 = vmatprep.mubr.bf16.mxu0 %v5700_v0  ;;  %5512 = vmatprep.subr.bf16.mxu1 %v5701_v1  ;;  %v5591_v2 = vld [vmem:[#allocation2 + $0x4] ss:$12 sps:$4 sm:$0xff]   ;;  %v5593_v3 = vld [vmem:[#allocation2] ss:$12 sps:$4 sm:$0xff]   ;;  %v5594_v4 = vld [vmem:[#allocation2 + $0x1c] ss:$12 sps:$4 sm:$0xff]  }
  0x39   :  { %5528 = vmatprep.mubr.msk.bf16.mxu1 %vm5702_vm0, %v5701_v1  ;;  %235 = vmatprep.subr.bf16.mxu0 %v5591_v2  ;;  %v5596_v5 = vld [vmem:[#allocation2 + $0x18] ss:$12 sps:$4 sm:$0xff]   ;;  %v5597_v6 = vld [vmem:[#allocation2 + $0x34] ss:$12 sps:$4 sm:$0xff]   ;;  %v5599_v7 = vld [vmem:[#allocation2 + $0x30] ss:$12 sps:$4 sm:$0xff]  }
  0x3a   :  { %236 = vmatpush1.bf16.msra.mxu0 %v5593_v3  ;;  %v5600_v8 = vld [vmem:[#allocation2 + $0x4c] ss:$12 sps:$4 sm:$0xff]   ;;  %v5602_v9 = vld [vmem:[#allocation2 + $0x48] ss:$12 sps:$4 sm:$0xff]   ;;  %v5603_v11 = vld [vmem:[#allocation2 + $0x64] ss:$12 sps:$4 sm:$0xff]  }
  0x3b   :  { %237 = vmatprep.subr.bf16.mxu0 %v5594_v4  ;;  %v5615_v10 = vld [vmem:[#allocation2 + $0x8] ss:$12 sps:$4 sm:$0xff]   ;;  %v5616_v12 = vld [vmem:[#allocation2 + $0x20] ss:$12 sps:$4 sm:$0xff]   ;;  %v5617_v15 = vld [vmem:[#allocation2 + $0x38] ss:$12 sps:$4 sm:$0xff]  }
  0x3c   :  { %5513 = vmatpush3.bf16.msra.mxu1 %v5615_v10  ;;  %v5605_v13 = vld [vmem:[#allocation2 + $0x60] ss:$12 sps:$4 sm:$0xff]   ;;  %v5606_v14 = vld [vmem:[#allocation2 + $0x7c] ss:$12 sps:$4 sm:$0xff]   ;;  %v5608_v16 = vld [vmem:[#allocation2 + $0x78] ss:$12 sps:$4 sm:$0xff]  }
  0x3d   :  { %5514 = vmatprep.subr.bf16.mxu1 %v5701_v1  ;;  %v5609_v17 = vld [vmem:[#allocation2 + $0x94] ss:$12 sps:$4 sm:$0xff]   ;;  %v5618_v18 = vld [vmem:[#allocation2 + $0x50] ss:$12 sps:$4 sm:$0xff]   ;;  %v5612_v20 = vld [vmem:[#allocation2 + $0xac] ss:$12 sps:$4 sm:$0xff]  }
  0x3e   :  { %238 = vmatpush1.bf16.msra.mxu0 %v5596_v5  ;;  %v5611_v19 = vld [vmem:[#allocation2 + $0x90] ss:$12 sps:$4 sm:$0xff]   ;;  %v5619_v21 = vld [vmem:[#allocation2 + $0x68] ss:$12 sps:$4 sm:$0xff]   ;;  %v5620_v26 = vld [vmem:[#allocation2 + $0x80] ss:$12 sps:$4 sm:$0xff]  }
  0x3f   :  { %239 = vmatprep.subr.bf16.mxu0 %v5597_v6  ;;  %v331_v23 = vld [vmem:[#allocation6 + $0x60] sm:$0xff]  ;;  %v57_v29 = vld [vmem:[%s5885_s0] sm:$0x1]  ;;  %v320_v35 = vld [vmem:[#allocation6 + $0x8] sm:$0xff] }
  0x40   :  { %5515 = vmatpush3.bf16.msra.mxu1 %v5616_v12  ;;  %v5614_v24 = vld [vmem:[#allocation2 + $0xa8] ss:$12 sps:$4 sm:$0xff]   ;;  %v4928_v25 = vcombine.high %v319_v22, %v331_v23  ;;  %v4927_v30 = vcombine.low %v319_v22, %v331_v23  ;;  %v5621_v32 = vld [vmem:[#allocation2 + $0x98] ss:$12 sps:$4 sm:$0xff]   ;;  %v332_v36 = vld [vmem:[#allocation6 + $0x68] sm:$0xff] }
  0x41   :  { %5516 = vmatprep.subr.bf16.mxu1 %v5701_v1  ;;  %v343_v27 = vld [vmem:[#allocation6 + $0xc0] sm:$0xff]  ;;  %v5622_v39 = vld [vmem:[#allocation2 + $0xb0] ss:$12 sps:$4 sm:$0xff]   ;;  %v4930_v42 = vcombine.high %v320_v35, %v332_v36  ;;  %v4929_v47 = vcombine.low %v320_v35, %v332_v36 }
  0x42   :  { %240 = vmatpush1.bf16.msra.mxu0 %v5599_v7  ;;  %v355_v28 = vld [vmem:[#allocation6 + $0x120] sm:$0xff]  ;;  %v344_v43 = vld [vmem:[#allocation6 + $0xc8] sm:$0xff] }
  0x43   :  { %241 = vmatprep.subr.bf16.mxu0 %v5600_v8  ;;  %v4952_v31 = vcombine.high %v343_v27, %v355_v28  ;;  %v367_v33 = vld [vmem:[#allocation6 + $0x180] sm:$0xff]  ;;  %v4951_v37 = vcombine.low %v343_v27, %v355_v28  ;;  %v356_v44 = vld [vmem:[#allocation6 + $0x128] sm:$0xff] }
  0x44   :  { %5517 = vmatpush3.bf16.msra.mxu1 %v5617_v15  ;;  %v379_v34 = vld [vmem:[#allocation6 + $0x1e0] sm:$0xff]  ;;  %v4954_v50 = vcombine.high %v344_v43, %v356_v44  ;;  %v368_v51 = vld [vmem:[#allocation6 + $0x188] sm:$0xff]  ;;  %v4953_v55 = vcombine.low %v344_v43, %v356_v44 }
  0x45   :  { %5518 = vmatprep.subr.bf16.mxu1 %v5701_v1  ;;  %v4976_v38 = vcombine.high %v367_v33, %v379_v34  ;;  %v391_v40 = vld [vmem:[#allocation6 + $0x240] sm:$0xff]  ;;  %v4975_v45 = vcombine.low %v367_v33, %v379_v34  ;;  %v380_v52 = vld [vmem:[#allocation6 + $0x1e8] sm:$0xff] }
  0x46   :  { %242 = vmatpush1.bf16.msra.mxu0 %v5602_v9  ;;  %v403_v41 = vld [vmem:[#allocation6 + $0x2a0] sm:$0xff]  ;;  %v4978_v58 = vcombine.high %v368_v51, %v380_v52  ;;  %v392_v59 = vld [vmem:[#allocation6 + $0x248] sm:$0xff]  ;;  %v4977_v63 = vcombine.low %v368_v51, %v380_v52 }
  0x47   :  { %243 = vmatprep.subr.bf16.mxu0 %v5603_v11  ;;  %v5000_v46 = vcombine.high %v391_v40, %v403_v41  ;;  %v415_v48 = vld [vmem:[#allocation6 + $0x300] sm:$0xff]  ;;  %v4999_v53 = vcombine.low %v391_v40, %v403_v41  ;;  %v404_v60 = vld [vmem:[#allocation6 + $0x2a8] sm:$0xff] }
  0x48   :  { %5519 = vmatpush3.bf16.msra.mxu1 %v5618_v18  ;;  %v427_v49 = vld [vmem:[#allocation6 + $0x360] sm:$0xff]  ;;  %v5002_v3 = vcombine.high %v392_v59, %v404_v60  ;;  %v416_v4 = vld [vmem:[#allocation6 + $0x308] sm:$0xff]  ;;  %v5001_v8 = vcombine.low %v392_v59, %v404_v60 }
  0x49   :  { %5520 = vmatprep.subr.bf16.mxu1 %v5701_v1  ;;  %v5024_v54 = vcombine.high %v415_v48, %v427_v49  ;;  %v439_v56 = vld [vmem:[#allocation6 + $0x3c0] sm:$0xff]  ;;  %v5023_v61 = vcombine.low %v415_v48, %v427_v49  ;;  %v428_v5 = vld [vmem:[#allocation6 + $0x368] sm:$0xff] }
  0x4a   :  { %244 = vmatpush1.bf16.msra.mxu0 %v5605_v13  ;;  %v451_v57 = vld [vmem:[#allocation6 + $0x420] sm:$0xff]  ;;  %v5026_v11 = vcombine.high %v416_v4, %v428_v5  ;;  %v440_v12 = vld [vmem:[#allocation6 + $0x3c8] sm:$0xff] }
  0x4b   :  { %245 = vmatprep.subr.bf16.mxu0 %v5606_v14  ;;  %v5048_v62 = vcombine.high %v439_v56, %v451_v57  ;;  %v475_v2 = vld [vmem:[#allocation6 + $0x4e0] sm:$0xff]  ;;  %v5047_v6 = vcombine.low %v439_v56, %v451_v57  ;;  %v452_v13 = vld [vmem:[#allocation6 + $0x428] sm:$0xff] }
  0x4c   :  { %5521 = vmatpush3.bf16.msra.mxu1 %v5619_v21  ;;  %v487_v9 = vld [vmem:[#allocation6 + $0x540] sm:$0xff]  ;;  %v476_v21 = vld [vmem:[#allocation6 + $0x4e8] sm:$0xff] }
  0x4d   :  { %5522 = vmatprep.subr.bf16.mxu1 %v5701_v1  ;;  %v499_v10 = vld [vmem:[#allocation6 + $0x5a0] sm:$0xff]  ;;  %v488_v28 = vld [vmem:[#allocation6 + $0x548] sm:$0xff] }
  0x4e   :  { %246 = vmatpush1.bf16.msra.mxu0 %v5608_v16  ;;  %v5096_v15 = vcombine.high %v487_v9, %v499_v10  ;;  %v5025_v16 = vcombine.low %v416_v4, %v428_v5  ;;  %v523_v18 = vld [vmem:[#allocation6 + $0x660] sm:$0xff]  ;;  %v5095_v22 = vcombine.low %v487_v9, %v499_v10  ;;  %v512_v36 = vld [vmem:[#allocation6 + $0x608] sm:$0xff] }
  0x4f   :  { %247 = vmatprep.subr.bf16.mxu0 %v5609_v17  ;;  %v511_v17 = vld [vmem:[#allocation6 + $0x600] sm:$0xff]  ;;  %v536_v44 = vld [vmem:[#allocation6 + $0x6c8] sm:$0xff] }
  0x50   :  { %5523 = vmatpush3.bf16.msra.mxu1 %v5620_v26  ;;  %v5120_v23 = vcombine.high %v511_v17, %v523_v18  ;;  %v547_v26 = vld [vmem:[#allocation6 + $0x720] sm:$0xff]  ;;  %v560_v52 = vld [vmem:[#allocation6 + $0x788] sm:$0xff] }
  0x51   :  { %5524 = vmatprep.subr.bf16.mxu1 %v5701_v1  ;;  %v559_v33 = vld [vmem:[#allocation6 + $0x780] sm:$0xff]  ;;  %v584_v60 = vld [vmem:[#allocation6 + $0x848] sm:$0xff] }
  0x52   :  { %248 = vmatpush1.bf16.msra.mxu0 %v5611_v19  ;;  %v5050_v19 = vcombine.high %v440_v12, %v452_v13  ;;  %v571_v34 = vld [vmem:[#allocation6 + $0x7e0] sm:$0xff]  ;;  %v608_v5 = vld [vmem:[#allocation6 + $0x908] sm:$0xff] }
  0x53   :  { %249 = vmatprep.subr.bf16.mxu0 %v5612_v20  ;;  %v464_v20 = vld [vmem:[#allocation6 + $0x488] sm:$0xff]  ;;  %v583_v41 = vld [vmem:[#allocation6 + $0x840] sm:$0xff] }
  0x54   :  { %5525 = vmatpush3.bf16.msra.mxu1 %v5621_v32  ;;  %v5074_v27 = vcombine.high %v464_v20, %v476_v21  ;;  %v5073_v32 = vcombine.low %v464_v20, %v476_v21  ;;  %v607_v49 = vld [vmem:[#allocation6 + $0x900] sm:$0xff] }
  0x55   :  { %5526 = vmatprep.subr.bf16.mxu1 %v5701_v1  ;;  %v463_v1 = vld [vmem:[#allocation6 + $0x480] sm:$0xff] }
  0x56   :  { %250 = vmatpush1.bf16.msra.mxu0 %v5614_v24  ;;  %v5072_v7 = vcombine.high %v463_v1, %v475_v2  ;;  %v5071_v14 = vcombine.low %v463_v1, %v475_v2  ;;  %v5049_v24 = vcombine.low %v440_v12, %v452_v13  ;;  %v631_v57 = vld [vmem:[#allocation6 + $0x9c0] sm:$0xff]  ;;  %v644_v12 = vld [vmem:[#allocation6 + $0xa28] sm:$0xff] }
  0x57   :  { %3775 = vmatprep.subr.bf16.mxu0 %v4928_v25  ;;  %v535_v25 = vld [vmem:[#allocation6 + $0x6c0] sm:$0xff] }
  0x58   :  { %5527 = vmatpush3.bf16.msra.mxu1 %v5622_v39  ;;  %v5168_v39 = vcombine.high %v559_v33, %v571_v34  ;;  %v655_v2 = vld [vmem:[#allocation6 + $0xa80] sm:$0xff] }
  0x59   :  { %268 = vmatmul.mubr.bf16.vlgmr.msra.gmra.mrb[0].mxu0 %v57_v29  ;;  %3857 = vmatprep.subr.bf16.mxu1 %v4930_v42  ;;  %v595_v42 = vld [vmem:[#allocation6 + $0x8a0] sm:$0xff] }
  0x5a   :  { %3776 = vmatpush1.bf16.msra.mxu0 %v4927_v30  ;;  %v5119_v30 = vcombine.low %v511_v17, %v523_v18  ;;  %v668_v17 = vld [vmem:[#allocation6 + $0xae8] sm:$0xff]  ;;  %v679_v21 = vld [vmem:[#allocation6 + $0xb40] sm:$0xff] }
  0x5b   :  { %3777 = vmatprep.subr.bf16.mxu0 %v4952_v31  ;;  %5529 = vmatmul.mubr.bf16.vlgmr.msra.gmra.mrb[0].mxu1 %v57_v29  ;;  %v500_v29 = vld [vmem:[#allocation6 + $0x5a8] sm:$0xff]  ;;  %v5144_v31 = vcombine.high %v535_v25, %v547_v26 }
  0x5c   :  { %3858 = vmatpush1.bf16.msra.mxu1 %v4929_v47  ;;  %v5098_v35 = vcombine.high %v488_v28, %v500_v29  ;;  %v5097_v40 = vcombine.low %v488_v28, %v500_v29  ;;  %v5192_v47 = vcombine.high %v583_v41, %v595_v42  ;;  %v703_v29 = vld [vmem:[#allocation6 + $0xc00] sm:$0xff] }
  0x5d   :  { %3859 = vmatprep.subr.bf16.mxu1 %v4954_v50  ;;  %v619_v50 = vld [vmem:[#allocation6 + $0x960] sm:$0xff] }
  0x5e   :  { %3778 = vmatpush1.bf16.msra.mxu0 %v4951_v37  ;;  %v524_v37 = vld [vmem:[#allocation6 + $0x668] sm:$0xff] }
  0x5f   :  { %3779 = vmatprep.subr.bf16.mxu0 %v4976_v38  ;;  %v5143_v38 = vcombine.low %v535_v25, %v547_v26  ;;  %v5122_v43 = vcombine.high %v512_v36, %v524_v37  ;;  %v5121_v48 = vcombine.low %v512_v36, %v524_v37  ;;  %v692_v25 = vld [vmem:[#allocation6 + $0xba8] sm:$0xff]  ;;  %v92_v37 = vlaneseq }
  0x60   :  { %3860 = vmatpush1.bf16.msra.mxu1 %v4953_v55  ;;  %v5216_v55 = vcombine.high %v607_v49, %v619_v50 }
  0x61   :  { %3861 = vmatprep.subr.bf16.mxu1 %v4978_v58  ;;  %v643_v58 = vld [vmem:[#allocation6 + $0xa20] sm:$0xff] }
  0x62   :  { %3780 = vmatpush1.bf16.msra.mxu0 %v4975_v45  ;;  %v548_v45 = vld [vmem:[#allocation6 + $0x728] sm:$0xff] }
  0x63   :  { %3781 = vmatprep.subr.bf16.mxu0 %v5000_v46  ;;  %v5167_v46 = vcombine.low %v559_v33, %v571_v34  ;;  %v5146_v51 = vcombine.high %v536_v44, %v548_v45  ;;  %v5145_v56 = vcombine.low %v536_v44, %v548_v45  ;;  %v716_v33 = vld [vmem:[#allocation6 + $0xc68] sm:$0xff] }
  0x64   :  { %3862 = vmatpush1.bf16.msra.mxu1 %v4977_v63  ;;  %v5240_v63 = vcombine.high %v631_v57, %v643_v58 }
  0x65   :  { %3863 = vmatprep.subr.bf16.mxu1 %v5002_v3  ;;  %v667_v3 = vld [vmem:[#allocation6 + $0xae0] sm:$0xff] }
  0x66   :  { %3782 = vmatpush1.bf16.msra.mxu0 %v4999_v53  ;;  %v572_v53 = vld [vmem:[#allocation6 + $0x7e8] sm:$0xff]  ;;  %v5263_v13 = vcombine.low %v655_v2, %v667_v3 }
  0x67   :  { %3783 = vmatprep.subr.bf16.mxu0 %v5024_v54  ;;  %v5191_v54 = vcombine.low %v583_v41, %v595_v42  ;;  %v5170_v59 = vcombine.high %v560_v52, %v572_v53  ;;  %v5169_v1 = vcombine.low %v560_v52, %v572_v53  ;;  %v740_v52 = vld [vmem:[#allocation6 + $0xd28] sm:$0xff] }
  0x68   :  { %3864 = vmatpush1.bf16.msra.mxu1 %v5001_v8  ;;  %v5264_v8 = vcombine.high %v655_v2, %v667_v3  ;;  %v775_v3 = vld [vmem:[#allocation6 + $0xe40] sm:$0xff] }
  0x69   :  { %3865 = vmatprep.subr.bf16.mxu1 %v5026_v11  ;;  %v632_v11 = vld [vmem:[#allocation6 + $0x9c8] sm:$0xff] }
  0x6a   :  { %3784 = vmatpush1.bf16.msra.mxu0 %v5023_v61  ;;  %v596_v61 = vld [vmem:[#allocation6 + $0x8a8] sm:$0xff]  ;;  %v5241_v18 = vcombine.low %v632_v11, %v644_v12 }
  0x6b   :  { %3785 = vmatprep.subr.bf16.mxu0 %v5048_v62  ;;  %v5215_v62 = vcombine.low %v607_v49, %v619_v50  ;;  %v5194_v4 = vcombine.high %v584_v60, %v596_v61  ;;  %v5193_v9 = vcombine.low %v584_v60, %v596_v61  ;;  %v739_v50 = vld [vmem:[#allocation6 + $0xd20] sm:$0xff]  ;;  %v752_v60 = vld [vmem:[#allocation6 + $0xd88] sm:$0xff] }
  0x6c   :  { %3866 = vmatpush1.bf16.msra.mxu1 %v5025_v16  ;;  %v656_v16 = vld [vmem:[#allocation6 + $0xa88] sm:$0xff] }
  0x6d   :  { %3867 = vmatprep.subr.bf16.mxu1 %v5050_v19  ;;  %v5266_v19 = vcombine.high %v656_v16, %v668_v17  ;;  %v5265_v20 = vcombine.low %v656_v16, %v668_v17  ;;  %v764_v61 = vld [vmem:[#allocation6 + $0xde8] sm:$0xff]  ;;  %v811_v16 = vld [vmem:[#allocation6 + $0xf60] sm:$0xff] }
  0x6e   :  { %3786 = vmatpush1.bf16.msra.mxu0 %v5047_v6  ;;  %v620_v6 = vld [vmem:[#allocation6 + $0x968] sm:$0xff]  ;;  %v5362_v2 = vcombine.high %v752_v60, %v764_v61 }
  0x6f   :  { %3787 = vmatprep.subr.bf16.mxu0 %v5072_v7  ;;  %v5239_v7 = vcombine.low %v631_v57, %v643_v58  ;;  %v5218_v10 = vcombine.high %v608_v5, %v620_v6  ;;  %v751_v58 = vld [vmem:[#allocation6 + $0xd80] sm:$0xff]  ;;  %v800_v17 = vld [vmem:[#allocation6 + $0xf08] sm:$0xff] }
  0x70   :  { %3868 = vmatpush1.bf16.msra.mxu1 %v5049_v24 }
  0x71   :  { %3869 = vmatprep.subr.bf16.mxu1 %v5074_v27 }
  0x72   :  { %3788 = vmatpush1.bf16.msra.mxu0 %v5071_v14  ;;  %v5217_v14 = vcombine.low %v608_v5, %v620_v6  ;;  %v776_v5 = vld [vmem:[#allocation6 + $0xe48] sm:$0xff] }
  0x73   :  { %3789 = vmatprep.subr.bf16.mxu0 %v5096_v15  ;;  %v5242_v15 = vcombine.high %v632_v11, %v644_v12  ;;  %v788_v6 = vld [vmem:[#allocation6 + $0xea8] sm:$0xff] }
  0x74   :  { %3870 = vmatpush1.bf16.msra.mxu1 %v5073_v32 }
  0x75   :  { %3871 = vmatprep.subr.bf16.mxu1 %v5098_v35 }
  0x76   :  { %3790 = vmatpush1.bf16.msra.mxu0 %v5095_v22  ;;  %v691_v22 = vld [vmem:[#allocation6 + $0xba0] sm:$0xff] }
  0x77   :  { %3791 = vmatprep.subr.bf16.mxu0 %v5120_v23  ;;  %v680_v23 = vld [vmem:[#allocation6 + $0xb48] sm:$0xff]  ;;  %v5288_v24 = vcombine.high %v679_v21, %v691_v22  ;;  %v5287_v26 = vcombine.low %v679_v21, %v691_v22 }
  0x78   :  { %3872 = vmatpush1.bf16.msra.mxu1 %v5097_v40  ;;  %v5289_v27 = vcombine.low %v680_v23, %v692_v25  ;;  %v5290_v28 = vcombine.high %v680_v23, %v692_v25  ;;  %v5788_v40 = vld [vmem:[#allocation4] sm:$0x7]  ;;  %v823_v23 = vld [vmem:[#allocation6 + $0xfc0] sm:$0xff]  ;;  %v824_v25 = vld [vmem:[#allocation6 + $0xfc8] sm:$0xff] }
  0x79   :  { %3873 = vmatprep.subr.bf16.mxu1 %v5122_v43 }
  0x7a   :  { %3792 = vmatpush1.bf16.msra.mxu0 %v5119_v30  ;;  %v715_v30 = vld [vmem:[#allocation6 + $0xc60] sm:$0xff] }
  0x7b   :  { %3793 = vmatprep.subr.bf16.mxu0 %v5144_v31  ;;  %v704_v31 = vld [vmem:[#allocation6 + $0xc08] sm:$0xff]  ;;  %v5312_v32 = vcombine.high %v703_v29, %v715_v30  ;;  %v5311_v34 = vcombine.low %v703_v29, %v715_v30 }
  0x7c   :  { %3874 = vmatpush1.bf16.msra.mxu1 %v5121_v48  ;;  %v5313_v35 = vcombine.low %v704_v31, %v716_v33  ;;  %v5314_v36 = vcombine.high %v704_v31, %v716_v33  ;;  %v847_v31 = vld [vmem:[#allocation6 + $0x1080] sm:$0xff]  ;;  %v848_v33 = vld [vmem:[#allocation6 + $0x1088] sm:$0xff] }
  0x7d   :  { %3875 = vmatprep.subr.bf16.mxu1 %v5146_v51  ;;  %v728_v51 = vld [vmem:[#allocation6 + $0xcc8] sm:$0xff] }
  0x7e   :  { %3794 = vmatpush1.bf16.msra.mxu0 %v5143_v38  ;;  %v5785_v38 = vshrl.u32 %v92_v37, 7  ;;  %v5338_v57 = vcombine.high %v728_v51, %v740_v52 }
  0x7f   :  { %3795 = vmatprep.subr.bf16.mxu0 %v5168_v39 }
  0x80   :  { %3876 = vmatpush1.bf16.msra.mxu1 %v5145_v56  ;;  %v94_v39 = vsub.s32 0, %v5785_v38  ;;  %v98_v41 = vsub.s32 1, %v5785_v38 }
  0x81   :  { %3877 = vmatprep.subr.bf16.mxu1 %v5170_v59  ;;  %v763_v59 = vld [vmem:[#allocation6 + $0xde0] sm:$0xff] }
  0x82   :  { %3796 = vmatpush1.bf16.msra.mxu0 %v5167_v46  ;;  %v95_v42 = vrot.slane %v5788_v40, %v94_v39  ;;  %v99_v43 = vrot.slane %v5788_v40, %v98_v41 }
  0x83   :  { %3797 = vmatprep.subr.bf16.mxu0 %v5192_v47  ;;  %v727_v47 = vld [vmem:[#allocation6 + $0xcc0] sm:$0xff] }
  0x84   :  { %3878 = vmatpush1.bf16.msra.mxu1 %v5169_v1  ;;  %v5336_v56 = vcombine.high %v727_v47, %v739_v50  ;;  %v5360_v1 = vcombine.high %v751_v58, %v763_v59 }
  0x85   :  { %3879 = vmatprep.subr.bf16.mxu1 %v5194_v4  ;;  %v787_v4 = vld [vmem:[#allocation6 + $0xea0] sm:$0xff] }
  0x86   :  { %3798 = vmatpush1.bf16.msra.mxu0 %v5191_v54  ;;  %v5384_v12 = vcombine.high %v775_v3, %v787_v4 }
  0x87   :  { %3799 = vmatprep.subr.bf16.mxu0 %v5216_v55 }
  0x88   :  { %3880 = vmatpush1.bf16.msra.mxu1 %v5193_v9  ;;  %v5359_v9 = vcombine.low %v751_v58, %v763_v59 }
  0x89   :  { %3881 = vmatprep.subr.bf16.mxu1 %v5218_v10  ;;  %v5361_v10 = vcombine.low %v752_v60, %v764_v61  ;;  %v345_v61 = vld [vmem:[#allocation6 + $0xd0] sm:$0xff] }
  0x8a   :  { %3800 = vmatpush1.bf16.msra.mxu0 %v5215_v62  ;;  %v5335_v62 = vcombine.low %v727_v47, %v739_v50 }
  0x8b   :  { %3801 = vmatprep.subr.bf16.mxu0 %v5240_v63  ;;  %v5337_v63 = vcombine.low %v728_v51, %v740_v52  ;;  %v321_v51 = vld [vmem:[#allocation6 + $0x10] sm:$0xff] }
  0x8c   :  { %3882 = vmatpush1.bf16.msra.mxu1 %v5217_v14  ;;  %v799_v14 = vld [vmem:[#allocation6 + $0xf00] sm:$0xff]  ;;  %v333_v52 = vld [vmem:[#allocation6 + $0x70] sm:$0xff] }
  0x8d   :  { %3883 = vmatprep.subr.bf16.mxu1 %v5242_v15  ;;  %v5408_v21 = vcombine.high %v799_v14, %v811_v16 }
  0x8e   :  { %3802 = vmatpush1.bf16.msra.mxu0 %v5239_v7 }
  0x8f   :  { %3803 = vmatprep.subr.bf16.mxu0 %v5264_v8 }
  0x90   :  { %3884 = vmatpush1.bf16.msra.mxu1 %v5241_v18  ;;  %v812_v18 = vld [vmem:[#allocation6 + $0xf68] sm:$0xff] }
  0x91   :  { %3885 = vmatprep.subr.bf16.mxu1 %v5266_v19  ;;  %v5383_v19 = vcombine.low %v775_v3, %v787_v4  ;;  %v5410_v22 = vcombine.high %v800_v17, %v812_v18  ;;  %v4931_v3 = vcombine.low %v321_v51, %v333_v52 }
  0x92   :  { %3804 = vmatpush1.bf16.msra.mxu0 %v5263_v13  ;;  %v5386_v13 = vcombine.high %v776_v5, %v788_v6 }
  0x93   :  { %3805 = vmatprep.subr.bf16.mxu0 %v5288_v24  ;;  %v835_v24 = vld [vmem:[#allocation6 + $0x1020] sm:$0xff] }
  0x94   :  { %3886 = vmatpush1.bf16.msra.mxu1 %v5265_v20  ;;  %v5385_v20 = vcombine.low %v776_v5, %v788_v6  ;;  %v5432_v29 = vcombine.high %v823_v23, %v835_v24 }
  0x95   :  { %3887 = vmatprep.subr.bf16.mxu1 %v5290_v28  ;;  %v5409_v28 = vcombine.low %v800_v17, %v812_v18  ;;  %v394_v17 = vld [vmem:[#allocation6 + $0x258] sm:$0xff] }
  0x96   :  { %3806 = vmatpush1.bf16.msra.mxu0 %v5287_v26  ;;  %v836_v26 = vld [vmem:[#allocation6 + $0x1028] sm:$0xff]  ;;  %v406_v18 = vld [vmem:[#allocation6 + $0x2b8] sm:$0xff] }
  0x97   :  { %3816 = vmatprep.subr.bf16.mxu0 %v5312_v32  ;;  %v5434_v30 = vcombine.high %v824_v25, %v836_v26  ;;  %v859_v32 = vld [vmem:[#allocation6 + $0x10e0] sm:$0xff]  ;;  %v5433_v37 = vcombine.low %v824_v25, %v836_v26  ;;  %v418_v25 = vld [vmem:[#allocation6 + $0x318] sm:$0xff] }
  0x98   :  { %3888 = vmatpush1.bf16.msra.mxu1 %v5289_v27  ;;  %v5407_v27 = vcombine.low %v799_v14, %v811_v16  ;;  %v5456_v39 = vcombine.high %v847_v31, %v859_v32  ;;  %v5455_v47 = vcombine.low %v847_v31, %v859_v32  ;;  %v405_v16 = vld [vmem:[#allocation6 + $0x2b0] sm:$0xff]  ;;  %v430_v26 = vld [vmem:[#allocation6 + $0x378] sm:$0xff] }
  0x99   :  { %3898 = vmatprep.subr.bf16.mxu1 %v5314_v36  ;;  %v5431_v36 = vcombine.low %v823_v23, %v835_v24  ;;  %v417_v23 = vld [vmem:[#allocation6 + $0x310] sm:$0xff] }
  0x9a   :  { %v429_v24 = vld [vmem:[#allocation6 + $0x370] sm:$0xff] }
  0x9b   :  { %v441_v31 = vld [vmem:[#allocation6 + $0x3d0] sm:$0xff] }
  0x9c   :  { %v453_v32 = vld [vmem:[#allocation6 + $0x430] sm:$0xff] }
 0x12c   :  { %v269_v44 = vpop.f32.mrb[0].mxu0 }
 0x12d   :  { %v270_v45 = vadd.f32 %v269_v44, %v95_v42  ;;  %v271_v46 = vpop.f32.mrb[1].mxu0  ;;  %v871_v42 = vld [vmem:[#allocation6 + $0x1140] sm:$0xff]  ;;  %v872_v44 = vld [vmem:[#allocation6 + $0x1148] sm:$0xff] }
 0x12e   :  { %v272_v48 = vadd.f32 %v271_v46, %v99_v43  ;;  %v273_v49 = vpop.f32.mrb[2].mxu0  ;;  %v5801_v7 = vpop.f32.mrb[0].mxu1  ;;  %v883_v43 = vld [vmem:[#allocation6 + $0x11a0] sm:$0xff] }
 0x12f   :  { %v274_v53 = vpop.f32.mrb[3].mxu0  ;;  %v5795_v55 = vpack.c.bf16 %v270_v45, %v270_v45  ;;  %v5530_v8 = vpop.f32.mrb[1].mxu1  ;;  %v884_v45 = vld [vmem:[#allocation6 + $0x11a8] sm:$0xff]  ;;  %v5480_v49 = vcombine.high %v871_v42, %v883_v43  ;;  %v5479_v58 = vcombine.low %v871_v42, %v883_v43  ;;  %v477_v42 = vld [vmem:[#allocation6 + $0x4f0] sm:$0xff]  ;;  %v466_v43 = vld [vmem:[#allocation6 + $0x498] sm:$0xff] }
 0x130   :  { %v5793_v54 = vpack.c.bf16 %v272_v48, %v272_v48  ;;  %v313_v11 = vpop.f32.mrb[2].mxu1  ;;  %v5482_v50 = vcombine.high %v872_v44, %v884_v45  ;;  %v322_v53 = vld [vmem:[#allocation6 + $0x18] sm:$0xff]  ;;  %v5481_v59 = vcombine.low %v872_v44, %v884_v45  ;;  %v381_v8 = vld [vmem:[#allocation6 + $0x1f0] sm:$0xff]  ;;  %v5051_v45 = vcombine.low %v441_v31, %v453_v32 }
 0x131   :  { %v5531_v15 = vpop.f32.mrb[3].mxu1  ;;  %v478_v44 = vld [vmem:[#allocation6 + $0x4f8] sm:$0xff] }
 0x132   :  { %3807 = vmatprep.mubr.bf16.mxu0 %v5793_v54  ;;  %3889 = vmatprep.mubr.bf16.mxu1 %v5793_v54  ;;  %v393_v15 = vld [vmem:[#allocation6 + $0x250] sm:$0xff] }
 0x133   :  { %3808 = vmatmul.mubr.bf16.vlgmr.msra.gmra.mrb[4].mxu0 %v5795_v55  ;;  %3890 = vmatmul.mubr.bf16.vlgmr.msra.gmra.mrb[4].mxu1 %v5795_v55 }
 0x134   :  { %3817 = vmatpush1.bf16.msra.mxu0 %v5311_v34  ;;  %3899 = vmatpush1.bf16.msra.mxu1 %v5313_v35  ;;  %v860_v34 = vld [vmem:[#allocation6 + $0x10e8] sm:$0xff]  ;;  %v102_v35 = vsub.s32 2, %v5785_v38 }
 0x135   :  { %3818 = vmatprep.subr.bf16.mxu0 %v5336_v56  ;;  %3900 = vmatprep.subr.bf16.mxu1 %v5338_v57  ;;  %v5458_v41 = vcombine.high %v848_v33, %v860_v34  ;;  %v5457_v48 = vcombine.low %v848_v33, %v860_v34  ;;  %v334_v56 = vld [vmem:[#allocation6 + $0x78] sm:$0xff] }
 0x136   :  { %3848 = vmatprep.mubr.bf16.mxu0 %v5700_v0  ;;  %3930 = vmatprep.mubr.bf16.mxu1 %v5700_v0  ;;  %v103_v46 = vrot.slane %v5788_v40, %v102_v35  ;;  %v4932_v40 = vcombine.high %v321_v51, %v333_v52  ;;  %v4934_v60 = vcombine.high %v322_v53, %v334_v56  ;;  %v442_v33 = vld [vmem:[#allocation6 + $0x3d8] sm:$0xff] }
 0x137   :  { %v4933_v4 = vcombine.low %v322_v53, %v334_v56  ;;  %v454_v34 = vld [vmem:[#allocation6 + $0x438] sm:$0xff]  ;;  %v5027_v35 = vcombine.low %v417_v23, %v429_v24  ;;  %v5077_v56 = vcombine.low %v466_v43, %v478_v44 }
 0x138   :  { %3819 = vmatpush1.bf16.msra.mxu0 %v5335_v62  ;;  %3901 = vmatpush1.bf16.msra.mxu1 %v5337_v63  ;;  %v311_v57 = vadd.f32 %v5801_v7, %v103_v46  ;;  %v357_v63 = vld [vmem:[#allocation6 + $0x130] sm:$0xff]  ;;  %v5053_v46 = vcombine.low %v442_v33, %v454_v34  ;;  %v490_v51 = vld [vmem:[#allocation6 + $0x558] sm:$0xff] }
 0x139   :  { %3820 = vmatprep.subr.bf16.mxu0 %v5360_v1  ;;  %3902 = vmatprep.subr.bf16.mxu1 %v5362_v2  ;;  %v346_v1 = vld [vmem:[#allocation6 + $0xd8] sm:$0xff]  ;;  %v4956_v5 = vcombine.high %v345_v61, %v357_v63  ;;  %v369_v7 = vld [vmem:[#allocation6 + $0x190] sm:$0xff]  ;;  %v4955_v11 = vcombine.low %v345_v61, %v357_v63 }
 0x13a   :  { %v5808_v62 = vpack.c.bf16 %v311_v57, %v311_v57  ;;  %v358_v2 = vld [vmem:[#allocation6 + $0x138] sm:$0xff] }
 0x13b   :  { %v4958_v6 = vcombine.high %v346_v1, %v358_v2  ;;  %v502_v52 = vld [vmem:[#allocation6 + $0x5b8] sm:$0xff] }
 0x13c   :  { %3821 = vmatpush1.bf16.msra.mxu0 %v5359_v9  ;;  %3903 = vmatpush1.bf16.msra.mxu1 %v5361_v10  ;;  %v370_v9 = vld [vmem:[#allocation6 + $0x198] sm:$0xff] }
 0x13d   :  { %3822 = vmatprep.subr.bf16.mxu0 %v5384_v12  ;;  %3904 = vmatprep.subr.bf16.mxu1 %v5386_v13  ;;  %v382_v10 = vld [vmem:[#allocation6 + $0x1f8] sm:$0xff]  ;;  %v4957_v12 = vcombine.low %v346_v1, %v358_v2  ;;  %v4980_v13 = vcombine.high %v369_v7, %v381_v8  ;;  %v5101_v1 = vcombine.low %v490_v51, %v502_v52 }
 0x13e   :  { %v4982_v14 = vcombine.high %v370_v9, %v382_v10  ;;  %v526_v61 = vld [vmem:[#allocation6 + $0x678] sm:$0xff] }
 0x140   :  { %3823 = vmatpush1.bf16.msra.mxu0 %v5383_v19  ;;  %3905 = vmatpush1.bf16.msra.mxu1 %v5385_v20  ;;  %v4979_v19 = vcombine.low %v369_v7, %v381_v8  ;;  %v4981_v20 = vcombine.low %v370_v9, %v382_v10  ;;  %v550_v7 = vld [vmem:[#allocation6 + $0x738] sm:$0xff] }
 0x141   :  { %3824 = vmatprep.subr.bf16.mxu0 %v5408_v21  ;;  %3906 = vmatprep.subr.bf16.mxu1 %v5410_v22  ;;  %v5004_v21 = vcombine.high %v393_v15, %v405_v16  ;;  %v5006_v22 = vcombine.high %v394_v17, %v406_v18 }
 0x144   :  { %3825 = vmatpush1.bf16.msra.mxu0 %v5407_v27  ;;  %3907 = vmatpush1.bf16.msra.mxu1 %v5409_v28  ;;  %v5003_v27 = vcombine.low %v393_v15, %v405_v16  ;;  %v5005_v28 = vcombine.low %v394_v17, %v406_v18  ;;  %v574_v15 = vld [vmem:[#allocation6 + $0x7f8] sm:$0xff] }
 0x145   :  { %3826 = vmatprep.subr.bf16.mxu0 %v5432_v29  ;;  %3908 = vmatprep.subr.bf16.mxu1 %v5434_v30  ;;  %v5028_v29 = vcombine.high %v417_v23, %v429_v24  ;;  %v5030_v30 = vcombine.high %v418_v25, %v430_v26  ;;  %v598_v23 = vld [vmem:[#allocation6 + $0x8b8] sm:$0xff] }
 0x148   :  { %3827 = vmatpush1.bf16.msra.mxu0 %v5431_v36  ;;  %3909 = vmatpush1.bf16.msra.mxu1 %v5433_v37  ;;  %v5029_v36 = vcombine.low %v418_v25, %v430_v26  ;;  %v5052_v37 = vcombine.high %v441_v31, %v453_v32  ;;  %v622_v31 = vld [vmem:[#allocation6 + $0x978] sm:$0xff] }
 0x149   :  { %3828 = vmatprep.subr.bf16.mxu0 %v5456_v39  ;;  %3910 = vmatprep.subr.bf16.mxu1 %v5458_v41  ;;  %v5054_v39 = vcombine.high %v442_v33, %v454_v34  ;;  %v465_v41 = vld [vmem:[#allocation6 + $0x490] sm:$0xff] }
 0x14a   :  { %v5075_v53 = vcombine.low %v465_v41, %v477_v42 }
 0x14c   :  { %3829 = vmatpush1.bf16.msra.mxu0 %v5455_v47  ;;  %3911 = vmatpush1.bf16.msra.mxu1 %v5457_v48  ;;  %v5076_v47 = vcombine.high %v465_v41, %v477_v42  ;;  %v5078_v48 = vcombine.high %v466_v43, %v478_v44  ;;  %v646_v41 = vld [vmem:[#allocation6 + $0xa38] sm:$0xff] }
 0x14d   :  { %3830 = vmatprep.subr.bf16.mxu0 %v5480_v49  ;;  %3912 = vmatprep.subr.bf16.mxu1 %v5482_v50  ;;  %v489_v49 = vld [vmem:[#allocation6 + $0x550] sm:$0xff] }
 0x14e   :  { %v501_v50 = vld [vmem:[#allocation6 + $0x5b0] sm:$0xff] }
 0x14f   :  { %v5100_v57 = vcombine.high %v489_v49, %v501_v50  ;;  %v5099_v63 = vcombine.low %v489_v49, %v501_v50  ;;  %v670_v49 = vld [vmem:[#allocation6 + $0xaf8] sm:$0xff] }
 0x150   :  { %3831 = vmatpush1.bf16.msra.mxu0 %v5479_v58  ;;  %3913 = vmatpush1.bf16.msra.mxu1 %v5481_v59  ;;  %v5102_v58 = vcombine.high %v490_v51, %v502_v52  ;;  %v513_v59 = vld [vmem:[#allocation6 + $0x610] sm:$0xff] }
 0x151   :  { %3939 = vmatprep.subr.bf16.mxu0 %v4932_v40  ;;  %4021 = vmatprep.subr.bf16.mxu1 %v4934_v60  ;;  %v525_v40 = vld [vmem:[#allocation6 + $0x670] sm:$0xff]  ;;  %v514_v60 = vld [vmem:[#allocation6 + $0x618] sm:$0xff] }
 0x152   :  { %v5124_v2 = vcombine.high %v513_v59, %v525_v40  ;;  %v5123_v8 = vcombine.low %v513_v59, %v525_v40  ;;  %v5125_v9 = vcombine.low %v514_v60, %v526_v61  ;;  %v694_v59 = vld [vmem:[#allocation6 + $0xbb8] sm:$0xff] }
 0x153   :  { %3849 = vmatmul.mubr.bf16.vlgmr.msra.gmra.mrb[4].mxu0 %v5808_v62  ;;  %3931 = vmatmul.mubr.bf16.vlgmr.msra.gmra.mrb[4].mxu1 %v5808_v62 }
 0x154   :  { %3940 = vmatpush1.bf16.msra.mxu0 %v4931_v3  ;;  %3971 = vmatprep.mubr.bf16.mxu0 %v5793_v54  ;;  %v5126_v3 = vcombine.high %v514_v60, %v526_v61 }
 0x155   :  { %4022 = vmatpush1.bf16.msra.mxu1 %v4933_v4  ;;  %4053 = vmatprep.mubr.bf16.mxu1 %v5793_v54  ;;  %v537_v4 = vld [vmem:[#allocation6 + $0x6d0] sm:$0xff] }
 0x156   :  { %3941 = vmatprep.subr.bf16.mxu0 %v4956_v5  ;;  %4023 = vmatprep.subr.bf16.mxu1 %v4958_v6  ;;  %v549_v5 = vld [vmem:[#allocation6 + $0x730] sm:$0xff]  ;;  %v538_v6 = vld [vmem:[#allocation6 + $0x6d8] sm:$0xff] }
 0x157   :  { %v5148_v10 = vcombine.high %v537_v4, %v549_v5  ;;  %v5147_v16 = vcombine.low %v537_v4, %v549_v5  ;;  %v5149_v17 = vcombine.low %v538_v6, %v550_v7  ;;  %v718_v4 = vld [vmem:[#allocation6 + $0xc78] sm:$0xff] }
 0x158   :  { %3942 = vmatpush1.bf16.msra.mxu0 %v4955_v11  ;;  %v5150_v11 = vcombine.high %v538_v6, %v550_v7 }
 0x159   :  { %4024 = vmatpush1.bf16.msra.mxu1 %v4957_v12  ;;  %3943 = vmatprep.subr.bf16.mxu0 %v4980_v13  ;;  %v561_v12 = vld [vmem:[#allocation6 + $0x790] sm:$0xff] }
 0x15a   :  { %4025 = vmatprep.subr.bf16.mxu1 %v4982_v14  ;;  %v573_v13 = vld [vmem:[#allocation6 + $0x7f0] sm:$0xff]  ;;  %v562_v14 = vld [vmem:[#allocation6 + $0x798] sm:$0xff] }
 0x15b   :  { %v5172_v18 = vcombine.high %v561_v12, %v573_v13  ;;  %v5171_v24 = vcombine.low %v561_v12, %v573_v13  ;;  %v5173_v25 = vcombine.low %v562_v14, %v574_v15  ;;  %v742_v12 = vld [vmem:[#allocation6 + $0xd38] sm:$0xff] }
 0x15c   :  { %3944 = vmatpush1.bf16.msra.mxu0 %v4979_v19  ;;  %v5174_v19 = vcombine.high %v562_v14, %v574_v15 }
 0x15d   :  { %4026 = vmatpush1.bf16.msra.mxu1 %v4981_v20  ;;  %3945 = vmatprep.subr.bf16.mxu0 %v5004_v21  ;;  %v585_v20 = vld [vmem:[#allocation6 + $0x850] sm:$0xff] }
 0x15e   :  { %4027 = vmatprep.subr.bf16.mxu1 %v5006_v22  ;;  %v597_v21 = vld [vmem:[#allocation6 + $0x8b0] sm:$0xff]  ;;  %v586_v22 = vld [vmem:[#allocation6 + $0x858] sm:$0xff] }
 0x15f   :  { %v5196_v26 = vcombine.high %v585_v20, %v597_v21  ;;  %v5195_v32 = vcombine.low %v585_v20, %v597_v21  ;;  %v5197_v33 = vcombine.low %v586_v22, %v598_v23  ;;  %v766_v20 = vld [vmem:[#allocation6 + $0xdf8] sm:$0xff] }
 0x160   :  { %3946 = vmatpush1.bf16.msra.mxu0 %v5003_v27  ;;  %v5198_v27 = vcombine.high %v586_v22, %v598_v23 }
 0x161   :  { %4028 = vmatpush1.bf16.msra.mxu1 %v5005_v28  ;;  %3947 = vmatprep.subr.bf16.mxu0 %v5028_v29  ;;  %v609_v28 = vld [vmem:[#allocation6 + $0x910] sm:$0xff] }
 0x162   :  { %4029 = vmatprep.subr.bf16.mxu1 %v5030_v30  ;;  %v621_v29 = vld [vmem:[#allocation6 + $0x970] sm:$0xff]  ;;  %v610_v30 = vld [vmem:[#allocation6 + $0x918] sm:$0xff] }
 0x163   :  { %v5220_v34 = vcombine.high %v609_v28, %v621_v29  ;;  %v5219_v42 = vcombine.low %v609_v28, %v621_v29  ;;  %v5221_v43 = vcombine.low %v610_v30, %v622_v31  ;;  %v790_v28 = vld [vmem:[#allocation6 + $0xeb8] sm:$0xff] }
 0x164   :  { %3948 = vmatpush1.bf16.msra.mxu0 %v5027_v35  ;;  %v5222_v35 = vcombine.high %v610_v30, %v622_v31 }
 0x165   :  { %4030 = vmatpush1.bf16.msra.mxu1 %v5029_v36  ;;  %3949 = vmatprep.subr.bf16.mxu0 %v5052_v37  ;;  %v633_v36 = vld [vmem:[#allocation6 + $0x9d0] sm:$0xff] }
 0x166   :  { %4031 = vmatprep.subr.bf16.mxu1 %v5054_v39  ;;  %v645_v37 = vld [vmem:[#allocation6 + $0xa30] sm:$0xff]  ;;  %v634_v39 = vld [vmem:[#allocation6 + $0x9d8] sm:$0xff] }
 0x167   :  { %v5244_v44 = vcombine.high %v633_v36, %v645_v37  ;;  %v5243_v50 = vcombine.low %v633_v36, %v645_v37  ;;  %v5245_v51 = vcombine.low %v634_v39, %v646_v41  ;;  %v814_v36 = vld [vmem:[#allocation6 + $0xf78] sm:$0xff] }
 0x168   :  { %3950 = vmatpush1.bf16.msra.mxu0 %v5051_v45  ;;  %v5246_v45 = vcombine.high %v634_v39, %v646_v41 }
 0x169   :  { %4032 = vmatpush1.bf16.msra.mxu1 %v5053_v46  ;;  %3951 = vmatprep.subr.bf16.mxu0 %v5076_v47  ;;  %v657_v46 = vld [vmem:[#allocation6 + $0xa90] sm:$0xff] }
 0x16a   :  { %4033 = vmatprep.subr.bf16.mxu1 %v5078_v48  ;;  %v669_v47 = vld [vmem:[#allocation6 + $0xaf0] sm:$0xff]  ;;  %v658_v48 = vld [vmem:[#allocation6 + $0xa98] sm:$0xff] }
 0x16b   :  { %v5268_v52 = vcombine.high %v657_v46, %v669_v47  ;;  %v5267_v40 = vcombine.low %v657_v46, %v669_v47  ;;  %v5269_v60 = vcombine.low %v658_v48, %v670_v49  ;;  %v838_v46 = vld [vmem:[#allocation6 + $0x1038] sm:$0xff] }
 0x16c   :  { %3952 = vmatpush1.bf16.msra.mxu0 %v5075_v53  ;;  %v5270_v53 = vcombine.high %v658_v48, %v670_v49 }
 0x16d   :  { %4034 = vmatpush1.bf16.msra.mxu1 %v5077_v56  ;;  %3953 = vmatprep.subr.bf16.mxu0 %v5100_v57  ;;  %v681_v56 = vld [vmem:[#allocation6 + $0xb50] sm:$0xff] }
 0x16e   :  { %4035 = vmatprep.subr.bf16.mxu1 %v5102_v58  ;;  %v693_v57 = vld [vmem:[#allocation6 + $0xbb0] sm:$0xff]  ;;  %v682_v58 = vld [vmem:[#allocation6 + $0xb58] sm:$0xff] }
 0x16f   :  { %v5292_v61 = vcombine.high %v681_v56, %v693_v57  ;;  %v5291_v5 = vcombine.low %v681_v56, %v693_v57  ;;  %v5293_v6 = vcombine.low %v682_v58, %v694_v59  ;;  %v862_v56 = vld [vmem:[#allocation6 + $0x10f8] sm:$0xff] }
 0x170   :  { %3954 = vmatpush1.bf16.msra.mxu0 %v5099_v63  ;;  %v5294_v63 = vcombine.high %v682_v58, %v694_v59 }
 0x171   :  { %4036 = vmatpush1.bf16.msra.mxu1 %v5101_v1  ;;  %3955 = vmatprep.subr.bf16.mxu0 %v5124_v2  ;;  %v705_v1 = vld [vmem:[#allocation6 + $0xc10] sm:$0xff] }
 0x172   :  { %4037 = vmatprep.subr.bf16.mxu1 %v5126_v3  ;;  %v717_v2 = vld [vmem:[#allocation6 + $0xc70] sm:$0xff]  ;;  %v706_v3 = vld [vmem:[#allocation6 + $0xc18] sm:$0xff] }
 0x173   :  { %v5316_v7 = vcombine.high %v705_v1, %v717_v2  ;;  %v5315_v13 = vcombine.low %v705_v1, %v717_v2  ;;  %v5317_v14 = vcombine.low %v706_v3, %v718_v4  ;;  %v886_v1 = vld [vmem:[#allocation6 + $0x11b8] sm:$0xff] }
 0x174   :  { %3956 = vmatpush1.bf16.msra.mxu0 %v5123_v8  ;;  %v5318_v8 = vcombine.high %v706_v3, %v718_v4 }
 0x175   :  { %4038 = vmatpush1.bf16.msra.mxu1 %v5125_v9  ;;  %3957 = vmatprep.subr.bf16.mxu0 %v5148_v10  ;;  %v729_v9 = vld [vmem:[#allocation6 + $0xcd0] sm:$0xff] }
 0x176   :  { %4039 = vmatprep.subr.bf16.mxu1 %v5150_v11  ;;  %v741_v10 = vld [vmem:[#allocation6 + $0xd30] sm:$0xff]  ;;  %v730_v11 = vld [vmem:[#allocation6 + $0xcd8] sm:$0xff] }
 0x177   :  { %v5340_v15 = vcombine.high %v729_v9, %v741_v10  ;;  %v5339_v21 = vcombine.low %v729_v9, %v741_v10  ;;  %v5341_v22 = vcombine.low %v730_v11, %v742_v12  ;;  %v336_v9 = vld [vmem:[#allocation6 + $0x88] sm:$0xff] }
 0x178   :  { %3958 = vmatpush1.bf16.msra.mxu0 %v5147_v16  ;;  %v5342_v16 = vcombine.high %v730_v11, %v742_v12 }
 0x179   :  { %4040 = vmatpush1.bf16.msra.mxu1 %v5149_v17  ;;  %3959 = vmatprep.subr.bf16.mxu0 %v5172_v18  ;;  %v753_v17 = vld [vmem:[#allocation6 + $0xd90] sm:$0xff] }
 0x17a   :  { %4041 = vmatprep.subr.bf16.mxu1 %v5174_v19  ;;  %v765_v18 = vld [vmem:[#allocation6 + $0xdf0] sm:$0xff]  ;;  %v754_v19 = vld [vmem:[#allocation6 + $0xd98] sm:$0xff] }
 0x17b   :  { %v5364_v23 = vcombine.high %v753_v17, %v765_v18  ;;  %v5363_v29 = vcombine.low %v753_v17, %v765_v18  ;;  %v5365_v30 = vcombine.low %v754_v19, %v766_v20  ;;  %v348_v17 = vld [vmem:[#allocation6 + $0xe8] sm:$0xff] }
 0x17c   :  { %3960 = vmatpush1.bf16.msra.mxu0 %v5171_v24  ;;  %v5366_v24 = vcombine.high %v754_v19, %v766_v20  ;;  %v360_v18 = vld [vmem:[#allocation6 + $0x148] sm:$0xff] }
 0x17d   :  { %4042 = vmatpush1.bf16.msra.mxu1 %v5173_v25  ;;  %3961 = vmatprep.subr.bf16.mxu0 %v5196_v26  ;;  %v777_v25 = vld [vmem:[#allocation6 + $0xe50] sm:$0xff] }
 0x17e   :  { %4043 = vmatprep.subr.bf16.mxu1 %v5198_v27  ;;  %v789_v26 = vld [vmem:[#allocation6 + $0xeb0] sm:$0xff]  ;;  %v778_v27 = vld [vmem:[#allocation6 + $0xe58] sm:$0xff] }
 0x17f   :  { %v5388_v31 = vcombine.high %v777_v25, %v789_v26  ;;  %v5387_v37 = vcombine.low %v777_v25, %v789_v26  ;;  %v5389_v39 = vcombine.low %v778_v27, %v790_v28  ;;  %v384_v25 = vld [vmem:[#allocation6 + $0x208] sm:$0xff] }
 0x180   :  { %3962 = vmatpush1.bf16.msra.mxu0 %v5195_v32  ;;  %v5390_v32 = vcombine.high %v778_v27, %v790_v28  ;;  %v4961_v27 = vcombine.low %v348_v17, %v360_v18 }
 0x181   :  { %4044 = vmatpush1.bf16.msra.mxu1 %v5197_v33  ;;  %3963 = vmatprep.subr.bf16.mxu0 %v5220_v34  ;;  %v801_v33 = vld [vmem:[#allocation6 + $0xf10] sm:$0xff] }
 0x182   :  { %4045 = vmatprep.subr.bf16.mxu1 %v5222_v35  ;;  %v813_v34 = vld [vmem:[#allocation6 + $0xf70] sm:$0xff]  ;;  %v802_v35 = vld [vmem:[#allocation6 + $0xf18] sm:$0xff] }
 0x183   :  { %v5412_v41 = vcombine.high %v801_v33, %v813_v34  ;;  %v5411_v47 = vcombine.low %v801_v33, %v813_v34  ;;  %v5413_v48 = vcombine.low %v802_v35, %v814_v36  ;;  %v408_v33 = vld [vmem:[#allocation6 + $0x2c8] sm:$0xff] }
 0x184   :  { %3964 = vmatpush1.bf16.msra.mxu0 %v5219_v42  ;;  %v5414_v42 = vcombine.high %v802_v35, %v814_v36 }
 0x185   :  { %4046 = vmatpush1.bf16.msra.mxu1 %v5221_v43  ;;  %3965 = vmatprep.subr.bf16.mxu0 %v5244_v44  ;;  %v825_v43 = vld [vmem:[#allocation6 + $0xfd0] sm:$0xff] }
 0x186   :  { %4047 = vmatprep.subr.bf16.mxu1 %v5246_v45  ;;  %v837_v44 = vld [vmem:[#allocation6 + $0x1030] sm:$0xff]  ;;  %v826_v45 = vld [vmem:[#allocation6 + $0xfd8] sm:$0xff] }
 0x187   :  { %v5436_v49 = vcombine.high %v825_v43, %v837_v44  ;;  %v5435_v57 = vcombine.low %v825_v43, %v837_v44  ;;  %v5437_v58 = vcombine.low %v826_v45, %v838_v46  ;;  %v432_v43 = vld [vmem:[#allocation6 + $0x388] sm:$0xff] }
 0x188   :  { %3966 = vmatpush1.bf16.msra.mxu0 %v5243_v50  ;;  %v5438_v50 = vcombine.high %v826_v45, %v838_v46 }
 0x189   :  { %4048 = vmatpush1.bf16.msra.mxu1 %v5245_v51  ;;  %3967 = vmatprep.subr.bf16.mxu0 %v5268_v52  ;;  %v849_v51 = vld [vmem:[#allocation6 + $0x1090] sm:$0xff] }
 0x18a   :  { %4049 = vmatprep.subr.bf16.mxu1 %v5270_v53  ;;  %v861_v52 = vld [vmem:[#allocation6 + $0x10f0] sm:$0xff]  ;;  %v850_v53 = vld [vmem:[#allocation6 + $0x1098] sm:$0xff] }
 0x18b   :  { %v5460_v59 = vcombine.high %v849_v51, %v861_v52  ;;  %v5459_v2 = vcombine.low %v849_v51, %v861_v52  ;;  %v5461_v3 = vcombine.low %v850_v53, %v862_v56  ;;  %v456_v51 = vld [vmem:[#allocation6 + $0x448] sm:$0xff] }
 0x18c   :  { %3968 = vmatpush1.bf16.msra.mxu0 %v5267_v40  ;;  %v5462_v40 = vcombine.high %v850_v53, %v862_v56 }
 0x18d   :  { %4050 = vmatpush1.bf16.msra.mxu1 %v5269_v60  ;;  %3969 = vmatprep.subr.bf16.mxu0 %v5292_v61  ;;  %v873_v60 = vld [vmem:[#allocation6 + $0x1150] sm:$0xff] }
 0x18e   :  { %4051 = vmatprep.subr.bf16.mxu1 %v5294_v63  ;;  %v885_v61 = vld [vmem:[#allocation6 + $0x11b0] sm:$0xff]  ;;  %v874_v63 = vld [vmem:[#allocation6 + $0x1158] sm:$0xff] }
 0x18f   :  { %v5484_v4 = vcombine.high %v873_v60, %v885_v61  ;;  %v5483_v10 = vcombine.low %v873_v60, %v885_v61  ;;  %v5485_v11 = vcombine.low %v874_v63, %v886_v1  ;;  %v480_v60 = vld [vmem:[#allocation6 + $0x508] sm:$0xff] }
 0x190   :  { %3970 = vmatpush1.bf16.msra.mxu0 %v5291_v5  ;;  %v5486_v5 = vcombine.high %v874_v63, %v886_v1 }
 0x191   :  { %4052 = vmatpush1.bf16.msra.mxu1 %v5293_v6  ;;  %3980 = vmatprep.subr.bf16.mxu0 %v5316_v7  ;;  %v323_v6 = vld [vmem:[#allocation6 + $0x20] sm:$0xff] }
 0x192   :  { %4062 = vmatprep.subr.bf16.mxu1 %v5318_v8  ;;  %v335_v7 = vld [vmem:[#allocation6 + $0x80] sm:$0xff]  ;;  %v324_v8 = vld [vmem:[#allocation6 + $0x28] sm:$0xff] }
 0x193   :  { %3972 = vmatmul.mubr.bf16.vlgmr.msra.gmra.mrb[8].mxu0 %v5795_v55  ;;  %v4936_v12 = vcombine.high %v323_v6, %v335_v7  ;;  %v4937_v19 = vcombine.low %v324_v8, %v336_v9 }
 0x194   :  { %4054 = vmatmul.mubr.bf16.vlgmr.msra.gmra.mrb[8].mxu1 %v5795_v55  ;;  %3981 = vmatpush1.bf16.msra.mxu0 %v5315_v13  ;;  %v4938_v13 = vcombine.high %v324_v8, %v336_v9 }
 0x195   :  { %4063 = vmatpush1.bf16.msra.mxu1 %v5317_v14  ;;  %3982 = vmatprep.subr.bf16.mxu0 %v5340_v15  ;;  %v347_v14 = vld [vmem:[#allocation6 + $0xe0] sm:$0xff] }
 0x196   :  { %4064 = vmatprep.subr.bf16.mxu1 %v5342_v16  ;;  %4012 = vmatprep.mubr.bf16.mxu0 %v5700_v0  ;;  %v359_v15 = vld [vmem:[#allocation6 + $0x140] sm:$0xff]  ;;  %v4935_v16 = vcombine.low %v323_v6, %v335_v7  ;;  %v504_v6 = vld [vmem:[#allocation6 + $0x5c8] sm:$0xff] }
 0x197   :  { %4094 = vmatprep.mubr.bf16.mxu1 %v5700_v0  ;;  %v4960_v20 = vcombine.high %v347_v14, %v359_v15  ;;  %v4959_v26 = vcombine.low %v347_v14, %v359_v15  ;;  %v528_v14 = vld [vmem:[#allocation6 + $0x688] sm:$0xff] }
 0x198   :  { %3983 = vmatpush1.bf16.msra.mxu0 %v5339_v21  ;;  %v371_v21 = vld [vmem:[#allocation6 + $0x1a0] sm:$0xff] }
 0x199   :  { %4065 = vmatpush1.bf16.msra.mxu1 %v5341_v22  ;;  %3984 = vmatprep.subr.bf16.mxu0 %v5364_v23  ;;  %v383_v22 = vld [vmem:[#allocation6 + $0x200] sm:$0xff]  ;;  %v4962_v23 = vcombine.high %v348_v17, %v360_v18 }
 0x19a   :  { %4066 = vmatprep.subr.bf16.mxu1 %v5366_v24  ;;  %v372_v24 = vld [vmem:[#allocation6 + $0x1a8] sm:$0xff]  ;;  %v4984_v28 = vcombine.high %v371_v21, %v383_v22  ;;  %v4983_v34 = vcombine.low %v371_v21, %v383_v22 }
 0x19b   :  { %v4985_v35 = vcombine.low %v372_v24, %v384_v25  ;;  %v540_v21 = vld [vmem:[#allocation6 + $0x6e8] sm:$0xff] }
 0x19c   :  { %3985 = vmatpush1.bf16.msra.mxu0 %v5363_v29  ;;  %v4986_v29 = vcombine.high %v372_v24, %v384_v25  ;;  %v552_v22 = vld [vmem:[#allocation6 + $0x748] sm:$0xff] }
 0x19d   :  { %4067 = vmatpush1.bf16.msra.mxu1 %v5365_v30  ;;  %3986 = vmatprep.subr.bf16.mxu0 %v5388_v31  ;;  %v395_v30 = vld [vmem:[#allocation6 + $0x260] sm:$0xff] }
 0x19e   :  { %4068 = vmatprep.subr.bf16.mxu1 %v5390_v32  ;;  %v407_v31 = vld [vmem:[#allocation6 + $0x2c0] sm:$0xff]  ;;  %v396_v32 = vld [vmem:[#allocation6 + $0x268] sm:$0xff] }
 0x19f   :  { %v5008_v36 = vcombine.high %v395_v30, %v407_v31  ;;  %v5007_v44 = vcombine.low %v395_v30, %v407_v31  ;;  %v5009_v45 = vcombine.low %v396_v32, %v408_v33  ;;  %v576_v30 = vld [vmem:[#allocation6 + $0x808] sm:$0xff] }
 0x1a0   :  { %3987 = vmatpush1.bf16.msra.mxu0 %v5387_v37  ;;  %v5010_v37 = vcombine.high %v396_v32, %v408_v33  ;;  %v5153_v32 = vcombine.low %v540_v21, %v552_v22 }
 0x1a1   :  { %4069 = vmatpush1.bf16.msra.mxu1 %v5389_v39  ;;  %3988 = vmatprep.subr.bf16.mxu0 %v5412_v41  ;;  %v419_v39 = vld [vmem:[#allocation6 + $0x320] sm:$0xff] }
 0x1a2   :  { %4070 = vmatprep.subr.bf16.mxu1 %v5414_v42  ;;  %v431_v41 = vld [vmem:[#allocation6 + $0x380] sm:$0xff]  ;;  %v420_v42 = vld [vmem:[#allocation6 + $0x328] sm:$0xff] }
 0x1a3   :  { %v5032_v46 = vcombine.high %v419_v39, %v431_v41  ;;  %v5031_v52 = vcombine.low %v419_v39, %v431_v41  ;;  %v5033_v53 = vcombine.low %v420_v42, %v432_v43  ;;  %v600_v39 = vld [vmem:[#allocation6 + $0x8c8] sm:$0xff] }
 0x1a4   :  { %3989 = vmatpush1.bf16.msra.mxu0 %v5411_v47  ;;  %v5034_v47 = vcombine.high %v420_v42, %v432_v43 }
 0x1a5   :  { %4071 = vmatpush1.bf16.msra.mxu1 %v5413_v48  ;;  %3990 = vmatprep.subr.bf16.mxu0 %v5436_v49  ;;  %v443_v48 = vld [vmem:[#allocation6 + $0x3e0] sm:$0xff] }
 0x1a6   :  { %4072 = vmatprep.subr.bf16.mxu1 %v5438_v50  ;;  %v455_v49 = vld [vmem:[#allocation6 + $0x440] sm:$0xff]  ;;  %v444_v50 = vld [vmem:[#allocation6 + $0x3e8] sm:$0xff] }
 0x1a7   :  { %v5056_v56 = vcombine.high %v443_v48, %v455_v49  ;;  %v5055_v61 = vcombine.low %v443_v48, %v455_v49  ;;  %v5057_v63 = vcombine.low %v444_v50, %v456_v51  ;;  %v624_v48 = vld [vmem:[#allocation6 + $0x988] sm:$0xff] }
 0x1a8   :  { %3991 = vmatpush1.bf16.msra.mxu0 %v5435_v57  ;;  %v5058_v57 = vcombine.high %v444_v50, %v456_v51 }
 0x1a9   :  { %4073 = vmatpush1.bf16.msra.mxu1 %v5437_v58  ;;  %3992 = vmatprep.subr.bf16.mxu0 %v5460_v59  ;;  %v467_v58 = vld [vmem:[#allocation6 + $0x4a0] sm:$0xff] }
 0x1aa   :  { %4074 = vmatprep.subr.bf16.mxu1 %v5462_v40  ;;  %v479_v59 = vld [vmem:[#allocation6 + $0x500] sm:$0xff]  ;;  %v468_v40 = vld [vmem:[#allocation6 + $0x4a8] sm:$0xff] }
 0x1ab   :  { %v5080_v1 = vcombine.high %v467_v58, %v479_v59  ;;  %v5079_v7 = vcombine.low %v467_v58, %v479_v59  ;;  %v5081_v8 = vcombine.low %v468_v40, %v480_v60  ;;  %v648_v58 = vld [vmem:[#allocation6 + $0xa48] sm:$0xff] }
 0x1ac   :  { %3993 = vmatpush1.bf16.msra.mxu0 %v5459_v2  ;;  %v5082_v2 = vcombine.high %v468_v40, %v480_v60 }
 0x1ad   :  { %4075 = vmatpush1.bf16.msra.mxu1 %v5461_v3  ;;  %3994 = vmatprep.subr.bf16.mxu0 %v5484_v4  ;;  %v491_v3 = vld [vmem:[#allocation6 + $0x560] sm:$0xff] }
 0x1ae   :  { %4076 = vmatprep.subr.bf16.mxu1 %v5486_v5  ;;  %v503_v4 = vld [vmem:[#allocation6 + $0x5c0] sm:$0xff]  ;;  %v492_v5 = vld [vmem:[#allocation6 + $0x568] sm:$0xff] }
 0x1af   :  { %v5104_v9 = vcombine.high %v491_v3, %v503_v4  ;;  %v5103_v15 = vcombine.low %v491_v3, %v503_v4  ;;  %v672_v3 = vld [vmem:[#allocation6 + $0xb08] sm:$0xff] }
 0x1b0   :  { %3995 = vmatpush1.bf16.msra.mxu0 %v5483_v10  ;;  %v5106_v10 = vcombine.high %v492_v5, %v504_v6 }
 0x1b1   :  { %4077 = vmatpush1.bf16.msra.mxu1 %v5485_v11  ;;  %4103 = vmatprep.subr.bf16.mxu0 %v4936_v12  ;;  %v515_v11 = vld [vmem:[#allocation6 + $0x620] sm:$0xff] }
 0x1b2   :  { %4185 = vmatprep.subr.bf16.mxu1 %v4938_v13  ;;  %v527_v12 = vld [vmem:[#allocation6 + $0x680] sm:$0xff]  ;;  %v516_v13 = vld [vmem:[#allocation6 + $0x628] sm:$0xff] }
 0x1b3   :  { %4013 = vmatmul.mubr.bf16.vlgmr.msra.gmra.mrb[8].mxu0 %v5808_v62  ;;  %v5128_v17 = vcombine.high %v515_v11, %v527_v12  ;;  %v5130_v18 = vcombine.high %v516_v13, %v528_v14  ;;  %v5129_v24 = vcombine.low %v516_v13, %v528_v14 }
 0x1b4   :  { %4095 = vmatmul.mubr.bf16.vlgmr.msra.gmra.mrb[8].mxu1 %v5808_v62  ;;  %4104 = vmatpush1.bf16.msra.mxu0 %v4935_v16  ;;  %v5105_v16 = vcombine.low %v492_v5, %v504_v6 }
 0x1b5   :  { %4135 = vmatprep.mubr.bf16.mxu0 %v5793_v54  ;;  %4186 = vmatpush1.bf16.msra.mxu1 %v4937_v19  ;;  %v539_v19 = vld [vmem:[#allocation6 + $0x6e0] sm:$0xff] }
 0x1b6   :  { %4217 = vmatprep.mubr.bf16.mxu1 %v5793_v54  ;;  %4105 = vmatprep.subr.bf16.mxu0 %v4960_v20  ;;  %v551_v20 = vld [vmem:[#allocation6 + $0x740] sm:$0xff] }
 0x1b7   :  { %4187 = vmatprep.subr.bf16.mxu1 %v4962_v23  ;;  %v5127_v23 = vcombine.low %v515_v11, %v527_v12  ;;  %v5152_v25 = vcombine.high %v539_v19, %v551_v20  ;;  %v5151_v31 = vcombine.low %v539_v19, %v551_v20  ;;  %v696_v11 = vld [vmem:[#allocation6 + $0xbc8] sm:$0xff] }
 0x1b8   :  { %4106 = vmatpush1.bf16.msra.mxu0 %v4959_v26  ;;  %v5154_v26 = vcombine.high %v540_v21, %v552_v22  ;;  %v720_v19 = vld [vmem:[#allocation6 + $0xc88] sm:$0xff] }
 0x1b9   :  { %4188 = vmatpush1.bf16.msra.mxu1 %v4961_v27  ;;  %4107 = vmatprep.subr.bf16.mxu0 %v4984_v28  ;;  %v563_v27 = vld [vmem:[#allocation6 + $0x7a0] sm:$0xff] }
 0x1ba   :  { %4189 = vmatprep.subr.bf16.mxu1 %v4986_v29  ;;  %v575_v28 = vld [vmem:[#allocation6 + $0x800] sm:$0xff]  ;;  %v564_v29 = vld [vmem:[#allocation6 + $0x7a8] sm:$0xff] }
 0x1bb   :  { %v5176_v33 = vcombine.high %v563_v27, %v575_v28  ;;  %v5175_v41 = vcombine.low %v563_v27, %v575_v28  ;;  %v5177_v42 = vcombine.low %v564_v29, %v576_v30  ;;  %v744_v27 = vld [vmem:[#allocation6 + $0xd48] sm:$0xff] }
 0x1bc   :  { %4108 = vmatpush1.bf16.msra.mxu0 %v4983_v34  ;;  %v5178_v34 = vcombine.high %v564_v29, %v576_v30 }
 0x1bd   :  { %4190 = vmatpush1.bf16.msra.mxu1 %v4985_v35  ;;  %4109 = vmatprep.subr.bf16.mxu0 %v5008_v36  ;;  %v587_v35 = vld [vmem:[#allocation6 + $0x860] sm:$0xff] }
 0x1be   :  { %4191 = vmatprep.subr.bf16.mxu1 %v5010_v37  ;;  %v599_v36 = vld [vmem:[#allocation6 + $0x8c0] sm:$0xff]  ;;  %v588_v37 = vld [vmem:[#allocation6 + $0x868] sm:$0xff] }
 0x1bf   :  { %v5200_v43 = vcombine.high %v587_v35, %v599_v36  ;;  %v5199_v49 = vcombine.low %v587_v35, %v599_v36  ;;  %v5201_v50 = vcombine.low %v588_v37, %v600_v39  ;;  %v768_v35 = vld [vmem:[#allocation6 + $0xe08] sm:$0xff] }
 0x1c0   :  { %4110 = vmatpush1.bf16.msra.mxu0 %v5007_v44  ;;  %v5202_v44 = vcombine.high %v588_v37, %v600_v39 }
 0x1c1   :  { %4192 = vmatpush1.bf16.msra.mxu1 %v5009_v45  ;;  %4111 = vmatprep.subr.bf16.mxu0 %v5032_v46  ;;  %v611_v45 = vld [vmem:[#allocation6 + $0x920] sm:$0xff] }
 0x1c2   :  { %4193 = vmatprep.subr.bf16.mxu1 %v5034_v47  ;;  %v623_v46 = vld [vmem:[#allocation6 + $0x980] sm:$0xff]  ;;  %v612_v47 = vld [vmem:[#allocation6 + $0x928] sm:$0xff] }
 0x1c3   :  { %v5224_v51 = vcombine.high %v611_v45, %v623_v46  ;;  %v5223_v59 = vcombine.low %v611_v45, %v623_v46  ;;  %v5225_v40 = vcombine.low %v612_v47, %v624_v48  ;;  %v792_v45 = vld [vmem:[#allocation6 + $0xec8] sm:$0xff] }
 0x1c4   :  { %4112 = vmatpush1.bf16.msra.mxu0 %v5031_v52  ;;  %v5226_v52 = vcombine.high %v612_v47, %v624_v48 }
 0x1c5   :  { %4194 = vmatpush1.bf16.msra.mxu1 %v5033_v53  ;;  %4113 = vmatprep.subr.bf16.mxu0 %v5056_v56  ;;  %v635_v53 = vld [vmem:[#allocation6 + $0x9e0] sm:$0xff] }
 0x1c6   :  { %4195 = vmatprep.subr.bf16.mxu1 %v5058_v57  ;;  %v647_v56 = vld [vmem:[#allocation6 + $0xa40] sm:$0xff]  ;;  %v636_v57 = vld [vmem:[#allocation6 + $0x9e8] sm:$0xff] }
 0x1c7   :  { %v5248_v60 = vcombine.high %v635_v53, %v647_v56  ;;  %v5247_v4 = vcombine.low %v635_v53, %v647_v56  ;;  %v5249_v5 = vcombine.low %v636_v57, %v648_v58  ;;  %v816_v53 = vld [vmem:[#allocation6 + $0xf88] sm:$0xff] }
 0x1c8   :  { %4114 = vmatpush1.bf16.msra.mxu0 %v5055_v61  ;;  %v5250_v61 = vcombine.high %v636_v57, %v648_v58 }
 0x1c9   :  { %4196 = vmatpush1.bf16.msra.mxu1 %v5057_v63  ;;  %4115 = vmatprep.subr.bf16.mxu0 %v5080_v1  ;;  %v659_v63 = vld [vmem:[#allocation6 + $0xaa0] sm:$0xff] }
 0x1ca   :  { %4197 = vmatprep.subr.bf16.mxu1 %v5082_v2  ;;  %v671_v1 = vld [vmem:[#allocation6 + $0xb00] sm:$0xff]  ;;  %v660_v2 = vld [vmem:[#allocation6 + $0xaa8] sm:$0xff] }
 0x1cb   :  { %v5272_v6 = vcombine.high %v659_v63, %v671_v1  ;;  %v5271_v12 = vcombine.low %v659_v63, %v671_v1  ;;  %v5273_v13 = vcombine.low %v660_v2, %v672_v3  ;;  %v840_v63 = vld [vmem:[#allocation6 + $0x1048] sm:$0xff] }
 0x1cc   :  { %4116 = vmatpush1.bf16.msra.mxu0 %v5079_v7  ;;  %v5274_v7 = vcombine.high %v660_v2, %v672_v3 }
 0x1cd   :  { %4198 = vmatpush1.bf16.msra.mxu1 %v5081_v8  ;;  %4117 = vmatprep.subr.bf16.mxu0 %v5104_v9  ;;  %v683_v8 = vld [vmem:[#allocation6 + $0xb60] sm:$0xff] }
 0x1ce   :  { %4199 = vmatprep.subr.bf16.mxu1 %v5106_v10  ;;  %v695_v9 = vld [vmem:[#allocation6 + $0xbc0] sm:$0xff]  ;;  %v684_v10 = vld [vmem:[#allocation6 + $0xb68] sm:$0xff] }
 0x1cf   :  { %v5296_v14 = vcombine.high %v683_v8, %v695_v9  ;;  %v5295_v20 = vcombine.low %v683_v8, %v695_v9  ;;  %v5297_v21 = vcombine.low %v684_v10, %v696_v11  ;;  %v864_v8 = vld [vmem:[#allocation6 + $0x1108] sm:$0xff] }
 0x1d0   :  { %4118 = vmatpush1.bf16.msra.mxu0 %v5103_v15  ;;  %v5298_v15 = vcombine.high %v684_v10, %v696_v11 }
 0x1d1   :  { %4200 = vmatpush1.bf16.msra.mxu1 %v5105_v16  ;;  %4119 = vmatprep.subr.bf16.mxu0 %v5128_v17  ;;  %v707_v16 = vld [vmem:[#allocation6 + $0xc20] sm:$0xff] }
 0x1d2   :  { %4201 = vmatprep.subr.bf16.mxu1 %v5130_v18  ;;  %v719_v17 = vld [vmem:[#allocation6 + $0xc80] sm:$0xff]  ;;  %v708_v18 = vld [vmem:[#allocation6 + $0xc28] sm:$0xff] }
 0x1d3   :  { %v5320_v22 = vcombine.high %v707_v16, %v719_v17  ;;  %v5319_v28 = vcombine.low %v707_v16, %v719_v17  ;;  %v5321_v29 = vcombine.low %v708_v18, %v720_v19  ;;  %v888_v16 = vld [vmem:[#allocation6 + $0x11c8] sm:$0xff] }
 0x1d4   :  { %4120 = vmatpush1.bf16.msra.mxu0 %v5127_v23  ;;  %v5322_v23 = vcombine.high %v708_v18, %v720_v19 }
 0x1d5   :  { %4202 = vmatpush1.bf16.msra.mxu1 %v5129_v24  ;;  %4121 = vmatprep.subr.bf16.mxu0 %v5152_v25  ;;  %v731_v24 = vld [vmem:[#allocation6 + $0xce0] sm:$0xff] }
 0x1d6   :  { %4203 = vmatprep.subr.bf16.mxu1 %v5154_v26  ;;  %v743_v25 = vld [vmem:[#allocation6 + $0xd40] sm:$0xff]  ;;  %v732_v26 = vld [vmem:[#allocation6 + $0xce8] sm:$0xff] }
 0x1d7   :  { %v5344_v30 = vcombine.high %v731_v24, %v743_v25  ;;  %v5343_v36 = vcombine.low %v731_v24, %v743_v25  ;;  %v5345_v37 = vcombine.low %v732_v26, %v744_v27  ;;  %v338_v24 = vld [vmem:[#allocation6 + $0x98] sm:$0xff] }
 0x1d8   :  { %4122 = vmatpush1.bf16.msra.mxu0 %v5151_v31  ;;  %v5346_v31 = vcombine.high %v732_v26, %v744_v27 }
 0x1d9   :  { %4204 = vmatpush1.bf16.msra.mxu1 %v5153_v32  ;;  %4123 = vmatprep.subr.bf16.mxu0 %v5176_v33  ;;  %v755_v32 = vld [vmem:[#allocation6 + $0xda0] sm:$0xff] }
 0x1da   :  { %4205 = vmatprep.subr.bf16.mxu1 %v5178_v34  ;;  %v767_v33 = vld [vmem:[#allocation6 + $0xe00] sm:$0xff]  ;;  %v756_v34 = vld [vmem:[#allocation6 + $0xda8] sm:$0xff] }
 0x1db   :  { %v5368_v39 = vcombine.high %v755_v32, %v767_v33  ;;  %v5367_v46 = vcombine.low %v755_v32, %v767_v33  ;;  %v5369_v47 = vcombine.low %v756_v34, %v768_v35  ;;  %v350_v32 = vld [vmem:[#allocation6 + $0xf8] sm:$0xff] }
 0x1dc   :  { %4124 = vmatpush1.bf16.msra.mxu0 %v5175_v41  ;;  %v5370_v41 = vcombine.high %v756_v34, %v768_v35  ;;  %v362_v33 = vld [vmem:[#allocation6 + $0x158] sm:$0xff] }
 0x1dd   :  { %4206 = vmatpush1.bf16.msra.mxu1 %v5177_v42  ;;  %4125 = vmatprep.subr.bf16.mxu0 %v5200_v43  ;;  %v779_v42 = vld [vmem:[#allocation6 + $0xe60] sm:$0xff] }
 0x1de   :  { %4207 = vmatprep.subr.bf16.mxu1 %v5202_v44  ;;  %v791_v43 = vld [vmem:[#allocation6 + $0xec0] sm:$0xff]  ;;  %v780_v44 = vld [vmem:[#allocation6 + $0xe68] sm:$0xff] }
 0x1df   :  { %v5392_v48 = vcombine.high %v779_v42, %v791_v43  ;;  %v5391_v56 = vcombine.low %v779_v42, %v791_v43  ;;  %v5393_v57 = vcombine.low %v780_v44, %v792_v45  ;;  %v386_v42 = vld [vmem:[#allocation6 + $0x218] sm:$0xff] }
 0x1e0   :  { %4126 = vmatpush1.bf16.msra.mxu0 %v5199_v49  ;;  %v5394_v49 = vcombine.high %v780_v44, %v792_v45  ;;  %v4965_v44 = vcombine.low %v350_v32, %v362_v33 }
 0x1e1   :  { %4208 = vmatpush1.bf16.msra.mxu1 %v5201_v50  ;;  %4127 = vmatprep.subr.bf16.mxu0 %v5224_v51  ;;  %v803_v50 = vld [vmem:[#allocation6 + $0xf20] sm:$0xff] }
 0x1e2   :  { %4209 = vmatprep.subr.bf16.mxu1 %v5226_v52  ;;  %v815_v51 = vld [vmem:[#allocation6 + $0xf80] sm:$0xff]  ;;  %v804_v52 = vld [vmem:[#allocation6 + $0xf28] sm:$0xff] }
 0x1e3   :  { %v5416_v58 = vcombine.high %v803_v50, %v815_v51  ;;  %v5415_v1 = vcombine.low %v803_v50, %v815_v51  ;;  %v5417_v2 = vcombine.low %v804_v52, %v816_v53  ;;  %v410_v50 = vld [vmem:[#allocation6 + $0x2d8] sm:$0xff] }
 0x1e4   :  { %4128 = vmatpush1.bf16.msra.mxu0 %v5223_v59  ;;  %v5418_v59 = vcombine.high %v804_v52, %v816_v53 }
 0x1e5   :  { %4210 = vmatpush1.bf16.msra.mxu1 %v5225_v40  ;;  %4129 = vmatprep.subr.bf16.mxu0 %v5248_v60  ;;  %v827_v40 = vld [vmem:[#allocation6 + $0xfe0] sm:$0xff] }
 0x1e6   :  { %4211 = vmatprep.subr.bf16.mxu1 %v5250_v61  ;;  %v839_v60 = vld [vmem:[#allocation6 + $0x1040] sm:$0xff]  ;;  %v828_v61 = vld [vmem:[#allocation6 + $0xfe8] sm:$0xff] }
 0x1e7   :  { %v5440_v3 = vcombine.high %v827_v40, %v839_v60  ;;  %v5439_v9 = vcombine.low %v827_v40, %v839_v60  ;;  %v5441_v10 = vcombine.low %v828_v61, %v840_v63  ;;  %v434_v40 = vld [vmem:[#allocation6 + $0x398] sm:$0xff] }
 0x1e8   :  { %4130 = vmatpush1.bf16.msra.mxu0 %v5247_v4  ;;  %v5442_v4 = vcombine.high %v828_v61, %v840_v63 }
 0x1e9   :  { %4212 = vmatpush1.bf16.msra.mxu1 %v5249_v5  ;;  %4131 = vmatprep.subr.bf16.mxu0 %v5272_v6  ;;  %v851_v5 = vld [vmem:[#allocation6 + $0x10a0] sm:$0xff] }
 0x1ea   :  { %4213 = vmatprep.subr.bf16.mxu1 %v5274_v7  ;;  %v863_v6 = vld [vmem:[#allocation6 + $0x1100] sm:$0xff]  ;;  %v852_v7 = vld [vmem:[#allocation6 + $0x10a8] sm:$0xff] }
 0x1eb   :  { %v5464_v11 = vcombine.high %v851_v5, %v863_v6  ;;  %v5463_v17 = vcombine.low %v851_v5, %v863_v6  ;;  %v5465_v18 = vcombine.low %v852_v7, %v864_v8  ;;  %v457_v5 = vld [vmem:[#allocation6 + $0x450] sm:$0xff]  ;;  %v446_v6 = vld [vmem:[#allocation6 + $0x3f8] sm:$0xff] }
 0x1ec   :  { %4132 = vmatpush1.bf16.msra.mxu0 %v5271_v12  ;;  %v5466_v12 = vcombine.high %v852_v7, %v864_v8  ;;  %v458_v7 = vld [vmem:[#allocation6 + $0x458] sm:$0xff] }
 0x1ed   :  { %4214 = vmatpush1.bf16.msra.mxu1 %v5273_v13  ;;  %4133 = vmatprep.subr.bf16.mxu0 %v5296_v14  ;;  %v875_v13 = vld [vmem:[#allocation6 + $0x1160] sm:$0xff] }
 0x1ee   :  { %4215 = vmatprep.subr.bf16.mxu1 %v5298_v15  ;;  %v887_v14 = vld [vmem:[#allocation6 + $0x11c0] sm:$0xff]  ;;  %v876_v15 = vld [vmem:[#allocation6 + $0x1168] sm:$0xff] }
 0x1ef   :  { %v5488_v19 = vcombine.high %v875_v13, %v887_v14  ;;  %v5487_v25 = vcombine.low %v875_v13, %v887_v14  ;;  %v5489_v26 = vcombine.low %v876_v15, %v888_v16  ;;  %v469_v13 = vld [vmem:[#allocation6 + $0x4b0] sm:$0xff] }
 0x1f0   :  { %4134 = vmatpush1.bf16.msra.mxu0 %v5295_v20  ;;  %v5490_v20 = vcombine.high %v876_v15, %v888_v16  ;;  %v481_v14 = vld [vmem:[#allocation6 + $0x510] sm:$0xff]  ;;  %v470_v15 = vld [vmem:[#allocation6 + $0x4b8] sm:$0xff] }
 0x1f1   :  { %4216 = vmatpush1.bf16.msra.mxu1 %v5297_v21  ;;  %4144 = vmatprep.subr.bf16.mxu0 %v5320_v22  ;;  %v325_v21 = vld [vmem:[#allocation6 + $0x30] sm:$0xff]  ;;  %v482_v16 = vld [vmem:[#allocation6 + $0x518] sm:$0xff] }
 0x1f2   :  { %4226 = vmatprep.subr.bf16.mxu1 %v5322_v23  ;;  %v337_v22 = vld [vmem:[#allocation6 + $0x90] sm:$0xff]  ;;  %v326_v23 = vld [vmem:[#allocation6 + $0x38] sm:$0xff] }
 0x1f3   :  { %4136 = vmatmul.mubr.bf16.vlgmr.msra.gmra.mrb[12].mxu0 %v5795_v55  ;;  %v4940_v27 = vcombine.high %v325_v21, %v337_v22  ;;  %v4941_v34 = vcombine.low %v326_v23, %v338_v24 }
 0x1f4   :  { %4218 = vmatmul.mubr.bf16.vlgmr.msra.gmra.mrb[12].mxu1 %v5795_v55  ;;  %4145 = vmatpush1.bf16.msra.mxu0 %v5319_v28  ;;  %v4942_v28 = vcombine.high %v326_v23, %v338_v24  ;;  %v5086_v23 = vcombine.high %v470_v15, %v482_v16  ;;  %v493_v24 = vld [vmem:[#allocation6 + $0x570] sm:$0xff] }
 0x1f5   :  { %4227 = vmatpush1.bf16.msra.mxu1 %v5321_v29  ;;  %4146 = vmatprep.subr.bf16.mxu0 %v5344_v30  ;;  %v349_v29 = vld [vmem:[#allocation6 + $0xf0] sm:$0xff] }
 0x1f6   :  { %4228 = vmatprep.subr.bf16.mxu1 %v5346_v31  ;;  %4176 = vmatprep.mubr.bf16.mxu0 %v5700_v0  ;;  %v361_v30 = vld [vmem:[#allocation6 + $0x150] sm:$0xff]  ;;  %v4939_v31 = vcombine.low %v325_v21, %v337_v22 }
 0x1f7   :  { %4258 = vmatprep.mubr.bf16.mxu1 %v5700_v0  ;;  %v4964_v35 = vcombine.high %v349_v29, %v361_v30  ;;  %v4963_v43 = vcombine.low %v349_v29, %v361_v30  ;;  %v506_v29 = vld [vmem:[#allocation6 + $0x5d8] sm:$0xff] }
 0x1f8   :  { %4147 = vmatpush1.bf16.msra.mxu0 %v5343_v36  ;;  %v373_v36 = vld [vmem:[#allocation6 + $0x1b0] sm:$0xff] }
 0x1f9   :  { %4229 = vmatpush1.bf16.msra.mxu1 %v5345_v37  ;;  %4148 = vmatprep.subr.bf16.mxu0 %v5368_v39  ;;  %v385_v37 = vld [vmem:[#allocation6 + $0x210] sm:$0xff]  ;;  %v4966_v39 = vcombine.high %v350_v32, %v362_v33 }
 0x1fa   :  { %4230 = vmatprep.subr.bf16.mxu1 %v5370_v41  ;;  %v374_v41 = vld [vmem:[#allocation6 + $0x1b8] sm:$0xff]  ;;  %v4988_v45 = vcombine.high %v373_v36, %v385_v37  ;;  %v4987_v51 = vcombine.low %v373_v36, %v385_v37  ;;  %v5085_v36 = vcombine.low %v470_v15, %v482_v16  ;;  %v613_v15 = vld [vmem:[#allocation6 + $0x930] sm:$0xff] }
 0x1fb   :  { %v4989_v52 = vcombine.low %v374_v41, %v386_v42  ;;  %v625_v16 = vld [vmem:[#allocation6 + $0x990] sm:$0xff] }
 0x1fc   :  { %4149 = vmatpush1.bf16.msra.mxu0 %v5367_v46  ;;  %v4990_v46 = vcombine.high %v374_v41, %v386_v42 }
 0x1fd   :  { %4231 = vmatpush1.bf16.msra.mxu1 %v5369_v47  ;;  %4150 = vmatprep.subr.bf16.mxu0 %v5392_v48  ;;  %v397_v47 = vld [vmem:[#allocation6 + $0x270] sm:$0xff] }
 0x1fe   :  { %4232 = vmatprep.subr.bf16.mxu1 %v5394_v49  ;;  %v409_v48 = vld [vmem:[#allocation6 + $0x2d0] sm:$0xff]  ;;  %v398_v49 = vld [vmem:[#allocation6 + $0x278] sm:$0xff] }
 0x1ff   :  { %v5012_v53 = vcombine.high %v397_v47, %v409_v48  ;;  %v5011_v60 = vcombine.low %v397_v47, %v409_v48  ;;  %v5013_v61 = vcombine.low %v398_v49, %v410_v50 }
 0x200   :  { %4151 = vmatpush1.bf16.msra.mxu0 %v5391_v56  ;;  %v5014_v56 = vcombine.high %v398_v49, %v410_v50 }
 0x201   :  { %4233 = vmatpush1.bf16.msra.mxu1 %v5393_v57  ;;  %4152 = vmatprep.subr.bf16.mxu0 %v5416_v58  ;;  %v421_v57 = vld [vmem:[#allocation6 + $0x330] sm:$0xff] }
 0x202   :  { %4234 = vmatprep.subr.bf16.mxu1 %v5418_v59  ;;  %v433_v58 = vld [vmem:[#allocation6 + $0x390] sm:$0xff]  ;;  %v422_v59 = vld [vmem:[#allocation6 + $0x338] sm:$0xff] }
 0x203   :  { %v5036_v63 = vcombine.high %v421_v57, %v433_v58  ;;  %v5035_v8 = vcombine.low %v421_v57, %v433_v58  ;;  %v554_v57 = vld [vmem:[#allocation6 + $0x758] sm:$0xff] }
 0x204   :  { %4153 = vmatpush1.bf16.msra.mxu0 %v5415_v1  ;;  %v5703_v1 = vmov 1983009808  }
 0x205   :  { %4235 = vmatpush1.bf16.msra.mxu1 %v5417_v2  ;;  %4154 = vmatprep.subr.bf16.mxu0 %v5440_v3  ;;  %v4786_v2 = vunpack.c.l.s4 %v5703_v1  ;;  %v5038_v3 = vcombine.high %v422_v59, %v434_v40  ;;  %v566_v1 = vld [vmem:[#allocation6 + $0x7b8] sm:$0xff] }
 0x206   :  { %4236 = vmatprep.subr.bf16.mxu1 %v5442_v4  ;;  %v445_v4 = vld [vmem:[#allocation6 + $0x3f0] sm:$0xff] }
 0x208   :  { %4155 = vmatpush1.bf16.msra.mxu0 %v5439_v9  ;;  %v5037_v9 = vcombine.low %v422_v59, %v434_v40 }
 0x209   :  { %4237 = vmatpush1.bf16.msra.mxu1 %v5441_v10  ;;  %4156 = vmatprep.subr.bf16.mxu0 %v5464_v11  ;;  %v5060_v10 = vcombine.high %v445_v4, %v457_v5  ;;  %v4787_v11 = vunpack.c.0.s8 %v4786_v2  ;;  %v578_v2 = vld [vmem:[#allocation6 + $0x818] sm:$0xff] }
 0x20a   :  { %4238 = vmatprep.subr.bf16.mxu1 %v5466_v12  ;;  %v5062_v12 = vcombine.high %v446_v6, %v458_v7 }
 0x20c   :  { %4157 = vmatpush1.bf16.msra.mxu0 %v5463_v17  ;;  %v5059_v17 = vcombine.low %v445_v4, %v457_v5 }
 0x20d   :  { %4239 = vmatpush1.bf16.msra.mxu1 %v5465_v18  ;;  %4158 = vmatprep.subr.bf16.mxu0 %v5488_v19  ;;  %v5061_v18 = vcombine.low %v446_v6, %v458_v7  ;;  %v5084_v19 = vcombine.high %v469_v13, %v481_v14  ;;  %v5182_v6 = vcombine.high %v566_v1, %v578_v2  ;;  %v589_v7 = vld [vmem:[#allocation6 + $0x870] sm:$0xff] }
 0x20e   :  { %4240 = vmatprep.subr.bf16.mxu1 %v5490_v20  ;;  %v5831_v20 = vsub.s32 %v4787_v11, %v5785_v38 }
 0x210   :  { %4159 = vmatpush1.bf16.msra.mxu0 %v5487_v25  ;;  %v505_v25 = vld [vmem:[#allocation6 + $0x5d0] sm:$0xff] }
 0x211   :  { %4241 = vmatpush1.bf16.msra.mxu1 %v5489_v26  ;;  %4267 = vmatprep.subr.bf16.mxu0 %v4940_v27  ;;  %v5108_v37 = vcombine.high %v493_v24, %v505_v25  ;;  %v5107_v48 = vcombine.low %v493_v24, %v505_v25  ;;  %v637_v24 = vld [vmem:[#allocation6 + $0x9f0] sm:$0xff] }
 0x212   :  { %4349 = vmatprep.subr.bf16.mxu1 %v4942_v28  ;;  %v494_v28 = vld [vmem:[#allocation6 + $0x578] sm:$0xff]  ;;  %v649_v25 = vld [vmem:[#allocation6 + $0xa50] sm:$0xff] }
 0x213   :  { %4177 = vmatmul.mubr.bf16.vlgmr.msra.gmra.mrb[12].mxu0 %v5808_v62  ;;  %v5110_v42 = vcombine.high %v494_v28, %v506_v29  ;;  %v5109_v49 = vcombine.low %v494_v28, %v506_v29  ;;  %v5227_v28 = vcombine.low %v613_v15, %v625_v16 }
 0x214   :  { %4259 = vmatmul.mubr.bf16.vlgmr.msra.gmra.mrb[12].mxu1 %v5808_v62  ;;  %4268 = vmatpush1.bf16.msra.mxu0 %v4939_v31 }
 0x215   :  { %4299 = vmatprep.mubr.bf16.mxu0 %v5793_v54  ;;  %4350 = vmatpush1.bf16.msra.mxu1 %v4941_v34  ;;  %v5083_v34 = vcombine.low %v469_v13, %v481_v14 }
 0x216   :  { %4381 = vmatprep.mubr.bf16.mxu1 %v5793_v54  ;;  %4269 = vmatprep.subr.bf16.mxu0 %v4964_v35 }
 0x217   :  { %4351 = vmatprep.subr.bf16.mxu1 %v4966_v39 }
 0x218   :  { %4270 = vmatpush1.bf16.msra.mxu0 %v4963_v43  ;;  %v517_v43 = vld [vmem:[#allocation6 + $0x630] sm:$0xff] }
 0x219   :  { %4352 = vmatpush1.bf16.msra.mxu1 %v4965_v44  ;;  %4271 = vmatprep.subr.bf16.mxu0 %v4988_v45  ;;  %v529_v44 = vld [vmem:[#allocation6 + $0x690] sm:$0xff]  ;;  %v518_v45 = vld [vmem:[#allocation6 + $0x638] sm:$0xff] }
 0x21a   :  { %4353 = vmatprep.subr.bf16.mxu1 %v4990_v46  ;;  %v530_v46 = vld [vmem:[#allocation6 + $0x698] sm:$0xff]  ;;  %v5132_v50 = vcombine.high %v517_v43, %v529_v44  ;;  %v5131_v58 = vcombine.low %v517_v43, %v529_v44 }
 0x21b   :  { %v5133_v59 = vcombine.low %v518_v45, %v530_v46  ;;  %v686_v43 = vld [vmem:[#allocation6 + $0xb78] sm:$0xff] }
 0x21c   :  { %4272 = vmatpush1.bf16.msra.mxu0 %v4987_v51  ;;  %v5134_v51 = vcombine.high %v518_v45, %v530_v46  ;;  %v698_v44 = vld [vmem:[#allocation6 + $0xbd8] sm:$0xff] }
 0x21d   :  { %4354 = vmatpush1.bf16.msra.mxu1 %v4989_v52  ;;  %4273 = vmatprep.subr.bf16.mxu0 %v5012_v53  ;;  %v541_v52 = vld [vmem:[#allocation6 + $0x6f0] sm:$0xff] }
 0x21e   :  { %4355 = vmatprep.subr.bf16.mxu1 %v5014_v56  ;;  %v553_v53 = vld [vmem:[#allocation6 + $0x750] sm:$0xff]  ;;  %v542_v56 = vld [vmem:[#allocation6 + $0x6f8] sm:$0xff] }
 0x21f   :  { %v5156_v40 = vcombine.high %v541_v52, %v553_v53  ;;  %v5157_v4 = vcombine.low %v542_v56, %v554_v57 }
 0x220   :  { %4274 = vmatpush1.bf16.msra.mxu0 %v5011_v60  ;;  %v5158_v60 = vcombine.high %v542_v56, %v554_v57  ;;  %v5301_v56 = vcombine.low %v686_v43, %v698_v44 }
 0x221   :  { %4356 = vmatpush1.bf16.msra.mxu1 %v5013_v61  ;;  %4275 = vmatprep.subr.bf16.mxu0 %v5036_v63  ;;  %v565_v61 = vld [vmem:[#allocation6 + $0x7b0] sm:$0xff] }
 0x222   :  { %4357 = vmatprep.subr.bf16.mxu1 %v5038_v3  ;;  %v577_v63 = vld [vmem:[#allocation6 + $0x810] sm:$0xff]  ;;  %v5155_v3 = vcombine.low %v541_v52, %v553_v53  ;;  %v722_v52 = vld [vmem:[#allocation6 + $0xc98] sm:$0xff] }
 0x223   :  { %v5180_v5 = vcombine.high %v565_v61, %v577_v63  ;;  %v5179_v11 = vcombine.low %v565_v61, %v577_v63  ;;  %v746_v61 = vld [vmem:[#allocation6 + $0xd58] sm:$0xff] }
 0x224   :  { %4276 = vmatpush1.bf16.msra.mxu0 %v5035_v8  ;;  %v601_v8 = vld [vmem:[#allocation6 + $0x8d0] sm:$0xff] }
 0x225   :  { %4358 = vmatpush1.bf16.msra.mxu1 %v5037_v9  ;;  %4277 = vmatprep.subr.bf16.mxu0 %v5060_v10  ;;  %v590_v9 = vld [vmem:[#allocation6 + $0x878] sm:$0xff]  ;;  %v5204_v13 = vcombine.high %v589_v7, %v601_v8 }
 0x226   :  { %v3850_v21 = vpop.f32.mrb[4].mxu0  ;;  %v3932_v22 = vpop.f32.mrb[4].mxu1  ;;  %4359 = vmatprep.subr.bf16.mxu1 %v5062_v12  ;;  %v602_v10 = vld [vmem:[#allocation6 + $0x8d8] sm:$0xff]  ;;  %v5181_v12 = vcombine.low %v566_v1, %v578_v2 }
 0x227   :  { %v3852_v26 = vpop.f32.mrb[5].mxu0  ;;  %v3934_v27 = vpop.f32.mrb[5].mxu1  ;;  %v5206_v14 = vcombine.high %v590_v9, %v602_v10 }
 0x228   :  { %v4783_v30 = vcombine.low %v3850_v21, %v3852_v26  ;;  %v4784_v31 = vcombine.low %v3932_v22, %v3934_v27  ;;  %v3854_v32 = vpop.f32.mrb[6].mxu0  ;;  %v3936_v33 = vpop.f32.mrb[6].mxu1  ;;  %4278 = vmatpush1.bf16.msra.mxu0 %v5059_v17  ;;  %v614_v17 = vld [vmem:[#allocation6 + $0x938] sm:$0xff]  ;;  %v5205_v21 = vcombine.low %v590_v9, %v602_v10  ;;  %v5228_v22 = vcombine.high %v613_v15, %v625_v16 }
 0x229   :  { %4360 = vmatpush1.bf16.msra.mxu1 %v5061_v18  ;;  %v3855_v35 = vpop.f32.mrb[7].mxu0  ;;  %v3937_v38 = vpop.f32.mrb[7].mxu1  ;;  %4279 = vmatprep.subr.bf16.mxu0 %v5084_v19  ;;  %v626_v18 = vld [vmem:[#allocation6 + $0x998] sm:$0xff]  ;;  %v5203_v19 = vcombine.low %v589_v7, %v601_v8  ;;  %v661_v32 = vld [vmem:[#allocation6 + $0xab0] sm:$0xff] }
 0x22a   :  { %v4791_v39 = vrot.slane %v4783_v30, %v5831_v20  ;;  %v4798_v41 = vrot.slane %v4784_v31, %v5831_v20  ;;  %4361 = vmatprep.subr.bf16.mxu1 %v5086_v23  ;;  %v5230_v23 = vcombine.high %v614_v17, %v626_v18  ;;  %v638_v26 = vld [vmem:[#allocation6 + $0x9f8] sm:$0xff]  ;;  %v5229_v29 = vcombine.low %v614_v17, %v626_v18  ;;  %v673_v33 = vld [vmem:[#allocation6 + $0xb10] sm:$0xff] }
 0x22b   :  { %v650_v27 = vld [vmem:[#allocation6 + $0xa58] sm:$0xff]  ;;  %v5252_v30 = vcombine.high %v637_v24, %v649_v25  ;;  %v5251_v38 = vcombine.low %v637_v24, %v649_v25  ;;  %v5275_v45 = vcombine.low %v661_v32, %v673_v33 }
 0x22c   :  { %v4799_v47 = vcombine.low %v4791_v39, %v4798_v41  ;;  %4280 = vmatpush1.bf16.msra.mxu0 %v5083_v34  ;;  %v5254_v31 = vcombine.high %v638_v26, %v650_v27  ;;  %v662_v34 = vld [vmem:[#allocation6 + $0xab8] sm:$0xff]  ;;  %v685_v41 = vld [vmem:[#allocation6 + $0xb70] sm:$0xff] }
 0x22d   :  { %4362 = vmatpush1.bf16.msra.mxu1 %v5085_v36  ;;  %4281 = vmatprep.subr.bf16.mxu0 %v5108_v37  ;;  %v674_v35 = vld [vmem:[#allocation6 + $0xb18] sm:$0xff]  ;;  %v5253_v36 = vcombine.low %v638_v26, %v650_v27  ;;  %v5276_v37 = vcombine.high %v661_v32, %v673_v33 }
 0x22e   :  { %4891 = vst [vmem:[%s5889_s4] sm:$0xff] %v4799_v47  ;;  %4363 = vmatprep.subr.bf16.mxu1 %v5110_v42  ;;  %v5278_v39 = vcombine.high %v662_v34, %v674_v35  ;;  %v697_v42 = vld [vmem:[#allocation6 + $0xbd0] sm:$0xff]  ;;  %v5277_v46 = vcombine.low %v662_v34, %v674_v35  ;;  %v770_v7 = vld [vmem:[#allocation6 + $0xe18] sm:$0xff] }
 0x22f   :  { %v5300_v47 = vcombine.high %v685_v41, %v697_v42  ;;  %v5299_v53 = vcombine.low %v685_v41, %v697_v42  ;;  %v794_v15 = vld [vmem:[#allocation6 + $0xed8] sm:$0xff] }
 0x230   :  { %4282 = vmatpush1.bf16.msra.mxu0 %v5107_v48  ;;  %v5302_v48 = vcombine.high %v686_v43, %v698_v44  ;;  %v818_v24 = vld [vmem:[#allocation6 + $0xf98] sm:$0xff] }
 0x231   :  { %4364 = vmatpush1.bf16.msra.mxu1 %v5109_v49  ;;  %4283 = vmatprep.subr.bf16.mxu0 %v5132_v50  ;;  %v709_v49 = vld [vmem:[#allocation6 + $0xc30] sm:$0xff]  ;;  %v842_v32 = vld [vmem:[#allocation6 + $0x1058] sm:$0xff] }
 0x232   :  { %4365 = vmatprep.subr.bf16.mxu1 %v5134_v51  ;;  %v721_v50 = vld [vmem:[#allocation6 + $0xc90] sm:$0xff]  ;;  %v710_v51 = vld [vmem:[#allocation6 + $0xc38] sm:$0xff] }
 0x233   :  { %v5324_v57 = vcombine.high %v709_v49, %v721_v50  ;;  %v5323_v63 = vcombine.low %v709_v49, %v721_v50  ;;  %v5325_v1 = vcombine.low %v710_v51, %v722_v52  ;;  %v866_v41 = vld [vmem:[#allocation6 + $0x1118] sm:$0xff] }
 0x234   :  { %4284 = vmatpush1.bf16.msra.mxu0 %v5131_v58  ;;  %v5326_v58 = vcombine.high %v710_v51, %v722_v52  ;;  %v890_v49 = vld [vmem:[#allocation6 + $0x11d8] sm:$0xff] }
 0x235   :  { %4366 = vmatpush1.bf16.msra.mxu1 %v5133_v59  ;;  %4285 = vmatprep.subr.bf16.mxu0 %v5156_v40  ;;  %v733_v59 = vld [vmem:[#allocation6 + $0xcf0] sm:$0xff] }
 0x236   :  { %4367 = vmatprep.subr.bf16.mxu1 %v5158_v60  ;;  %v745_v40 = vld [vmem:[#allocation6 + $0xd50] sm:$0xff]  ;;  %v734_v60 = vld [vmem:[#allocation6 + $0xcf8] sm:$0xff] }
 0x237   :  { %v5348_v2 = vcombine.high %v733_v59, %v745_v40  ;;  %v5347_v8 = vcombine.low %v733_v59, %v745_v40  ;;  %v5349_v9 = vcombine.low %v734_v60, %v746_v61  ;;  %v340_v59 = vld [vmem:[#allocation6 + $0xa8] sm:$0xff] }
 0x238   :  { %4286 = vmatpush1.bf16.msra.mxu0 %v5155_v3  ;;  %v5350_v3 = vcombine.high %v734_v60, %v746_v61 }
 0x239   :  { %4368 = vmatpush1.bf16.msra.mxu1 %v5157_v4  ;;  %4287 = vmatprep.subr.bf16.mxu0 %v5180_v5  ;;  %v757_v4 = vld [vmem:[#allocation6 + $0xdb0] sm:$0xff] }
 0x23a   :  { %4369 = vmatprep.subr.bf16.mxu1 %v5182_v6  ;;  %v769_v5 = vld [vmem:[#allocation6 + $0xe10] sm:$0xff]  ;;  %v758_v6 = vld [vmem:[#allocation6 + $0xdb8] sm:$0xff] }
 0x23b   :  { %v5372_v10 = vcombine.high %v757_v4, %v769_v5  ;;  %v5371_v16 = vcombine.low %v757_v4, %v769_v5  ;;  %v5373_v17 = vcombine.low %v758_v6, %v770_v7  ;;  %v352_v4 = vld [vmem:[#allocation6 + $0x108] sm:$0xff] }
 0x23c   :  { %4288 = vmatpush1.bf16.msra.mxu0 %v5179_v11  ;;  %v5374_v11 = vcombine.high %v758_v6, %v770_v7  ;;  %v364_v5 = vld [vmem:[#allocation6 + $0x168] sm:$0xff] }
 0x23d   :  { %4370 = vmatpush1.bf16.msra.mxu1 %v5181_v12  ;;  %4289 = vmatprep.subr.bf16.mxu0 %v5204_v13  ;;  %v781_v12 = vld [vmem:[#allocation6 + $0xe70] sm:$0xff] }
 0x23e   :  { %4371 = vmatprep.subr.bf16.mxu1 %v5206_v14  ;;  %v793_v13 = vld [vmem:[#allocation6 + $0xed0] sm:$0xff]  ;;  %v782_v14 = vld [vmem:[#allocation6 + $0xe78] sm:$0xff] }
 0x23f   :  { %v5396_v18 = vcombine.high %v781_v12, %v793_v13  ;;  %v5395_v25 = vcombine.low %v781_v12, %v793_v13  ;;  %v5397_v26 = vcombine.low %v782_v14, %v794_v15  ;;  %v388_v12 = vld [vmem:[#allocation6 + $0x228] sm:$0xff] }
 0x240   :  { %4290 = vmatpush1.bf16.msra.mxu0 %v5203_v19  ;;  %v5398_v19 = vcombine.high %v782_v14, %v794_v15  ;;  %v4969_v14 = vcombine.low %v352_v4, %v364_v5 }
 0x241   :  { %4372 = vmatpush1.bf16.msra.mxu1 %v5205_v21  ;;  %4291 = vmatprep.subr.bf16.mxu0 %v5228_v22  ;;  %v805_v21 = vld [vmem:[#allocation6 + $0xf30] sm:$0xff] }
 0x242   :  { %4373 = vmatprep.subr.bf16.mxu1 %v5230_v23  ;;  %v817_v22 = vld [vmem:[#allocation6 + $0xf90] sm:$0xff]  ;;  %v806_v23 = vld [vmem:[#allocation6 + $0xf38] sm:$0xff] }
 0x243   :  { %v5420_v27 = vcombine.high %v805_v21, %v817_v22  ;;  %v5419_v33 = vcombine.low %v805_v21, %v817_v22  ;;  %v5421_v34 = vcombine.low %v806_v23, %v818_v24  ;;  %v412_v21 = vld [vmem:[#allocation6 + $0x2e8] sm:$0xff] }
 0x244   :  { %4292 = vmatpush1.bf16.msra.mxu0 %v5227_v28  ;;  %v5422_v28 = vcombine.high %v806_v23, %v818_v24 }
 0x245   :  { %4374 = vmatpush1.bf16.msra.mxu1 %v5229_v29  ;;  %4293 = vmatprep.subr.bf16.mxu0 %v5252_v30  ;;  %v829_v29 = vld [vmem:[#allocation6 + $0xff0] sm:$0xff] }
 0x246   :  { %4375 = vmatprep.subr.bf16.mxu1 %v5254_v31  ;;  %v841_v30 = vld [vmem:[#allocation6 + $0x1050] sm:$0xff]  ;;  %v830_v31 = vld [vmem:[#allocation6 + $0xff8] sm:$0xff] }
 0x247   :  { %v5444_v35 = vcombine.high %v829_v29, %v841_v30  ;;  %v5443_v42 = vcombine.low %v829_v29, %v841_v30  ;;  %v5445_v43 = vcombine.low %v830_v31, %v842_v32  ;;  %v436_v29 = vld [vmem:[#allocation6 + $0x3a8] sm:$0xff] }
 0x248   :  { %4294 = vmatpush1.bf16.msra.mxu0 %v5251_v38  ;;  %v5446_v38 = vcombine.high %v830_v31, %v842_v32 }
 0x249   :  { %4376 = vmatpush1.bf16.msra.mxu1 %v5253_v36  ;;  %4295 = vmatprep.subr.bf16.mxu0 %v5276_v37  ;;  %v853_v36 = vld [vmem:[#allocation6 + $0x10b0] sm:$0xff] }
 0x24a   :  { %4377 = vmatprep.subr.bf16.mxu1 %v5278_v39  ;;  %v865_v37 = vld [vmem:[#allocation6 + $0x1110] sm:$0xff]  ;;  %v854_v39 = vld [vmem:[#allocation6 + $0x10b8] sm:$0xff] }
 0x24b   :  { %v5468_v44 = vcombine.high %v853_v36, %v865_v37  ;;  %v5467_v50 = vcombine.low %v853_v36, %v865_v37  ;;  %v5469_v51 = vcombine.low %v854_v39, %v866_v41  ;;  %v460_v36 = vld [vmem:[#allocation6 + $0x468] sm:$0xff] }
 0x24c   :  { %4296 = vmatpush1.bf16.msra.mxu0 %v5275_v45  ;;  %v5470_v45 = vcombine.high %v854_v39, %v866_v41 }
 0x24d   :  { %4378 = vmatpush1.bf16.msra.mxu1 %v5277_v46  ;;  %4297 = vmatprep.subr.bf16.mxu0 %v5300_v47  ;;  %v877_v46 = vld [vmem:[#allocation6 + $0x1170] sm:$0xff] }
 0x24e   :  { %4379 = vmatprep.subr.bf16.mxu1 %v5302_v48  ;;  %v889_v47 = vld [vmem:[#allocation6 + $0x11d0] sm:$0xff]  ;;  %v878_v48 = vld [vmem:[#allocation6 + $0x1178] sm:$0xff] }
 0x24f   :  { %v5492_v52 = vcombine.high %v877_v46, %v889_v47  ;;  %v5491_v40 = vcombine.low %v877_v46, %v889_v47  ;;  %v5493_v60 = vcombine.low %v878_v48, %v890_v49  ;;  %v484_v46 = vld [vmem:[#allocation6 + $0x528] sm:$0xff] }
 0x250   :  { %4298 = vmatpush1.bf16.msra.mxu0 %v5299_v53  ;;  %v5494_v53 = vcombine.high %v878_v48, %v890_v49 }
 0x251   :  { %4380 = vmatpush1.bf16.msra.mxu1 %v5301_v56  ;;  %4308 = vmatprep.subr.bf16.mxu0 %v5324_v57  ;;  %v327_v56 = vld [vmem:[#allocation6 + $0x40] sm:$0xff] }
 0x252   :  { %4390 = vmatprep.subr.bf16.mxu1 %v5326_v58  ;;  %v339_v57 = vld [vmem:[#allocation6 + $0xa0] sm:$0xff]  ;;  %v328_v58 = vld [vmem:[#allocation6 + $0x48] sm:$0xff] }
 0x253   :  { %4300 = vmatmul.mubr.bf16.vlgmr.msra.gmra.mrb[16].mxu0 %v5795_v55  ;;  %v4944_v61 = vcombine.high %v327_v56, %v339_v57  ;;  %v4945_v6 = vcombine.low %v328_v58, %v340_v59 }
 0x254   :  { %4382 = vmatmul.mubr.bf16.vlgmr.msra.gmra.mrb[16].mxu1 %v5795_v55  ;;  %4309 = vmatpush1.bf16.msra.mxu0 %v5323_v63  ;;  %v4946_v63 = vcombine.high %v328_v58, %v340_v59  ;;  %v496_v58 = vld [vmem:[#allocation6 + $0x588] sm:$0xff] }
 0x255   :  { %4391 = vmatpush1.bf16.msra.mxu1 %v5325_v1  ;;  %4310 = vmatprep.subr.bf16.mxu0 %v5348_v2  ;;  %v351_v1 = vld [vmem:[#allocation6 + $0x100] sm:$0xff]  ;;  %v508_v59 = vld [vmem:[#allocation6 + $0x5e8] sm:$0xff] }
 0x256   :  { %4392 = vmatprep.subr.bf16.mxu1 %v5350_v3  ;;  %4340 = vmatprep.mubr.bf16.mxu0 %v5700_v0  ;;  %v363_v2 = vld [vmem:[#allocation6 + $0x160] sm:$0xff]  ;;  %v4943_v3 = vcombine.low %v327_v56, %v339_v57 }
 0x257   :  { %4422 = vmatprep.mubr.bf16.mxu1 %v5700_v0  ;;  %v4968_v7 = vcombine.high %v351_v1, %v363_v2  ;;  %v4967_v13 = vcombine.low %v351_v1, %v363_v2 }
 0x258   :  { %4311 = vmatpush1.bf16.msra.mxu0 %v5347_v8  ;;  %v375_v8 = vld [vmem:[#allocation6 + $0x1c0] sm:$0xff] }
 0x259   :  { %4393 = vmatpush1.bf16.msra.mxu1 %v5349_v9  ;;  %4312 = vmatprep.subr.bf16.mxu0 %v5372_v10  ;;  %v387_v9 = vld [vmem:[#allocation6 + $0x220] sm:$0xff]  ;;  %v4970_v10 = vcombine.high %v352_v4, %v364_v5 }
 0x25a   :  { %4394 = vmatprep.subr.bf16.mxu1 %v5374_v11  ;;  %v376_v11 = vld [vmem:[#allocation6 + $0x1c8] sm:$0xff]  ;;  %v4992_v15 = vcombine.high %v375_v8, %v387_v9  ;;  %v4991_v22 = vcombine.low %v375_v8, %v387_v9  ;;  %v5114_v8 = vcombine.high %v496_v58, %v508_v59  ;;  %v519_v9 = vld [vmem:[#allocation6 + $0x640] sm:$0xff] }
 0x25b   :  { %v4993_v23 = vcombine.low %v376_v11, %v388_v12 }
 0x25c   :  { %4313 = vmatpush1.bf16.msra.mxu0 %v5371_v16  ;;  %v4994_v16 = vcombine.high %v376_v11, %v388_v12  ;;  %v520_v12 = vld [vmem:[#allocation6 + $0x648] sm:$0xff] }
 0x25d   :  { %4395 = vmatpush1.bf16.msra.mxu1 %v5373_v17  ;;  %4314 = vmatprep.subr.bf16.mxu0 %v5396_v18  ;;  %v399_v17 = vld [vmem:[#allocation6 + $0x280] sm:$0xff] }
 0x25e   :  { %4396 = vmatprep.subr.bf16.mxu1 %v5398_v19  ;;  %v411_v18 = vld [vmem:[#allocation6 + $0x2e0] sm:$0xff]  ;;  %v400_v19 = vld [vmem:[#allocation6 + $0x288] sm:$0xff] }
 0x25f   :  { %v5016_v24 = vcombine.high %v399_v17, %v411_v18  ;;  %v5015_v30 = vcombine.low %v399_v17, %v411_v18  ;;  %v5017_v31 = vcombine.low %v400_v19, %v412_v21 }
 0x260   :  { %4315 = vmatpush1.bf16.msra.mxu0 %v5395_v25  ;;  %v5018_v25 = vcombine.high %v400_v19, %v412_v21  ;;  %v543_v19 = vld [vmem:[#allocation6 + $0x700] sm:$0xff] }
 0x261   :  { %4397 = vmatpush1.bf16.msra.mxu1 %v5397_v26  ;;  %4316 = vmatprep.subr.bf16.mxu0 %v5420_v27  ;;  %v423_v26 = vld [vmem:[#allocation6 + $0x340] sm:$0xff] }
 0x262   :  { %4398 = vmatprep.subr.bf16.mxu1 %v5422_v28  ;;  %v435_v27 = vld [vmem:[#allocation6 + $0x3a0] sm:$0xff]  ;;  %v424_v28 = vld [vmem:[#allocation6 + $0x348] sm:$0xff] }
 0x263   :  { %v5040_v32 = vcombine.high %v423_v26, %v435_v27  ;;  %v5039_v37 = vcombine.low %v423_v26, %v435_v27  ;;  %v5041_v39 = vcombine.low %v424_v28, %v436_v29  ;;  %v555_v21 = vld [vmem:[#allocation6 + $0x760] sm:$0xff] }
 0x264   :  { %4317 = vmatpush1.bf16.msra.mxu0 %v5419_v33  ;;  %v5042_v33 = vcombine.high %v424_v28, %v436_v29  ;;  %v5160_v26 = vcombine.high %v543_v19, %v555_v21  ;;  %v567_v28 = vld [vmem:[#allocation6 + $0x7c0] sm:$0xff] }
 0x265   :  { %4399 = vmatpush1.bf16.msra.mxu1 %v5421_v34  ;;  %4318 = vmatprep.subr.bf16.mxu0 %v5444_v35  ;;  %v447_v34 = vld [vmem:[#allocation6 + $0x400] sm:$0xff] }
 0x266   :  { %4400 = vmatprep.subr.bf16.mxu1 %v5446_v38  ;;  %v459_v35 = vld [vmem:[#allocation6 + $0x460] sm:$0xff]  ;;  %v448_v38 = vld [vmem:[#allocation6 + $0x408] sm:$0xff] }
 0x267   :  { %v5064_v41 = vcombine.high %v447_v34, %v459_v35  ;;  %v5063_v47 = vcombine.low %v447_v34, %v459_v35  ;;  %v5065_v48 = vcombine.low %v448_v38, %v460_v36  ;;  %v579_v29 = vld [vmem:[#allocation6 + $0x820] sm:$0xff] }
 0x268   :  { %4319 = vmatpush1.bf16.msra.mxu0 %v5443_v42  ;;  %v5066_v42 = vcombine.high %v448_v38, %v460_v36  ;;  %v5184_v34 = vcombine.high %v567_v28, %v579_v29  ;;  %v591_v38 = vld [vmem:[#allocation6 + $0x880] sm:$0xff] }
 0x269   :  { %4401 = vmatpush1.bf16.msra.mxu1 %v5445_v43  ;;  %4320 = vmatprep.subr.bf16.mxu0 %v5468_v44  ;;  %v471_v43 = vld [vmem:[#allocation6 + $0x4c0] sm:$0xff] }
 0x26a   :  { %4402 = vmatprep.subr.bf16.mxu1 %v5470_v45  ;;  %v483_v44 = vld [vmem:[#allocation6 + $0x520] sm:$0xff]  ;;  %v472_v45 = vld [vmem:[#allocation6 + $0x4c8] sm:$0xff] }
 0x26b   :  { %v5088_v49 = vcombine.high %v471_v43, %v483_v44  ;;  %v5089_v4 = vcombine.low %v472_v45, %v484_v46  ;;  %v603_v36 = vld [vmem:[#allocation6 + $0x8e0] sm:$0xff] }
 0x26c   :  { %4321 = vmatpush1.bf16.msra.mxu0 %v5467_v50 }
 0x26d   :  { %4403 = vmatpush1.bf16.msra.mxu1 %v5469_v51  ;;  %4322 = vmatprep.subr.bf16.mxu0 %v5492_v52  ;;  %v5090_v51 = vcombine.high %v472_v45, %v484_v46  ;;  %v495_v52 = vld [vmem:[#allocation6 + $0x580] sm:$0xff] }
 0x26e   :  { %4404 = vmatprep.subr.bf16.mxu1 %v5494_v53  ;;  %v507_v53 = vld [vmem:[#allocation6 + $0x5e0] sm:$0xff] }
 0x26f   :  { %v5112_v5 = vcombine.high %v495_v52, %v507_v53  ;;  %v615_v45 = vld [vmem:[#allocation6 + $0x940] sm:$0xff] }
 0x270   :  { %4323 = vmatpush1.bf16.msra.mxu0 %v5491_v40  ;;  %v627_v46 = vld [vmem:[#allocation6 + $0x9a0] sm:$0xff] }
 0x271   :  { %4405 = vmatpush1.bf16.msra.mxu1 %v5493_v60  ;;  %4431 = vmatprep.subr.bf16.mxu0 %v4944_v61 }
 0x272   :  { %4513 = vmatprep.subr.bf16.mxu1 %v4946_v63  ;;  %v5087_v63 = vcombine.low %v471_v43, %v483_v44  ;;  %v5208_v43 = vcombine.high %v591_v38, %v603_v36 }
 0x273   :  { %4341 = vmatmul.mubr.bf16.vlgmr.msra.gmra.mrb[16].mxu0 %v5808_v62 }
 0x274   :  { %4423 = vmatmul.mubr.bf16.vlgmr.msra.gmra.mrb[16].mxu1 %v5808_v62  ;;  %4432 = vmatpush1.bf16.msra.mxu0 %v4943_v3 }
 0x275   :  { %4463 = vmatprep.mubr.bf16.mxu0 %v5793_v54  ;;  %4514 = vmatpush1.bf16.msra.mxu1 %v4945_v6 }
 0x276   :  { %4545 = vmatprep.mubr.bf16.mxu1 %v5793_v54  ;;  %4433 = vmatprep.subr.bf16.mxu0 %v4968_v7 }
 0x277   :  { %4515 = vmatprep.subr.bf16.mxu1 %v4970_v10  ;;  %v531_v10 = vld [vmem:[#allocation6 + $0x6a0] sm:$0xff] }
 0x278   :  { %4434 = vmatpush1.bf16.msra.mxu0 %v4967_v13  ;;  %v532_v13 = vld [vmem:[#allocation6 + $0x6a8] sm:$0xff]  ;;  %v5136_v17 = vcombine.high %v519_v9, %v531_v10 }
 0x279   :  { %4516 = vmatpush1.bf16.msra.mxu1 %v4969_v14  ;;  %4435 = vmatprep.subr.bf16.mxu0 %v4992_v15  ;;  %v5111_v14 = vcombine.low %v495_v52, %v507_v53  ;;  %v5138_v18 = vcombine.high %v520_v12, %v532_v13  ;;  %v639_v53 = vld [vmem:[#allocation6 + $0xa00] sm:$0xff] }
 0x27a   :  { %4517 = vmatprep.subr.bf16.mxu1 %v4994_v16  ;;  %v5113_v16 = vcombine.low %v496_v58, %v508_v59  ;;  %v652_v58 = vld [vmem:[#allocation6 + $0xa68] sm:$0xff]  ;;  %v5231_v59 = vcombine.low %v615_v45, %v627_v46 }
 0x27c   :  { %4436 = vmatpush1.bf16.msra.mxu0 %v4991_v22  ;;  %v544_v22 = vld [vmem:[#allocation6 + $0x708] sm:$0xff] }
 0x27d   :  { %4518 = vmatpush1.bf16.msra.mxu1 %v4993_v23  ;;  %4437 = vmatprep.subr.bf16.mxu0 %v5016_v24  ;;  %v556_v23 = vld [vmem:[#allocation6 + $0x768] sm:$0xff]  ;;  %v5135_v24 = vcombine.low %v519_v9, %v531_v10  ;;  %v699_v9 = vld [vmem:[#allocation6 + $0xbe0] sm:$0xff] }
 0x27e   :  { %4519 = vmatprep.subr.bf16.mxu1 %v5018_v25  ;;  %v5137_v25 = vcombine.low %v520_v12, %v532_v13  ;;  %v5162_v27 = vcombine.high %v544_v22, %v556_v23  ;;  %v688_v10 = vld [vmem:[#allocation6 + $0xb88] sm:$0xff] }
 0x280   :  { %4438 = vmatpush1.bf16.msra.mxu0 %v5015_v30  ;;  %v568_v30 = vld [vmem:[#allocation6 + $0x7c8] sm:$0xff] }
 0x281   :  { %4520 = vmatpush1.bf16.msra.mxu1 %v5017_v31  ;;  %4439 = vmatprep.subr.bf16.mxu0 %v5040_v32  ;;  %v580_v31 = vld [vmem:[#allocation6 + $0x828] sm:$0xff]  ;;  %v5159_v32 = vcombine.low %v543_v19, %v555_v21 }
 0x282   :  { %4521 = vmatprep.subr.bf16.mxu1 %v5042_v33  ;;  %v5161_v33 = vcombine.low %v544_v22, %v556_v23  ;;  %v5186_v35 = vcombine.high %v568_v30, %v580_v31  ;;  %v724_v19 = vld [vmem:[#allocation6 + $0xca8] sm:$0xff] }
 0x284   :  { %4440 = vmatpush1.bf16.msra.mxu0 %v5039_v37  ;;  %v592_v37 = vld [vmem:[#allocation6 + $0x888] sm:$0xff] }
 0x285   :  { %4522 = vmatpush1.bf16.msra.mxu1 %v5041_v39  ;;  %4441 = vmatprep.subr.bf16.mxu0 %v5064_v41  ;;  %v604_v39 = vld [vmem:[#allocation6 + $0x8e8] sm:$0xff]  ;;  %v5183_v41 = vcombine.low %v567_v28, %v579_v29 }
 0x286   :  { %v4014_v50 = vpop.f32.mrb[8].mxu0  ;;  %4523 = vmatprep.subr.bf16.mxu1 %v5066_v42  ;;  %v5185_v42 = vcombine.low %v568_v30, %v580_v31  ;;  %v5210_v44 = vcombine.high %v592_v37, %v604_v39  ;;  %v748_v28 = vld [vmem:[#allocation6 + $0xd68] sm:$0xff] }
 0x287   :  { %v4096_v56 = vpop.f32.mrb[8].mxu1  ;;  %v4016_v57 = vpop.f32.mrb[9].mxu0 }
 0x288   :  { %v4800_v40 = vcombine.low %v4014_v50, %v4016_v57  ;;  %v4098_v60 = vpop.f32.mrb[9].mxu1  ;;  %v4018_v61 = vpop.f32.mrb[10].mxu0  ;;  %4442 = vmatpush1.bf16.msra.mxu0 %v5063_v47  ;;  %v616_v47 = vld [vmem:[#allocation6 + $0x948] sm:$0xff]  ;;  %v5209_v50 = vcombine.low %v592_v37, %v604_v39 }
 0x289   :  { %v4801_v1 = vcombine.low %v4096_v56, %v4098_v60  ;;  %v4100_v2 = vpop.f32.mrb[10].mxu1  ;;  %4524 = vmatpush1.bf16.msra.mxu1 %v5065_v48  ;;  %v4019_v3 = vpop.f32.mrb[11].mxu0  ;;  %4443 = vmatprep.subr.bf16.mxu0 %v5088_v49  ;;  %v628_v48 = vld [vmem:[#allocation6 + $0x9a8] sm:$0xff]  ;;  %v5207_v49 = vcombine.low %v591_v38, %v603_v36  ;;  %v651_v56 = vld [vmem:[#allocation6 + $0xa60] sm:$0xff] }
 0x28a   :  { %v4808_v6 = vrot.slane %v4800_v40, %v5831_v20  ;;  %v4101_v7 = vpop.f32.mrb[11].mxu1  ;;  %4525 = vmatprep.subr.bf16.mxu1 %v5090_v51  ;;  %v5232_v51 = vcombine.high %v615_v45, %v627_v46  ;;  %v5234_v52 = vcombine.high %v616_v47, %v628_v48  ;;  %v640_v57 = vld [vmem:[#allocation6 + $0xa08] sm:$0xff]  ;;  %v5233_v40 = vcombine.low %v616_v47, %v628_v48 }
 0x28b   :  { %v4815_v11 = vrot.slane %v4801_v1, %v5831_v20  ;;  %v5256_v60 = vcombine.high %v639_v53, %v651_v56  ;;  %v5258_v61 = vcombine.high %v640_v57, %v652_v58  ;;  %v675_v1 = vld [vmem:[#allocation6 + $0xb20] sm:$0xff]  ;;  %v664_v2 = vld [vmem:[#allocation6 + $0xac8] sm:$0xff] }
 0x28c   :  { %4444 = vmatpush1.bf16.msra.mxu0 %v5087_v63  ;;  %v663_v63 = vld [vmem:[#allocation6 + $0xac0] sm:$0xff]  ;;  %v676_v3 = vld [vmem:[#allocation6 + $0xb28] sm:$0xff] }
 0x28d   :  { %v4816_v15 = vcombine.low %v4808_v6, %v4815_v11  ;;  %4526 = vmatpush1.bf16.msra.mxu1 %v5089_v4  ;;  %4445 = vmatprep.subr.bf16.mxu0 %v5112_v5  ;;  %v5255_v4 = vcombine.low %v639_v53, %v651_v56  ;;  %v5257_v5 = vcombine.low %v640_v57, %v652_v58  ;;  %v700_v11 = vld [vmem:[#allocation6 + $0xbe8] sm:$0xff] }
 0x28e   :  { %4527 = vmatprep.subr.bf16.mxu1 %v5114_v8  ;;  %v5280_v6 = vcombine.high %v663_v63, %v675_v1  ;;  %v5282_v7 = vcombine.high %v664_v2, %v676_v3  ;;  %v687_v8 = vld [vmem:[#allocation6 + $0xb80] sm:$0xff]  ;;  %v5279_v12 = vcombine.low %v663_v63, %v675_v1  ;;  %v5281_v13 = vcombine.low %v664_v2, %v676_v3  ;;  %v772_v38 = vld [vmem:[#allocation6 + $0xe28] sm:$0xff] }
 0x28f   :  { %4892 = vst [vmem:[%s5889_s4 + $0x8] sm:$0xff] %v4816_v15  ;;  %v5306_v15 = vcombine.high %v688_v10, %v700_v11  ;;  %v5303_v21 = vcombine.low %v687_v8, %v699_v9  ;;  %v5305_v22 = vcombine.low %v688_v10, %v700_v11  ;;  %v796_v45 = vld [vmem:[#allocation6 + $0xee8] sm:$0xff] }
 0x290   :  { %4446 = vmatpush1.bf16.msra.mxu0 %v5111_v14  ;;  %v5304_v14 = vcombine.high %v687_v8, %v699_v9  ;;  %v820_v53 = vld [vmem:[#allocation6 + $0xfa8] sm:$0xff] }
 0x291   :  { %4528 = vmatpush1.bf16.msra.mxu1 %v5113_v16  ;;  %4447 = vmatprep.subr.bf16.mxu0 %v5136_v17  ;;  %v711_v16 = vld [vmem:[#allocation6 + $0xc40] sm:$0xff]  ;;  %v844_v63 = vld [vmem:[#allocation6 + $0x1068] sm:$0xff] }
 0x292   :  { %4529 = vmatprep.subr.bf16.mxu1 %v5138_v18  ;;  %v723_v17 = vld [vmem:[#allocation6 + $0xca0] sm:$0xff]  ;;  %v712_v18 = vld [vmem:[#allocation6 + $0xc48] sm:$0xff] }
 0x293   :  { %v5328_v23 = vcombine.high %v711_v16, %v723_v17  ;;  %v5327_v29 = vcombine.low %v711_v16, %v723_v17  ;;  %v5329_v30 = vcombine.low %v712_v18, %v724_v19  ;;  %v868_v8 = vld [vmem:[#allocation6 + $0x1128] sm:$0xff] }
 0x294   :  { %4448 = vmatpush1.bf16.msra.mxu0 %v5135_v24  ;;  %v5330_v24 = vcombine.high %v712_v18, %v724_v19  ;;  %v892_v16 = vld [vmem:[#allocation6 + $0x11e8] sm:$0xff] }
 0x295   :  { %4530 = vmatpush1.bf16.msra.mxu1 %v5137_v25  ;;  %4449 = vmatprep.subr.bf16.mxu0 %v5160_v26  ;;  %v735_v25 = vld [vmem:[#allocation6 + $0xd00] sm:$0xff] }
 0x296   :  { %4531 = vmatprep.subr.bf16.mxu1 %v5162_v27  ;;  %v747_v26 = vld [vmem:[#allocation6 + $0xd60] sm:$0xff]  ;;  %v736_v27 = vld [vmem:[#allocation6 + $0xd08] sm:$0xff] }
 0x297   :  { %v5352_v31 = vcombine.high %v735_v25, %v747_v26  ;;  %v5351_v36 = vcombine.low %v735_v25, %v747_v26  ;;  %v5353_v37 = vcombine.low %v736_v27, %v748_v28  ;;  %v342_v25 = vld [vmem:[#allocation6 + $0xb8] sm:$0xff] }
 0x298   :  { %4450 = vmatpush1.bf16.msra.mxu0 %v5159_v32  ;;  %v5354_v32 = vcombine.high %v736_v27, %v748_v28 }
 0x299   :  { %4532 = vmatpush1.bf16.msra.mxu1 %v5161_v33  ;;  %4451 = vmatprep.subr.bf16.mxu0 %v5184_v34  ;;  %v759_v33 = vld [vmem:[#allocation6 + $0xdc0] sm:$0xff] }
 0x29a   :  { %4533 = vmatprep.subr.bf16.mxu1 %v5186_v35  ;;  %v771_v34 = vld [vmem:[#allocation6 + $0xe20] sm:$0xff]  ;;  %v760_v35 = vld [vmem:[#allocation6 + $0xdc8] sm:$0xff] }
 0x29b   :  { %v5376_v39 = vcombine.high %v759_v33, %v771_v34  ;;  %v5375_v46 = vcombine.low %v759_v33, %v771_v34  ;;  %v5377_v47 = vcombine.low %v760_v35, %v772_v38  ;;  %v354_v33 = vld [vmem:[#allocation6 + $0x118] sm:$0xff] }
 0x29c   :  { %4452 = vmatpush1.bf16.msra.mxu0 %v5183_v41  ;;  %v5378_v41 = vcombine.high %v760_v35, %v772_v38  ;;  %v366_v34 = vld [vmem:[#allocation6 + $0x178] sm:$0xff] }
 0x29d   :  { %4534 = vmatpush1.bf16.msra.mxu1 %v5185_v42  ;;  %4453 = vmatprep.subr.bf16.mxu0 %v5208_v43  ;;  %v783_v42 = vld [vmem:[#allocation6 + $0xe80] sm:$0xff] }
 0x29e   :  { %4535 = vmatprep.subr.bf16.mxu1 %v5210_v44  ;;  %v795_v43 = vld [vmem:[#allocation6 + $0xee0] sm:$0xff]  ;;  %v784_v44 = vld [vmem:[#allocation6 + $0xe88] sm:$0xff] }
 0x29f   :  { %v5400_v48 = vcombine.high %v783_v42, %v795_v43  ;;  %v5399_v56 = vcombine.low %v783_v42, %v795_v43  ;;  %v5401_v57 = vcombine.low %v784_v44, %v796_v45  ;;  %v390_v42 = vld [vmem:[#allocation6 + $0x238] sm:$0xff] }
 0x2a0   :  { %4454 = vmatpush1.bf16.msra.mxu0 %v5207_v49  ;;  %v5402_v49 = vcombine.high %v784_v44, %v796_v45  ;;  %v4973_v44 = vcombine.low %v354_v33, %v366_v34 }
 0x2a1   :  { %4536 = vmatpush1.bf16.msra.mxu1 %v5209_v50  ;;  %4455 = vmatprep.subr.bf16.mxu0 %v5232_v51  ;;  %v807_v50 = vld [vmem:[#allocation6 + $0xf40] sm:$0xff] }
 0x2a2   :  { %4537 = vmatprep.subr.bf16.mxu1 %v5234_v52  ;;  %v819_v51 = vld [vmem:[#allocation6 + $0xfa0] sm:$0xff]  ;;  %v808_v52 = vld [vmem:[#allocation6 + $0xf48] sm:$0xff] }
 0x2a3   :  { %v5424_v58 = vcombine.high %v807_v50, %v819_v51  ;;  %v5423_v1 = vcombine.low %v807_v50, %v819_v51  ;;  %v5425_v2 = vcombine.low %v808_v52, %v820_v53  ;;  %v414_v50 = vld [vmem:[#allocation6 + $0x2f8] sm:$0xff] }
 0x2a4   :  { %4456 = vmatpush1.bf16.msra.mxu0 %v5231_v59  ;;  %v5426_v59 = vcombine.high %v808_v52, %v820_v53 }
 0x2a5   :  { %4538 = vmatpush1.bf16.msra.mxu1 %v5233_v40  ;;  %4457 = vmatprep.subr.bf16.mxu0 %v5256_v60  ;;  %v831_v40 = vld [vmem:[#allocation6 + $0x1000] sm:$0xff] }
 0x2a6   :  { %4539 = vmatprep.subr.bf16.mxu1 %v5258_v61  ;;  %v843_v60 = vld [vmem:[#allocation6 + $0x1060] sm:$0xff]  ;;  %v832_v61 = vld [vmem:[#allocation6 + $0x1008] sm:$0xff] }
 0x2a7   :  { %v5448_v3 = vcombine.high %v831_v40, %v843_v60  ;;  %v5447_v9 = vcombine.low %v831_v40, %v843_v60  ;;  %v5449_v10 = vcombine.low %v832_v61, %v844_v63  ;;  %v438_v40 = vld [vmem:[#allocation6 + $0x3b8] sm:$0xff] }
 0x2a8   :  { %4458 = vmatpush1.bf16.msra.mxu0 %v5255_v4  ;;  %v5450_v4 = vcombine.high %v832_v61, %v844_v63 }
 0x2a9   :  { %4540 = vmatpush1.bf16.msra.mxu1 %v5257_v5  ;;  %4459 = vmatprep.subr.bf16.mxu0 %v5280_v6  ;;  %v855_v5 = vld [vmem:[#allocation6 + $0x10c0] sm:$0xff] }
 0x2aa   :  { %4541 = vmatprep.subr.bf16.mxu1 %v5282_v7  ;;  %v867_v6 = vld [vmem:[#allocation6 + $0x1120] sm:$0xff]  ;;  %v856_v7 = vld [vmem:[#allocation6 + $0x10c8] sm:$0xff] }
 0x2ab   :  { %v5472_v11 = vcombine.high %v855_v5, %v867_v6  ;;  %v5471_v17 = vcombine.low %v855_v5, %v867_v6  ;;  %v5473_v18 = vcombine.low %v856_v7, %v868_v8 }
 0x2ac   :  { %4460 = vmatpush1.bf16.msra.mxu0 %v5279_v12  ;;  %v5474_v12 = vcombine.high %v856_v7, %v868_v8 }
 0x2ad   :  { %4542 = vmatpush1.bf16.msra.mxu1 %v5281_v13  ;;  %4461 = vmatprep.subr.bf16.mxu0 %v5304_v14  ;;  %v879_v13 = vld [vmem:[#allocation6 + $0x1180] sm:$0xff] }
 0x2ae   :  { %4543 = vmatprep.subr.bf16.mxu1 %v5306_v15  ;;  %v891_v14 = vld [vmem:[#allocation6 + $0x11e0] sm:$0xff]  ;;  %v880_v15 = vld [vmem:[#allocation6 + $0x1188] sm:$0xff] }
 0x2af   :  { %v5496_v19 = vcombine.high %v879_v13, %v891_v14  ;;  %v5495_v26 = vcombine.low %v879_v13, %v891_v14  ;;  %v5497_v27 = vcombine.low %v880_v15, %v892_v16 }
 0x2b0   :  { %4462 = vmatpush1.bf16.msra.mxu0 %v5303_v21  ;;  %v5498_v21 = vcombine.high %v880_v15, %v892_v16 }
 0x2b1   :  { %4544 = vmatpush1.bf16.msra.mxu1 %v5305_v22  ;;  %4472 = vmatprep.subr.bf16.mxu0 %v5328_v23  ;;  %v329_v22 = vld [vmem:[#allocation6 + $0x50] sm:$0xff] }
 0x2b2   :  { %4554 = vmatprep.subr.bf16.mxu1 %v5330_v24  ;;  %v341_v23 = vld [vmem:[#allocation6 + $0xb0] sm:$0xff]  ;;  %v330_v24 = vld [vmem:[#allocation6 + $0x58] sm:$0xff] }
 0x2b3   :  { %4464 = vmatmul.mubr.bf16.vlgmr.msra.gmra.mrb[20].mxu0 %v5795_v55  ;;  %v4948_v28 = vcombine.high %v329_v22, %v341_v23  ;;  %v4949_v35 = vcombine.low %v330_v24, %v342_v25 }
 0x2b4   :  { %4546 = vmatmul.mubr.bf16.vlgmr.msra.gmra.mrb[20].mxu1 %v5795_v55  ;;  %4473 = vmatpush1.bf16.msra.mxu0 %v5327_v29  ;;  %v4950_v29 = vcombine.high %v330_v24, %v342_v25  ;;  %v510_v24 = vld [vmem:[#allocation6 + $0x5f8] sm:$0xff] }
 0x2b5   :  { %4555 = vmatpush1.bf16.msra.mxu1 %v5329_v30  ;;  %4474 = vmatprep.subr.bf16.mxu0 %v5352_v31  ;;  %v353_v30 = vld [vmem:[#allocation6 + $0x110] sm:$0xff] }
 0x2b6   :  { %4556 = vmatprep.subr.bf16.mxu1 %v5354_v32  ;;  %4504 = vmatprep.mubr.bf16.mxu0 %v5700_v0  ;;  %v365_v31 = vld [vmem:[#allocation6 + $0x170] sm:$0xff]  ;;  %v4947_v32 = vcombine.low %v329_v22, %v341_v23  ;;  %v498_v23 = vld [vmem:[#allocation6 + $0x598] sm:$0xff] }
 0x2b7   :  { %4586 = vmatprep.mubr.bf16.mxu1 %v5700_v0  ;;  %v4972_v38 = vcombine.high %v353_v30, %v365_v31  ;;  %v4971_v43 = vcombine.low %v353_v30, %v365_v31 }
 0x2b8   :  { %4475 = vmatpush1.bf16.msra.mxu0 %v5351_v36  ;;  %v377_v36 = vld [vmem:[#allocation6 + $0x1d0] sm:$0xff] }
 0x2b9   :  { %4557 = vmatpush1.bf16.msra.mxu1 %v5353_v37  ;;  %4476 = vmatprep.subr.bf16.mxu0 %v5376_v39  ;;  %v389_v37 = vld [vmem:[#allocation6 + $0x230] sm:$0xff]  ;;  %v4974_v39 = vcombine.high %v354_v33, %v366_v34 }
 0x2ba   :  { %4558 = vmatprep.subr.bf16.mxu1 %v5378_v41  ;;  %v378_v41 = vld [vmem:[#allocation6 + $0x1d8] sm:$0xff]  ;;  %v4996_v45 = vcombine.high %v377_v36, %v389_v37  ;;  %v4995_v51 = vcombine.low %v377_v36, %v389_v37  ;;  %v521_v36 = vld [vmem:[#allocation6 + $0x650] sm:$0xff] }
 0x2bb   :  { %v4997_v52 = vcombine.low %v378_v41, %v390_v42  ;;  %v533_v37 = vld [vmem:[#allocation6 + $0x6b0] sm:$0xff] }
 0x2bc   :  { %4477 = vmatpush1.bf16.msra.mxu0 %v5375_v46  ;;  %v4998_v46 = vcombine.high %v378_v41, %v390_v42  ;;  %v522_v41 = vld [vmem:[#allocation6 + $0x658] sm:$0xff] }
 0x2bd   :  { %4559 = vmatpush1.bf16.msra.mxu1 %v5377_v47  ;;  %4478 = vmatprep.subr.bf16.mxu0 %v5400_v48  ;;  %v401_v47 = vld [vmem:[#allocation6 + $0x290] sm:$0xff]  ;;  %v534_v42 = vld [vmem:[#allocation6 + $0x6b8] sm:$0xff] }
 0x2be   :  { %4560 = vmatprep.subr.bf16.mxu1 %v5402_v49  ;;  %v413_v48 = vld [vmem:[#allocation6 + $0x2f0] sm:$0xff]  ;;  %v402_v49 = vld [vmem:[#allocation6 + $0x298] sm:$0xff] }
 0x2bf   :  { %v5020_v53 = vcombine.high %v401_v47, %v413_v48  ;;  %v5021_v60 = vcombine.low %v402_v49, %v414_v50 }
 0x2c0   :  { %4479 = vmatpush1.bf16.msra.mxu0 %v5399_v56  ;;  %v5022_v56 = vcombine.high %v402_v49, %v414_v50  ;;  %v557_v49 = vld [vmem:[#allocation6 + $0x770] sm:$0xff]  ;;  %v546_v50 = vld [vmem:[#allocation6 + $0x718] sm:$0xff] }
 0x2c1   :  { %4561 = vmatpush1.bf16.msra.mxu1 %v5401_v57  ;;  %4480 = vmatprep.subr.bf16.mxu0 %v5424_v58  ;;  %v425_v57 = vld [vmem:[#allocation6 + $0x350] sm:$0xff] }
 0x2c2   :  { %4562 = vmatprep.subr.bf16.mxu1 %v5426_v59  ;;  %v437_v58 = vld [vmem:[#allocation6 + $0x3b0] sm:$0xff]  ;;  %v426_v59 = vld [vmem:[#allocation6 + $0x358] sm:$0xff] }
 0x2c3   :  { %v5044_v61 = vcombine.high %v425_v57, %v437_v58  ;;  %v5046_v63 = vcombine.high %v426_v59, %v438_v40  ;;  %v5043_v5 = vcombine.low %v425_v57, %v437_v58  ;;  %v5045_v6 = vcombine.low %v426_v59, %v438_v40  ;;  %v569_v58 = vld [vmem:[#allocation6 + $0x7d0] sm:$0xff]  ;;  %v570_v40 = vld [vmem:[#allocation6 + $0x7d8] sm:$0xff] }
 0x2c4   :  { %4481 = vmatpush1.bf16.msra.mxu0 %v5423_v1  ;;  %v449_v1 = vld [vmem:[#allocation6 + $0x410] sm:$0xff] }
 0x2c5   :  { %4563 = vmatpush1.bf16.msra.mxu1 %v5425_v2  ;;  %4482 = vmatprep.subr.bf16.mxu0 %v5448_v3  ;;  %v461_v2 = vld [vmem:[#allocation6 + $0x470] sm:$0xff]  ;;  %v450_v3 = vld [vmem:[#allocation6 + $0x418] sm:$0xff] }
 0x2c6   :  { %4564 = vmatprep.subr.bf16.mxu1 %v5450_v4  ;;  %v462_v4 = vld [vmem:[#allocation6 + $0x478] sm:$0xff]  ;;  %v5068_v7 = vcombine.high %v449_v1, %v461_v2  ;;  %v5067_v13 = vcombine.low %v449_v1, %v461_v2  ;;  %v581_v59 = vld [vmem:[#allocation6 + $0x830] sm:$0xff] }
 0x2c7   :  { %v5070_v8 = vcombine.high %v450_v3, %v462_v4  ;;  %v5069_v14 = vcombine.low %v450_v3, %v462_v4  ;;  %v593_v2 = vld [vmem:[#allocation6 + $0x890] sm:$0xff]  ;;  %v594_v4 = vld [vmem:[#allocation6 + $0x898] sm:$0xff] }
 0x2c8   :  { %4483 = vmatpush1.bf16.msra.mxu0 %v5447_v9  ;;  %v473_v9 = vld [vmem:[#allocation6 + $0x4d0] sm:$0xff] }
 0x2c9   :  { %4565 = vmatpush1.bf16.msra.mxu1 %v5449_v10  ;;  %4484 = vmatprep.subr.bf16.mxu0 %v5472_v11  ;;  %v485_v10 = vld [vmem:[#allocation6 + $0x530] sm:$0xff]  ;;  %v474_v11 = vld [vmem:[#allocation6 + $0x4d8] sm:$0xff] }
 0x2ca   :  { %4566 = vmatprep.subr.bf16.mxu1 %v5474_v12  ;;  %v486_v12 = vld [vmem:[#allocation6 + $0x538] sm:$0xff]  ;;  %v5092_v15 = vcombine.high %v473_v9, %v485_v10  ;;  %v605_v3 = vld [vmem:[#allocation6 + $0x8f0] sm:$0xff] }
 0x2cc   :  { %4485 = vmatpush1.bf16.msra.mxu0 %v5471_v17  ;;  %v5094_v17 = vcombine.high %v474_v11, %v486_v12 }
 0x2cd   :  { %4567 = vmatpush1.bf16.msra.mxu1 %v5473_v18  ;;  %4486 = vmatprep.subr.bf16.mxu0 %v5496_v19  ;;  %v497_v18 = vld [vmem:[#allocation6 + $0x590] sm:$0xff] }
 0x2ce   :  { %4568 = vmatprep.subr.bf16.mxu1 %v5498_v21  ;;  %v509_v19 = vld [vmem:[#allocation6 + $0x5f0] sm:$0xff] }
 0x2cf   :  { %v5116_v33 = vcombine.high %v497_v18, %v509_v19 }
 0x2d0   :  { %4487 = vmatpush1.bf16.msra.mxu0 %v5495_v26 }
 0x2d1   :  { %4569 = vmatpush1.bf16.msra.mxu1 %v5497_v27  ;;  %4595 = vmatprep.subr.bf16.mxu0 %v4948_v28  ;;  %v5091_v28 = vcombine.low %v473_v9, %v485_v10  ;;  %v617_v10 = vld [vmem:[#allocation6 + $0x950] sm:$0xff] }
 0x2d2   :  { %4677 = vmatprep.subr.bf16.mxu1 %v4950_v29 }
 0x2d3   :  { %4505 = vmatmul.mubr.bf16.vlgmr.msra.gmra.mrb[20].mxu0 %v5808_v62 }
 0x2d4   :  { %4587 = vmatmul.mubr.bf16.vlgmr.msra.gmra.mrb[20].mxu1 %v5808_v62  ;;  %4596 = vmatpush1.bf16.msra.mxu0 %v4947_v32  ;;  %v5093_v32 = vcombine.low %v474_v11, %v486_v12  ;;  %v629_v11 = vld [vmem:[#allocation6 + $0x9b0] sm:$0xff]  ;;  %v618_v12 = vld [vmem:[#allocation6 + $0x958] sm:$0xff] }
 0x2d5   :  { %4627 = vmatprep.mubr.bf16.mxu0 %v5793_v54  ;;  %4678 = vmatpush1.bf16.msra.mxu1 %v4949_v35 }
 0x2d6   :  { %4709 = vmatprep.mubr.bf16.mxu1 %v5793_v54  ;;  %4597 = vmatprep.subr.bf16.mxu0 %v4972_v38  ;;  %v5019_v54 = vcombine.low %v401_v47, %v413_v48  ;;  %v5118_v38 = vcombine.high %v498_v23, %v510_v24  ;;  %v5142_v47 = vcombine.high %v522_v41, %v534_v42  ;;  %v545_v48 = vld [vmem:[#allocation6 + $0x710] sm:$0xff] }
 0x2d7   :  { %4679 = vmatprep.subr.bf16.mxu1 %v4974_v39 }
 0x2d8   :  { %4598 = vmatpush1.bf16.msra.mxu0 %v4971_v43  ;;  %v5115_v43 = vcombine.low %v497_v18, %v509_v19  ;;  %v641_v18 = vld [vmem:[#allocation6 + $0xa10] sm:$0xff] }
 0x2d9   :  { %4680 = vmatpush1.bf16.msra.mxu1 %v4973_v44  ;;  %4599 = vmatprep.subr.bf16.mxu0 %v4996_v45  ;;  %v5117_v45 = vcombine.low %v498_v23, %v510_v24  ;;  %v653_v19 = vld [vmem:[#allocation6 + $0xa70] sm:$0xff]  ;;  %v5235_v23 = vcombine.low %v617_v10, %v629_v11 }
 0x2da   :  { %4681 = vmatprep.subr.bf16.mxu1 %v4998_v46  ;;  %v5140_v46 = vcombine.high %v521_v36, %v533_v37 }
 0x2dc   :  { %4600 = vmatpush1.bf16.msra.mxu0 %v4995_v51  ;;  %v558_v51 = vld [vmem:[#allocation6 + $0x778] sm:$0xff] }
 0x2dd   :  { %4682 = vmatpush1.bf16.msra.mxu1 %v4997_v52  ;;  %4601 = vmatprep.subr.bf16.mxu0 %v5020_v53  ;;  %v5139_v52 = vcombine.low %v521_v36, %v533_v37  ;;  %v5141_v53 = vcombine.low %v522_v41, %v534_v42  ;;  %v5166_v57 = vcombine.high %v546_v50, %v558_v51  ;;  %v690_v36 = vld [vmem:[#allocation6 + $0xb98] sm:$0xff] }
 0x2de   :  { %4683 = vmatprep.subr.bf16.mxu1 %v5022_v56  ;;  %v5164_v56 = vcombine.high %v545_v48, %v557_v49  ;;  %v702_v37 = vld [vmem:[#allocation6 + $0xbf8] sm:$0xff] }
 0x2e0   :  { %4602 = vmatpush1.bf16.msra.mxu0 %v5019_v54  ;;  %v582_v54 = vld [vmem:[#allocation6 + $0x838] sm:$0xff] }
 0x2e1   :  { %4684 = vmatpush1.bf16.msra.mxu1 %v5021_v60  ;;  %4603 = vmatprep.subr.bf16.mxu0 %v5044_v61  ;;  %v5163_v60 = vcombine.low %v545_v48, %v557_v49  ;;  %v5165_v61 = vcombine.low %v546_v50, %v558_v51  ;;  %v5190_v1 = vcombine.high %v570_v40, %v582_v54 }
 0x2e2   :  { %4685 = vmatprep.subr.bf16.mxu1 %v5046_v63  ;;  %v5188_v63 = vcombine.high %v569_v58, %v581_v59  ;;  %v5309_v49 = vcombine.low %v690_v36, %v702_v37 }
 0x2e4   :  { %4604 = vmatpush1.bf16.msra.mxu0 %v5043_v5  ;;  %v606_v5 = vld [vmem:[#allocation6 + $0x8f8] sm:$0xff] }
 0x2e5   :  { %4686 = vmatpush1.bf16.msra.mxu1 %v5045_v6  ;;  %4605 = vmatprep.subr.bf16.mxu0 %v5068_v7  ;;  %v5187_v6 = vcombine.low %v569_v58, %v581_v59  ;;  %v5189_v7 = vcombine.low %v570_v40, %v582_v54  ;;  %v5214_v9 = vcombine.high %v594_v4, %v606_v5 }
 0x2e6   :  { %v4178_v16 = vpop.f32.mrb[12].mxu0  ;;  %4687 = vmatprep.subr.bf16.mxu1 %v5070_v8  ;;  %v5212_v8 = vcombine.high %v593_v2, %v605_v3 }
 0x2e7   :  { %v4260_v21 = vpop.f32.mrb[12].mxu1  ;;  %v4180_v22 = vpop.f32.mrb[13].mxu0 }
 0x2e8   :  { %v4817_v25 = vcombine.low %v4178_v16, %v4180_v22  ;;  %v4262_v26 = vpop.f32.mrb[13].mxu1  ;;  %v4182_v27 = vpop.f32.mrb[14].mxu0  ;;  %4606 = vmatpush1.bf16.msra.mxu0 %v5067_v13  ;;  %v630_v13 = vld [vmem:[#allocation6 + $0x9b8] sm:$0xff]  ;;  %v5236_v16 = vcombine.high %v617_v10, %v629_v11 }
 0x2e9   :  { %v4818_v29 = vcombine.low %v4260_v21, %v4262_v26  ;;  %v4264_v30 = vpop.f32.mrb[14].mxu1  ;;  %4688 = vmatpush1.bf16.msra.mxu1 %v5069_v14  ;;  %v4183_v31 = vpop.f32.mrb[15].mxu0  ;;  %4607 = vmatprep.subr.bf16.mxu0 %v5092_v15  ;;  %v5211_v14 = vcombine.low %v593_v2, %v605_v3  ;;  %v5213_v15 = vcombine.low %v594_v4, %v606_v5  ;;  %v642_v21 = vld [vmem:[#allocation6 + $0xa18] sm:$0xff]  ;;  %v665_v27 = vld [vmem:[#allocation6 + $0xad0] sm:$0xff] }
 0x2ea   :  { %v4825_v34 = vrot.slane %v4817_v25, %v5831_v20  ;;  %v4265_v35 = vpop.f32.mrb[15].mxu1  ;;  %4689 = vmatprep.subr.bf16.mxu1 %v5094_v17  ;;  %v5238_v17 = vcombine.high %v618_v12, %v630_v13  ;;  %v654_v22 = vld [vmem:[#allocation6 + $0xa78] sm:$0xff]  ;;  %v5237_v24 = vcombine.low %v618_v12, %v630_v13  ;;  %v5260_v25 = vcombine.high %v641_v18, %v653_v19  ;;  %v809_v13 = vld [vmem:[#allocation6 + $0xf50] sm:$0xff] }
 0x2eb   :  { %v4832_v39 = vrot.slane %v4818_v29, %v5831_v20  ;;  %v5262_v26 = vcombine.high %v642_v21, %v654_v22  ;;  %v666_v29 = vld [vmem:[#allocation6 + $0xad8] sm:$0xff]  ;;  %v5259_v31 = vcombine.low %v641_v18, %v653_v19  ;;  %v689_v35 = vld [vmem:[#allocation6 + $0xb90] sm:$0xff] }
 0x2ec   :  { %4608 = vmatpush1.bf16.msra.mxu0 %v5091_v28  ;;  %v677_v28 = vld [vmem:[#allocation6 + $0xb30] sm:$0xff]  ;;  %v678_v30 = vld [vmem:[#allocation6 + $0xb38] sm:$0xff] }
 0x2ed   :  { %v4833_v44 = vcombine.low %v4825_v34, %v4832_v39  ;;  %4690 = vmatpush1.bf16.msra.mxu1 %v5093_v32  ;;  %4609 = vmatprep.subr.bf16.mxu0 %v5116_v33  ;;  %v5261_v32 = vcombine.low %v642_v21, %v654_v22  ;;  %v5284_v33 = vcombine.high %v665_v27, %v677_v28  ;;  %v833_v21 = vld [vmem:[#allocation6 + $0x1010] sm:$0xff] }
 0x2ee   :  { %4691 = vmatprep.subr.bf16.mxu1 %v5118_v38  ;;  %v5286_v34 = vcombine.high %v666_v29, %v678_v30  ;;  %v701_v38 = vld [vmem:[#allocation6 + $0xbf0] sm:$0xff]  ;;  %v5283_v39 = vcombine.low %v665_v27, %v677_v28  ;;  %v5285_v41 = vcombine.low %v666_v29, %v678_v30 }
 0x2ef   :  { %4893 = vst [vmem:[%s5889_s4 + $0x10] sm:$0xff] %v4833_v44  ;;  %v5308_v42 = vcombine.high %v689_v35, %v701_v38  ;;  %v713_v44 = vld [vmem:[#allocation6 + $0xc50] sm:$0xff]  ;;  %v5307_v48 = vcombine.low %v689_v35, %v701_v38 }
 0x2f0   :  { %4610 = vmatpush1.bf16.msra.mxu0 %v5115_v43  ;;  %v5310_v43 = vcombine.high %v690_v36, %v702_v37  ;;  %v845_v22 = vld [vmem:[#allocation6 + $0x1070] sm:$0xff] }
 0x2f1   :  { %4692 = vmatpush1.bf16.msra.mxu1 %v5117_v45  ;;  %4611 = vmatprep.subr.bf16.mxu0 %v5140_v46  ;;  %v725_v45 = vld [vmem:[#allocation6 + $0xcb0] sm:$0xff]  ;;  %v714_v46 = vld [vmem:[#allocation6 + $0xc58] sm:$0xff]  ;;  %v5452_v27 = vcombine.high %v833_v21, %v845_v22 }
 0x2f2   :  { %4693 = vmatprep.subr.bf16.mxu1 %v5142_v47  ;;  %v726_v47 = vld [vmem:[#allocation6 + $0xcb8] sm:$0xff]  ;;  %v5332_v50 = vcombine.high %v713_v44, %v725_v45  ;;  %v5331_v58 = vcombine.low %v713_v44, %v725_v45  ;;  %v857_v29 = vld [vmem:[#allocation6 + $0x10d0] sm:$0xff] }
 0x2f3   :  { %v5334_v51 = vcombine.high %v714_v46, %v726_v47  ;;  %v5333_v59 = vcombine.low %v714_v46, %v726_v47  ;;  %v869_v30 = vld [vmem:[#allocation6 + $0x1130] sm:$0xff] }
 0x2f4   :  { %4612 = vmatpush1.bf16.msra.mxu0 %v5139_v52  ;;  %v737_v52 = vld [vmem:[#allocation6 + $0xd10] sm:$0xff]  ;;  %v5476_v35 = vcombine.high %v857_v29, %v869_v30 }
 0x2f5   :  { %4694 = vmatpush1.bf16.msra.mxu1 %v5141_v53  ;;  %4613 = vmatprep.subr.bf16.mxu0 %v5164_v56  ;;  %v749_v53 = vld [vmem:[#allocation6 + $0xd70] sm:$0xff]  ;;  %v738_v56 = vld [vmem:[#allocation6 + $0xd18] sm:$0xff] }
 0x2f6   :  { %4695 = vmatprep.subr.bf16.mxu1 %v5166_v57  ;;  %v750_v57 = vld [vmem:[#allocation6 + $0xd78] sm:$0xff]  ;;  %v5356_v40 = vcombine.high %v737_v52, %v749_v53  ;;  %v5355_v2 = vcombine.low %v737_v52, %v749_v53  ;;  %v881_v36 = vld [vmem:[#allocation6 + $0x1190] sm:$0xff] }
 0x2f7   :  { %v5358_v54 = vcombine.high %v738_v56, %v750_v57  ;;  %v5357_v3 = vcombine.low %v738_v56, %v750_v57  ;;  %v893_v37 = vld [vmem:[#allocation6 + $0x11f0] sm:$0xff] }
 0x2f8   :  { %4614 = vmatpush1.bf16.msra.mxu0 %v5163_v60  ;;  %v761_v60 = vld [vmem:[#allocation6 + $0xdd0] sm:$0xff]  ;;  %v5500_v44 = vcombine.high %v881_v36, %v893_v37  ;;  %v5499_v46 = vcombine.low %v881_v36, %v893_v37 }
 0x2f9   :  { %4696 = vmatpush1.bf16.msra.mxu1 %v5165_v61  ;;  %4615 = vmatprep.subr.bf16.mxu0 %v5188_v63  ;;  %v773_v61 = vld [vmem:[#allocation6 + $0xe30] sm:$0xff]  ;;  %v762_v63 = vld [vmem:[#allocation6 + $0xdd8] sm:$0xff] }
 0x2fa   :  { %4697 = vmatprep.subr.bf16.mxu1 %v5190_v1  ;;  %v774_v1 = vld [vmem:[#allocation6 + $0xe38] sm:$0xff]  ;;  %v5380_v4 = vcombine.high %v761_v60, %v773_v61  ;;  %v5379_v10 = vcombine.low %v761_v60, %v773_v61 }
 0x2fb   :  { %v5382_v5 = vcombine.high %v762_v63, %v774_v1 }
 0x2fc   :  { %4616 = vmatpush1.bf16.msra.mxu0 %v5187_v6  ;;  %v785_v6 = vld [vmem:[#allocation6 + $0xe90] sm:$0xff] }
 0x2fd   :  { %4698 = vmatpush1.bf16.msra.mxu1 %v5189_v7  ;;  %4617 = vmatprep.subr.bf16.mxu0 %v5212_v8  ;;  %v797_v7 = vld [vmem:[#allocation6 + $0xef0] sm:$0xff]  ;;  %v786_v8 = vld [vmem:[#allocation6 + $0xe98] sm:$0xff] }
 0x2fe   :  { %4699 = vmatprep.subr.bf16.mxu1 %v5214_v9  ;;  %v798_v9 = vld [vmem:[#allocation6 + $0xef8] sm:$0xff]  ;;  %v5404_v11 = vcombine.high %v785_v6, %v797_v7 }
 0x2ff   :  { %v5406_v12 = vcombine.high %v786_v8, %v798_v9  ;;  %v5405_v18 = vcombine.low %v786_v8, %v798_v9 }
 0x300   :  { %4618 = vmatpush1.bf16.msra.mxu0 %v5211_v14  ;;  %v821_v14 = vld [vmem:[#allocation6 + $0xfb0] sm:$0xff] }
 0x301   :  { %4700 = vmatpush1.bf16.msra.mxu1 %v5213_v15  ;;  %4619 = vmatprep.subr.bf16.mxu0 %v5236_v16  ;;  %v810_v15 = vld [vmem:[#allocation6 + $0xf58] sm:$0xff]  ;;  %v5428_v19 = vcombine.high %v809_v13, %v821_v14 }
 0x302   :  { %4701 = vmatprep.subr.bf16.mxu1 %v5238_v17  ;;  %v822_v16 = vld [vmem:[#allocation6 + $0xfb8] sm:$0xff]  ;;  %v5403_v17 = vcombine.low %v785_v6, %v797_v7 }
 0x304   :  { %4620 = vmatpush1.bf16.msra.mxu0 %v5235_v23  ;;  %v834_v23 = vld [vmem:[#allocation6 + $0x1018] sm:$0xff] }
 0x305   :  { %4702 = vmatpush1.bf16.msra.mxu1 %v5237_v24  ;;  %4621 = vmatprep.subr.bf16.mxu0 %v5260_v25  ;;  %v846_v24 = vld [vmem:[#allocation6 + $0x1078] sm:$0xff]  ;;  %v5427_v25 = vcombine.low %v809_v13, %v821_v14 }
 0x306   :  { %4703 = vmatprep.subr.bf16.mxu1 %v5262_v26  ;;  %v5429_v26 = vcombine.low %v810_v15, %v822_v16  ;;  %v5454_v28 = vcombine.high %v834_v23, %v846_v24 }
 0x308   :  { %4622 = vmatpush1.bf16.msra.mxu0 %v5259_v31  ;;  %v858_v31 = vld [vmem:[#allocation6 + $0x10d8] sm:$0xff] }
 0x309   :  { %4704 = vmatpush1.bf16.msra.mxu1 %v5261_v32  ;;  %4623 = vmatprep.subr.bf16.mxu0 %v5284_v33  ;;  %v870_v32 = vld [vmem:[#allocation6 + $0x1138] sm:$0xff]  ;;  %v5451_v33 = vcombine.low %v833_v21, %v845_v22 }
 0x30a   :  { %4705 = vmatprep.subr.bf16.mxu1 %v5286_v34  ;;  %v5453_v34 = vcombine.low %v834_v23, %v846_v24  ;;  %v5478_v38 = vcombine.high %v858_v31, %v870_v32 }
 0x30c   :  { %4624 = vmatpush1.bf16.msra.mxu0 %v5283_v39  ;;  %v882_v39 = vld [vmem:[#allocation6 + $0x1198] sm:$0xff] }
 0x30d   :  { %4706 = vmatpush1.bf16.msra.mxu1 %v5285_v41  ;;  %4625 = vmatprep.subr.bf16.mxu0 %v5308_v42  ;;  %v894_v41 = vld [vmem:[#allocation6 + $0x11f8] sm:$0xff]  ;;  %v5475_v42 = vcombine.low %v857_v29, %v869_v30 }
 0x30e   :  { %4707 = vmatprep.subr.bf16.mxu1 %v5310_v43  ;;  %v5477_v43 = vcombine.low %v858_v31, %v870_v32  ;;  %v5502_v45 = vcombine.high %v882_v39, %v894_v41  ;;  %v5501_v47 = vcombine.low %v882_v39, %v894_v41 }
 0x310   :  { %4626 = vmatpush1.bf16.msra.mxu0 %v5307_v48 }
 0x311   :  { %4708 = vmatpush1.bf16.msra.mxu1 %v5309_v49  ;;  %4636 = vmatprep.subr.bf16.mxu0 %v5332_v50 }
 0x312   :  { %4718 = vmatprep.subr.bf16.mxu1 %v5334_v51 }
 0x313   :  { %4628 = vmatmul.mubr.bf16.vlgmr.msra.gmra.mrb[24].mxu0 %v5795_v55 }
 0x314   :  { %4710 = vmatmul.mubr.bf16.vlgmr.msra.gmra.mrb[24].mxu1 %v5795_v55  ;;  %4637 = vmatpush1.bf16.msra.mxu0 %v5331_v58  ;;  %v5381_v55 = vcombine.low %v762_v63, %v774_v1 }
 0x315   :  { %4719 = vmatpush1.bf16.msra.mxu1 %v5333_v59  ;;  %4638 = vmatprep.subr.bf16.mxu0 %v5356_v40 }
 0x316   :  { %4720 = vmatprep.subr.bf16.mxu1 %v5358_v54  ;;  %4668 = vmatprep.mubr.bf16.mxu0 %v5700_v0 }
 0x317   :  { %4750 = vmatprep.mubr.bf16.mxu1 %v5700_v0  ;;  %v5430_v0 = vcombine.high %v810_v15, %v822_v16 }
 0x318   :  { %4639 = vmatpush1.bf16.msra.mxu0 %v5355_v2 }
 0x319   :  { %4721 = vmatpush1.bf16.msra.mxu1 %v5357_v3  ;;  %4640 = vmatprep.subr.bf16.mxu0 %v5380_v4 }
 0x31a   :  { %4722 = vmatprep.subr.bf16.mxu1 %v5382_v5 }
 0x31c   :  { %4641 = vmatpush1.bf16.msra.mxu0 %v5379_v10 }
 0x31d   :  { %4723 = vmatpush1.bf16.msra.mxu1 %v5381_v55  ;;  %4642 = vmatprep.subr.bf16.mxu0 %v5404_v11 }
 0x31e   :  { %4724 = vmatprep.subr.bf16.mxu1 %v5406_v12 }
 0x320   :  { %4643 = vmatpush1.bf16.msra.mxu0 %v5403_v17 }
 0x321   :  { %4725 = vmatpush1.bf16.msra.mxu1 %v5405_v18  ;;  %4644 = vmatprep.subr.bf16.mxu0 %v5428_v19 }
 0x322   :  { %4726 = vmatprep.subr.bf16.mxu1 %v5430_v0 }
 0x324   :  { %4645 = vmatpush1.bf16.msra.mxu0 %v5427_v25 }
 0x325   :  { %4727 = vmatpush1.bf16.msra.mxu1 %v5429_v26  ;;  %4646 = vmatprep.subr.bf16.mxu0 %v5452_v27 }
 0x326   :  { %4728 = vmatprep.subr.bf16.mxu1 %v5454_v28 }
 0x328   :  { %4647 = vmatpush1.bf16.msra.mxu0 %v5451_v33 }
 0x329   :  { %4729 = vmatpush1.bf16.msra.mxu1 %v5453_v34  ;;  %4648 = vmatprep.subr.bf16.mxu0 %v5476_v35 }
 0x32a   :  { %4730 = vmatprep.subr.bf16.mxu1 %v5478_v38 }
 0x32c   :  { %4649 = vmatpush1.bf16.msra.mxu0 %v5475_v42 }
 0x32d   :  { %4731 = vmatpush1.bf16.msra.mxu1 %v5477_v43  ;;  %4650 = vmatprep.subr.bf16.mxu0 %v5500_v44 }
 0x32e   :  { %4732 = vmatprep.subr.bf16.mxu1 %v5502_v45 }
 0x330   :  { %4651 = vmatpush1.bf16.msra.mxu0 %v5499_v46 }
 0x331   :  { %4733 = vmatpush1.bf16.msra.mxu1 %v5501_v47 }
 0x333   :  { %4669 = vmatmul.mubr.bf16.vlgmr.msra.gmra.mrb[24].mxu0 %v5808_v62 }
 0x334   :  { %4751 = vmatmul.mubr.bf16.vlgmr.msra.gmra.mrb[24].mxu1 %v5808_v62 }
 0x346   :  { %v4342_v48 = vpop.f32.mrb[16].mxu0 }
 0x347   :  { %v4424_v49 = vpop.f32.mrb[16].mxu1  ;;  %v4344_v50 = vpop.f32.mrb[17].mxu0 }
 0x348   :  { %v4834_v51 = vcombine.low %v4342_v48, %v4344_v50  ;;  %v4426_v52 = vpop.f32.mrb[17].mxu1  ;;  %v4346_v53 = vpop.f32.mrb[18].mxu0 }
 0x349   :  { %v4835_v56 = vcombine.low %v4424_v49, %v4426_v52  ;;  %v4428_v57 = vpop.f32.mrb[18].mxu1  ;;  %v4347_v58 = vpop.f32.mrb[19].mxu0 }
 0x34a   :  { %v4842_v59 = vrot.slane %v4834_v51, %v5831_v20  ;;  %v4429_v40 = vpop.f32.mrb[19].mxu1 }
 0x34b   :  { %v4849_v54 = vrot.slane %v4835_v56, %v5831_v20 }
 0x34d   :  { %v4850_v60 = vcombine.low %v4842_v59, %v4849_v54 }
 0x34f   :  { %4894 = vst [vmem:[%s5889_s4 + $0x18] sm:$0xff] %v4850_v60 }
 0x3a6   :  { %v4506_v62 = vpop.f32.mrb[20].mxu0 }
 0x3a7   :  { %v4588_v61 = vpop.f32.mrb[20].mxu1  ;;  %v4508_v63 = vpop.f32.mrb[21].mxu0 }
 0x3a8   :  { %v4851_v1 = vcombine.low %v4506_v62, %v4508_v63  ;;  %v4590_v2 = vpop.f32.mrb[21].mxu1  ;;  %v4510_v3 = vpop.f32.mrb[22].mxu0 }
 0x3a9   :  { %v4852_v4 = vcombine.low %v4588_v61, %v4590_v2  ;;  %v4592_v5 = vpop.f32.mrb[22].mxu1  ;;  %v4511_v6 = vpop.f32.mrb[23].mxu0 }
 0x3aa   :  { %v4859_v7 = vrot.slane %v4851_v1, %v5831_v20  ;;  %v4593_v8 = vpop.f32.mrb[23].mxu1 }
 0x3ab   :  { %v4866_v9 = vrot.slane %v4852_v4, %v5831_v20 }
 0x3ad   :  { %v4867_v10 = vcombine.low %v4859_v7, %v4866_v9 }
 0x3af   :  { %4895 = vst [vmem:[%s5889_s4 + $0x20] sm:$0xff] %v4867_v10 }
 0x406   :  { %v4670_v55 = vpop.f32.mrb[24].mxu0 }
 0x407   :  { %v4752_v11 = vpop.f32.mrb[24].mxu1  ;;  %v4672_v12 = vpop.f32.mrb[25].mxu0 }
 0x408   :  { %v4868_v13 = vcombine.low %v4670_v55, %v4672_v12  ;;  %v4754_v14 = vpop.f32.mrb[25].mxu1  ;;  %v4674_v15 = vpop.f32.mrb[26].mxu0 }
 0x409   :  { %v4869_v16 = vcombine.low %v4752_v11, %v4754_v14  ;;  %v4756_v17 = vpop.f32.mrb[26].mxu1  ;;  %v4675_v18 = vpop.f32.mrb[27].mxu0 }
 0x40a   :  { %v4876_v19 = vrot.slane %v4868_v13, %v5831_v20  ;;  %v4757_v0 = vpop.f32.mrb[27].mxu1 }
 0x40b   :  { %v4883_v21 = vrot.slane %v4869_v16, %v5831_v20 }
 0x40d   :  { %v4884_v22 = vcombine.low %v4876_v19, %v4883_v21 }
 0x40f   :  { %4896 = vst [vmem:[%s5889_s4 + $0x28] sm:$0xff] %v4884_v22 }
 0x410   :  { %4901 = vsyncpa [#allocation3], 1 }
 0x411   :  { %4902 = vsyncpa [#allocation5], 1 }

// kernel: generator_forward.14
= control target key start
LH: loop header
LB: loop body
LE: loop exit
PB: predicated region body
PF: predicated region fallthrough
CT: control target
= control target key end

     0   :  { %s741_s9 = smov 0   ;;  %s839_s0 = inlined_call_operand.vmem [shape: bf16[512,48], index: 0, kind: input, shape index: {}]   ;;  %s840_s1 = inlined_call_operand.vmem [shape: bf16[48,128], index: 1, kind: input, shape index: {}]   ;;  %s841_s2 = inlined_call_operand.vmem [shape: f32[512,128], index: 2, kind: output, shape index: {}]  }
   0x1 LB: > { %s582_s10 = sadd.s32 4294967295, %s724_s9   ;;  %p586_p0 = scmp.ge.s32.totalorder %s724_s9, 1  ;;  %s724_s9 = sphi %s741_s9, %s12_s9  }
   0x2   : > { %p113_p1 = scmp.lt.s32.totalorder %s724_s9, 3 }
   0x4   : > { %p114_p2 = pnand %p586_p0, %p113_p1 }
   0x5   : > { %v699_v0 = vld [vmem:[%s840_s1] sm:$0xff] (!%p114_p2)   ;;  %s587_s13 = sshll.u32 (!%p114_p2), %s582_s10, 5  ;;  %v700_v1 = vld [vmem:[%s840_s1 + $0x8] sm:$0xff] (!%p114_p2)   ;;  %v701_v2 = vld [vmem:[%s840_s1 + $0x10] sm:$0xff] (!%p114_p2)   ;;  %vm284_vm0 = vcmask (!%p114_p2), 392192  }
   0x6   : > { %117 = sbr.rel (%p114_p2) target bundleno = 259 (0x103), region = 28  ;;  %p136_p3 = scmp.lt.s32.totalorder (!%p114_p2), %s587_s13, 63  ;;  %647 = vmatprep.subr.bf16.mxu0 (!%p114_p2), %v699_v0  ;;  %685 = vmatprep.subr.bf16.mxu1 (!%p114_p2), %v699_v0 }
   0x7   : > { %648 = vmatpush3.bf16.msra.mxu0 (!%p114_p2), %v699_v0  ;;  %688 = vmatpush3.bf16.msra.mxu1 (!%p114_p2), %v699_v0 }
   0x8   : > { %649 = vmatprep.subr.bf16.mxu0 (!%p114_p2), %v700_v1  ;;  %686 = vmatprep.subr.bf16.mxu1 (!%p114_p2), %v700_v1 }
   0xb   : > { %650 = vmatpush3.bf16.msra.mxu0 (!%p114_p2), %v700_v1  ;;  %689 = vmatpush3.bf16.msra.mxu1 (!%p114_p2), %v700_v1 }
   0xc   : > { %651 = vmatprep.subr.bf16.mxu0 (!%p114_p2), %v701_v2  ;;  %687 = vmatprep.subr.bf16.mxu1 (!%p114_p2), %v701_v2 }
   0xd   : > { %s843_s13 = smov (!%p136_p3, %s587_s13), 63 }
   0xe   : > { %s588_s18 = sshll.u32 %s843_s13, 2  ;;  %s590_s22 = sshll.u32 %s843_s13, 3 }
   0xf   : > { %s764_s21 = scalar_lea.vmem %s839_s0, %s588_s18  ;;  %652 = vmatpush3.bf16.msra.mxu0 %v701_v2  ;;  %690 = vmatpush3.bf16.msra.mxu1 %v701_v2  ;;  %s802_s25 = scalar_lea.vmem %s841_s2, %s590_s22 }
  0x10   : > { %v702_v3 = vld [vmem:[%s764_s21] sm:$0xff]   ;;  %v704_v5 = vld [vmem:[%s764_s21 + $0x8] sm:$0xff]   ;;  %v706_v7 = vld [vmem:[%s764_s21 + $0x10] sm:$0xff]  }
  0x11   : > { %v703_v4 = vld [vmem:[%s764_s21 + $0x40] sm:$0xff]   ;;  %653 = vmatprep.mubr.msk.bf16.mxu0 %vm284_vm0, %v702_v3  ;;  %v705_v6 = vld [vmem:[%s764_s21 + $0x48] sm:$0xff]   ;;  %v707_v8 = vld [vmem:[%s764_s21 + $0x50] sm:$0xff]  }
  0x12   : > { %669 = vmatprep.mubr.msk.bf16.mxu1 %vm284_vm0, %v703_v4  ;;  %654 = vmatmul.mubr.msk.bf16.vlgmr.msra.gmra.mrb[0].mxu0 %vm284_vm0, %v704_v5  ;;  %v708_v9 = vld [vmem:[%s764_s21 + $0x18] sm:$0xff]   ;;  %v710_v11 = vld [vmem:[%s764_s21 + $0x20] sm:$0xff]   ;;  %v712_v13 = vld [vmem:[%s764_s21 + $0x28] sm:$0xff]  }
  0x13   : > { %670 = vmatmul.mubr.msk.bf16.vlgmr.msra.gmra.mrb[0].mxu1 %vm284_vm0, %v705_v6  ;;  %657 = vmatprep.mubr.msk.bf16.mxu0 %vm284_vm0, %v706_v7  ;;  %v709_v10 = vld [vmem:[%s764_s21 + $0x58] sm:$0xff]   ;;  %v711_v12 = vld [vmem:[%s764_s21 + $0x60] sm:$0xff]   ;;  %v713_v14 = vld [vmem:[%s764_s21 + $0x68] sm:$0xff]  }
  0x14   : > { %673 = vmatprep.mubr.msk.bf16.mxu1 %vm284_vm0, %v707_v8  ;;  %v714_v15 = vld [vmem:[%s764_s21 + $0x30] sm:$0xff]   ;;  %v716_v17 = vld [vmem:[%s764_s21 + $0x38] sm:$0xff]  }
  0x15   : > { %v715_v16 = vld [vmem:[%s764_s21 + $0x70] sm:$0xff]   ;;  %v717_v18 = vld [vmem:[%s764_s21 + $0x78] sm:$0xff]  }
  0x1a   : > { %658 = vmatmul.mubr.msk.bf16.gmra.mrb[4].mxu0 %vm284_vm0, %v708_v9 }
  0x1b   : > { %674 = vmatmul.mubr.msk.bf16.gmra.mrb[4].mxu1 %vm284_vm0, %v709_v10  ;;  %661 = vmatprep.mubr.msk.bf16.mxu0 %vm284_vm0, %v710_v11 }
  0x1c   : > { %677 = vmatprep.mubr.msk.bf16.mxu1 %vm284_vm0, %v711_v12 }
  0x22   : > { %662 = vmatmul.mubr.msk.bf16.gmra.mrb[8].mxu0 %vm284_vm0, %v712_v13 }
  0x23   : > { %678 = vmatmul.mubr.msk.bf16.gmra.mrb[8].mxu1 %vm284_vm0, %v713_v14  ;;  %665 = vmatprep.mubr.msk.bf16.mxu0 %vm284_vm0, %v714_v15 }
  0x24   : > { %681 = vmatprep.mubr.msk.bf16.mxu1 %vm284_vm0, %v715_v16 }
  0x2a   : > { %666 = vmatmul.mubr.msk.bf16.gmra.mrb[12].mxu0 %vm284_vm0, %v716_v17 }
  0x2b   : > { %682 = vmatmul.mubr.msk.bf16.gmra.mrb[12].mxu1 %vm284_vm0, %v717_v18 }
  0xe5   : > { %v655_v19 = vpop.f32.mrb[0].mxu0 }
  0xe6   : > { %v671_v20 = vpop.f32.mrb[0].mxu1  ;;  %496 = vst [vmem:[%s802_s25 + $0x10] sm:$0xff] %v655_v19  ;;  %v367_v21 = vpop.f32.mrb[1].mxu0 }
  0xe7   : > { %512 = vst [vmem:[%s802_s25 + $0x90] sm:$0xff] %v671_v20  ;;  %v431_v22 = vpop.f32.mrb[1].mxu1  ;;  %494 = vst [vmem:[%s802_s25] sm:$0xff] %v367_v21  ;;  %v656_v23 = vpop.f32.mrb[2].mxu0 }
  0xe8   : > { %510 = vst [vmem:[%s802_s25 + $0x80] sm:$0xff] %v431_v22  ;;  %v672_v24 = vpop.f32.mrb[2].mxu1  ;;  %497 = vst [vmem:[%s802_s25 + $0x18] sm:$0xff] %v656_v23  ;;  %v370_v25 = vpop.f32.mrb[3].mxu0 }
  0xe9   : > { %513 = vst [vmem:[%s802_s25 + $0x98] sm:$0xff] %v672_v24  ;;  %v434_v26 = vpop.f32.mrb[3].mxu1  ;;  %495 = vst [vmem:[%s802_s25 + $0x8] sm:$0xff] %v370_v25 }
  0xea   : > { %511 = vst [vmem:[%s802_s25 + $0x88] sm:$0xff] %v434_v26 }
  0xed   : > { %v659_v27 = vpop.f32.mrb[4].mxu0 }
  0xee   : > { %v675_v28 = vpop.f32.mrb[4].mxu1  ;;  %500 = vst [vmem:[%s802_s25 + $0x30] sm:$0xff] %v659_v27  ;;  %v383_v29 = vpop.f32.mrb[5].mxu0 }
  0xef   : > { %516 = vst [vmem:[%s802_s25 + $0xb0] sm:$0xff] %v675_v28  ;;  %v447_v30 = vpop.f32.mrb[5].mxu1  ;;  %498 = vst [vmem:[%s802_s25 + $0x20] sm:$0xff] %v383_v29  ;;  %v660_v31 = vpop.f32.mrb[6].mxu0 }
  0xf0   : > { %514 = vst [vmem:[%s802_s25 + $0xa0] sm:$0xff] %v447_v30  ;;  %v676_v32 = vpop.f32.mrb[6].mxu1  ;;  %501 = vst [vmem:[%s802_s25 + $0x38] sm:$0xff] %v660_v31  ;;  %v386_v33 = vpop.f32.mrb[7].mxu0 }
  0xf1   : > { %517 = vst [vmem:[%s802_s25 + $0xb8] sm:$0xff] %v676_v32  ;;  %v450_v34 = vpop.f32.mrb[7].mxu1  ;;  %499 = vst [vmem:[%s802_s25 + $0x28] sm:$0xff] %v386_v33 }
  0xf2   : > { %515 = vst [vmem:[%s802_s25 + $0xa8] sm:$0xff] %v450_v34 }
  0xf5   : > { %v663_v35 = vpop.f32.mrb[8].mxu0 }
  0xf6   : > { %v679_v36 = vpop.f32.mrb[8].mxu1  ;;  %504 = vst [vmem:[%s802_s25 + $0x50] sm:$0xff] %v663_v35  ;;  %v399_v37 = vpop.f32.mrb[9].mxu0 }
  0xf7   : > { %520 = vst [vmem:[%s802_s25 + $0xd0] sm:$0xff] %v679_v36  ;;  %v463_v38 = vpop.f32.mrb[9].mxu1  ;;  %502 = vst [vmem:[%s802_s25 + $0x40] sm:$0xff] %v399_v37  ;;  %v664_v39 = vpop.f32.mrb[10].mxu0 }
  0xf8   : > { %518 = vst [vmem:[%s802_s25 + $0xc0] sm:$0xff] %v463_v38  ;;  %v680_v40 = vpop.f32.mrb[10].mxu1  ;;  %505 = vst [vmem:[%s802_s25 + $0x58] sm:$0xff] %v664_v39  ;;  %v402_v41 = vpop.f32.mrb[11].mxu0 }
  0xf9   : > { %521 = vst [vmem:[%s802_s25 + $0xd8] sm:$0xff] %v680_v40  ;;  %v466_v42 = vpop.f32.mrb[11].mxu1  ;;  %503 = vst [vmem:[%s802_s25 + $0x48] sm:$0xff] %v402_v41 }
  0xfa   : > { %519 = vst [vmem:[%s802_s25 + $0xc8] sm:$0xff] %v466_v42 }
  0xfd   : > { %v667_v43 = vpop.f32.mrb[12].mxu0 }
  0xfe   : > { %v683_v44 = vpop.f32.mrb[12].mxu1  ;;  %508 = vst [vmem:[%s802_s25 + $0x70] sm:$0xff] %v667_v43  ;;  %v415_v45 = vpop.f32.mrb[13].mxu0 }
  0xff   : > { %524 = vst [vmem:[%s802_s25 + $0xf0] sm:$0xff] %v683_v44  ;;  %v479_v46 = vpop.f32.mrb[13].mxu1  ;;  %506 = vst [vmem:[%s802_s25 + $0x60] sm:$0xff] %v415_v45  ;;  %v668_v47 = vpop.f32.mrb[14].mxu0 }
 0x100   : > { %522 = vst [vmem:[%s802_s25 + $0xe0] sm:$0xff] %v479_v46  ;;  %v684_v48 = vpop.f32.mrb[14].mxu1  ;;  %509 = vst [vmem:[%s802_s25 + $0x78] sm:$0xff] %v668_v47  ;;  %v418_v49 = vpop.f32.mrb[15].mxu0 }
 0x101   : > { %525 = vst [vmem:[%s802_s25 + $0xf8] sm:$0xff] %v684_v48  ;;  %v482_v50 = vpop.f32.mrb[15].mxu1  ;;  %507 = vst [vmem:[%s802_s25 + $0x68] sm:$0xff] %v418_v49 }
 0x102   : > { %523 = vst [vmem:[%s802_s25 + $0xe8] sm:$0xff] %v482_v50 }
 0x103 PF: > { %s12_s9 = sadd.s32 1, %s724_s9  }
 0x104   : > { %p9_p4 = scmp.ge.s32.totalorder %s12_s9, 4  }
 0x106   :  { %11 = sbr.rel (!%p9_p4) target bundleno = 1 (0x1), region = 58 }

// kernel: generator_forward.13
= control target key start
LH: loop header
LB: loop body
LE: loop exit
PB: predicated region body
PF: predicated region fallthrough
CT: control target
= control target key end

     0   :  { %vm152_vm0 = vcmask 392192   ;;  %vm1078_vm1 = vcmask 388096   ;;  %s2796_s0 = inlined_call_operand.vmem [shape: f32[512,48], index: 0, kind: input, shape index: {}]   ;;  %s2797_s1 = inlined_call_operand.vmem [shape: f32[1,48], index: 1, kind: input, shape index: {}]   ;;  %s2798_s2 = inlined_call_operand.vmem [shape: f32[1,48], index: 2, kind: input, shape index: {}]   ;;  %s2799_s3 = inlined_call_operand.vmem [shape: f32[1,48], index: 3, kind: input, shape index: {}]   ;;  %s2800_s4 = inlined_call_operand.vmem [shape: bf16[512,48], index: 4, kind: output, shape index: {}]  }
   0x1   :  { %v17_v0 = vld [vmem:[%s2796_s0] sm:$0xff]  ;;  %v18_v1 = vld [vmem:[%s2796_s0 + $0x8] sm:$0xff]  ;;  %v19_v2 = vld [vmem:[%s2796_s0 + $0x10] sm:$0xff] }
   0x2   :  { %v20_v3 = vld [vmem:[%s2796_s0 + $0x18] sm:$0xff]  ;;  %v50_v4 = vld [vmem:[%s2796_s0 + $0x108] sm:$0xff]  ;;  %v51_v5 = vld [vmem:[%s2796_s0 + $0x110] sm:$0xff] }
   0x3   :  { %v52_v6 = vld [vmem:[%s2796_s0 + $0x118] sm:$0xff]  ;;  %v53_v7 = vld [vmem:[%s2796_s0 + $0x120] sm:$0xff]  ;;  %v54_v8 = vld [vmem:[%s2796_s0 + $0x128] sm:$0xff] }
   0x4   :  { %v55_v9 = vld [vmem:[%s2796_s0 + $0x130] sm:$0xff]  ;;  %v56_v10 = vld [vmem:[%s2796_s0 + $0x138] sm:$0xff]  ;;  %v1341_v11 = vld [vmem:[%s2797_s1] ss:$0 sm:$0xff] }
   0x5   :  { %v57_v12 = vld [vmem:[%s2796_s0 + $0x140] sm:$0xff]  ;;  %v58_v13 = vld [vmem:[%s2796_s0 + $0x148] sm:$0xff]  ;;  %v59_v14 = vld [vmem:[%s2796_s0 + $0x150] sm:$0xff]  ;;  %v1371_v21 = vadd.f32 %v1341_v11, %v17_v0  ;;  %v1374_v22 = vadd.f32 %v1341_v11, %v18_v1  ;;  %v1377_v23 = vadd.f32 %v1341_v11, %v19_v2  ;;  %v1389_v27 = vadd.f32 %v1341_v11, %v20_v3 }
   0x6   :  { %v60_v15 = vld [vmem:[%s2796_s0 + $0x158] sm:$0xff]  ;;  %v61_v16 = vld [vmem:[%s2796_s0 + $0x160] sm:$0xff]  ;;  %v62_v17 = vld [vmem:[%s2796_s0 + $0x168] sm:$0xff]  ;;  %v1392_v28 = vadd.f32 %v1341_v11, %v50_v4  ;;  %v1395_v29 = vadd.f32 %v1341_v11, %v51_v5  ;;  %v1398_v30 = vadd.f32 %v1341_v11, %v52_v6  ;;  %v1410_v34 = vadd.f32 %v1341_v11, %v53_v7 }
   0x7   :  { %v63_v18 = vld [vmem:[%s2796_s0 + $0x170] sm:$0xff]  ;;  %v64_v19 = vld [vmem:[%s2796_s0 + $0x178] sm:$0xff]  ;;  %v65_v20 = vld [vmem:[%s2796_s0 + $0x180] sm:$0xff]  ;;  %v1413_v35 = vadd.f32 %v1341_v11, %v54_v8  ;;  %v1416_v36 = vadd.f32 %v1341_v11, %v55_v9  ;;  %v1419_v37 = vadd.f32 %v1341_v11, %v56_v10  ;;  %v1431_v41 = vadd.f32 %v1341_v11, %v57_v12 }
   0x8   :  { %v66_v24 = vld [vmem:[%s2796_s0 + $0x188] sm:$0xff]  ;;  %v67_v25 = vld [vmem:[%s2796_s0 + $0x190] sm:$0xff]  ;;  %v68_v26 = vld [vmem:[%s2796_s0 + $0x198] sm:$0xff]  ;;  %v1434_v42 = vadd.f32 %v1341_v11, %v58_v13  ;;  %v1437_v43 = vadd.f32 %v1341_v11, %v59_v14  ;;  %v1440_v44 = vadd.f32 %v1341_v11, %v60_v15  ;;  %v1452_v48 = vadd.f32 %v1341_v11, %v61_v16 }
   0x9   :  { %v69_v31 = vld [vmem:[%s2796_s0 + $0x1a0] sm:$0xff]  ;;  %v70_v32 = vld [vmem:[%s2796_s0 + $0x1a8] sm:$0xff]  ;;  %v71_v33 = vld [vmem:[%s2796_s0 + $0x1b0] sm:$0xff]  ;;  %v1455_v49 = vadd.f32 %v1341_v11, %v62_v17  ;;  %v1458_v50 = vadd.f32 %v1341_v11, %v63_v18  ;;  %v1461_v51 = vadd.f32 %v1341_v11, %v64_v19  ;;  %v1473_v55 = vadd.f32 %v1341_v11, %v65_v20 }
   0xa   :  { %v72_v38 = vld [vmem:[%s2796_s0 + $0x1b8] sm:$0xff]  ;;  %v73_v39 = vld [vmem:[%s2796_s0 + $0x1c0] sm:$0xff]  ;;  %v74_v40 = vld [vmem:[%s2796_s0 + $0x1c8] sm:$0xff]  ;;  %v1476_v56 = vadd.f32 %v1341_v11, %v66_v24  ;;  %v1479_v57 = vadd.f32 %v1341_v11, %v67_v25  ;;  %v1482_v58 = vadd.f32 %v1341_v11, %v68_v26  ;;  %v1488_v60 = vadd.f32 %v1341_v11, %v69_v31 }
   0xb   :  { %v75_v45 = vld [vmem:[%s2796_s0 + $0x1d0] sm:$0xff]  ;;  %v76_v46 = vld [vmem:[%s2796_s0 + $0x1d8] sm:$0xff]  ;;  %v77_v47 = vld [vmem:[%s2796_s0 + $0x1e0] sm:$0xff]  ;;  %v1491_v61 = vadd.f32 %v1341_v11, %v70_v32  ;;  %v1494_v62 = vadd.f32 %v1341_v11, %v71_v33  ;;  %v1497_v63 = vadd.f32 %v1341_v11, %v72_v38  ;;  %v1500_v0 = vadd.f32 %v1341_v11, %v73_v39 }
   0xc   :  { %v78_v52 = vld [vmem:[%s2796_s0 + $0x1e8] sm:$0xff]  ;;  %v79_v53 = vld [vmem:[%s2796_s0 + $0x1f0] sm:$0xff]  ;;  %v80_v54 = vld [vmem:[%s2796_s0 + $0x1f8] sm:$0xff]  ;;  %v1503_v1 = vadd.f32 %v1341_v11, %v74_v40  ;;  %v1506_v2 = vadd.f32 %v1341_v11, %v75_v45  ;;  %v1509_v3 = vadd.f32 %v1341_v11, %v76_v46  ;;  %v1515_v5 = vadd.f32 %v1341_v11, %v77_v47 }
   0xd   :  { %v21_v59 = vld [vmem:[%s2796_s0 + $0x20] sm:$0xff]  ;;  %v22_v4 = vld [vmem:[%s2796_s0 + $0x28] sm:$0xff]  ;;  %v1518_v6 = vadd.f32 %v1341_v11, %v78_v52  ;;  %v1521_v7 = vadd.f32 %v1341_v11, %v79_v53  ;;  %v1524_v8 = vadd.f32 %v1341_v11, %v80_v54  ;;  %v153_v10 = vsel %vm152_vm0, %v1371_v21, 0.0  ;;  %v23_v14 = vld [vmem:[%s2796_s0 + $0x30] sm:$0xff] }
   0xe   :  { %2838 = vst [vmem:[#allocation2_spill] sm:$0xff] %v1509_v3  ;;  %2839 = vst [vmem:[#allocation3_spill] sm:$0xff] %v1515_v5  ;;  %v1527_v9 = vadd.f32 %v1341_v11, %v21_v59  ;;  %v154_v12 = vsel %vm152_vm0, %v1374_v22, 0.0  ;;  %v156_v13 = vsel %vm152_vm0, %v1377_v23, 0.0  ;;  %v1539_v16 = vadd.f32 %v1341_v11, %v22_v4  ;;  %v24_v18 = vld [vmem:[%s2796_s0 + $0x38] sm:$0xff]  ;;  %v25_v25 = vld [vmem:[%s2796_s0 + $0x40] sm:$0xff] }
   0xf   :  { %v155_v15 = vadd.f32 %v154_v12, %v153_v10  ;;  %v158_v17 = vsel %vm152_vm0, %v1389_v27, 0.0  ;;  %v1547_v20 = vadd.f32 %v1341_v11, %v23_v14  ;;  %v1555_v31 = vadd.f32 %v1341_v11, %v24_v18  ;;  %v26_v33 = vld [vmem:[%s2796_s0 + $0x48] sm:$0xff]  ;;  %v27_v45 = vld [vmem:[%s2796_s0 + $0x50] sm:$0xff]  ;;  %v28_v53 = vld [vmem:[%s2796_s0 + $0x58] sm:$0xff] }
  0x10   :  { %v160_v24 = vsel %vm152_vm0, %v1527_v9, 0.0  ;;  %v162_v32 = vsel %vm152_vm0, %v1539_v16, 0.0  ;;  %v1563_v39 = vadd.f32 %v1341_v11, %v25_v25  ;;  %v1571_v47 = vadd.f32 %v1341_v11, %v26_v33  ;;  %v29_v10 = vld [vmem:[%s2796_s0 + $0x60] sm:$0xff]  ;;  %v32_v33 = vld [vmem:[%s2796_s0 + $0x78] sm:$0xff] }
  0x11   :  { %v157_v19 = vadd.f32 %v156_v13, %v155_v15  ;;  %v164_v40 = vsel %vm152_vm0, %v1547_v20, 0.0  ;;  %v166_v52 = vsel %vm152_vm0, %v1555_v31, 0.0  ;;  %v1579_v59 = vadd.f32 %v1341_v11, %v27_v45  ;;  %v30_v15 = vld [vmem:[%s2796_s0 + $0x68] sm:$0xff] }
  0x12   :  { %v168_v4 = vsel %vm152_vm0, %v1563_v39, 0.0  ;;  %v1587_v13 = vadd.f32 %v1341_v11, %v28_v53  ;;  %v170_v14 = vsel %vm152_vm0, %v1571_v47, 0.0  ;;  %v1595_v18 = vadd.f32 %v1341_v11, %v29_v10 }
  0x13   :  { %v159_v26 = vadd.f32 %v158_v17, %v157_v19  ;;  %v172_v19 = vsel %vm152_vm0, %v1579_v59, 0.0  ;;  %v1619_v53 = vadd.f32 %v1341_v11, %v32_v33 }
  0x14   :  { %v176_v45 = vsel %vm152_vm0, %v1595_v18, 0.0 }
  0x15   :  { %v161_v38 = vadd.f32 %v160_v24, %v159_v26  ;;  %v31_v24 = vld [vmem:[%s2796_s0 + $0x70] sm:$0xff]  ;;  %v1603_v26 = vadd.f32 %v1341_v11, %v30_v15 }
  0x16   :  { %v35_v15 = vld [vmem:[%s2796_s0 + $0x90] sm:$0xff] }
  0x17   :  { %v163_v46 = vadd.f32 %v162_v32, %v161_v38  ;;  %v174_v32 = vsel %vm152_vm0, %v1587_v13, 0.0  ;;  %v1643_v33 = vadd.f32 %v1341_v11, %v35_v15 }
  0x19   :  { %v165_v54 = vadd.f32 %v164_v40, %v163_v46  ;;  %v1611_v40 = vadd.f32 %v1341_v11, %v31_v24  ;;  %v33_v46 = vld [vmem:[%s2796_s0 + $0x80] sm:$0xff]  ;;  %v182_v24 = vsel %vm152_vm0, %v1619_v53, 0.0  ;;  %2842 = vst [vmem:[#allocation6_spill] sm:$0xff] %v1643_v33  ;;  %v188_v15 = vsel %vm152_vm0, %v1643_v33, 0.0 }
  0x1b   :  { %v167_v12 = vadd.f32 %v166_v52, %v165_v54  ;;  %v178_v54 = vsel %vm152_vm0, %v1603_v26, 0.0 }
  0x1d   :  { %v169_v17 = vadd.f32 %v168_v4, %v167_v12  ;;  %v34_v4 = vld [vmem:[%s2796_s0 + $0x88] sm:$0xff]  ;;  %v1627_v12 = vadd.f32 %v1341_v11, %v33_v46 }
  0x1f   :  { %v171_v25 = vadd.f32 %v170_v14, %v169_v17  ;;  %2840 = vst [vmem:[#allocation4_spill] sm:$0xff] %v1627_v12  ;;  %v180_v14 = vsel %vm152_vm0, %v1611_v40, 0.0 }
  0x21   :  { %v173_v38 = vadd.f32 %v172_v19, %v171_v25  ;;  %v1635_v19 = vadd.f32 %v1341_v11, %v34_v4  ;;  %v36_v25 = vld [vmem:[%s2796_s0 + $0x98] sm:$0xff]  ;;  %v38_v4 = vld [vmem:[%s2796_s0 + $0xa8] sm:$0xff] }
  0x23   :  { %v175_v52 = vadd.f32 %v174_v32, %v173_v38  ;;  %2841 = vst [vmem:[#allocation5_spill] sm:$0xff] %v1635_v19  ;;  %v184_v38 = vsel %vm152_vm0, %v1627_v12, 0.0 }
  0x25   :  { %v177_v10 = vadd.f32 %v176_v45, %v175_v52  ;;  %v37_v45 = vld [vmem:[%s2796_s0 + $0xa0] sm:$0xff]  ;;  %v1651_v52 = vadd.f32 %v1341_v11, %v36_v25  ;;  %v1667_v25 = vadd.f32 %v1341_v11, %v38_v4 }
  0x27   :  { %v179_v17 = vadd.f32 %v178_v54, %v177_v10  ;;  %2843 = vst [vmem:[#allocation7_spill] sm:$0xff] %v1651_v52  ;;  %v186_v54 = vsel %vm152_vm0, %v1635_v19, 0.0  ;;  %2845 = vst [vmem:[#allocation9_spill] sm:$0xff] %v1667_v25 }
  0x29   :  { %v181_v32 = vadd.f32 %v180_v14, %v179_v17  ;;  %v1659_v14 = vadd.f32 %v1341_v11, %v37_v45  ;;  %v39_v17 = vld [vmem:[%s2796_s0 + $0xb0] sm:$0xff] }
  0x2b   :  { %v183_v46 = vadd.f32 %v182_v24, %v181_v32  ;;  %2844 = vst [vmem:[#allocation8_spill] sm:$0xff] %v1659_v14  ;;  %v190_v32 = vsel %vm152_vm0, %v1651_v52, 0.0  ;;  %v192_v33 = vsel %vm152_vm0, %v1659_v14, 0.0  ;;  %v194_v52 = vsel %vm152_vm0, %v1667_v25, 0.0 }
  0x2d   :  { %v185_v10 = vadd.f32 %v184_v38, %v183_v46  ;;  %v40_v38 = vld [vmem:[%s2796_s0 + $0xb8] sm:$0xff]  ;;  %v1675_v46 = vadd.f32 %v1341_v11, %v39_v17 }
  0x2f   :  { %v187_v24 = vadd.f32 %v186_v54, %v185_v10  ;;  %2846 = vst [vmem:[#allocation10_spill] sm:$0xff] %v1675_v46  ;;  %v41_v54 = vld [vmem:[%s2796_s0 + $0xc0] sm:$0xff]  ;;  %v1683_v10 = vadd.f32 %v1341_v11, %v40_v38  ;;  %v196_v14 = vsel %vm152_vm0, %v1675_v46, 0.0 }
  0x31   :  { %v189_v45 = vadd.f32 %v188_v15, %v187_v24  ;;  %2847 = vst [vmem:[#allocation11_spill] sm:$0xff] %v1683_v10  ;;  %v42_v15 = vld [vmem:[%s2796_s0 + $0xc8] sm:$0xff]  ;;  %v1691_v24 = vadd.f32 %v1341_v11, %v41_v54  ;;  %v198_v25 = vsel %vm152_vm0, %v1683_v10, 0.0 }
  0x33   :  { %v191_v4 = vadd.f32 %v190_v32, %v189_v45  ;;  %2848 = vst [vmem:[#allocation12_spill] sm:$0xff] %v1691_v24  ;;  %v43_v32 = vld [vmem:[%s2796_s0 + $0xd0] sm:$0xff]  ;;  %v1699_v45 = vadd.f32 %v1341_v11, %v42_v15  ;;  %v200_v46 = vsel %vm152_vm0, %v1691_v24, 0.0 }
  0x35   :  { %v193_v17 = vadd.f32 %v192_v33, %v191_v4  ;;  %2849 = vst [vmem:[#allocation13_spill] sm:$0xff] %v1699_v45  ;;  %v44_v33 = vld [vmem:[%s2796_s0 + $0xd8] sm:$0xff]  ;;  %v1707_v4 = vadd.f32 %v1341_v11, %v43_v32  ;;  %v202_v10 = vsel %vm152_vm0, %v1699_v45, 0.0 }
  0x37   :  { %v195_v38 = vadd.f32 %v194_v52, %v193_v17  ;;  %2850 = vst [vmem:[#allocation14_spill] sm:$0xff] %v1707_v4  ;;  %v45_v52 = vld [vmem:[%s2796_s0 + $0xe0] sm:$0xff]  ;;  %v1715_v17 = vadd.f32 %v1341_v11, %v44_v33  ;;  %v204_v24 = vsel %vm152_vm0, %v1707_v4, 0.0 }
  0x39   :  { %v197_v54 = vadd.f32 %v196_v14, %v195_v38  ;;  %2851 = vst [vmem:[#allocation15_spill] sm:$0xff] %v1715_v17  ;;  %v46_v14 = vld [vmem:[%s2796_s0 + $0xe8] sm:$0xff]  ;;  %v1723_v38 = vadd.f32 %v1341_v11, %v45_v52  ;;  %v206_v45 = vsel %vm152_vm0, %v1715_v17, 0.0 }
  0x3b   :  { %v199_v15 = vadd.f32 %v198_v25, %v197_v54  ;;  %2852 = vst [vmem:[#allocation16_spill] sm:$0xff] %v1723_v38  ;;  %v47_v25 = vld [vmem:[%s2796_s0 + $0xf0] sm:$0xff]  ;;  %v1731_v54 = vadd.f32 %v1341_v11, %v46_v14  ;;  %v208_v4 = vsel %vm152_vm0, %v1723_v38, 0.0 }
  0x3d   :  { %v201_v32 = vadd.f32 %v200_v46, %v199_v15  ;;  %2853 = vst [vmem:[#allocation17_spill] sm:$0xff] %v1731_v54  ;;  %v48_v46 = vld [vmem:[%s2796_s0 + $0xf8] sm:$0xff]  ;;  %v1739_v15 = vadd.f32 %v1341_v11, %v47_v25  ;;  %v210_v17 = vsel %vm152_vm0, %v1731_v54, 0.0 }
  0x3f   :  { %v203_v33 = vadd.f32 %v202_v10, %v201_v32  ;;  %v49_v10 = vld [vmem:[%s2796_s0 + $0x100] sm:$0xff]  ;;  %v1747_v32 = vadd.f32 %v1341_v11, %v48_v46  ;;  %v212_v25 = vsel %vm152_vm0, %v1739_v15, 0.0 }
  0x41   :  { %v205_v52 = vadd.f32 %v204_v24, %v203_v33  ;;  %v1752_v24 = vadd.f32 %v1341_v11, %v49_v10  ;;  %v214_v38 = vsel %vm152_vm0, %v1747_v32, 0.0  ;;  %v220_v11 = vsel %vm152_vm0, %v1395_v29, 0.0 }
  0x42   :  { %v222_v10 = vsel %vm152_vm0, %v1398_v30, 0.0 }
  0x43   :  { %v207_v14 = vadd.f32 %v206_v45, %v205_v52  ;;  %v216_v45 = vsel %vm152_vm0, %v1752_v24, 0.0  ;;  %v218_v52 = vsel %vm152_vm0, %v1392_v28, 0.0 }
  0x45   :  { %v209_v19 = vadd.f32 %v208_v4, %v207_v14 }
  0x47   :  { %v211_v33 = vadd.f32 %v210_v17, %v209_v19  ;;  %v224_v17 = vsel %vm152_vm0, %v1410_v34, 0.0 }
  0x49   :  { %v213_v12 = vadd.f32 %v212_v25, %v211_v33  ;;  %v226_v25 = vsel %vm152_vm0, %v1413_v35, 0.0 }
  0x4b   :  { %v215_v46 = vadd.f32 %v214_v38, %v213_v12  ;;  %v228_v38 = vsel %vm152_vm0, %v1416_v36, 0.0 }
  0x4d   :  { %v217_v54 = vadd.f32 %v216_v45, %v215_v46  ;;  %v230_v45 = vsel %vm152_vm0, %v1419_v37, 0.0  ;;  %v232_v46 = vsel %vm152_vm0, %v1431_v41, 0.0 }
  0x4f   :  { %v219_v4 = vadd.f32 %v218_v52, %v217_v54 }
  0x51   :  { %v221_v19 = vadd.f32 %v220_v11, %v219_v4  ;;  %v234_v11 = vsel %vm152_vm0, %v1434_v42, 0.0 }
  0x53   :  { %v223_v14 = vadd.f32 %v222_v10, %v221_v19  ;;  %v236_v10 = vsel %vm152_vm0, %v1437_v43, 0.0 }
  0x55   :  { %v225_v12 = vadd.f32 %v224_v17, %v223_v14  ;;  %v238_v17 = vsel %vm152_vm0, %v1440_v44, 0.0 }
  0x57   :  { %v227_v33 = vadd.f32 %v226_v25, %v225_v12  ;;  %v240_v25 = vsel %vm152_vm0, %v1452_v48, 0.0 }
  0x59   :  { %v229_v54 = vadd.f32 %v228_v38, %v227_v33  ;;  %v242_v38 = vsel %vm152_vm0, %v1455_v49, 0.0 }
  0x5b   :  { %v231_v52 = vadd.f32 %v230_v45, %v229_v54  ;;  %v244_v45 = vsel %vm152_vm0, %v1458_v50, 0.0 }
  0x5d   :  { %v233_v4 = vadd.f32 %v232_v46, %v231_v52  ;;  %v246_v46 = vsel %vm152_vm0, %v1461_v51, 0.0 }
  0x5f   :  { %v235_v19 = vadd.f32 %v234_v11, %v233_v4  ;;  %v248_v11 = vsel %vm152_vm0, %v1473_v55, 0.0 }
  0x61   :  { %v237_v14 = vadd.f32 %v236_v10, %v235_v19  ;;  %v250_v10 = vsel %vm152_vm0, %v1476_v56, 0.0 }
  0x63   :  { %v239_v12 = vadd.f32 %v238_v17, %v237_v14  ;;  %v252_v17 = vsel %vm152_vm0, %v1479_v57, 0.0 }
  0x65   :  { %v241_v33 = vadd.f32 %v240_v25, %v239_v12  ;;  %v254_v25 = vsel %vm152_vm0, %v1482_v58, 0.0 }
  0x67   :  { %v243_v54 = vadd.f32 %v242_v38, %v241_v33  ;;  %v256_v38 = vsel %vm152_vm0, %v1488_v60, 0.0 }
  0x69   :  { %v245_v52 = vadd.f32 %v244_v45, %v243_v54  ;;  %v258_v45 = vsel %vm152_vm0, %v1491_v61, 0.0 }
  0x6b   :  { %v247_v4 = vadd.f32 %v246_v46, %v245_v52  ;;  %v260_v46 = vsel %vm152_vm0, %v1494_v62, 0.0 }
  0x6d   :  { %v249_v19 = vadd.f32 %v248_v11, %v247_v4  ;;  %v262_v11 = vsel %vm152_vm0, %v1497_v63, 0.0 }
  0x6f   :  { %v251_v14 = vadd.f32 %v250_v10, %v249_v19  ;;  %v264_v10 = vsel %vm152_vm0, %v1500_v0, 0.0 }
  0x71   :  { %v253_v12 = vadd.f32 %v252_v17, %v251_v14  ;;  %v266_v17 = vsel %vm152_vm0, %v1503_v1, 0.0 }
  0x73   :  { %v255_v33 = vadd.f32 %v254_v25, %v253_v12  ;;  %v268_v25 = vsel %vm152_vm0, %v1506_v2, 0.0 }
  0x75   :  { %v257_v54 = vadd.f32 %v256_v38, %v255_v33  ;;  %v270_v38 = vsel %vm152_vm0, %v1509_v3, 0.0 }
  0x77   :  { %v259_v52 = vadd.f32 %v258_v45, %v257_v54  ;;  %v272_v54 = vsel %vm152_vm0, %v1515_v5, 0.0 }
  0x79   :  { %v261_v4 = vadd.f32 %v260_v46, %v259_v52  ;;  %v274_v52 = vsel %vm152_vm0, %v1518_v6, 0.0 }
  0x7b   :  { %v263_v19 = vadd.f32 %v262_v11, %v261_v4  ;;  %v276_v4 = vsel %vm152_vm0, %v1521_v7, 0.0 }
  0x7d   :  { %v265_v14 = vadd.f32 %v264_v10, %v263_v19  ;;  %v278_v19 = vsel %vm152_vm0, %v1524_v8, 0.0 }
  0x7f   :  { %v267_v12 = vadd.f32 %v266_v17, %v265_v14 }
  0x81   :  { %v269_v33 = vadd.f32 %v268_v25, %v267_v12 }
  0x83   :  { %v271_v45 = vadd.f32 %v270_v38, %v269_v33 }
  0x85   :  { %v273_v46 = vadd.f32 %v272_v54, %v271_v45 }
  0x87   :  { %v275_v11 = vadd.f32 %v274_v52, %v273_v46 }
  0x89   :  { %v277_v10 = vadd.f32 %v276_v4, %v275_v11 }
  0x8b   :  { %v279_v17 = vadd.f32 %v278_v19, %v277_v10 }
  0x8d   :  { %v280_v14 = vrot.slane %v279_v17, 4 }
  0x8f   :  { %v281_v3 = vadd.f32 %v280_v14, %v279_v17 }
  0x91   :  { %v282_v25 = vrot.slane %v281_v3, 2 }
  0x93   :  { %v283_v12 = vadd.f32 %v282_v25, %v281_v3 }
  0x95   :  { %v284_v38 = vrot.slane %v283_v12, 1 }
  0x97   :  { %v285_v33 = vadd.f32 %v284_v38, %v283_v12 }
  0x99   :  { %v1822_v5 = vmul.f32 0.001953125, %v285_v33 }
  0x9b   :  { %v1826_v45 = vsub.f32 %v1371_v21, %v1822_v5  ;;  %v1830_v54 = vsub.f32 %v1374_v22, %v1822_v5  ;;  %v1834_v46 = vsub.f32 %v1377_v23, %v1822_v5  ;;  %v1838_v52 = vsub.f32 %v1389_v27, %v1822_v5 }
  0x9c   :  { %v1842_v3 = vsub.f32 %v1527_v9, %v1822_v5  ;;  %v1852_v23 = vsub.f32 %v1539_v16, %v1822_v5  ;;  %v1858_v9 = vsub.f32 %v1547_v20, %v1822_v5  ;;  %v1867_v16 = vsub.f32 %v1555_v31, %v1822_v5 }
  0x9d   :  { %v352_v21 = vmul.f32 %v1826_v45, %v1826_v45  ;;  %v353_v11 = vmul.f32 %v1830_v54, %v1830_v54  ;;  %v354_v22 = vmul.f32 %v1834_v46, %v1834_v46  ;;  %v355_v27 = vmul.f32 %v1838_v52, %v1838_v52 }
  0x9e   :  { %v356_v4 = vmul.f32 %v1842_v3, %v1842_v3  ;;  %v357_v25 = vmul.f32 %v1852_v23, %v1852_v23  ;;  %v1874_v38 = vsub.f32 %v1563_v39, %v1822_v5  ;;  %v358_v33 = vmul.f32 %v1858_v9, %v1858_v9 }
  0x9f   :  { %v416_v10 = vsel %vm152_vm0, %v352_v21, 0.0  ;;  %v417_v19 = vsel %vm152_vm0, %v353_v11, 0.0  ;;  %v419_v17 = vsel %vm152_vm0, %v354_v22, 0.0  ;;  %v421_v20 = vsel %vm152_vm0, %v355_v27, 0.0 }
  0xa0   :  { %v418_v14 = vadd.f32 %v417_v19, %v416_v10  ;;  %v423_v21 = vsel %vm152_vm0, %v356_v4, 0.0  ;;  %v1881_v31 = vsub.f32 %v1571_v47, %v1822_v5  ;;  %v359_v22 = vmul.f32 %v1867_v16, %v1867_v16 }
  0xa1   :  { %v425_v27 = vsel %vm152_vm0, %v357_v25, 0.0  ;;  %v1888_v39 = vsub.f32 %v1579_v59, %v1822_v5  ;;  %v360_v19 = vmul.f32 %v1874_v38, %v1874_v38  ;;  %v427_v4 = vsel %vm152_vm0, %v358_v33, 0.0 }
  0xa2   :  { %v420_v12 = vadd.f32 %v419_v17, %v418_v14  ;;  %v1895_v47 = vsub.f32 %v1587_v13, %v1822_v5  ;;  %v361_v14 = vmul.f32 %v1881_v31, %v1881_v31  ;;  %v429_v25 = vsel %vm152_vm0, %v359_v22, 0.0 }
  0xa3   :  { %v1902_v59 = vsub.f32 %v1595_v18, %v1822_v5  ;;  %v431_v33 = vsel %vm152_vm0, %v360_v19, 0.0  ;;  %v1909_v13 = vsub.f32 %v1603_v26, %v1822_v5  ;;  %v1916_v18 = vsub.f32 %v1611_v40, %v1822_v5 }
  0xa4   :  { %v422_v11 = vadd.f32 %v421_v20, %v420_v12  ;;  %v362_v12 = vmul.f32 %v1888_v39, %v1888_v39  ;;  %v433_v22 = vsel %vm152_vm0, %v361_v14, 0.0  ;;  %v1923_v26 = vsub.f32 %v1619_v53, %v1822_v5 }
  0xa5   :  { %2854 = vst [vmem:[#allocation18_spill] sm:$0xff] %v1916_v18 }
  0xa6   :  { %v424_v10 = vadd.f32 %v423_v21, %v422_v11  ;;  %v363_v11 = vmul.f32 %v1895_v47, %v1895_v47  ;;  %v435_v19 = vsel %vm152_vm0, %v362_v12, 0.0  ;;  %2855 = vst [vmem:[#allocation19_spill] sm:$0xff] %v1923_v26 }
  0xa8   :  { %v426_v17 = vadd.f32 %v425_v27, %v424_v10  ;;  %v364_v10 = vmul.f32 %v1902_v59, %v1902_v59  ;;  %v437_v14 = vsel %vm152_vm0, %v363_v11, 0.0 }
  0xaa   :  { %v428_v20 = vadd.f32 %v427_v4, %v426_v17  ;;  %v365_v17 = vmul.f32 %v1909_v13, %v1909_v13  ;;  %v439_v12 = vsel %vm152_vm0, %v364_v10, 0.0 }
  0xac   :  { %v430_v21 = vadd.f32 %v429_v25, %v428_v20  ;;  %v2856_v20 = vld [vmem:[#allocation4_spill] sm:$0xff]  ;;  %v441_v11 = vsel %vm152_vm0, %v365_v17, 0.0 }
  0xad   :  { %v1930_v40 = vsub.f32 %v2856_v20, %v1822_v5 }
  0xae   :  { %v432_v27 = vadd.f32 %v431_v33, %v430_v21  ;;  %v366_v33 = vmul.f32 %v1916_v18, %v1916_v18 }
  0xaf   :  { %2857 = vst [vmem:[#allocation4_spill] sm:$0xff] %v1930_v40  ;;  %v368_v18 = vmul.f32 %v1930_v40, %v1930_v40 }
  0xb0   :  { %v434_v4 = vadd.f32 %v433_v22, %v432_v27  ;;  %v2858_v22 = vld [vmem:[#allocation5_spill] sm:$0xff]  ;;  %v367_v27 = vmul.f32 %v1923_v26, %v1923_v26  ;;  %v443_v10 = vsel %vm152_vm0, %v366_v33, 0.0 }
  0xb1   :  { %v1937_v53 = vsub.f32 %v2858_v22, %v1822_v5  ;;  %v447_v33 = vsel %vm152_vm0, %v368_v18, 0.0 }
  0xb2   :  { %v436_v25 = vadd.f32 %v435_v19, %v434_v4  ;;  %v2860_v4 = vld [vmem:[#allocation6_spill] sm:$0xff]  ;;  %v445_v17 = vsel %vm152_vm0, %v367_v27, 0.0 }
  0xb3   :  { %2859 = vst [vmem:[#allocation5_spill] sm:$0xff] %v1937_v53  ;;  %v1944_v20 = vsub.f32 %v2860_v4, %v1822_v5  ;;  %v369_v26 = vmul.f32 %v1937_v53, %v1937_v53 }
  0xb4   :  { %v438_v21 = vadd.f32 %v437_v14, %v436_v25  ;;  %v2862_v25 = vld [vmem:[#allocation7_spill] sm:$0xff] }
  0xb5   :  { %2861 = vst [vmem:[#allocation6_spill] sm:$0xff] %v1944_v20  ;;  %v1951_v22 = vsub.f32 %v2862_v25, %v1822_v5  ;;  %v370_v40 = vmul.f32 %v1944_v20, %v1944_v20  ;;  %v449_v27 = vsel %vm152_vm0, %v369_v26, 0.0 }
  0xb6   :  { %v440_v19 = vadd.f32 %v439_v12, %v438_v21  ;;  %v2864_v21 = vld [vmem:[#allocation8_spill] sm:$0xff] }
  0xb7   :  { %2863 = vst [vmem:[#allocation7_spill] sm:$0xff] %v1951_v22  ;;  %v1958_v4 = vsub.f32 %v2864_v21, %v1822_v5  ;;  %v371_v53 = vmul.f32 %v1951_v22, %v1951_v22  ;;  %v451_v18 = vsel %vm152_vm0, %v370_v40, 0.0 }
  0xb8   :  { %v442_v14 = vadd.f32 %v441_v11, %v440_v19  ;;  %v2866_v19 = vld [vmem:[#allocation9_spill] sm:$0xff] }
  0xb9   :  { %2865 = vst [vmem:[#allocation8_spill] sm:$0xff] %v1958_v4  ;;  %v1965_v25 = vsub.f32 %v2866_v19, %v1822_v5  ;;  %v372_v20 = vmul.f32 %v1958_v4, %v1958_v4  ;;  %v453_v26 = vsel %vm152_vm0, %v371_v53, 0.0 }
  0xba   :  { %v444_v12 = vadd.f32 %v443_v10, %v442_v14  ;;  %v2868_v14 = vld [vmem:[#allocation10_spill] sm:$0xff] }
  0xbb   :  { %2867 = vst [vmem:[#allocation9_spill] sm:$0xff] %v1965_v25  ;;  %v1972_v21 = vsub.f32 %v2868_v14, %v1822_v5  ;;  %v373_v22 = vmul.f32 %v1965_v25, %v1965_v25  ;;  %v455_v40 = vsel %vm152_vm0, %v372_v20, 0.0 }
  0xbc   :  { %v446_v11 = vadd.f32 %v445_v17, %v444_v12  ;;  %v2870_v12 = vld [vmem:[#allocation11_spill] sm:$0xff] }
  0xbd   :  { %2869 = vst [vmem:[#allocation10_spill] sm:$0xff] %v1972_v21  ;;  %v1979_v19 = vsub.f32 %v2870_v12, %v1822_v5  ;;  %v374_v4 = vmul.f32 %v1972_v21, %v1972_v21  ;;  %v457_v53 = vsel %vm152_vm0, %v373_v22, 0.0 }
  0xbe   :  { %v448_v10 = vadd.f32 %v447_v33, %v446_v11  ;;  %v2872_v11 = vld [vmem:[#allocation12_spill] sm:$0xff] }
  0xbf   :  { %2871 = vst [vmem:[#allocation11_spill] sm:$0xff] %v1979_v19  ;;  %v1986_v14 = vsub.f32 %v2872_v11, %v1822_v5  ;;  %v375_v25 = vmul.f32 %v1979_v19, %v1979_v19  ;;  %v459_v20 = vsel %vm152_vm0, %v374_v4, 0.0 }
  0xc0   :  { %v450_v17 = vadd.f32 %v449_v27, %v448_v10  ;;  %v2874_v10 = vld [vmem:[#allocation13_spill] sm:$0xff] }
  0xc1   :  { %2873 = vst [vmem:[#allocation12_spill] sm:$0xff] %v1986_v14  ;;  %v1993_v12 = vsub.f32 %v2874_v10, %v1822_v5  ;;  %v376_v21 = vmul.f32 %v1986_v14, %v1986_v14  ;;  %v461_v22 = vsel %vm152_vm0, %v375_v25, 0.0 }
  0xc2   :  { %v452_v33 = vadd.f32 %v451_v18, %v450_v17  ;;  %v2876_v17 = vld [vmem:[#allocation14_spill] sm:$0xff] }
  0xc3   :  { %2875 = vst [vmem:[#allocation13_spill] sm:$0xff] %v1993_v12  ;;  %v2000_v11 = vsub.f32 %v2876_v17, %v1822_v5  ;;  %v377_v19 = vmul.f32 %v1993_v12, %v1993_v12  ;;  %v463_v4 = vsel %vm152_vm0, %v376_v21, 0.0 }
  0xc4   :  { %v454_v27 = vadd.f32 %v453_v26, %v452_v33  ;;  %v2877_v33 = vld [vmem:[#allocation15_spill] sm:$0xff] }
  0xc5   :  { %v2007_v10 = vsub.f32 %v2877_v33, %v1822_v5  ;;  %v378_v14 = vmul.f32 %v2000_v11, %v2000_v11  ;;  %v465_v25 = vsel %vm152_vm0, %v377_v19, 0.0 }
  0xc6   :  { %v456_v18 = vadd.f32 %v455_v40, %v454_v27  ;;  %v2878_v27 = vld [vmem:[#allocation16_spill] sm:$0xff] }
  0xc7   :  { %v2014_v17 = vsub.f32 %v2878_v27, %v1822_v5  ;;  %v379_v12 = vmul.f32 %v2007_v10, %v2007_v10  ;;  %v467_v21 = vsel %vm152_vm0, %v378_v14, 0.0 }
  0xc8   :  { %v458_v26 = vadd.f32 %v457_v53, %v456_v18  ;;  %v2879_v18 = vld [vmem:[#allocation17_spill] sm:$0xff] }
  0xc9   :  { %v2021_v33 = vsub.f32 %v2879_v18, %v1822_v5  ;;  %v380_v27 = vmul.f32 %v2014_v17, %v2014_v17  ;;  %v469_v19 = vsel %vm152_vm0, %v379_v12, 0.0 }
  0xca   :  { %v460_v40 = vadd.f32 %v459_v20, %v458_v26  ;;  %v2028_v26 = vsub.f32 %v1739_v15, %v1822_v5  ;;  %v2042_v15 = vsub.f32 %v1752_v24, %v1822_v5  ;;  %v2056_v24 = vsub.f32 %v1395_v29, %v1822_v5 }
  0xcb   :  { %v381_v18 = vmul.f32 %v2021_v33, %v2021_v33  ;;  %v471_v14 = vsel %vm152_vm0, %v380_v27, 0.0  ;;  %v2070_v29 = vsub.f32 %v1410_v34, %v1822_v5  ;;  %v2084_v34 = vsub.f32 %v1416_v36, %v1822_v5 }
  0xcc   :  { %v462_v53 = vadd.f32 %v461_v22, %v460_v40  ;;  %v2035_v40 = vsub.f32 %v1747_v32, %v1822_v5  ;;  %v2049_v32 = vsub.f32 %v1392_v28, %v1822_v5  ;;  %v2063_v28 = vsub.f32 %v1398_v30, %v1822_v5 }
  0xcd   :  { %v473_v12 = vsel %vm152_vm0, %v381_v18, 0.0  ;;  %v2077_v30 = vsub.f32 %v1413_v35, %v1822_v5  ;;  %v2091_v35 = vsub.f32 %v1419_v37, %v1822_v5  ;;  %v2098_v36 = vsub.f32 %v1431_v41, %v1822_v5 }
  0xce   :  { %v464_v20 = vadd.f32 %v463_v4, %v462_v53  ;;  %v382_v53 = vmul.f32 %v2028_v26, %v2028_v26  ;;  %v2105_v37 = vsub.f32 %v1434_v42, %v1822_v5  ;;  %v2112_v41 = vsub.f32 %v1437_v43, %v1822_v5 }
  0xcf   :  { %v2119_v42 = vsub.f32 %v1440_v44, %v1822_v5  ;;  %v2126_v43 = vsub.f32 %v1452_v48, %v1822_v5  ;;  %v2133_v44 = vsub.f32 %v1455_v49, %v1822_v5  ;;  %v2140_v48 = vsub.f32 %v1458_v50, %v1822_v5 }
  0xd0   :  { %v466_v22 = vadd.f32 %v465_v25, %v464_v20  ;;  %v383_v20 = vmul.f32 %v2035_v40, %v2035_v40  ;;  %v475_v27 = vsel %vm152_vm0, %v382_v53, 0.0  ;;  %v2147_v49 = vsub.f32 %v1461_v51, %v1822_v5 }
  0xd1   :  { %v2154_v50 = vsub.f32 %v1473_v55, %v1822_v5  ;;  %v2161_v51 = vsub.f32 %v1476_v56, %v1822_v5  ;;  %v2168_v55 = vsub.f32 %v1479_v57, %v1822_v5  ;;  %v2175_v56 = vsub.f32 %v1482_v58, %v1822_v5 }
  0xd2   :  { %v468_v4 = vadd.f32 %v467_v21, %v466_v22  ;;  %v384_v22 = vmul.f32 %v2042_v15, %v2042_v15  ;;  %v477_v18 = vsel %vm152_vm0, %v383_v20, 0.0  ;;  %v2182_v57 = vsub.f32 %v1488_v60, %v1822_v5 }
  0xd3   :  { %v2189_v58 = vsub.f32 %v1491_v61, %v1822_v5  ;;  %v2196_v60 = vsub.f32 %v1494_v62, %v1822_v5  ;;  %v2203_v61 = vsub.f32 %v1497_v63, %v1822_v5  ;;  %v2210_v62 = vsub.f32 %v1500_v0, %v1822_v5 }
  0xd4   :  { %v470_v25 = vadd.f32 %v469_v19, %v468_v4  ;;  %v385_v4 = vmul.f32 %v2049_v32, %v2049_v32  ;;  %v479_v53 = vsel %vm152_vm0, %v384_v22, 0.0  ;;  %v2217_v63 = vsub.f32 %v1503_v1, %v1822_v5 }
  0xd5   :  { %2880 = vst [vmem:[#allocation14_spill] sm:$0xff] %v2203_v61  ;;  %2881 = vst [vmem:[#allocation15_spill] sm:$0xff] %v2210_v62  ;;  %v2224_v0 = vsub.f32 %v1506_v2, %v1822_v5 }
  0xd6   :  { %v472_v21 = vadd.f32 %v471_v14, %v470_v25  ;;  %v386_v25 = vmul.f32 %v2056_v24, %v2056_v24  ;;  %v481_v20 = vsel %vm152_vm0, %v385_v4, 0.0  ;;  %2882 = vst [vmem:[#allocation16_spill] sm:$0xff] %v2217_v63 }
  0xd7   :  { %2883 = vst [vmem:[#allocation17_spill] sm:$0xff] %v2224_v0 }
  0xd8   :  { %v474_v19 = vadd.f32 %v473_v12, %v472_v21  ;;  %v387_v21 = vmul.f32 %v2063_v28, %v2063_v28  ;;  %v483_v22 = vsel %vm152_vm0, %v386_v25, 0.0 }
  0xda   :  { %v476_v14 = vadd.f32 %v475_v27, %v474_v19  ;;  %v388_v19 = vmul.f32 %v2070_v29, %v2070_v29  ;;  %v485_v4 = vsel %vm152_vm0, %v387_v21, 0.0 }
  0xdc   :  { %v478_v12 = vadd.f32 %v477_v18, %v476_v14  ;;  %v389_v14 = vmul.f32 %v2077_v30, %v2077_v30  ;;  %v487_v25 = vsel %vm152_vm0, %v388_v19, 0.0 }
  0xde   :  { %v480_v27 = vadd.f32 %v479_v53, %v478_v12  ;;  %v390_v12 = vmul.f32 %v2084_v34, %v2084_v34  ;;  %v489_v21 = vsel %vm152_vm0, %v389_v14, 0.0 }
  0xe0   :  { %v482_v18 = vadd.f32 %v481_v20, %v480_v27  ;;  %v391_v27 = vmul.f32 %v2091_v35, %v2091_v35  ;;  %v491_v19 = vsel %vm152_vm0, %v390_v12, 0.0 }
  0xe2   :  { %v484_v53 = vadd.f32 %v483_v22, %v482_v18  ;;  %v392_v18 = vmul.f32 %v2098_v36, %v2098_v36  ;;  %v493_v14 = vsel %vm152_vm0, %v391_v27, 0.0 }
  0xe4   :  { %v486_v20 = vadd.f32 %v485_v4, %v484_v53  ;;  %v393_v53 = vmul.f32 %v2105_v37, %v2105_v37  ;;  %v495_v12 = vsel %vm152_vm0, %v392_v18, 0.0 }
  0xe6   :  { %v488_v22 = vadd.f32 %v487_v25, %v486_v20  ;;  %v394_v20 = vmul.f32 %v2112_v41, %v2112_v41  ;;  %v497_v27 = vsel %vm152_vm0, %v393_v53, 0.0 }
  0xe8   :  { %v490_v4 = vadd.f32 %v489_v21, %v488_v22  ;;  %v395_v22 = vmul.f32 %v2119_v42, %v2119_v42  ;;  %v499_v18 = vsel %vm152_vm0, %v394_v20, 0.0 }
  0xea   :  { %v492_v25 = vadd.f32 %v491_v19, %v490_v4  ;;  %v396_v4 = vmul.f32 %v2126_v43, %v2126_v43  ;;  %v501_v53 = vsel %vm152_vm0, %v395_v22, 0.0 }
  0xec   :  { %v494_v21 = vadd.f32 %v493_v14, %v492_v25  ;;  %v397_v25 = vmul.f32 %v2133_v44, %v2133_v44  ;;  %v503_v20 = vsel %vm152_vm0, %v396_v4, 0.0 }
  0xee   :  { %v496_v19 = vadd.f32 %v495_v12, %v494_v21  ;;  %v398_v21 = vmul.f32 %v2140_v48, %v2140_v48  ;;  %v505_v22 = vsel %vm152_vm0, %v397_v25, 0.0 }
  0xf0   :  { %v498_v14 = vadd.f32 %v497_v27, %v496_v19  ;;  %v399_v19 = vmul.f32 %v2147_v49, %v2147_v49  ;;  %v507_v4 = vsel %vm152_vm0, %v398_v21, 0.0 }
  0xf2   :  { %v500_v12 = vadd.f32 %v499_v18, %v498_v14  ;;  %v400_v14 = vmul.f32 %v2154_v50, %v2154_v50  ;;  %v509_v25 = vsel %vm152_vm0, %v399_v19, 0.0 }
  0xf4   :  { %v502_v27 = vadd.f32 %v501_v53, %v500_v12  ;;  %v401_v12 = vmul.f32 %v2161_v51, %v2161_v51  ;;  %v511_v21 = vsel %vm152_vm0, %v400_v14, 0.0 }
  0xf6   :  { %v504_v18 = vadd.f32 %v503_v20, %v502_v27  ;;  %v402_v27 = vmul.f32 %v2168_v55, %v2168_v55  ;;  %v513_v19 = vsel %vm152_vm0, %v401_v12, 0.0 }
  0xf8   :  { %v506_v53 = vadd.f32 %v505_v22, %v504_v18  ;;  %v403_v18 = vmul.f32 %v2175_v56, %v2175_v56  ;;  %v515_v14 = vsel %vm152_vm0, %v402_v27, 0.0 }
  0xfa   :  { %v508_v20 = vadd.f32 %v507_v4, %v506_v53  ;;  %v404_v53 = vmul.f32 %v2182_v57, %v2182_v57  ;;  %v517_v12 = vsel %vm152_vm0, %v403_v18, 0.0 }
  0xfc   :  { %v510_v22 = vadd.f32 %v509_v25, %v508_v20  ;;  %v405_v20 = vmul.f32 %v2189_v58, %v2189_v58  ;;  %v519_v27 = vsel %vm152_vm0, %v404_v53, 0.0 }
  0xfe   :  { %v512_v4 = vadd.f32 %v511_v21, %v510_v22  ;;  %v406_v22 = vmul.f32 %v2196_v60, %v2196_v60  ;;  %v521_v18 = vsel %vm152_vm0, %v405_v20, 0.0 }
 0x100   :  { %v514_v25 = vadd.f32 %v513_v19, %v512_v4  ;;  %v407_v4 = vmul.f32 %v2203_v61, %v2203_v61  ;;  %v523_v53 = vsel %vm152_vm0, %v406_v22, 0.0  ;;  %v409_v61 = vmul.f32 %v2217_v63, %v2217_v63 }
 0x102   :  { %v516_v21 = vadd.f32 %v515_v14, %v514_v25  ;;  %v408_v25 = vmul.f32 %v2210_v62, %v2210_v62  ;;  %v525_v20 = vsel %vm152_vm0, %v407_v4, 0.0  ;;  %v410_v62 = vmul.f32 %v2224_v0, %v2224_v0 }
 0x103   :  { %v529_v4 = vsel %vm152_vm0, %v409_v61, 0.0 }
 0x104   :  { %v518_v19 = vadd.f32 %v517_v12, %v516_v21  ;;  %v2884_v21 = vld [vmem:[#allocation2_spill] sm:$0xff]  ;;  %v527_v22 = vsel %vm152_vm0, %v408_v25, 0.0  ;;  %v531_v25 = vsel %vm152_vm0, %v410_v62, 0.0 }
 0x105   :  { %v2231_v1 = vsub.f32 %v2884_v21, %v1822_v5 }
 0x106   :  { %v520_v14 = vadd.f32 %v519_v27, %v518_v19  ;;  %v2886_v19 = vld [vmem:[#allocation3_spill] sm:$0xff] }
 0x107   :  { %2885 = vst [vmem:[#allocation2_spill] sm:$0xff] %v2231_v1  ;;  %v2238_v2 = vsub.f32 %v2886_v19, %v1822_v5  ;;  %v411_v21 = vmul.f32 %v2231_v1, %v2231_v1 }
 0x108   :  { %v522_v12 = vadd.f32 %v521_v18, %v520_v14  ;;  %v2245_v14 = vsub.f32 %v1518_v6, %v1822_v5  ;;  %v2259_v6 = vsub.f32 %v1524_v8, %v1822_v5 }
 0x109   :  { %2887 = vst [vmem:[#allocation3_spill] sm:$0xff] %v2238_v2  ;;  %v412_v19 = vmul.f32 %v2238_v2, %v2238_v2  ;;  %v533_v61 = vsel %vm152_vm0, %v411_v21, 0.0 }
 0x10a   :  { %v524_v27 = vadd.f32 %v523_v53, %v522_v12  ;;  %2888 = vst [vmem:[#allocation20_spill] sm:$0xff] %v2245_v14  ;;  %v2252_v12 = vsub.f32 %v1521_v7, %v1822_v5  ;;  %2890 = vst [vmem:[#allocation22_spill] sm:$0xff] %v2259_v6  ;;  %v415_v62 = vmul.f32 %v2259_v6, %v2259_v6 }
 0x10c   :  { %v526_v18 = vadd.f32 %v525_v20, %v524_v27  ;;  %2889 = vst [vmem:[#allocation21_spill] sm:$0xff] %v2252_v12  ;;  %v413_v27 = vmul.f32 %v2245_v14, %v2245_v14  ;;  %v414_v7 = vmul.f32 %v2252_v12, %v2252_v12  ;;  %v541_v14 = vsel %vm152_vm0, %v415_v62, 0.0 }
 0x10e   :  { %v528_v53 = vadd.f32 %v527_v22, %v526_v18  ;;  %v535_v18 = vsel %vm152_vm0, %v412_v19, 0.0  ;;  %v539_v5 = vsel %vm152_vm0, %v414_v7, 0.0 }
 0x110   :  { %v530_v20 = vadd.f32 %v529_v4, %v528_v53  ;;  %v537_v4 = vsel %vm152_vm0, %v413_v27, 0.0 }
 0x112   :  { %v532_v22 = vadd.f32 %v531_v25, %v530_v20 }
 0x114   :  { %v534_v1 = vadd.f32 %v533_v61, %v532_v22 }
 0x116   :  { %v536_v53 = vadd.f32 %v535_v18, %v534_v1  ;;  %v2277_v1 = vld [vmem:[%s2798_s2] ss:$0 sm:$0xff] }
 0x118   :  { %v538_v8 = vadd.f32 %v537_v4, %v536_v53 }
 0x11a   :  { %v540_v2 = vadd.f32 %v539_v5, %v538_v8 }
 0x11c   :  { %v542_v21 = vadd.f32 %v541_v14, %v540_v2 }
 0x11e   :  { %v543_v25 = vrot.slane %v542_v21, 4 }
 0x120   :  { %v544_v20 = vadd.f32 %v543_v25, %v542_v21 }
 0x122   :  { %v545_v0 = vrot.slane %v544_v20, 2 }
 0x124   :  { %v546_v12 = vadd.f32 %v545_v0, %v544_v20 }
 0x126   :  { %v547_v63 = vrot.slane %v546_v12, 1 }
 0x128   :  { %v548_v19 = vadd.f32 %v547_v63, %v546_v12  ;;  %v2290_v12 = vld [vmem:[%s2799_s3] ss:$0 sm:$0xff] }
 0x12a   :  { %v549_v61 = vmul.f32 0.001953125, %v548_v19 }
 0x12c   :  { %v550_v22 = vadd.f32 1e-05, %v549_v61 }
 0x12e   :  { %1278 = vrsqrt.f32 %v550_v22 }
 0x138   :  { %v2272_v6 = vpop.eup %1278 }
 0x139   :  { %v552_v2 = vmul.f32 %v2272_v6, %v1826_v45  ;;  %v553_v14 = vmul.f32 %v2272_v6, %v1830_v54  ;;  %v554_v63 = vmul.f32 %v2272_v6, %v1834_v46  ;;  %v555_v0 = vmul.f32 %v2272_v6, %v1838_v52 }
 0x13a   :  { %v556_v27 = vmul.f32 %v2272_v6, %v1842_v3  ;;  %v557_v45 = vmul.f32 %v2272_v6, %v1852_v23  ;;  %v558_v54 = vmul.f32 %v2272_v6, %v1858_v9  ;;  %v559_v46 = vmul.f32 %v2272_v6, %v1867_v16 }
 0x13b   :  { %v623_v7 = vmul.f32 %v2277_v1, %v552_v2  ;;  %v624_v52 = vmul.f32 %v2277_v1, %v553_v14  ;;  %v625_v18 = vmul.f32 %v2277_v1, %v554_v63  ;;  %v626_v62 = vmul.f32 %v2277_v1, %v555_v0 }
 0x13c   :  { %v627_v4 = vmul.f32 %v2277_v1, %v556_v27  ;;  %v628_v3 = vmul.f32 %v2277_v1, %v557_v45  ;;  %v629_v23 = vmul.f32 %v2277_v1, %v558_v54  ;;  %v630_v53 = vmul.f32 %v2277_v1, %v559_v46 }
 0x13d   :  { %v694_v9 = vadd.f32 %v2290_v12, %v623_v7  ;;  %v695_v16 = vadd.f32 %v2290_v12, %v624_v52  ;;  %v696_v5 = vadd.f32 %v2290_v12, %v625_v18  ;;  %v697_v8 = vadd.f32 %v2290_v12, %v626_v62 }
 0x13e   :  { %v698_v21 = vadd.f32 %v2290_v12, %v627_v4  ;;  %v699_v25 = vadd.f32 %v2290_v12, %v628_v3  ;;  %v700_v20 = vadd.f32 %v2290_v12, %v629_v23  ;;  %v701_v19 = vadd.f32 %v2290_v12, %v630_v53 }
 0x13f   :  { %v758_v61 = vmax.f32 %v694_v9, 0.0  ;;  %v759_v22 = vmax.f32 %v695_v16, 0.0  ;;  %v760_v2 = vmax.f32 %v696_v5, 0.0  ;;  %v761_v14 = vmax.f32 %v697_v8, 0.0  ;;  %v2892_v5 = vld [vmem:[#allocation19_spill] sm:$0xff] }
 0x140   :  { %v762_v63 = vmax.f32 %v698_v21, 0.0  ;;  %v763_v0 = vmax.f32 %v699_v25, 0.0  ;;  %v764_v27 = vmax.f32 %v700_v20, 0.0  ;;  %v765_v45 = vmax.f32 %v701_v19, 0.0 }
 0x141   :  { %v1214_v54 = vpack.c.bf16 %v758_v61, %v758_v61  ;;  %v1215_v46 = vpack.c.bf16 %v759_v22, %v759_v22  ;;  %v1216_v7 = vpack.c.bf16 %v760_v2, %v760_v2  ;;  %v1217_v52 = vpack.c.bf16 %v761_v14, %v761_v14 }
 0x142   :  { %v1218_v18 = vpack.c.bf16 %v762_v63, %v762_v63  ;;  %v1219_v62 = vpack.c.bf16 %v763_v0, %v763_v0  ;;  %v1220_v4 = vpack.c.bf16 %v764_v27, %v764_v27  ;;  %v1221_v3 = vpack.c.bf16 %v765_v45, %v765_v45 }
 0x143   :  { %1079 = vst.msk [vmem:[%s2800_s4] sm:$0xf] %vm1078_vm1, %v1214_v54  ;;  %1080 = vst.msk [vmem:[%s2800_s4 + $0x4] sm:$0xf] %vm1078_vm1, %v1215_v46  ;;  %v560_v23 = vmul.f32 %v2272_v6, %v1874_v38  ;;  %v561_v53 = vmul.f32 %v2272_v6, %v1881_v31  ;;  %v562_v9 = vmul.f32 %v2272_v6, %v1888_v39  ;;  %v2891_v39 = vld [vmem:[#allocation18_spill] sm:$0xff] }
 0x144   :  { %1081 = vst.msk [vmem:[%s2800_s4 + $0x8] sm:$0xf] %vm1078_vm1, %v1216_v7  ;;  %1082 = vst.msk [vmem:[%s2800_s4 + $0xc] sm:$0xf] %vm1078_vm1, %v1217_v52  ;;  %v563_v16 = vmul.f32 %v2272_v6, %v1895_v47  ;;  %v564_v38 = vmul.f32 %v2272_v6, %v1902_v59  ;;  %v565_v31 = vmul.f32 %v2272_v6, %v1909_v13 }
 0x145   :  { %1083 = vst.msk [vmem:[%s2800_s4 + $0x10] sm:$0xf] %vm1078_vm1, %v1218_v18  ;;  %1084 = vst.msk [vmem:[%s2800_s4 + $0x14] sm:$0xf] %vm1078_vm1, %v1219_v62  ;;  %v566_v47 = vmul.f32 %v2272_v6, %v2891_v39  ;;  %v567_v8 = vmul.f32 %v2272_v6, %v2892_v5  ;;  %v631_v21 = vmul.f32 %v2277_v1, %v560_v23 }
 0x146   :  { %1085 = vst.msk [vmem:[%s2800_s4 + $0x18] sm:$0xf] %vm1078_vm1, %v1220_v4  ;;  %1086 = vst.msk [vmem:[%s2800_s4 + $0x1c] sm:$0xf] %vm1078_vm1, %v1221_v3  ;;  %v632_v25 = vmul.f32 %v2277_v1, %v561_v53  ;;  %v633_v20 = vmul.f32 %v2277_v1, %v562_v9  ;;  %v634_v19 = vmul.f32 %v2277_v1, %v563_v16 }
 0x147   :  { %v635_v61 = vmul.f32 %v2277_v1, %v564_v38  ;;  %v636_v59 = vmul.f32 %v2277_v1, %v565_v31  ;;  %v637_v13 = vmul.f32 %v2277_v1, %v566_v47  ;;  %v638_v22 = vmul.f32 %v2277_v1, %v567_v8 }
 0x148   :  { %v702_v2 = vadd.f32 %v2290_v12, %v631_v21  ;;  %v703_v14 = vadd.f32 %v2290_v12, %v632_v25  ;;  %v704_v63 = vadd.f32 %v2290_v12, %v633_v20  ;;  %v705_v0 = vadd.f32 %v2290_v12, %v634_v19  ;;  %v2893_v21 = vld [vmem:[#allocation4_spill] sm:$0xff]  ;;  %v2894_v20 = vld [vmem:[#allocation5_spill] sm:$0xff] }
 0x149   :  { %v706_v27 = vadd.f32 %v2290_v12, %v635_v61  ;;  %v707_v45 = vadd.f32 %v2290_v12, %v636_v59  ;;  %v708_v54 = vadd.f32 %v2290_v12, %v637_v13  ;;  %v709_v46 = vadd.f32 %v2290_v12, %v638_v22  ;;  %v2895_v61 = vld [vmem:[#allocation6_spill] sm:$0xff]  ;;  %v2896_v13 = vld [vmem:[#allocation7_spill] sm:$0xff] }
 0x14a   :  { %v766_v7 = vmax.f32 %v702_v2, 0.0  ;;  %v767_v52 = vmax.f32 %v703_v14, 0.0  ;;  %v768_v18 = vmax.f32 %v704_v63, 0.0  ;;  %v769_v62 = vmax.f32 %v705_v0, 0.0  ;;  %v2897_v2 = vld [vmem:[#allocation8_spill] sm:$0xff]  ;;  %v2898_v63 = vld [vmem:[#allocation9_spill] sm:$0xff] }
 0x14b   :  { %v770_v4 = vmax.f32 %v706_v27, 0.0  ;;  %v771_v3 = vmax.f32 %v707_v45, 0.0  ;;  %v772_v23 = vmax.f32 %v708_v54, 0.0  ;;  %v773_v53 = vmax.f32 %v709_v46, 0.0  ;;  %v2899_v27 = vld [vmem:[#allocation10_spill] sm:$0xff]  ;;  %v2900_v54 = vld [vmem:[#allocation11_spill] sm:$0xff] }
 0x14c   :  { %v1222_v9 = vpack.c.bf16 %v766_v7, %v766_v7  ;;  %v1223_v16 = vpack.c.bf16 %v767_v52, %v767_v52  ;;  %v1224_v38 = vpack.c.bf16 %v768_v18, %v768_v18  ;;  %v1225_v31 = vpack.c.bf16 %v769_v62, %v769_v62 }
 0x14d   :  { %v1226_v39 = vpack.c.bf16 %v770_v4, %v770_v4  ;;  %v1227_v47 = vpack.c.bf16 %v771_v3, %v771_v3  ;;  %v1228_v5 = vpack.c.bf16 %v772_v23, %v772_v23  ;;  %v1229_v8 = vpack.c.bf16 %v773_v53, %v773_v53 }
 0x14e   :  { %1087 = vst.msk [vmem:[%s2800_s4 + $0x20] sm:$0xf] %vm1078_vm1, %v1222_v9  ;;  %1088 = vst.msk [vmem:[%s2800_s4 + $0x24] sm:$0xf] %vm1078_vm1, %v1223_v16  ;;  %v568_v25 = vmul.f32 %v2272_v6, %v2893_v21  ;;  %v569_v19 = vmul.f32 %v2272_v6, %v2894_v20  ;;  %v570_v59 = vmul.f32 %v2272_v6, %v2895_v61 }
 0x14f   :  { %1089 = vst.msk [vmem:[%s2800_s4 + $0x28] sm:$0xf] %vm1078_vm1, %v1224_v38  ;;  %1090 = vst.msk [vmem:[%s2800_s4 + $0x2c] sm:$0xf] %vm1078_vm1, %v1225_v31  ;;  %v571_v22 = vmul.f32 %v2272_v6, %v2896_v13  ;;  %v572_v14 = vmul.f32 %v2272_v6, %v2897_v2  ;;  %v573_v0 = vmul.f32 %v2272_v6, %v2898_v63 }
 0x150   :  { %1091 = vst.msk [vmem:[%s2800_s4 + $0x30] sm:$0xf] %vm1078_vm1, %v1226_v39  ;;  %1092 = vst.msk [vmem:[%s2800_s4 + $0x34] sm:$0xf] %vm1078_vm1, %v1227_v47  ;;  %v574_v45 = vmul.f32 %v2272_v6, %v2899_v27  ;;  %v575_v46 = vmul.f32 %v2272_v6, %v2900_v54  ;;  %v639_v7 = vmul.f32 %v2277_v1, %v568_v25 }
 0x151   :  { %1093 = vst.msk [vmem:[%s2800_s4 + $0x38] sm:$0xf] %vm1078_vm1, %v1228_v5  ;;  %1094 = vst.msk [vmem:[%s2800_s4 + $0x3c] sm:$0xf] %vm1078_vm1, %v1229_v8  ;;  %v640_v52 = vmul.f32 %v2277_v1, %v569_v19  ;;  %v641_v18 = vmul.f32 %v2277_v1, %v570_v59  ;;  %v642_v62 = vmul.f32 %v2277_v1, %v571_v22 }
 0x152   :  { %v643_v4 = vmul.f32 %v2277_v1, %v572_v14  ;;  %v644_v3 = vmul.f32 %v2277_v1, %v573_v0  ;;  %v645_v23 = vmul.f32 %v2277_v1, %v574_v45  ;;  %v646_v53 = vmul.f32 %v2277_v1, %v575_v46 }
 0x153   :  { %v710_v9 = vadd.f32 %v2290_v12, %v639_v7  ;;  %v711_v16 = vadd.f32 %v2290_v12, %v640_v52  ;;  %v712_v38 = vadd.f32 %v2290_v12, %v641_v18  ;;  %v713_v31 = vadd.f32 %v2290_v12, %v642_v62  ;;  %v2901_v7 = vld [vmem:[#allocation12_spill] sm:$0xff]  ;;  %v2902_v18 = vld [vmem:[#allocation13_spill] sm:$0xff] }
 0x154   :  { %v714_v39 = vadd.f32 %v2290_v12, %v643_v4  ;;  %v715_v47 = vadd.f32 %v2290_v12, %v644_v3  ;;  %v716_v5 = vadd.f32 %v2290_v12, %v645_v23  ;;  %v717_v8 = vadd.f32 %v2290_v12, %v646_v53 }
 0x155   :  { %v774_v21 = vmax.f32 %v710_v9, 0.0  ;;  %v775_v25 = vmax.f32 %v711_v16, 0.0  ;;  %v776_v20 = vmax.f32 %v712_v38, 0.0  ;;  %v777_v19 = vmax.f32 %v713_v31, 0.0 }
 0x156   :  { %v778_v61 = vmax.f32 %v714_v39, 0.0  ;;  %v779_v59 = vmax.f32 %v715_v47, 0.0  ;;  %v780_v13 = vmax.f32 %v716_v5, 0.0  ;;  %v781_v22 = vmax.f32 %v717_v8, 0.0 }
 0x157   :  { %v1230_v2 = vpack.c.bf16 %v774_v21, %v774_v21  ;;  %v1231_v14 = vpack.c.bf16 %v775_v25, %v775_v25  ;;  %v1232_v63 = vpack.c.bf16 %v776_v20, %v776_v20  ;;  %v1233_v0 = vpack.c.bf16 %v777_v19, %v777_v19 }
 0x158   :  { %v1234_v27 = vpack.c.bf16 %v778_v61, %v778_v61  ;;  %v1235_v45 = vpack.c.bf16 %v779_v59, %v779_v59  ;;  %v1236_v54 = vpack.c.bf16 %v780_v13, %v780_v13  ;;  %v1237_v46 = vpack.c.bf16 %v781_v22, %v781_v22 }
 0x159   :  { %1095 = vst.msk [vmem:[%s2800_s4 + $0x40] sm:$0xf] %vm1078_vm1, %v1230_v2  ;;  %1096 = vst.msk [vmem:[%s2800_s4 + $0x44] sm:$0xf] %vm1078_vm1, %v1231_v14  ;;  %v576_v52 = vmul.f32 %v2272_v6, %v2901_v7  ;;  %v577_v62 = vmul.f32 %v2272_v6, %v2902_v18  ;;  %v578_v4 = vmul.f32 %v2272_v6, %v2000_v11 }
 0x15a   :  { %1097 = vst.msk [vmem:[%s2800_s4 + $0x48] sm:$0xf] %vm1078_vm1, %v1232_v63  ;;  %1098 = vst.msk [vmem:[%s2800_s4 + $0x4c] sm:$0xf] %vm1078_vm1, %v1233_v0  ;;  %v579_v3 = vmul.f32 %v2272_v6, %v2007_v10  ;;  %v580_v11 = vmul.f32 %v2272_v6, %v2014_v17  ;;  %v581_v10 = vmul.f32 %v2272_v6, %v2021_v33 }
 0x15b   :  { %1099 = vst.msk [vmem:[%s2800_s4 + $0x50] sm:$0xf] %vm1078_vm1, %v1234_v27  ;;  %1100 = vst.msk [vmem:[%s2800_s4 + $0x54] sm:$0xf] %vm1078_vm1, %v1235_v45  ;;  %v582_v23 = vmul.f32 %v2272_v6, %v2028_v26  ;;  %v583_v53 = vmul.f32 %v2272_v6, %v2035_v40  ;;  %v647_v9 = vmul.f32 %v2277_v1, %v576_v52 }
 0x15c   :  { %1101 = vst.msk [vmem:[%s2800_s4 + $0x58] sm:$0xf] %vm1078_vm1, %v1236_v54  ;;  %1102 = vst.msk [vmem:[%s2800_s4 + $0x5c] sm:$0xf] %vm1078_vm1, %v1237_v46  ;;  %v648_v16 = vmul.f32 %v2277_v1, %v577_v62  ;;  %v649_v38 = vmul.f32 %v2277_v1, %v578_v4  ;;  %v650_v31 = vmul.f32 %v2277_v1, %v579_v3 }
 0x15d   :  { %v651_v39 = vmul.f32 %v2277_v1, %v580_v11  ;;  %v652_v17 = vmul.f32 %v2277_v1, %v581_v10  ;;  %v653_v33 = vmul.f32 %v2277_v1, %v582_v23  ;;  %v654_v47 = vmul.f32 %v2277_v1, %v583_v53 }
 0x15e   :  { %v718_v26 = vadd.f32 %v2290_v12, %v647_v9  ;;  %v719_v40 = vadd.f32 %v2290_v12, %v648_v16  ;;  %v720_v5 = vadd.f32 %v2290_v12, %v649_v38  ;;  %v721_v8 = vadd.f32 %v2290_v12, %v650_v31 }
 0x15f   :  { %v722_v21 = vadd.f32 %v2290_v12, %v651_v39  ;;  %v723_v25 = vadd.f32 %v2290_v12, %v652_v17  ;;  %v724_v20 = vadd.f32 %v2290_v12, %v653_v33  ;;  %v725_v19 = vadd.f32 %v2290_v12, %v654_v47 }
 0x160   :  { %v782_v61 = vmax.f32 %v718_v26, 0.0  ;;  %v783_v59 = vmax.f32 %v719_v40, 0.0  ;;  %v784_v13 = vmax.f32 %v720_v5, 0.0  ;;  %v785_v22 = vmax.f32 %v721_v8, 0.0 }
 0x161   :  { %v786_v2 = vmax.f32 %v722_v21, 0.0  ;;  %v787_v14 = vmax.f32 %v723_v25, 0.0  ;;  %v788_v63 = vmax.f32 %v724_v20, 0.0  ;;  %v789_v0 = vmax.f32 %v725_v19, 0.0 }
 0x162   :  { %v1238_v27 = vpack.c.bf16 %v782_v61, %v782_v61  ;;  %v1239_v45 = vpack.c.bf16 %v783_v59, %v783_v59  ;;  %v1240_v54 = vpack.c.bf16 %v784_v13, %v784_v13  ;;  %v1241_v46 = vpack.c.bf16 %v785_v22, %v785_v22 }
 0x163   :  { %v1242_v7 = vpack.c.bf16 %v786_v2, %v786_v2  ;;  %v1243_v52 = vpack.c.bf16 %v787_v14, %v787_v14  ;;  %v1244_v18 = vpack.c.bf16 %v788_v63, %v788_v63  ;;  %v1245_v62 = vpack.c.bf16 %v789_v0, %v789_v0 }
 0x164   :  { %1103 = vst.msk [vmem:[%s2800_s4 + $0x60] sm:$0xf] %vm1078_vm1, %v1238_v27  ;;  %1104 = vst.msk [vmem:[%s2800_s4 + $0x64] sm:$0xf] %vm1078_vm1, %v1239_v45  ;;  %v584_v4 = vmul.f32 %v2272_v6, %v2042_v15  ;;  %v585_v3 = vmul.f32 %v2272_v6, %v2049_v32  ;;  %v586_v11 = vmul.f32 %v2272_v6, %v2056_v24 }
 0x165   :  { %1105 = vst.msk [vmem:[%s2800_s4 + $0x68] sm:$0xf] %vm1078_vm1, %v1240_v54  ;;  %1106 = vst.msk [vmem:[%s2800_s4 + $0x6c] sm:$0xf] %vm1078_vm1, %v1241_v46  ;;  %v587_v10 = vmul.f32 %v2272_v6, %v2063_v28  ;;  %v588_v15 = vmul.f32 %v2272_v6, %v2070_v29  ;;  %v589_v32 = vmul.f32 %v2272_v6, %v2077_v30 }
 0x166   :  { %1107 = vst.msk [vmem:[%s2800_s4 + $0x70] sm:$0xf] %vm1078_vm1, %v1242_v7  ;;  %1108 = vst.msk [vmem:[%s2800_s4 + $0x74] sm:$0xf] %vm1078_vm1, %v1243_v52  ;;  %v590_v24 = vmul.f32 %v2272_v6, %v2084_v34  ;;  %v591_v28 = vmul.f32 %v2272_v6, %v2091_v35  ;;  %v655_v23 = vmul.f32 %v2277_v1, %v584_v4 }
 0x167   :  { %1109 = vst.msk [vmem:[%s2800_s4 + $0x78] sm:$0xf] %vm1078_vm1, %v1244_v18  ;;  %1110 = vst.msk [vmem:[%s2800_s4 + $0x7c] sm:$0xf] %vm1078_vm1, %v1245_v62  ;;  %v656_v53 = vmul.f32 %v2277_v1, %v585_v3  ;;  %v657_v9 = vmul.f32 %v2277_v1, %v586_v11  ;;  %v658_v16 = vmul.f32 %v2277_v1, %v587_v10 }
 0x168   :  { %v659_v38 = vmul.f32 %v2277_v1, %v588_v15  ;;  %v660_v29 = vmul.f32 %v2277_v1, %v589_v32  ;;  %v661_v30 = vmul.f32 %v2277_v1, %v590_v24  ;;  %v662_v31 = vmul.f32 %v2277_v1, %v591_v28 }
 0x169   :  { %v726_v34 = vadd.f32 %v2290_v12, %v655_v23  ;;  %v727_v35 = vadd.f32 %v2290_v12, %v656_v53  ;;  %v728_v39 = vadd.f32 %v2290_v12, %v657_v9  ;;  %v729_v17 = vadd.f32 %v2290_v12, %v658_v16 }
 0x16a   :  { %v730_v33 = vadd.f32 %v2290_v12, %v659_v38  ;;  %v731_v47 = vadd.f32 %v2290_v12, %v660_v29  ;;  %v732_v26 = vadd.f32 %v2290_v12, %v661_v30  ;;  %v733_v40 = vadd.f32 %v2290_v12, %v662_v31 }
 0x16b   :  { %v790_v5 = vmax.f32 %v726_v34, 0.0  ;;  %v791_v8 = vmax.f32 %v727_v35, 0.0  ;;  %v792_v21 = vmax.f32 %v728_v39, 0.0  ;;  %v793_v25 = vmax.f32 %v729_v17, 0.0 }
 0x16c   :  { %v794_v20 = vmax.f32 %v730_v33, 0.0  ;;  %v795_v19 = vmax.f32 %v731_v47, 0.0  ;;  %v796_v61 = vmax.f32 %v732_v26, 0.0  ;;  %v797_v59 = vmax.f32 %v733_v40, 0.0 }
 0x16d   :  { %v1246_v13 = vpack.c.bf16 %v790_v5, %v790_v5  ;;  %v1247_v22 = vpack.c.bf16 %v791_v8, %v791_v8  ;;  %v1248_v2 = vpack.c.bf16 %v792_v21, %v792_v21  ;;  %v1249_v14 = vpack.c.bf16 %v793_v25, %v793_v25 }
 0x16e   :  { %v1250_v63 = vpack.c.bf16 %v794_v20, %v794_v20  ;;  %v1251_v0 = vpack.c.bf16 %v795_v19, %v795_v19  ;;  %v1252_v27 = vpack.c.bf16 %v796_v61, %v796_v61  ;;  %v1253_v45 = vpack.c.bf16 %v797_v59, %v797_v59 }
 0x16f   :  { %1111 = vst.msk [vmem:[%s2800_s4 + $0x80] sm:$0xf] %vm1078_vm1, %v1246_v13  ;;  %1112 = vst.msk [vmem:[%s2800_s4 + $0x84] sm:$0xf] %vm1078_vm1, %v1247_v22  ;;  %v592_v54 = vmul.f32 %v2272_v6, %v2098_v36  ;;  %v593_v46 = vmul.f32 %v2272_v6, %v2105_v37  ;;  %v594_v7 = vmul.f32 %v2272_v6, %v2112_v41 }
 0x170   :  { %1113 = vst.msk [vmem:[%s2800_s4 + $0x88] sm:$0xf] %vm1078_vm1, %v1248_v2  ;;  %1114 = vst.msk [vmem:[%s2800_s4 + $0x8c] sm:$0xf] %vm1078_vm1, %v1249_v14  ;;  %v595_v52 = vmul.f32 %v2272_v6, %v2119_v42  ;;  %v596_v36 = vmul.f32 %v2272_v6, %v2126_v43  ;;  %v597_v37 = vmul.f32 %v2272_v6, %v2133_v44 }
 0x171   :  { %1115 = vst.msk [vmem:[%s2800_s4 + $0x90] sm:$0xf] %vm1078_vm1, %v1250_v63  ;;  %1116 = vst.msk [vmem:[%s2800_s4 + $0x94] sm:$0xf] %vm1078_vm1, %v1251_v0  ;;  %v598_v41 = vmul.f32 %v2272_v6, %v2140_v48  ;;  %v599_v42 = vmul.f32 %v2272_v6, %v2147_v49  ;;  %v663_v18 = vmul.f32 %v2277_v1, %v592_v54 }
 0x172   :  { %1117 = vst.msk [vmem:[%s2800_s4 + $0x98] sm:$0xf] %vm1078_vm1, %v1252_v27  ;;  %1118 = vst.msk [vmem:[%s2800_s4 + $0x9c] sm:$0xf] %vm1078_vm1, %v1253_v45  ;;  %v664_v62 = vmul.f32 %v2277_v1, %v593_v46  ;;  %v665_v4 = vmul.f32 %v2277_v1, %v594_v7  ;;  %v666_v3 = vmul.f32 %v2277_v1, %v595_v52 }
 0x173   :  { %v667_v11 = vmul.f32 %v2277_v1, %v596_v36  ;;  %v668_v43 = vmul.f32 %v2277_v1, %v597_v37  ;;  %v669_v44 = vmul.f32 %v2277_v1, %v598_v41  ;;  %v670_v10 = vmul.f32 %v2277_v1, %v599_v42 }
 0x174   :  { %v734_v48 = vadd.f32 %v2290_v12, %v663_v18  ;;  %v735_v49 = vadd.f32 %v2290_v12, %v664_v62  ;;  %v736_v15 = vadd.f32 %v2290_v12, %v665_v4  ;;  %v737_v32 = vadd.f32 %v2290_v12, %v666_v3 }
 0x175   :  { %v738_v24 = vadd.f32 %v2290_v12, %v667_v11  ;;  %v739_v28 = vadd.f32 %v2290_v12, %v668_v43  ;;  %v740_v23 = vadd.f32 %v2290_v12, %v669_v44  ;;  %v741_v53 = vadd.f32 %v2290_v12, %v670_v10 }
 0x176   :  { %v798_v9 = vmax.f32 %v734_v48, 0.0  ;;  %v799_v16 = vmax.f32 %v735_v49, 0.0  ;;  %v800_v38 = vmax.f32 %v736_v15, 0.0  ;;  %v801_v29 = vmax.f32 %v737_v32, 0.0 }
 0x177   :  { %v802_v30 = vmax.f32 %v738_v24, 0.0  ;;  %v803_v31 = vmax.f32 %v739_v28, 0.0  ;;  %v804_v34 = vmax.f32 %v740_v23, 0.0  ;;  %v805_v35 = vmax.f32 %v741_v53, 0.0  ;;  %v2904_v24 = vld [vmem:[#allocation15_spill] sm:$0xff]  ;;  %v2905_v23 = vld [vmem:[#allocation16_spill] sm:$0xff] }
 0x178   :  { %v1254_v39 = vpack.c.bf16 %v798_v9, %v798_v9  ;;  %v1255_v17 = vpack.c.bf16 %v799_v16, %v799_v16  ;;  %v1256_v33 = vpack.c.bf16 %v800_v38, %v800_v38  ;;  %v1257_v47 = vpack.c.bf16 %v801_v29, %v801_v29  ;;  %v2906_v9 = vld [vmem:[#allocation17_spill] sm:$0xff]  ;;  %v2907_v38 = vld [vmem:[#allocation2_spill] sm:$0xff] }
 0x179   :  { %v1258_v26 = vpack.c.bf16 %v802_v30, %v802_v30  ;;  %v1259_v40 = vpack.c.bf16 %v803_v31, %v803_v31  ;;  %v1260_v5 = vpack.c.bf16 %v804_v34, %v804_v34  ;;  %v1261_v8 = vpack.c.bf16 %v805_v35, %v805_v35  ;;  %v2908_v30 = vld [vmem:[#allocation3_spill] sm:$0xff]  ;;  %v2909_v34 = vld [vmem:[#allocation20_spill] sm:$0xff] }
 0x17a   :  { %1119 = vst.msk [vmem:[%s2800_s4 + $0xa0] sm:$0xf] %vm1078_vm1, %v1254_v39  ;;  %1120 = vst.msk [vmem:[%s2800_s4 + $0xa4] sm:$0xf] %vm1078_vm1, %v1255_v17  ;;  %v600_v21 = vmul.f32 %v2272_v6, %v2154_v50  ;;  %v601_v25 = vmul.f32 %v2272_v6, %v2161_v51  ;;  %v602_v20 = vmul.f32 %v2272_v6, %v2168_v55  ;;  %v2910_v39 = vld [vmem:[#allocation21_spill] sm:$0xff] }
 0x17b   :  { %1121 = vst.msk [vmem:[%s2800_s4 + $0xa8] sm:$0xf] %vm1078_vm1, %v1256_v33  ;;  %1122 = vst.msk [vmem:[%s2800_s4 + $0xac] sm:$0xf] %vm1078_vm1, %v1257_v47  ;;  %v603_v19 = vmul.f32 %v2272_v6, %v2175_v56  ;;  %v604_v50 = vmul.f32 %v2272_v6, %v2182_v57  ;;  %v605_v51 = vmul.f32 %v2272_v6, %v2189_v58  ;;  %v2903_v56 = vld [vmem:[#allocation14_spill] sm:$0xff] }
 0x17c   :  { %1123 = vst.msk [vmem:[%s2800_s4 + $0xb0] sm:$0xf] %vm1078_vm1, %v1258_v26  ;;  %1124 = vst.msk [vmem:[%s2800_s4 + $0xb4] sm:$0xf] %vm1078_vm1, %v1259_v40  ;;  %v606_v55 = vmul.f32 %v2272_v6, %v2196_v60  ;;  %v607_v61 = vmul.f32 %v2272_v6, %v2903_v56  ;;  %v671_v59 = vmul.f32 %v2277_v1, %v600_v21  ;;  %v2911_v33 = vld [vmem:[#allocation22_spill] sm:$0xff] }
 0x17d   :  { %1125 = vst.msk [vmem:[%s2800_s4 + $0xb8] sm:$0xf] %vm1078_vm1, %v1260_v5  ;;  %1126 = vst.msk [vmem:[%s2800_s4 + $0xbc] sm:$0xf] %vm1078_vm1, %v1261_v8  ;;  %v672_v13 = vmul.f32 %v2277_v1, %v601_v25  ;;  %v673_v22 = vmul.f32 %v2277_v1, %v602_v20  ;;  %v674_v2 = vmul.f32 %v2277_v1, %v603_v19 }
 0x17e   :  { %v675_v14 = vmul.f32 %v2277_v1, %v604_v50  ;;  %v676_v57 = vmul.f32 %v2277_v1, %v605_v51  ;;  %v677_v58 = vmul.f32 %v2277_v1, %v606_v55  ;;  %v678_v63 = vmul.f32 %v2277_v1, %v607_v61 }
 0x17f   :  { %v742_v60 = vadd.f32 %v2290_v12, %v671_v59  ;;  %v743_v0 = vadd.f32 %v2290_v12, %v672_v13  ;;  %v744_v27 = vadd.f32 %v2290_v12, %v673_v22  ;;  %v745_v45 = vadd.f32 %v2290_v12, %v674_v2 }
 0x180   :  { %v746_v54 = vadd.f32 %v2290_v12, %v675_v14  ;;  %v747_v46 = vadd.f32 %v2290_v12, %v676_v57  ;;  %v748_v7 = vadd.f32 %v2290_v12, %v677_v58  ;;  %v749_v52 = vadd.f32 %v2290_v12, %v678_v63 }
 0x181   :  { %v806_v36 = vmax.f32 %v742_v60, 0.0  ;;  %v807_v37 = vmax.f32 %v743_v0, 0.0  ;;  %v808_v41 = vmax.f32 %v744_v27, 0.0  ;;  %v809_v42 = vmax.f32 %v745_v45, 0.0 }
 0x182   :  { %v810_v18 = vmax.f32 %v746_v54, 0.0  ;;  %v811_v62 = vmax.f32 %v747_v46, 0.0  ;;  %v812_v4 = vmax.f32 %v748_v7, 0.0  ;;  %v813_v3 = vmax.f32 %v749_v52, 0.0 }
 0x183   :  { %v1262_v11 = vpack.c.bf16 %v806_v36, %v806_v36  ;;  %v1263_v43 = vpack.c.bf16 %v807_v37, %v807_v37  ;;  %v1264_v44 = vpack.c.bf16 %v808_v41, %v808_v41  ;;  %v1265_v10 = vpack.c.bf16 %v809_v42, %v809_v42 }
 0x184   :  { %v1266_v48 = vpack.c.bf16 %v810_v18, %v810_v18  ;;  %v1267_v49 = vpack.c.bf16 %v811_v62, %v811_v62  ;;  %v1268_v15 = vpack.c.bf16 %v812_v4, %v812_v4  ;;  %v1269_v32 = vpack.c.bf16 %v813_v3, %v813_v3 }
 0x185   :  { %1127 = vst.msk [vmem:[%s2800_s4 + $0xc0] sm:$0xf] %vm1078_vm1, %v1262_v11  ;;  %1128 = vst.msk [vmem:[%s2800_s4 + $0xc4] sm:$0xf] %vm1078_vm1, %v1263_v43  ;;  %v608_v28 = vmul.f32 %v2272_v6, %v2904_v24  ;;  %v609_v53 = vmul.f32 %v2272_v6, %v2905_v23  ;;  %v610_v16 = vmul.f32 %v2272_v6, %v2906_v9 }
 0x186   :  { %1129 = vst.msk [vmem:[%s2800_s4 + $0xc8] sm:$0xf] %vm1078_vm1, %v1264_v44  ;;  %1130 = vst.msk [vmem:[%s2800_s4 + $0xcc] sm:$0xf] %vm1078_vm1, %v1265_v10  ;;  %v611_v29 = vmul.f32 %v2272_v6, %v2907_v38  ;;  %v612_v31 = vmul.f32 %v2272_v6, %v2908_v30  ;;  %v613_v35 = vmul.f32 %v2272_v6, %v2909_v34 }
 0x187   :  { %1131 = vst.msk [vmem:[%s2800_s4 + $0xd0] sm:$0xf] %vm1078_vm1, %v1266_v48  ;;  %1132 = vst.msk [vmem:[%s2800_s4 + $0xd4] sm:$0xf] %vm1078_vm1, %v1267_v49  ;;  %v614_v17 = vmul.f32 %v2272_v6, %v2910_v39  ;;  %v615_v47 = vmul.f32 %v2272_v6, %v2911_v33  ;;  %v679_v26 = vmul.f32 %v2277_v1, %v608_v28 }
 0x188   :  { %1133 = vst.msk [vmem:[%s2800_s4 + $0xd8] sm:$0xf] %vm1078_vm1, %v1268_v15  ;;  %1134 = vst.msk [vmem:[%s2800_s4 + $0xdc] sm:$0xf] %vm1078_vm1, %v1269_v32  ;;  %v680_v40 = vmul.f32 %v2277_v1, %v609_v53  ;;  %v681_v5 = vmul.f32 %v2277_v1, %v610_v16  ;;  %v682_v8 = vmul.f32 %v2277_v1, %v611_v29 }
 0x189   :  { %v683_v21 = vmul.f32 %v2277_v1, %v612_v31  ;;  %v684_v25 = vmul.f32 %v2277_v1, %v613_v35  ;;  %v685_v20 = vmul.f32 %v2277_v1, %v614_v17  ;;  %v686_v19 = vmul.f32 %v2277_v1, %v615_v47 }
 0x18a   :  { %v750_v50 = vadd.f32 %v2290_v12, %v679_v26  ;;  %v751_v6 = vadd.f32 %v2290_v12, %v680_v40  ;;  %v752_v51 = vadd.f32 %v2290_v12, %v681_v5  ;;  %v753_v55 = vadd.f32 %v2290_v12, %v682_v8 }
 0x18b   :  { %v754_v56 = vadd.f32 %v2290_v12, %v683_v21  ;;  %v755_v61 = vadd.f32 %v2290_v12, %v684_v25  ;;  %v756_v59 = vadd.f32 %v2290_v12, %v685_v20  ;;  %v757_v13 = vadd.f32 %v2290_v12, %v686_v19 }
 0x18c   :  { %v814_v22 = vmax.f32 %v750_v50, 0.0  ;;  %v815_v2 = vmax.f32 %v751_v6, 0.0  ;;  %v816_v14 = vmax.f32 %v752_v51, 0.0  ;;  %v817_v1 = vmax.f32 %v753_v55, 0.0 }
 0x18d   :  { %v818_v57 = vmax.f32 %v754_v56, 0.0  ;;  %v819_v58 = vmax.f32 %v755_v61, 0.0  ;;  %v820_v63 = vmax.f32 %v756_v59, 0.0  ;;  %v821_v60 = vmax.f32 %v757_v13, 0.0 }
 0x18e   :  { %v1270_v0 = vpack.c.bf16 %v814_v22, %v814_v22  ;;  %v1271_v27 = vpack.c.bf16 %v815_v2, %v815_v2  ;;  %v1272_v45 = vpack.c.bf16 %v816_v14, %v816_v14  ;;  %v1273_v54 = vpack.c.bf16 %v817_v1, %v817_v1 }
 0x18f   :  { %v1274_v46 = vpack.c.bf16 %v818_v57, %v818_v57  ;;  %v1275_v7 = vpack.c.bf16 %v819_v58, %v819_v58  ;;  %v1276_v52 = vpack.c.bf16 %v820_v63, %v820_v63  ;;  %v1277_v36 = vpack.c.bf16 %v821_v60, %v821_v60 }
 0x190   :  { %1135 = vst.msk [vmem:[%s2800_s4 + $0xe0] sm:$0xf] %vm1078_vm1, %v1270_v0  ;;  %1136 = vst.msk [vmem:[%s2800_s4 + $0xe4] sm:$0xf] %vm1078_vm1, %v1271_v27 }
 0x191   :  { %1137 = vst.msk [vmem:[%s2800_s4 + $0xe8] sm:$0xf] %vm1078_vm1, %v1272_v45  ;;  %1138 = vst.msk [vmem:[%s2800_s4 + $0xec] sm:$0xf] %vm1078_vm1, %v1273_v54 }
 0x192   :  { %1139 = vst.msk [vmem:[%s2800_s4 + $0xf0] sm:$0xf] %vm1078_vm1, %v1274_v46  ;;  %1140 = vst.msk [vmem:[%s2800_s4 + $0xf4] sm:$0xf] %vm1078_vm1, %v1275_v7 }
 0x193   :  { %1141 = vst.msk [vmem:[%s2800_s4 + $0xf8] sm:$0xf] %vm1078_vm1, %v1276_v52  ;;  %1142 = vst.msk [vmem:[%s2800_s4 + $0xfc] sm:$0xf] %vm1078_vm1, %v1277_v36 }

// kernel: generator_forward.15
= control target key start
LH: loop header
LB: loop body
LE: loop exit
PB: predicated region body
PF: predicated region fallthrough
CT: control target
= control target key end

     0   :  { %v29_v0 = vlaneseq  ;;  %s237_s1 = inlined_call_operand.vmem [shape: f32[1,256], index: 1, kind: input, shape index: {}]   ;;  %s238_s0 = inlined_call_operand.vmem [shape: f32[64,256], index: 0, kind: input, shape index: {}]   ;;  %s239_s2 = inlined_call_operand.vmem [shape: f32[64,256], index: 2, kind: output, shape index: {}]  }
   0x1   :  { %v27_v2 = vld [vmem:[%s237_s1] sm:$0x3]  ;;  %v12_v6 = vld [vmem:[%s238_s0 + $0x8] sm:$0xff]  ;;  %v13_v7 = vld [vmem:[%s238_s0 + $0x10] sm:$0xff] }
   0x2   :  { %v30_v1 = vshrl.u32 %v29_v0, 7  ;;  %v11_v5 = vld [vmem:[%s238_s0] sm:$0xff]  ;;  %v14_v10 = vld [vmem:[%s238_s0 + $0x18] sm:$0xff]  ;;  %v16_v15 = vld [vmem:[%s238_s0 + $0x28] sm:$0xff] }
   0x3   :  { %v15_v11 = vld [vmem:[%s238_s0 + $0x20] sm:$0xff]  ;;  %v17_v17 = vld [vmem:[%s238_s0 + $0x30] sm:$0xff]  ;;  %v18_v19 = vld [vmem:[%s238_s0 + $0x38] sm:$0xff] }
   0x4   :  { %v31_v3 = vsub.s32 0, %v30_v1  ;;  %v35_v4 = vsub.s32 1, %v30_v1  ;;  %v19_v21 = vld [vmem:[%s238_s0 + $0x40] sm:$0xff]  ;;  %v20_v23 = vld [vmem:[%s238_s0 + $0x48] sm:$0xff]  ;;  %v21_v25 = vld [vmem:[%s238_s0 + $0x50] sm:$0xff] }
   0x5   :  { %v22_v27 = vld [vmem:[%s238_s0 + $0x58] sm:$0xff]  ;;  %v23_v29 = vld [vmem:[%s238_s0 + $0x60] sm:$0xff]  ;;  %v24_v31 = vld [vmem:[%s238_s0 + $0x68] sm:$0xff] }
   0x6   :  { %v32_v8 = vrot.slane %v27_v2, %v31_v3  ;;  %v36_v9 = vrot.slane %v27_v2, %v35_v4  ;;  %v25_v33 = vld [vmem:[%s238_s0 + $0x70] sm:$0xff]  ;;  %v26_v35 = vld [vmem:[%s238_s0 + $0x78] sm:$0xff] }
   0x8   :  { %v39_v12 = vadd.f32 %v32_v8, %v11_v5  ;;  %v40_v13 = vadd.f32 %v36_v9, %v12_v6  ;;  %v41_v14 = vadd.f32 %v32_v8, %v13_v7  ;;  %v42_v16 = vadd.f32 %v36_v9, %v14_v10 }
   0x9   :  { %v43_v18 = vadd.f32 %v32_v8, %v15_v11  ;;  %v44_v20 = vadd.f32 %v36_v9, %v16_v15  ;;  %v45_v22 = vadd.f32 %v32_v8, %v17_v17  ;;  %v46_v24 = vadd.f32 %v36_v9, %v18_v19 }
   0xa   :  { %91 = vtanh.f32 %v39_v12  ;;  %v47_v26 = vadd.f32 %v32_v8, %v19_v21  ;;  %v48_v28 = vadd.f32 %v36_v9, %v20_v23  ;;  %v49_v30 = vadd.f32 %v32_v8, %v21_v25 }
   0xb   :  { %93 = vtanh.f32 %v40_v13  ;;  %v50_v32 = vadd.f32 %v36_v9, %v22_v27  ;;  %v51_v34 = vadd.f32 %v32_v8, %v23_v29  ;;  %v52_v36 = vadd.f32 %v36_v9, %v24_v31 }
   0xc   :  { %95 = vtanh.f32 %v41_v14  ;;  %v53_v38 = vadd.f32 %v32_v8, %v25_v33  ;;  %v54_v40 = vadd.f32 %v36_v9, %v26_v35 }
   0xd   :  { %97 = vtanh.f32 %v42_v16 }
   0xe   :  { %99 = vtanh.f32 %v43_v18 }
   0xf   :  { %101 = vtanh.f32 %v44_v20 }
  0x10   :  { %103 = vtanh.f32 %v45_v22 }
  0x11   :  { %105 = vtanh.f32 %v46_v24 }
  0x12   :  { %107 = vtanh.f32 %v47_v26 }
  0x13   :  { %109 = vtanh.f32 %v48_v28 }
  0x14   :  { %v92_v37 = vpop.eup %91  ;;  %111 = vtanh.f32 %v49_v30 }
  0x15   :  { %v94_v39 = vpop.eup %93  ;;  %71 = vst [vmem:[%s239_s2] sm:$0xff] %v92_v37  ;;  %113 = vtanh.f32 %v50_v32 }
  0x16   :  { %v96_v41 = vpop.eup %95  ;;  %72 = vst [vmem:[%s239_s2 + $0x8] sm:$0xff] %v94_v39  ;;  %115 = vtanh.f32 %v51_v34 }
  0x17   :  { %v98_v42 = vpop.eup %97  ;;  %73 = vst [vmem:[%s239_s2 + $0x10] sm:$0xff] %v96_v41  ;;  %117 = vtanh.f32 %v52_v36 }
  0x18   :  { %v100_v43 = vpop.eup %99  ;;  %74 = vst [vmem:[%s239_s2 + $0x18] sm:$0xff] %v98_v42  ;;  %119 = vtanh.f32 %v53_v38 }
  0x19   :  { %v102_v44 = vpop.eup %101  ;;  %75 = vst [vmem:[%s239_s2 + $0x20] sm:$0xff] %v100_v43  ;;  %121 = vtanh.f32 %v54_v40 }
  0x1a   :  { %v104_v45 = vpop.eup %103  ;;  %76 = vst [vmem:[%s239_s2 + $0x28] sm:$0xff] %v102_v44 }
  0x1b   :  { %v106_v46 = vpop.eup %105  ;;  %77 = vst [vmem:[%s239_s2 + $0x30] sm:$0xff] %v104_v45 }
  0x1c   :  { %v108_v47 = vpop.eup %107  ;;  %78 = vst [vmem:[%s239_s2 + $0x38] sm:$0xff] %v106_v46 }
  0x1d   :  { %v110_v48 = vpop.eup %109  ;;  %79 = vst [vmem:[%s239_s2 + $0x40] sm:$0xff] %v108_v47 }
  0x1e   :  { %v112_v49 = vpop.eup %111  ;;  %80 = vst [vmem:[%s239_s2 + $0x48] sm:$0xff] %v110_v48 }
  0x1f   :  { %v114_v50 = vpop.eup %113  ;;  %81 = vst [vmem:[%s239_s2 + $0x50] sm:$0xff] %v112_v49 }
  0x20   :  { %v116_v51 = vpop.eup %115  ;;  %82 = vst [vmem:[%s239_s2 + $0x58] sm:$0xff] %v114_v50 }
  0x21   :  { %v118_v52 = vpop.eup %117  ;;  %83 = vst [vmem:[%s239_s2 + $0x60] sm:$0xff] %v116_v51 }
  0x22   :  { %v120_v53 = vpop.eup %119  ;;  %84 = vst [vmem:[%s239_s2 + $0x68] sm:$0xff] %v118_v52 }
  0x23   :  { %v122_v54 = vpop.eup %121  ;;  %85 = vst [vmem:[%s239_s2 + $0x70] sm:$0xff] %v120_v53 }
  0x24   :  { %86 = vst [vmem:[%s239_s2 + $0x78] sm:$0xff] %v122_v54 }

</bundles_post_ra>
